<compile_context>
chip_gen: v5e
topology: v5e:2x2
jax: 0.10.0
libtpu: 0.0.40
codegen_flags: <defaults>
</compile_context>

<pallas_src>
import functools

import jax
import jax.numpy as jnp
from jax.experimental import pallas as pl
from jax.experimental.pallas import tpu as pltpu

_EPS = 1e-5

_PARAM_NAMES = ("g1", "b1", "wpd", "bpd", "g2", "b2", "wgc", "gcb",
                "ggc", "bgc", "g3", "b3", "wpu", "bpu")


def _elu(v):
    # ELU(alpha=1): x for x > 0 else exp(x) - 1 (clamp exp arg so the discarded
    # branch cannot overflow).
    return jnp.where(v > 0, v, jnp.exp(jnp.minimum(v, 0.0)) - 1.0)


def _relu(v):
    return jnp.maximum(v, 0.0)


def _plane_sum(p):
    # (B, X) plane -> (1, 1): lane reduce first, then the tiny batch reduce.
    s = jnp.sum(p, axis=1, keepdims=True)
    return jnp.sum(s, axis=0, keepdims=True)


def _bn_act(p, gamma, beta, n, act):
    """Training-mode BatchNorm on one channel plane + activation.

    Single traversal (sum & sum-of-squares, biased variance, eps=1e-5);
    gamma/beta are scalars read from SMEM so the normalization folds into one
    fused scale/shift.
    """
    inv_n = 1.0 / n
    mean = _plane_sum(p) * inv_n                 # E[x]
    ex2 = _plane_sum(p * p) * inv_n              # E[x^2]
    var = jnp.maximum(ex2 - mean * mean, 0.0)    # guard cancellation
    scale = jax.lax.rsqrt(var + _EPS) * gamma
    shift = beta - mean * scale
    return act(p * scale + shift)


def _channel_mix(planes, p_ref, w_off, cout, b_off=None):
    """1x1 conv as an unrolled VPU FMA over channels (weights from packed SMEM)."""
    cin = len(planes)
    out = []
    for co in range(cout):
        acc = planes[0] * p_ref[w_off + co * cin]
        for ci in range(1, cin):
            acc = acc + planes[ci] * p_ref[w_off + co * cin + ci]
        if b_off is not None:
            acc = acc + p_ref[b_off + co]
        out.append(acc)
    return out


def _mxu_dot(a, b):
    return jnp.dot(a, b, preferred_element_type=jnp.float32,
                   precision=jax.lax.Precision.HIGHEST)


def _kernel(a_ref, x_ref, p_ref, out_ref, *, dilation, W, cin, cmid, offs):
    B, HW = a_ref.shape
    H = HW // W
    n_pix = float(B * HW)
    n_row = float(B * H)

    a = a_ref[...]                               # (B, HW) graph hop distances
    mask_lt = a < dilation                       # torch.where(A < dilation, x, 0)
    keep_f = jnp.where((a == dilation) | (a == -1.0), 1.0, 0.0)  # GraphConv mask

    # Exact 0/1 matrices for the W-axis sum and the broadcast-over-W; built once
    # from 2-D iota (no integer division), used as tiny MXU matmuls to avoid any
    # lane<->sublane reshapes of the feature planes.
    hw_i = jax.lax.broadcasted_iota(jnp.int32, (HW, H), 0)
    h_i = jax.lax.broadcasted_iota(jnp.int32, (HW, H), 1)
    sum_w = jnp.where((hw_i >= h_i * W) & (hw_i < (h_i + 1) * W), 1.0, 0.0)    # (HW, H)
    h_j = jax.lax.broadcasted_iota(jnp.int32, (H, HW), 0)
    hw_j = jax.lax.broadcasted_iota(jnp.int32, (H, HW), 1)
    bcast_w = jnp.where((hw_j >= h_j * W) & (hw_j < (h_j + 1) * W), 1.0, 0.0)  # (H, HW)

    # torch.where(A < dilation, x, 0); these lane-dense planes are the residual.
    ident = [jnp.where(mask_lt, x_ref[:, c, :], 0.0) for c in range(cin)]

    # bn1 + ELU (single-pass batch stats, scalar affine params from SMEM).
    h = [_bn_act(ident[c], p_ref[offs["g1"] + c], p_ref[offs["b1"] + c], n_pix, _elu)
         for c in range(cin)]

    # project_down (1x1 conv, Cin -> Cmid) as VPU FMAs.  Its bias is dropped: a
    # constant per-channel offset immediately followed by bn2 cancels exactly.
    h = _channel_mix(h, p_ref, offs["wpd"], cmid)
    h = [_bn_act(h[c], p_ref[offs["g2"] + c], p_ref[offs["b2"] + c], n_pix, _elu)
         for c in range(cmid)]

    # GraphConv: mask, sum over the neighbour axis W *first* (the 1x1 conv is
    # linear, so sum_W(conv(x)) == conv(sum_W(x))), then the Cmid x Cmid mix.
    # The explicit GraphConv bias is dropped (cancelled by its BatchNorm).
    # Everything after the W-sum runs on lane-dense (B, H) planes.
    g = [_mxu_dot(h[c] * keep_f, sum_w) for c in range(cmid)]      # (B, H)
    g = _channel_mix(g, p_ref, offs["wgc"], cmid)
    g = [_bn_act(g[c], p_ref[offs["ggc"] + c], p_ref[offs["bgc"] + c], n_row, _relu)
         for c in range(cmid)]

    # bn3 + ELU, then project_up (Cmid -> Cin; bias kept — no BN follows it).
    g = [_bn_act(g[c], p_ref[offs["g3"] + c], p_ref[offs["b3"] + c], n_row, _elu)
         for c in range(cmid)]
    g = _channel_mix(g, p_ref, offs["wpu"], cin, b_off=offs["bpu"])  # cin x (B, H)

    # TODO(synk): the original PyTorch adds a (B, C, H) graph branch to the
    # (B, C, H, W) identity, which does not broadcast in torch; as before we
    # realise the residual by broadcasting the graph branch over W.
    for c in range(cin):
        out_ref[:, c, :] = _mxu_dot(g[c], bcast_w) + ident[c]


def graph_bottleneck(inps, params, *, dilation=1):
    """Pallas forward of GraphBottleneck. `inps` = {'graph', 'features'} in NCHW."""
    A = inps["graph"].astype(jnp.float32)        # (B, 1, H, W)
    x = inps["features"].astype(jnp.float32)     # (B, Cin, H, W)
    B, cin, H, W = x.shape
    cmid = params[2].shape[0]
    HW = H * W

    # Lane-dense layout: flatten spatial dims (free for contiguous NCHW) so the
    # minor axis is H*W; A is pre-squeezed to (B, H*W).
    a2 = A.reshape(B, HW)
    x3 = x.reshape(B, cin, HW)

    # Pack every parameter vector/matrix into ONE flat 1-D SMEM array.
    offs, sz = {}, 0
    for name, p in zip(_PARAM_NAMES, params):
        offs[name] = sz
        sz += int(p.size)
    packed = jnp.concatenate([jnp.asarray(p, jnp.float32).reshape(-1) for p in params])

    vmem = pl.BlockSpec(memory_space=pltpu.MemorySpace.VMEM)
    smem = pl.BlockSpec(memory_space=pltpu.MemorySpace.SMEM)

    # Advisory cost estimate so XLA schedules neighbouring ops sensibly.
    flops = int(2 * B * HW * cin * cmid            # project_down FMAs
                + 2 * B * HW * H * (cmid + cin)    # W-sum / W-broadcast matmuls (MXU)
                + 2 * B * H * cmid * cmid          # graph-conv mix (after W-sum)
                + 2 * B * H * cmid * cin           # project_up
                + 12 * B * HW * (cin + cmid))      # masks / BN / ELU elementwise
    transcendentals = int(B * HW * (cin + cmid) + 2 * B * H * cmid)
    bytes_accessed = int(4 * (2 * B * cin * HW + B * HW))

    out = pl.pallas_call(
        functools.partial(_kernel, dilation=float(dilation), W=W,
                          cin=cin, cmid=cmid, offs=offs),
        out_shape=jax.ShapeDtypeStruct((B, cin, HW), jnp.float32),
        in_specs=[vmem, vmem, smem],
        out_specs=vmem,
        compiler_params=pltpu.CompilerParams(vmem_limit_bytes=64 * 1024 * 1024),
        cost_estimate=pl.CostEstimate(flops=flops,
                                      transcendentals=transcendentals,
                                      bytes_accessed=bytes_accessed),
    )(a2, x3, packed)

    return {"graph": inps["graph"], "features": out.reshape(B, cin, H, W)}


# ----------------------------------------------------------------------------
# Pure-JAX reference with the ORIGINAL op order (conv-then-sum, biases kept,
# two-pass BN), used to validate the in-kernel algebraic rewrites.
# ----------------------------------------------------------------------------
def _reference(A, x, params, dilation):
    (g1, b1, wpd, bpd, g2, b2, wgc, gcb, ggc, bgc, g3, b3, wpu, bpu) = params

    def bn(v, gamma, beta, axes):
        mean = jnp.mean(v, axis=axes, keepdims=True)
        var = jnp.mean((v - mean) ** 2, axis=axes, keepdims=True)
        shape = [1] * v.ndim
        shape[1] = v.shape[1]
        return ((v - mean) / jnp.sqrt(var + _EPS)) * gamma.reshape(shape) \
            + beta.reshape(shape)

    def elu(v):
        return jnp.where(v > 0, v, jnp.exp(jnp.minimum(v, 0.0)) - 1.0)

    xz = jnp.where(A < dilation, x, 0.0)                       # A broadcasts over C
    identity = xz
    out = elu(bn(xz, g1, b1, axes=(0, 2, 3)))
    out = jnp.einsum("oc,bchw->bohw", wpd, out,
                     precision="highest") + bpd.reshape(1, -1, 1, 1)
    out = elu(bn(out, g2, b2, axes=(0, 2, 3)))
    # GraphConv (original order): mask -> 1x1 conv -> sum over W -> +bias -> BN -> ReLU
    gx = jnp.where((A == dilation) | (A == -1.0), out, 0.0)
    gx = jnp.einsum("oc,bchw->bohw", wgc, gx, precision="highest")
    gx = jnp.sum(gx, axis=-1)                                  # (B, Cmid, H)
    gx = gx + gcb.reshape(1, -1, 1)
    gx = jnp.maximum(bn(gx, ggc, bgc, axes=(0, 2)), 0.0)
    gx = elu(bn(gx, g3, b3, axes=(0, 2)))
    gx = jnp.einsum("oc,bch->boh", wpu, gx,
                    precision="highest") + bpu.reshape(1, -1, 1)
    return gx[:, :, :, None] + identity                        # broadcast over W


if __name__ == "__main__":
    nin, compress, dilation = 8, 2, 1
    nmid = nin // compress
    B, H, W = 2, 16, 16

    key = jax.random.PRNGKey(0)
    ks = jax.random.split(key, 16)

    def rnd(k, shape, scale=0.1):
        return scale * jax.random.normal(k, shape, dtype=jnp.float32)

    x = jax.random.normal(ks[0], (B, nin, H, W), dtype=jnp.float32)
    # graph hop-distance tensor with values in {-1, 0, 1, 2}
    A = jax.random.randint(ks[1], (B, 1, H, W), -1, 3).astype(jnp.float32)

    params = (
        1.0 + rnd(ks[2], (nin,)),           # bn1 gamma
        rnd(ks[3], (nin,)),                 # bn1 beta
        rnd(ks[4], (nmid, nin), 0.3),       # project_down weight (Cout, Cin)
        rnd(ks[5], (nmid,)),                # project_down bias
        1.0 + rnd(ks[6], (nmid,)),          # bn2 gamma
        rnd(ks[7], (nmid,)),                # bn2 beta
        rnd(ks[8], (nmid, nmid), 0.3),      # graph_conv Conv1d weight (no conv bias)
        jnp.zeros((nmid,), jnp.float32),    # graph_conv explicit bias (init zeros)
        1.0 + rnd(ks[9], (nmid,)),          # graph_conv bn gamma
        rnd(ks[10], (nmid,)),               # graph_conv bn beta
        1.0 + rnd(ks[11], (nmid,)),         # bn3 gamma
        rnd(ks[12], (nmid,)),               # bn3 beta
        rnd(ks[13], (nin, nmid), 0.3),      # project_up weight (Cout, Cin)
        rnd(ks[14], (nin,)),                # project_up bias
    )

    out = graph_bottleneck({"graph": A, "features": x}, params, dilation=dilation)
    feats = jax.block_until_ready(out["features"])
    assert feats.shape == (B, nin, H, W)

    ref = _reference(A, x, params, float(dilation))
    assert jnp.allclose(feats, ref, atol=1e-3, rtol=1e-3)

    print("KERNEL_OK")
</pallas_src>

<mosaic_0001>
module attributes {stable_mosaic.version = 11 : i64} {
  func.func @_kernel(%arg0: memref<2x256xf32, #tpu.memory_space<vmem>>, %arg1: memref<2x8x256xf32, #tpu.memory_space<vmem>>, %arg2: memref<136xf32, #tpu.memory_space<smem>>, %arg3: memref<2x8x256xf32, #tpu.memory_space<vmem>>) attributes {dimension_semantics = [], scalar_prefetch = 0 : i64, scratch_operands = 0 : i64, tpu.core_type = #tpu.core_type<tc>} {
    %c0 = arith.constant 0 : index
    %c0_0 = arith.constant 0 : index
    %0 = vector.load %arg0[%c0, %c0_0] : memref<2x256xf32, #tpu.memory_space<vmem>>, vector<2x256xf32>
    %cst = arith.constant 1.000000e+00 : f32
    %1 = vector.broadcast %cst : f32 to vector<2x256xf32>
    %2 = arith.cmpf olt, %0, %1 : vector<2x256xf32>
    %cst_1 = arith.constant 1.000000e+00 : f32
    %3 = vector.broadcast %cst_1 : f32 to vector<2x256xf32>
    %4 = arith.cmpf oeq, %0, %3 : vector<2x256xf32>
    %cst_2 = arith.constant -1.000000e+00 : f32
    %5 = vector.broadcast %cst_2 : f32 to vector<2x256xf32>
    %6 = arith.cmpf oeq, %0, %5 : vector<2x256xf32>
    %7 = arith.ori %4, %6 : vector<2x256xi1>
    %cst_3 = arith.constant 1.000000e+00 : f32
    %cst_4 = arith.constant 0.000000e+00 : f32
    %8 = vector.broadcast %cst_3 : f32 to vector<2x256xf32>
    %9 = vector.broadcast %cst_4 : f32 to vector<2x256xf32>
    %10 = arith.select %7, %8, %9 : vector<2x256xi1>, vector<2x256xf32>
    %11 = tpu.iota {dimensions = array<i32: 0>} : vector<256x16xi32>
    %12 = tpu.iota {dimensions = array<i32: 1>} : vector<256x16xi32>
    %c16_i32 = arith.constant 16 : i32
    %13 = vector.broadcast %c16_i32 : i32 to vector<256x16xi32>
    %14 = arith.muli %12, %13 : vector<256x16xi32>
    %15 = arith.cmpi sge, %11, %14 : vector<256x16xi32>
    %c1_i32 = arith.constant 1 : i32
    %16 = vector.broadcast %c1_i32 : i32 to vector<256x16xi32>
    %17 = arith.addi %12, %16 : vector<256x16xi32>
    %c16_i32_5 = arith.constant 16 : i32
    %18 = vector.broadcast %c16_i32_5 : i32 to vector<256x16xi32>
    %19 = arith.muli %17, %18 : vector<256x16xi32>
    %20 = arith.cmpi slt, %11, %19 : vector<256x16xi32>
    %21 = arith.andi %15, %20 : vector<256x16xi1>
    %cst_6 = arith.constant 1.000000e+00 : f32
    %cst_7 = arith.constant 0.000000e+00 : f32
    %22 = vector.broadcast %cst_6 : f32 to vector<256x16xf32>
    %23 = vector.broadcast %cst_7 : f32 to vector<256x16xf32>
    %24 = arith.select %21, %22, %23 : vector<256x16xi1>, vector<256x16xf32>
    %25 = tpu.iota {dimensions = array<i32: 0>} : vector<16x256xi32>
    %26 = tpu.iota {dimensions = array<i32: 1>} : vector<16x256xi32>
    %c16_i32_8 = arith.constant 16 : i32
    %27 = vector.broadcast %c16_i32_8 : i32 to vector<16x256xi32>
    %28 = arith.muli %25, %27 : vector<16x256xi32>
    %29 = arith.cmpi sge, %26, %28 : vector<16x256xi32>
    %c1_i32_9 = arith.constant 1 : i32
    %30 = vector.broadcast %c1_i32_9 : i32 to vector<16x256xi32>
    %31 = arith.addi %25, %30 : vector<16x256xi32>
    %c16_i32_10 = arith.constant 16 : i32
    %32 = vector.broadcast %c16_i32_10 : i32 to vector<16x256xi32>
    %33 = arith.muli %31, %32 : vector<16x256xi32>
    %34 = arith.cmpi slt, %26, %33 : vector<16x256xi32>
    %35 = arith.andi %29, %34 : vector<16x256xi1>
    %cst_11 = arith.constant 1.000000e+00 : f32
    %cst_12 = arith.constant 0.000000e+00 : f32
    %36 = vector.broadcast %cst_11 : f32 to vector<16x256xf32>
    %37 = vector.broadcast %cst_12 : f32 to vector<16x256xf32>
    %38 = arith.select %35, %36, %37 : vector<16x256xi1>, vector<16x256xf32>
    %c0_13 = arith.constant 0 : index
    %c0_14 = arith.constant 0 : index
    %c0_15 = arith.constant 0 : index
    %39 = vector.load %arg1[%c0_13, %c0_14, %c0_15] : memref<2x8x256xf32, #tpu.memory_space<vmem>>, vector<2x1x256xf32>
    %40 = vector.shape_cast %39 : vector<2x1x256xf32> to vector<2x256xf32>
    %cst_16 = arith.constant 0.000000e+00 : f32
    %41 = vector.broadcast %cst_16 : f32 to vector<2x256xf32>
    %42 = arith.select %2, %40, %41 : vector<2x256xi1>, vector<2x256xf32>
    %c0_17 = arith.constant 0 : index
    %c1 = arith.constant 1 : index
    %c0_18 = arith.constant 0 : index
    %43 = vector.load %arg1[%c0_17, %c1, %c0_18] : memref<2x8x256xf32, #tpu.memory_space<vmem>>, vector<2x1x256xf32>
    %44 = vector.shape_cast %43 : vector<2x1x256xf32> to vector<2x256xf32>
    %cst_19 = arith.constant 0.000000e+00 : f32
    %45 = vector.broadcast %cst_19 : f32 to vector<2x256xf32>
    %46 = arith.select %2, %44, %45 : vector<2x256xi1>, vector<2x256xf32>
    %c0_20 = arith.constant 0 : index
    %c2 = arith.constant 2 : index
    %c0_21 = arith.constant 0 : index
    %47 = vector.load %arg1[%c0_20, %c2, %c0_21] : memref<2x8x256xf32, #tpu.memory_space<vmem>>, vector<2x1x256xf32>
    %48 = vector.shape_cast %47 : vector<2x1x256xf32> to vector<2x256xf32>
    %cst_22 = arith.constant 0.000000e+00 : f32
    %49 = vector.broadcast %cst_22 : f32 to vector<2x256xf32>
    %50 = arith.select %2, %48, %49 : vector<2x256xi1>, vector<2x256xf32>
    %c0_23 = arith.constant 0 : index
    %c3 = arith.constant 3 : index
    %c0_24 = arith.constant 0 : index
    %51 = vector.load %arg1[%c0_23, %c3, %c0_24] : memref<2x8x256xf32, #tpu.memory_space<vmem>>, vector<2x1x256xf32>
    %52 = vector.shape_cast %51 : vector<2x1x256xf32> to vector<2x256xf32>
    %cst_25 = arith.constant 0.000000e+00 : f32
    %53 = vector.broadcast %cst_25 : f32 to vector<2x256xf32>
    %54 = arith.select %2, %52, %53 : vector<2x256xi1>, vector<2x256xf32>
    %c0_26 = arith.constant 0 : index
    %c4 = arith.constant 4 : index
    %c0_27 = arith.constant 0 : index
    %55 = vector.load %arg1[%c0_26, %c4, %c0_27] : memref<2x8x256xf32, #tpu.memory_space<vmem>>, vector<2x1x256xf32>
    %56 = vector.shape_cast %55 : vector<2x1x256xf32> to vector<2x256xf32>
    %cst_28 = arith.constant 0.000000e+00 : f32
    %57 = vector.broadcast %cst_28 : f32 to vector<2x256xf32>
    %58 = arith.select %2, %56, %57 : vector<2x256xi1>, vector<2x256xf32>
    %c0_29 = arith.constant 0 : index
    %c5 = arith.constant 5 : index
    %c0_30 = arith.constant 0 : index
    %59 = vector.load %arg1[%c0_29, %c5, %c0_30] : memref<2x8x256xf32, #tpu.memory_space<vmem>>, vector<2x1x256xf32>
    %60 = vector.shape_cast %59 : vector<2x1x256xf32> to vector<2x256xf32>
    %cst_31 = arith.constant 0.000000e+00 : f32
    %61 = vector.broadcast %cst_31 : f32 to vector<2x256xf32>
    %62 = arith.select %2, %60, %61 : vector<2x256xi1>, vector<2x256xf32>
    %c0_32 = arith.constant 0 : index
    %c6 = arith.constant 6 : index
    %c0_33 = arith.constant 0 : index
    %63 = vector.load %arg1[%c0_32, %c6, %c0_33] : memref<2x8x256xf32, #tpu.memory_space<vmem>>, vector<2x1x256xf32>
    %64 = vector.shape_cast %63 : vector<2x1x256xf32> to vector<2x256xf32>
    %cst_34 = arith.constant 0.000000e+00 : f32
    %65 = vector.broadcast %cst_34 : f32 to vector<2x256xf32>
    %66 = arith.select %2, %64, %65 : vector<2x256xi1>, vector<2x256xf32>
    %c0_35 = arith.constant 0 : index
    %c7 = arith.constant 7 : index
    %c0_36 = arith.constant 0 : index
    %67 = vector.load %arg1[%c0_35, %c7, %c0_36] : memref<2x8x256xf32, #tpu.memory_space<vmem>>, vector<2x1x256xf32>
    %68 = vector.shape_cast %67 : vector<2x1x256xf32> to vector<2x256xf32>
    %cst_37 = arith.constant 0.000000e+00 : f32
    %69 = vector.broadcast %cst_37 : f32 to vector<2x256xf32>
    %70 = arith.select %2, %68, %69 : vector<2x256xi1>, vector<2x256xf32>
    %c0_38 = arith.constant 0 : index
    %71 = memref.load %arg2[%c0_38] : memref<136xf32, #tpu.memory_space<smem>>
    %c8 = arith.constant 8 : index
    %72 = memref.load %arg2[%c8] : memref<136xf32, #tpu.memory_space<smem>>
    %cst_39 = arith.constant dense<0.000000e+00> : vector<2xf32>
    %73 = vector.multi_reduction <add>, %42, %cst_39 [1] : vector<2x256xf32> to vector<2xf32>
    %74 = vector.shape_cast %73 : vector<2xf32> to vector<2x1xf32>
    %cst_40 = arith.constant dense<0.000000e+00> : vector<1xf32>
    %75 = vector.multi_reduction <add>, %74, %cst_40 [0] : vector<2x1xf32> to vector<1xf32>
    %76 = vector.shape_cast %75 : vector<1xf32> to vector<1x1xf32>
    %cst_41 = arith.constant 0.001953125 : f32
    %77 = vector.broadcast %cst_41 : f32 to vector<1x1xf32>
    %78 = arith.mulf %76, %77 : vector<1x1xf32>
    %79 = arith.mulf %42, %42 : vector<2x256xf32>
    %cst_42 = arith.constant dense<0.000000e+00> : vector<2xf32>
    %80 = vector.multi_reduction <add>, %79, %cst_42 [1] : vector<2x256xf32> to vector<2xf32>
    %81 = vector.shape_cast %80 : vector<2xf32> to vector<2x1xf32>
    %cst_43 = arith.constant dense<0.000000e+00> : vector<1xf32>
    %82 = vector.multi_reduction <add>, %81, %cst_43 [0] : vector<2x1xf32> to vector<1xf32>
    %83 = vector.shape_cast %82 : vector<1xf32> to vector<1x1xf32>
    %cst_44 = arith.constant 0.001953125 : f32
    %84 = vector.broadcast %cst_44 : f32 to vector<1x1xf32>
    %85 = arith.mulf %83, %84 : vector<1x1xf32>
    %86 = arith.mulf %78, %78 : vector<1x1xf32>
    %87 = arith.subf %85, %86 : vector<1x1xf32>
    %cst_45 = arith.constant 0.000000e+00 : f32
    %88 = vector.broadcast %cst_45 : f32 to vector<1x1xf32>
    %89 = arith.maximumf %87, %88 : vector<1x1xf32>
    %cst_46 = arith.constant 9.99999974E-6 : f32
    %90 = vector.broadcast %cst_46 : f32 to vector<1x1xf32>
    %91 = arith.addf %89, %90 : vector<1x1xf32>
    %92 = math.rsqrt %91 : vector<1x1xf32>
    %93 = vector.broadcast %71 : f32 to vector<1x1xf32>
    %94 = arith.mulf %92, %93 : vector<1x1xf32>
    %95 = arith.mulf %78, %94 : vector<1x1xf32>
    %96 = vector.broadcast %72 : f32 to vector<1x1xf32>
    %97 = arith.subf %96, %95 : vector<1x1xf32>
    %98 = vector.broadcast %94 : vector<1x1xf32> to vector<2x256xf32>
    %99 = arith.mulf %42, %98 : vector<2x256xf32>
    %100 = vector.broadcast %97 : vector<1x1xf32> to vector<2x256xf32>
    %101 = arith.addf %99, %100 : vector<2x256xf32>
    %cst_47 = arith.constant 0.000000e+00 : f32
    %102 = vector.broadcast %cst_47 : f32 to vector<2x256xf32>
    %103 = arith.cmpf ogt, %101, %102 : vector<2x256xf32>
    %cst_48 = arith.constant 0.000000e+00 : f32
    %104 = vector.broadcast %cst_48 : f32 to vector<2x256xf32>
    %105 = arith.minimumf %101, %104 : vector<2x256xf32>
    %106 = math.exp %105 : vector<2x256xf32>
    %cst_49 = arith.constant 1.000000e+00 : f32
    %107 = vector.broadcast %cst_49 : f32 to vector<2x256xf32>
    %108 = arith.subf %106, %107 : vector<2x256xf32>
    %109 = arith.select %103, %101, %108 : vector<2x256xi1>, vector<2x256xf32>
    %c1_50 = arith.constant 1 : index
    %110 = memref.load %arg2[%c1_50] : memref<136xf32, #tpu.memory_space<smem>>
    %c9 = arith.constant 9 : index
    %111 = memref.load %arg2[%c9] : memref<136xf32, #tpu.memory_space<smem>>
    %cst_51 = arith.constant dense<0.000000e+00> : vector<2xf32>
    %112 = vector.multi_reduction <add>, %46, %cst_51 [1] : vector<2x256xf32> to vector<2xf32>
    %113 = vector.shape_cast %112 : vector<2xf32> to vector<2x1xf32>
    %cst_52 = arith.constant dense<0.000000e+00> : vector<1xf32>
    %114 = vector.multi_reduction <add>, %113, %cst_52 [0] : vector<2x1xf32> to vector<1xf32>
    %115 = vector.shape_cast %114 : vector<1xf32> to vector<1x1xf32>
    %cst_53 = arith.constant 0.001953125 : f32
    %116 = vector.broadcast %cst_53 : f32 to vector<1x1xf32>
    %117 = arith.mulf %115, %116 : vector<1x1xf32>
    %118 = arith.mulf %46, %46 : vector<2x256xf32>
    %cst_54 = arith.constant dense<0.000000e+00> : vector<2xf32>
    %119 = vector.multi_reduction <add>, %118, %cst_54 [1] : vector<2x256xf32> to vector<2xf32>
    %120 = vector.shape_cast %119 : vector<2xf32> to vector<2x1xf32>
    %cst_55 = arith.constant dense<0.000000e+00> : vector<1xf32>
    %121 = vector.multi_reduction <add>, %120, %cst_55 [0] : vector<2x1xf32> to vector<1xf32>
    %122 = vector.shape_cast %121 : vector<1xf32> to vector<1x1xf32>
    %cst_56 = arith.constant 0.001953125 : f32
    %123 = vector.broadcast %cst_56 : f32 to vector<1x1xf32>
    %124 = arith.mulf %122, %123 : vector<1x1xf32>
    %125 = arith.mulf %117, %117 : vector<1x1xf32>
    %126 = arith.subf %124, %125 : vector<1x1xf32>
    %cst_57 = arith.constant 0.000000e+00 : f32
    %127 = vector.broadcast %cst_57 : f32 to vector<1x1xf32>
    %128 = arith.maximumf %126, %127 : vector<1x1xf32>
    %cst_58 = arith.constant 9.99999974E-6 : f32
    %129 = vector.broadcast %cst_58 : f32 to vector<1x1xf32>
    %130 = arith.addf %128, %129 : vector<1x1xf32>
    %131 = math.rsqrt %130 : vector<1x1xf32>
    %132 = vector.broadcast %110 : f32 to vector<1x1xf32>
    %133 = arith.mulf %131, %132 : vector<1x1xf32>
    %134 = arith.mulf %117, %133 : vector<1x1xf32>
    %135 = vector.broadcast %111 : f32 to vector<1x1xf32>
    %136 = arith.subf %135, %134 : vector<1x1xf32>
    %137 = vector.broadcast %133 : vector<1x1xf32> to vector<2x256xf32>
    %138 = arith.mulf %46, %137 : vector<2x256xf32>
    %139 = vector.broadcast %136 : vector<1x1xf32> to vector<2x256xf32>
    %140 = arith.addf %138, %139 : vector<2x256xf32>
    %cst_59 = arith.constant 0.000000e+00 : f32
    %141 = vector.broadcast %cst_59 : f32 to vector<2x256xf32>
    %142 = arith.cmpf ogt, %140, %141 : vector<2x256xf32>
    %cst_60 = arith.constant 0.000000e+00 : f32
    %143 = vector.broadcast %cst_60 : f32 to vector<2x256xf32>
    %144 = arith.minimumf %140, %143 : vector<2x256xf32>
    %145 = math.exp %144 : vector<2x256xf32>
    %cst_61 = arith.constant 1.000000e+00 : f32
    %146 = vector.broadcast %cst_61 : f32 to vector<2x256xf32>
    %147 = arith.subf %145, %146 : vector<2x256xf32>
    %148 = arith.select %142, %140, %147 : vector<2x256xi1>, vector<2x256xf32>
    %c2_62 = arith.constant 2 : index
    %149 = memref.load %arg2[%c2_62] : memref<136xf32, #tpu.memory_space<smem>>
    %c10 = arith.constant 10 : index
    %150 = memref.load %arg2[%c10] : memref<136xf32, #tpu.memory_space<smem>>
    %cst_63 = arith.constant dense<0.000000e+00> : vector<2xf32>
    %151 = vector.multi_reduction <add>, %50, %cst_63 [1] : vector<2x256xf32> to vector<2xf32>
    %152 = vector.shape_cast %151 : vector<2xf32> to vector<2x1xf32>
    %cst_64 = arith.constant dense<0.000000e+00> : vector<1xf32>
    %153 = vector.multi_reduction <add>, %152, %cst_64 [0] : vector<2x1xf32> to vector<1xf32>
    %154 = vector.shape_cast %153 : vector<1xf32> to vector<1x1xf32>
    %cst_65 = arith.constant 0.001953125 : f32
    %155 = vector.broadcast %cst_65 : f32 to vector<1x1xf32>
    %156 = arith.mulf %154, %155 : vector<1x1xf32>
    %157 = arith.mulf %50, %50 : vector<2x256xf32>
    %cst_66 = arith.constant dense<0.000000e+00> : vector<2xf32>
    %158 = vector.multi_reduction <add>, %157, %cst_66 [1] : vector<2x256xf32> to vector<2xf32>
    %159 = vector.shape_cast %158 : vector<2xf32> to vector<2x1xf32>
    %cst_67 = arith.constant dense<0.000000e+00> : vector<1xf32>
    %160 = vector.multi_reduction <add>, %159, %cst_67 [0] : vector<2x1xf32> to vector<1xf32>
    %161 = vector.shape_cast %160 : vector<1xf32> to vector<1x1xf32>
    %cst_68 = arith.constant 0.001953125 : f32
    %162 = vector.broadcast %cst_68 : f32 to vector<1x1xf32>
    %163 = arith.mulf %161, %162 : vector<1x1xf32>
    %164 = arith.mulf %156, %156 : vector<1x1xf32>
    %165 = arith.subf %163, %164 : vector<1x1xf32>
    %cst_69 = arith.constant 0.000000e+00 : f32
    %166 = vector.broadcast %cst_69 : f32 to vector<1x1xf32>
    %167 = arith.maximumf %165, %166 : vector<1x1xf32>
    %cst_70 = arith.constant 9.99999974E-6 : f32
    %168 = vector.broadcast %cst_70 : f32 to vector<1x1xf32>
    %169 = arith.addf %167, %168 : vector<1x1xf32>
    %170 = math.rsqrt %169 : vector<1x1xf32>
    %171 = vector.broadcast %149 : f32 to vector<1x1xf32>
    %172 = arith.mulf %170, %171 : vector<1x1xf32>
    %173 = arith.mulf %156, %172 : vector<1x1xf32>
    %174 = vector.broadcast %150 : f32 to vector<1x1xf32>
    %175 = arith.subf %174, %173 : vector<1x1xf32>
    %176 = vector.broadcast %172 : vector<1x1xf32> to vector<2x256xf32>
    %177 = arith.mulf %50, %176 : vector<2x256xf32>
    %178 = vector.broadcast %175 : vector<1x1xf32> to vector<2x256xf32>
    %179 = arith.addf %177, %178 : vector<2x256xf32>
    %cst_71 = arith.constant 0.000000e+00 : f32
    %180 = vector.broadcast %cst_71 : f32 to vector<2x256xf32>
    %181 = arith.cmpf ogt, %179, %180 : vector<2x256xf32>
    %cst_72 = arith.constant 0.000000e+00 : f32
    %182 = vector.broadcast %cst_72 : f32 to vector<2x256xf32>
    %183 = arith.minimumf %179, %182 : vector<2x256xf32>
    %184 = math.exp %183 : vector<2x256xf32>
    %cst_73 = arith.constant 1.000000e+00 : f32
    %185 = vector.broadcast %cst_73 : f32 to vector<2x256xf32>
    %186 = arith.subf %184, %185 : vector<2x256xf32>
    %187 = arith.select %181, %179, %186 : vector<2x256xi1>, vector<2x256xf32>
    %c3_74 = arith.constant 3 : index
    %188 = memref.load %arg2[%c3_74] : memref<136xf32, #tpu.memory_space<smem>>
    %c11 = arith.constant 11 : index
    %189 = memref.load %arg2[%c11] : memref<136xf32, #tpu.memory_space<smem>>
    %cst_75 = arith.constant dense<0.000000e+00> : vector<2xf32>
    %190 = vector.multi_reduction <add>, %54, %cst_75 [1] : vector<2x256xf32> to vector<2xf32>
    %191 = vector.shape_cast %190 : vector<2xf32> to vector<2x1xf32>
    %cst_76 = arith.constant dense<0.000000e+00> : vector<1xf32>
    %192 = vector.multi_reduction <add>, %191, %cst_76 [0] : vector<2x1xf32> to vector<1xf32>
    %193 = vector.shape_cast %192 : vector<1xf32> to vector<1x1xf32>
    %cst_77 = arith.constant 0.001953125 : f32
    %194 = vector.broadcast %cst_77 : f32 to vector<1x1xf32>
    %195 = arith.mulf %193, %194 : vector<1x1xf32>
    %196 = arith.mulf %54, %54 : vector<2x256xf32>
    %cst_78 = arith.constant dense<0.000000e+00> : vector<2xf32>
    %197 = vector.multi_reduction <add>, %196, %cst_78 [1] : vector<2x256xf32> to vector<2xf32>
    %198 = vector.shape_cast %197 : vector<2xf32> to vector<2x1xf32>
    %cst_79 = arith.constant dense<0.000000e+00> : vector<1xf32>
    %199 = vector.multi_reduction <add>, %198, %cst_79 [0] : vector<2x1xf32> to vector<1xf32>
    %200 = vector.shape_cast %199 : vector<1xf32> to vector<1x1xf32>
    %cst_80 = arith.constant 0.001953125 : f32
    %201 = vector.broadcast %cst_80 : f32 to vector<1x1xf32>
    %202 = arith.mulf %200, %201 : vector<1x1xf32>
    %203 = arith.mulf %195, %195 : vector<1x1xf32>
    %204 = arith.subf %202, %203 : vector<1x1xf32>
    %cst_81 = arith.constant 0.000000e+00 : f32
    %205 = vector.broadcast %cst_81 : f32 to vector<1x1xf32>
    %206 = arith.maximumf %204, %205 : vector<1x1xf32>
    %cst_82 = arith.constant 9.99999974E-6 : f32
    %207 = vector.broadcast %cst_82 : f32 to vector<1x1xf32>
    %208 = arith.addf %206, %207 : vector<1x1xf32>
    %209 = math.rsqrt %208 : vector<1x1xf32>
    %210 = vector.broadcast %188 : f32 to vector<1x1xf32>
    %211 = arith.mulf %209, %210 : vector<1x1xf32>
    %212 = arith.mulf %195, %211 : vector<1x1xf32>
    %213 = vector.broadcast %189 : f32 to vector<1x1xf32>
    %214 = arith.subf %213, %212 : vector<1x1xf32>
    %215 = vector.broadcast %211 : vector<1x1xf32> to vector<2x256xf32>
    %216 = arith.mulf %54, %215 : vector<2x256xf32>
    %217 = vector.broadcast %214 : vector<1x1xf32> to vector<2x256xf32>
    %218 = arith.addf %216, %217 : vector<2x256xf32>
    %cst_83 = arith.constant 0.000000e+00 : f32
    %219 = vector.broadcast %cst_83 : f32 to vector<2x256xf32>
    %220 = arith.cmpf ogt, %218, %219 : vector<2x256xf32>
    %cst_84 = arith.constant 0.000000e+00 : f32
    %221 = vector.broadcast %cst_84 : f32 to vector<2x256xf32>
    %222 = arith.minimumf %218, %221 : vector<2x256xf32>
    %223 = math.exp %222 : vector<2x256xf32>
    %cst_85 = arith.constant 1.000000e+00 : f32
    %224 = vector.broadcast %cst_85 : f32 to vector<2x256xf32>
    %225 = arith.subf %223, %224 : vector<2x256xf32>
    %226 = arith.select %220, %218, %225 : vector<2x256xi1>, vector<2x256xf32>
    %c4_86 = arith.constant 4 : index
    %227 = memref.load %arg2[%c4_86] : memref<136xf32, #tpu.memory_space<smem>>
    %c12 = arith.constant 12 : index
    %228 = memref.load %arg2[%c12] : memref<136xf32, #tpu.memory_space<smem>>
    %cst_87 = arith.constant dense<0.000000e+00> : vector<2xf32>
    %229 = vector.multi_reduction <add>, %58, %cst_87 [1] : vector<2x256xf32> to vector<2xf32>
    %230 = vector.shape_cast %229 : vector<2xf32> to vector<2x1xf32>
    %cst_88 = arith.constant dense<0.000000e+00> : vector<1xf32>
    %231 = vector.multi_reduction <add>, %230, %cst_88 [0] : vector<2x1xf32> to vector<1xf32>
    %232 = vector.shape_cast %231 : vector<1xf32> to vector<1x1xf32>
    %cst_89 = arith.constant 0.001953125 : f32
    %233 = vector.broadcast %cst_89 : f32 to vector<1x1xf32>
    %234 = arith.mulf %232, %233 : vector<1x1xf32>
    %235 = arith.mulf %58, %58 : vector<2x256xf32>
    %cst_90 = arith.constant dense<0.000000e+00> : vector<2xf32>
    %236 = vector.multi_reduction <add>, %235, %cst_90 [1] : vector<2x256xf32> to vector<2xf32>
    %237 = vector.shape_cast %236 : vector<2xf32> to vector<2x1xf32>
    %cst_91 = arith.constant dense<0.000000e+00> : vector<1xf32>
    %238 = vector.multi_reduction <add>, %237, %cst_91 [0] : vector<2x1xf32> to vector<1xf32>
    %239 = vector.shape_cast %238 : vector<1xf32> to vector<1x1xf32>
    %cst_92 = arith.constant 0.001953125 : f32
    %240 = vector.broadcast %cst_92 : f32 to vector<1x1xf32>
    %241 = arith.mulf %239, %240 : vector<1x1xf32>
    %242 = arith.mulf %234, %234 : vector<1x1xf32>
    %243 = arith.subf %241, %242 : vector<1x1xf32>
    %cst_93 = arith.constant 0.000000e+00 : f32
    %244 = vector.broadcast %cst_93 : f32 to vector<1x1xf32>
    %245 = arith.maximumf %243, %244 : vector<1x1xf32>
    %cst_94 = arith.constant 9.99999974E-6 : f32
    %246 = vector.broadcast %cst_94 : f32 to vector<1x1xf32>
    %247 = arith.addf %245, %246 : vector<1x1xf32>
    %248 = math.rsqrt %247 : vector<1x1xf32>
    %249 = vector.broadcast %227 : f32 to vector<1x1xf32>
    %250 = arith.mulf %248, %249 : vector<1x1xf32>
    %251 = arith.mulf %234, %250 : vector<1x1xf32>
    %252 = vector.broadcast %228 : f32 to vector<1x1xf32>
    %253 = arith.subf %252, %251 : vector<1x1xf32>
    %254 = vector.broadcast %250 : vector<1x1xf32> to vector<2x256xf32>
    %255 = arith.mulf %58, %254 : vector<2x256xf32>
    %256 = vector.broadcast %253 : vector<1x1xf32> to vector<2x256xf32>
    %257 = arith.addf %255, %256 : vector<2x256xf32>
    %cst_95 = arith.constant 0.000000e+00 : f32
    %258 = vector.broadcast %cst_95 : f32 to vector<2x256xf32>
    %259 = arith.cmpf ogt, %257, %258 : vector<2x256xf32>
    %cst_96 = arith.constant 0.000000e+00 : f32
    %260 = vector.broadcast %cst_96 : f32 to vector<2x256xf32>
    %261 = arith.minimumf %257, %260 : vector<2x256xf32>
    %262 = math.exp %261 : vector<2x256xf32>
    %cst_97 = arith.constant 1.000000e+00 : f32
    %263 = vector.broadcast %cst_97 : f32 to vector<2x256xf32>
    %264 = arith.subf %262, %263 : vector<2x256xf32>
    %265 = arith.select %259, %257, %264 : vector<2x256xi1>, vector<2x256xf32>
    %c5_98 = arith.constant 5 : index
    %266 = memref.load %arg2[%c5_98] : memref<136xf32, #tpu.memory_space<smem>>
    %c13 = arith.constant 13 : index
    %267 = memref.load %arg2[%c13] : memref<136xf32, #tpu.memory_space<smem>>
    %cst_99 = arith.constant dense<0.000000e+00> : vector<2xf32>
    %268 = vector.multi_reduction <add>, %62, %cst_99 [1] : vector<2x256xf32> to vector<2xf32>
    %269 = vector.shape_cast %268 : vector<2xf32> to vector<2x1xf32>
    %cst_100 = arith.constant dense<0.000000e+00> : vector<1xf32>
    %270 = vector.multi_reduction <add>, %269, %cst_100 [0] : vector<2x1xf32> to vector<1xf32>
    %271 = vector.shape_cast %270 : vector<1xf32> to vector<1x1xf32>
    %cst_101 = arith.constant 0.001953125 : f32
    %272 = vector.broadcast %cst_101 : f32 to vector<1x1xf32>
    %273 = arith.mulf %271, %272 : vector<1x1xf32>
    %274 = arith.mulf %62, %62 : vector<2x256xf32>
    %cst_102 = arith.constant dense<0.000000e+00> : vector<2xf32>
    %275 = vector.multi_reduction <add>, %274, %cst_102 [1] : vector<2x256xf32> to vector<2xf32>
    %276 = vector.shape_cast %275 : vector<2xf32> to vector<2x1xf32>
    %cst_103 = arith.constant dense<0.000000e+00> : vector<1xf32>
    %277 = vector.multi_reduction <add>, %276, %cst_103 [0] : vector<2x1xf32> to vector<1xf32>
    %278 = vector.shape_cast %277 : vector<1xf32> to vector<1x1xf32>
    %cst_104 = arith.constant 0.001953125 : f32
    %279 = vector.broadcast %cst_104 : f32 to vector<1x1xf32>
    %280 = arith.mulf %278, %279 : vector<1x1xf32>
    %281 = arith.mulf %273, %273 : vector<1x1xf32>
    %282 = arith.subf %280, %281 : vector<1x1xf32>
    %cst_105 = arith.constant 0.000000e+00 : f32
    %283 = vector.broadcast %cst_105 : f32 to vector<1x1xf32>
    %284 = arith.maximumf %282, %283 : vector<1x1xf32>
    %cst_106 = arith.constant 9.99999974E-6 : f32
    %285 = vector.broadcast %cst_106 : f32 to vector<1x1xf32>
    %286 = arith.addf %284, %285 : vector<1x1xf32>
    %287 = math.rsqrt %286 : vector<1x1xf32>
    %288 = vector.broadcast %266 : f32 to vector<1x1xf32>
    %289 = arith.mulf %287, %288 : vector<1x1xf32>
    %290 = arith.mulf %273, %289 : vector<1x1xf32>
    %291 = vector.broadcast %267 : f32 to vector<1x1xf32>
    %292 = arith.subf %291, %290 : vector<1x1xf32>
    %293 = vector.broadcast %289 : vector<1x1xf32> to vector<2x256xf32>
    %294 = arith.mulf %62, %293 : vector<2x256xf32>
    %295 = vector.broadcast %292 : vector<1x1xf32> to vector<2x256xf32>
    %296 = arith.addf %294, %295 : vector<2x256xf32>
    %cst_107 = arith.constant 0.000000e+00 : f32
    %297 = vector.broadcast %cst_107 : f32 to vector<2x256xf32>
    %298 = arith.cmpf ogt, %296, %297 : vector<2x256xf32>
    %cst_108 = arith.constant 0.000000e+00 : f32
    %299 = vector.broadcast %cst_108 : f32 to vector<2x256xf32>
    %300 = arith.minimumf %296, %299 : vector<2x256xf32>
    %301 = math.exp %300 : vector<2x256xf32>
    %cst_109 = arith.constant 1.000000e+00 : f32
    %302 = vector.broadcast %cst_109 : f32 to vector<2x256xf32>
    %303 = arith.subf %301, %302 : vector<2x256xf32>
    %304 = arith.select %298, %296, %303 : vector<2x256xi1>, vector<2x256xf32>
    %c6_110 = arith.constant 6 : index
    %305 = memref.load %arg2[%c6_110] : memref<136xf32, #tpu.memory_space<smem>>
    %c14 = arith.constant 14 : index
    %306 = memref.load %arg2[%c14] : memref<136xf32, #tpu.memory_space<smem>>
    %cst_111 = arith.constant dense<0.000000e+00> : vector<2xf32>
    %307 = vector.multi_reduction <add>, %66, %cst_111 [1] : vector<2x256xf32> to vector<2xf32>
    %308 = vector.shape_cast %307 : vector<2xf32> to vector<2x1xf32>
    %cst_112 = arith.constant dense<0.000000e+00> : vector<1xf32>
    %309 = vector.multi_reduction <add>, %308, %cst_112 [0] : vector<2x1xf32> to vector<1xf32>
    %310 = vector.shape_cast %309 : vector<1xf32> to vector<1x1xf32>
    %cst_113 = arith.constant 0.001953125 : f32
    %311 = vector.broadcast %cst_113 : f32 to vector<1x1xf32>
    %312 = arith.mulf %310, %311 : vector<1x1xf32>
    %313 = arith.mulf %66, %66 : vector<2x256xf32>
    %cst_114 = arith.constant dense<0.000000e+00> : vector<2xf32>
    %314 = vector.multi_reduction <add>, %313, %cst_114 [1] : vector<2x256xf32> to vector<2xf32>
    %315 = vector.shape_cast %314 : vector<2xf32> to vector<2x1xf32>
    %cst_115 = arith.constant dense<0.000000e+00> : vector<1xf32>
    %316 = vector.multi_reduction <add>, %315, %cst_115 [0] : vector<2x1xf32> to vector<1xf32>
    %317 = vector.shape_cast %316 : vector<1xf32> to vector<1x1xf32>
    %cst_116 = arith.constant 0.001953125 : f32
    %318 = vector.broadcast %cst_116 : f32 to vector<1x1xf32>
    %319 = arith.mulf %317, %318 : vector<1x1xf32>
    %320 = arith.mulf %312, %312 : vector<1x1xf32>
    %321 = arith.subf %319, %320 : vector<1x1xf32>
    %cst_117 = arith.constant 0.000000e+00 : f32
    %322 = vector.broadcast %cst_117 : f32 to vector<1x1xf32>
    %323 = arith.maximumf %321, %322 : vector<1x1xf32>
    %cst_118 = arith.constant 9.99999974E-6 : f32
    %324 = vector.broadcast %cst_118 : f32 to vector<1x1xf32>
    %325 = arith.addf %323, %324 : vector<1x1xf32>
    %326 = math.rsqrt %325 : vector<1x1xf32>
    %327 = vector.broadcast %305 : f32 to vector<1x1xf32>
    %328 = arith.mulf %326, %327 : vector<1x1xf32>
    %329 = arith.mulf %312, %328 : vector<1x1xf32>
    %330 = vector.broadcast %306 : f32 to vector<1x1xf32>
    %331 = arith.subf %330, %329 : vector<1x1xf32>
    %332 = vector.broadcast %328 : vector<1x1xf32> to vector<2x256xf32>
    %333 = arith.mulf %66, %332 : vector<2x256xf32>
    %334 = vector.broadcast %331 : vector<1x1xf32> to vector<2x256xf32>
    %335 = arith.addf %333, %334 : vector<2x256xf32>
    %cst_119 = arith.constant 0.000000e+00 : f32
    %336 = vector.broadcast %cst_119 : f32 to vector<2x256xf32>
    %337 = arith.cmpf ogt, %335, %336 : vector<2x256xf32>
    %cst_120 = arith.constant 0.000000e+00 : f32
    %338 = vector.broadcast %cst_120 : f32 to vector<2x256xf32>
    %339 = arith.minimumf %335, %338 : vector<2x256xf32>
    %340 = math.exp %339 : vector<2x256xf32>
    %cst_121 = arith.constant 1.000000e+00 : f32
    %341 = vector.broadcast %cst_121 : f32 to vector<2x256xf32>
    %342 = arith.subf %340, %341 : vector<2x256xf32>
    %343 = arith.select %337, %335, %342 : vector<2x256xi1>, vector<2x256xf32>
    %c7_122 = arith.constant 7 : index
    %344 = memref.load %arg2[%c7_122] : memref<136xf32, #tpu.memory_space<smem>>
    %c15 = arith.constant 15 : index
    %345 = memref.load %arg2[%c15] : memref<136xf32, #tpu.memory_space<smem>>
    %cst_123 = arith.constant dense<0.000000e+00> : vector<2xf32>
    %346 = vector.multi_reduction <add>, %70, %cst_123 [1] : vector<2x256xf32> to vector<2xf32>
    %347 = vector.shape_cast %346 : vector<2xf32> to vector<2x1xf32>
    %cst_124 = arith.constant dense<0.000000e+00> : vector<1xf32>
    %348 = vector.multi_reduction <add>, %347, %cst_124 [0] : vector<2x1xf32> to vector<1xf32>
    %349 = vector.shape_cast %348 : vector<1xf32> to vector<1x1xf32>
    %cst_125 = arith.constant 0.001953125 : f32
    %350 = vector.broadcast %cst_125 : f32 to vector<1x1xf32>
    %351 = arith.mulf %349, %350 : vector<1x1xf32>
    %352 = arith.mulf %70, %70 : vector<2x256xf32>
    %cst_126 = arith.constant dense<0.000000e+00> : vector<2xf32>
    %353 = vector.multi_reduction <add>, %352, %cst_126 [1] : vector<2x256xf32> to vector<2xf32>
    %354 = vector.shape_cast %353 : vector<2xf32> to vector<2x1xf32>
    %cst_127 = arith.constant dense<0.000000e+00> : vector<1xf32>
    %355 = vector.multi_reduction <add>, %354, %cst_127 [0] : vector<2x1xf32> to vector<1xf32>
    %356 = vector.shape_cast %355 : vector<1xf32> to vector<1x1xf32>
    %cst_128 = arith.constant 0.001953125 : f32
    %357 = vector.broadcast %cst_128 : f32 to vector<1x1xf32>
    %358 = arith.mulf %356, %357 : vector<1x1xf32>
    %359 = arith.mulf %351, %351 : vector<1x1xf32>
    %360 = arith.subf %358, %359 : vector<1x1xf32>
    %cst_129 = arith.constant 0.000000e+00 : f32
    %361 = vector.broadcast %cst_129 : f32 to vector<1x1xf32>
    %362 = arith.maximumf %360, %361 : vector<1x1xf32>
    %cst_130 = arith.constant 9.99999974E-6 : f32
    %363 = vector.broadcast %cst_130 : f32 to vector<1x1xf32>
    %364 = arith.addf %362, %363 : vector<1x1xf32>
    %365 = math.rsqrt %364 : vector<1x1xf32>
    %366 = vector.broadcast %344 : f32 to vector<1x1xf32>
    %367 = arith.mulf %365, %366 : vector<1x1xf32>
    %368 = arith.mulf %351, %367 : vector<1x1xf32>
    %369 = vector.broadcast %345 : f32 to vector<1x1xf32>
    %370 = arith.subf %369, %368 : vector<1x1xf32>
    %371 = vector.broadcast %367 : vector<1x1xf32> to vector<2x256xf32>
    %372 = arith.mulf %70, %371 : vector<2x256xf32>
    %373 = vector.broadcast %370 : vector<1x1xf32> to vector<2x256xf32>
    %374 = arith.addf %372, %373 : vector<2x256xf32>
    %cst_131 = arith.constant 0.000000e+00 : f32
    %375 = vector.broadcast %cst_131 : f32 to vector<2x256xf32>
    %376 = arith.cmpf ogt, %374, %375 : vector<2x256xf32>
    %cst_132 = arith.constant 0.000000e+00 : f32
    %377 = vector.broadcast %cst_132 : f32 to vector<2x256xf32>
    %378 = arith.minimumf %374, %377 : vector<2x256xf32>
    %379 = math.exp %378 : vector<2x256xf32>
    %cst_133 = arith.constant 1.000000e+00 : f32
    %380 = vector.broadcast %cst_133 : f32 to vector<2x256xf32>
    %381 = arith.subf %379, %380 : vector<2x256xf32>
    %382 = arith.select %376, %374, %381 : vector<2x256xi1>, vector<2x256xf32>
    %c16 = arith.constant 16 : index
    %383 = memref.load %arg2[%c16] : memref<136xf32, #tpu.memory_space<smem>>
    %384 = vector.broadcast %383 : f32 to vector<2x256xf32>
    %385 = arith.mulf %109, %384 : vector<2x256xf32>
    %c17 = arith.constant 17 : index
    %386 = memref.load %arg2[%c17] : memref<136xf32, #tpu.memory_space<smem>>
    %387 = vector.broadcast %386 : f32 to vector<2x256xf32>
    %388 = arith.mulf %148, %387 : vector<2x256xf32>
    %389 = arith.addf %385, %388 : vector<2x256xf32>
    %c18 = arith.constant 18 : index
    %390 = memref.load %arg2[%c18] : memref<136xf32, #tpu.memory_space<smem>>
    %391 = vector.broadcast %390 : f32 to vector<2x256xf32>
    %392 = arith.mulf %187, %391 : vector<2x256xf32>
    %393 = arith.addf %389, %392 : vector<2x256xf32>
    %c19 = arith.constant 19 : index
    %394 = memref.load %arg2[%c19] : memref<136xf32, #tpu.memory_space<smem>>
    %395 = vector.broadcast %394 : f32 to vector<2x256xf32>
    %396 = arith.mulf %226, %395 : vector<2x256xf32>
    %397 = arith.addf %393, %396 : vector<2x256xf32>
    %c20 = arith.constant 20 : index
    %398 = memref.load %arg2[%c20] : memref<136xf32, #tpu.memory_space<smem>>
    %399 = vector.broadcast %398 : f32 to vector<2x256xf32>
    %400 = arith.mulf %265, %399 : vector<2x256xf32>
    %401 = arith.addf %397, %400 : vector<2x256xf32>
    %c21 = arith.constant 21 : index
    %402 = memref.load %arg2[%c21] : memref<136xf32, #tpu.memory_space<smem>>
    %403 = vector.broadcast %402 : f32 to vector<2x256xf32>
    %404 = arith.mulf %304, %403 : vector<2x256xf32>
    %405 = arith.addf %401, %404 : vector<2x256xf32>
    %c22 = arith.constant 22 : index
    %406 = memref.load %arg2[%c22] : memref<136xf32, #tpu.memory_space<smem>>
    %407 = vector.broadcast %406 : f32 to vector<2x256xf32>
    %408 = arith.mulf %343, %407 : vector<2x256xf32>
    %409 = arith.addf %405, %408 : vector<2x256xf32>
    %c23 = arith.constant 23 : index
    %410 = memref.load %arg2[%c23] : memref<136xf32, #tpu.memory_space<smem>>
    %411 = vector.broadcast %410 : f32 to vector<2x256xf32>
    %412 = arith.mulf %382, %411 : vector<2x256xf32>
    %413 = arith.addf %409, %412 : vector<2x256xf32>
    %c24 = arith.constant 24 : index
    %414 = memref.load %arg2[%c24] : memref<136xf32, #tpu.memory_space<smem>>
    %415 = vector.broadcast %414 : f32 to vector<2x256xf32>
    %416 = arith.mulf %109, %415 : vector<2x256xf32>
    %c25 = arith.constant 25 : index
    %417 = memref.load %arg2[%c25] : memref<136xf32, #tpu.memory_space<smem>>
    %418 = vector.broadcast %417 : f32 to vector<2x256xf32>
    %419 = arith.mulf %148, %418 : vector<2x256xf32>
    %420 = arith.addf %416, %419 : vector<2x256xf32>
    %c26 = arith.constant 26 : index
    %421 = memref.load %arg2[%c26] : memref<136xf32, #tpu.memory_space<smem>>
    %422 = vector.broadcast %421 : f32 to vector<2x256xf32>
    %423 = arith.mulf %187, %422 : vector<2x256xf32>
    %424 = arith.addf %420, %423 : vector<2x256xf32>
    %c27 = arith.constant 27 : index
    %425 = memref.load %arg2[%c27] : memref<136xf32, #tpu.memory_space<smem>>
    %426 = vector.broadcast %425 : f32 to vector<2x256xf32>
    %427 = arith.mulf %226, %426 : vector<2x256xf32>
    %428 = arith.addf %424, %427 : vector<2x256xf32>
    %c28 = arith.constant 28 : index
    %429 = memref.load %arg2[%c28] : memref<136xf32, #tpu.memory_space<smem>>
    %430 = vector.broadcast %429 : f32 to vector<2x256xf32>
    %431 = arith.mulf %265, %430 : vector<2x256xf32>
    %432 = arith.addf %428, %431 : vector<2x256xf32>
    %c29 = arith.constant 29 : index
    %433 = memref.load %arg2[%c29] : memref<136xf32, #tpu.memory_space<smem>>
    %434 = vector.broadcast %433 : f32 to vector<2x256xf32>
    %435 = arith.mulf %304, %434 : vector<2x256xf32>
    %436 = arith.addf %432, %435 : vector<2x256xf32>
    %c30 = arith.constant 30 : index
    %437 = memref.load %arg2[%c30] : memref<136xf32, #tpu.memory_space<smem>>
    %438 = vector.broadcast %437 : f32 to vector<2x256xf32>
    %439 = arith.mulf %343, %438 : vector<2x256xf32>
    %440 = arith.addf %436, %439 : vector<2x256xf32>
    %c31 = arith.constant 31 : index
    %441 = memref.load %arg2[%c31] : memref<136xf32, #tpu.memory_space<smem>>
    %442 = vector.broadcast %441 : f32 to vector<2x256xf32>
    %443 = arith.mulf %382, %442 : vector<2x256xf32>
    %444 = arith.addf %440, %443 : vector<2x256xf32>
    %c32 = arith.constant 32 : index
    %445 = memref.load %arg2[%c32] : memref<136xf32, #tpu.memory_space<smem>>
    %446 = vector.broadcast %445 : f32 to vector<2x256xf32>
    %447 = arith.mulf %109, %446 : vector<2x256xf32>
    %c33 = arith.constant 33 : index
    %448 = memref.load %arg2[%c33] : memref<136xf32, #tpu.memory_space<smem>>
    %449 = vector.broadcast %448 : f32 to vector<2x256xf32>
    %450 = arith.mulf %148, %449 : vector<2x256xf32>
    %451 = arith.addf %447, %450 : vector<2x256xf32>
    %c34 = arith.constant 34 : index
    %452 = memref.load %arg2[%c34] : memref<136xf32, #tpu.memory_space<smem>>
    %453 = vector.broadcast %452 : f32 to vector<2x256xf32>
    %454 = arith.mulf %187, %453 : vector<2x256xf32>
    %455 = arith.addf %451, %454 : vector<2x256xf32>
    %c35 = arith.constant 35 : index
    %456 = memref.load %arg2[%c35] : memref<136xf32, #tpu.memory_space<smem>>
    %457 = vector.broadcast %456 : f32 to vector<2x256xf32>
    %458 = arith.mulf %226, %457 : vector<2x256xf32>
    %459 = arith.addf %455, %458 : vector<2x256xf32>
    %c36 = arith.constant 36 : index
    %460 = memref.load %arg2[%c36] : memref<136xf32, #tpu.memory_space<smem>>
    %461 = vector.broadcast %460 : f32 to vector<2x256xf32>
    %462 = arith.mulf %265, %461 : vector<2x256xf32>
    %463 = arith.addf %459, %462 : vector<2x256xf32>
    %c37 = arith.constant 37 : index
    %464 = memref.load %arg2[%c37] : memref<136xf32, #tpu.memory_space<smem>>
    %465 = vector.broadcast %464 : f32 to vector<2x256xf32>
    %466 = arith.mulf %304, %465 : vector<2x256xf32>
    %467 = arith.addf %463, %466 : vector<2x256xf32>
    %c38 = arith.constant 38 : index
    %468 = memref.load %arg2[%c38] : memref<136xf32, #tpu.memory_space<smem>>
    %469 = vector.broadcast %468 : f32 to vector<2x256xf32>
    %470 = arith.mulf %343, %469 : vector<2x256xf32>
    %471 = arith.addf %467, %470 : vector<2x256xf32>
    %c39 = arith.constant 39 : index
    %472 = memref.load %arg2[%c39] : memref<136xf32, #tpu.memory_space<smem>>
    %473 = vector.broadcast %472 : f32 to vector<2x256xf32>
    %474 = arith.mulf %382, %473 : vector<2x256xf32>
    %475 = arith.addf %471, %474 : vector<2x256xf32>
    %c40 = arith.constant 40 : index
    %476 = memref.load %arg2[%c40] : memref<136xf32, #tpu.memory_space<smem>>
    %477 = vector.broadcast %476 : f32 to vector<2x256xf32>
    %478 = arith.mulf %109, %477 : vector<2x256xf32>
    %c41 = arith.constant 41 : index
    %479 = memref.load %arg2[%c41] : memref<136xf32, #tpu.memory_space<smem>>
    %480 = vector.broadcast %479 : f32 to vector<2x256xf32>
    %481 = arith.mulf %148, %480 : vector<2x256xf32>
    %482 = arith.addf %478, %481 : vector<2x256xf32>
    %c42 = arith.constant 42 : index
    %483 = memref.load %arg2[%c42] : memref<136xf32, #tpu.memory_space<smem>>
    %484 = vector.broadcast %483 : f32 to vector<2x256xf32>
    %485 = arith.mulf %187, %484 : vector<2x256xf32>
    %486 = arith.addf %482, %485 : vector<2x256xf32>
    %c43 = arith.constant 43 : index
    %487 = memref.load %arg2[%c43] : memref<136xf32, #tpu.memory_space<smem>>
    %488 = vector.broadcast %487 : f32 to vector<2x256xf32>
    %489 = arith.mulf %226, %488 : vector<2x256xf32>
    %490 = arith.addf %486, %489 : vector<2x256xf32>
    %c44 = arith.constant 44 : index
    %491 = memref.load %arg2[%c44] : memref<136xf32, #tpu.memory_space<smem>>
    %492 = vector.broadcast %491 : f32 to vector<2x256xf32>
    %493 = arith.mulf %265, %492 : vector<2x256xf32>
    %494 = arith.addf %490, %493 : vector<2x256xf32>
    %c45 = arith.constant 45 : index
    %495 = memref.load %arg2[%c45] : memref<136xf32, #tpu.memory_space<smem>>
    %496 = vector.broadcast %495 : f32 to vector<2x256xf32>
    %497 = arith.mulf %304, %496 : vector<2x256xf32>
    %498 = arith.addf %494, %497 : vector<2x256xf32>
    %c46 = arith.constant 46 : index
    %499 = memref.load %arg2[%c46] : memref<136xf32, #tpu.memory_space<smem>>
    %500 = vector.broadcast %499 : f32 to vector<2x256xf32>
    %501 = arith.mulf %343, %500 : vector<2x256xf32>
    %502 = arith.addf %498, %501 : vector<2x256xf32>
    %c47 = arith.constant 47 : index
    %503 = memref.load %arg2[%c47] : memref<136xf32, #tpu.memory_space<smem>>
    %504 = vector.broadcast %503 : f32 to vector<2x256xf32>
    %505 = arith.mulf %382, %504 : vector<2x256xf32>
    %506 = arith.addf %502, %505 : vector<2x256xf32>
    %c52 = arith.constant 52 : index
    %507 = memref.load %arg2[%c52] : memref<136xf32, #tpu.memory_space<smem>>
    %c56 = arith.constant 56 : index
    %508 = memref.load %arg2[%c56] : memref<136xf32, #tpu.memory_space<smem>>
    %cst_134 = arith.constant dense<0.000000e+00> : vector<2xf32>
    %509 = vector.multi_reduction <add>, %413, %cst_134 [1] : vector<2x256xf32> to vector<2xf32>
    %510 = vector.shape_cast %509 : vector<2xf32> to vector<2x1xf32>
    %cst_135 = arith.constant dense<0.000000e+00> : vector<1xf32>
    %511 = vector.multi_reduction <add>, %510, %cst_135 [0] : vector<2x1xf32> to vector<1xf32>
    %512 = vector.shape_cast %511 : vector<1xf32> to vector<1x1xf32>
    %cst_136 = arith.constant 0.001953125 : f32
    %513 = vector.broadcast %cst_136 : f32 to vector<1x1xf32>
    %514 = arith.mulf %512, %513 : vector<1x1xf32>
    %515 = arith.mulf %413, %413 : vector<2x256xf32>
    %cst_137 = arith.constant dense<0.000000e+00> : vector<2xf32>
    %516 = vector.multi_reduction <add>, %515, %cst_137 [1] : vector<2x256xf32> to vector<2xf32>
    %517 = vector.shape_cast %516 : vector<2xf32> to vector<2x1xf32>
    %cst_138 = arith.constant dense<0.000000e+00> : vector<1xf32>
    %518 = vector.multi_reduction <add>, %517, %cst_138 [0] : vector<2x1xf32> to vector<1xf32>
    %519 = vector.shape_cast %518 : vector<1xf32> to vector<1x1xf32>
    %cst_139 = arith.constant 0.001953125 : f32
    %520 = vector.broadcast %cst_139 : f32 to vector<1x1xf32>
    %521 = arith.mulf %519, %520 : vector<1x1xf32>
    %522 = arith.mulf %514, %514 : vector<1x1xf32>
    %523 = arith.subf %521, %522 : vector<1x1xf32>
    %cst_140 = arith.constant 0.000000e+00 : f32
    %524 = vector.broadcast %cst_140 : f32 to vector<1x1xf32>
    %525 = arith.maximumf %523, %524 : vector<1x1xf32>
    %cst_141 = arith.constant 9.99999974E-6 : f32
    %526 = vector.broadcast %cst_141 : f32 to vector<1x1xf32>
    %527 = arith.addf %525, %526 : vector<1x1xf32>
    %528 = math.rsqrt %527 : vector<1x1xf32>
    %529 = vector.broadcast %507 : f32 to vector<1x1xf32>
    %530 = arith.mulf %528, %529 : vector<1x1xf32>
    %531 = arith.mulf %514, %530 : vector<1x1xf32>
    %532 = vector.broadcast %508 : f32 to vector<1x1xf32>
    %533 = arith.subf %532, %531 : vector<1x1xf32>
    %534 = vector.broadcast %530 : vector<1x1xf32> to vector<2x256xf32>
    %535 = arith.mulf %413, %534 : vector<2x256xf32>
    %536 = vector.broadcast %533 : vector<1x1xf32> to vector<2x256xf32>
    %537 = arith.addf %535, %536 : vector<2x256xf32>
    %cst_142 = arith.constant 0.000000e+00 : f32
    %538 = vector.broadcast %cst_142 : f32 to vector<2x256xf32>
    %539 = arith.cmpf ogt, %537, %538 : vector<2x256xf32>
    %cst_143 = arith.constant 0.000000e+00 : f32
    %540 = vector.broadcast %cst_143 : f32 to vector<2x256xf32>
    %541 = arith.minimumf %537, %540 : vector<2x256xf32>
    %542 = math.exp %541 : vector<2x256xf32>
    %cst_144 = arith.constant 1.000000e+00 : f32
    %543 = vector.broadcast %cst_144 : f32 to vector<2x256xf32>
    %544 = arith.subf %542, %543 : vector<2x256xf32>
    %545 = arith.select %539, %537, %544 : vector<2x256xi1>, vector<2x256xf32>
    %c53 = arith.constant 53 : index
    %546 = memref.load %arg2[%c53] : memref<136xf32, #tpu.memory_space<smem>>
    %c57 = arith.constant 57 : index
    %547 = memref.load %arg2[%c57] : memref<136xf32, #tpu.memory_space<smem>>
    %cst_145 = arith.constant dense<0.000000e+00> : vector<2xf32>
    %548 = vector.multi_reduction <add>, %444, %cst_145 [1] : vector<2x256xf32> to vector<2xf32>
    %549 = vector.shape_cast %548 : vector<2xf32> to vector<2x1xf32>
    %cst_146 = arith.constant dense<0.000000e+00> : vector<1xf32>
    %550 = vector.multi_reduction <add>, %549, %cst_146 [0] : vector<2x1xf32> to vector<1xf32>
    %551 = vector.shape_cast %550 : vector<1xf32> to vector<1x1xf32>
    %cst_147 = arith.constant 0.001953125 : f32
    %552 = vector.broadcast %cst_147 : f32 to vector<1x1xf32>
    %553 = arith.mulf %551, %552 : vector<1x1xf32>
    %554 = arith.mulf %444, %444 : vector<2x256xf32>
    %cst_148 = arith.constant dense<0.000000e+00> : vector<2xf32>
    %555 = vector.multi_reduction <add>, %554, %cst_148 [1] : vector<2x256xf32> to vector<2xf32>
    %556 = vector.shape_cast %555 : vector<2xf32> to vector<2x1xf32>
    %cst_149 = arith.constant dense<0.000000e+00> : vector<1xf32>
    %557 = vector.multi_reduction <add>, %556, %cst_149 [0] : vector<2x1xf32> to vector<1xf32>
    %558 = vector.shape_cast %557 : vector<1xf32> to vector<1x1xf32>
    %cst_150 = arith.constant 0.001953125 : f32
    %559 = vector.broadcast %cst_150 : f32 to vector<1x1xf32>
    %560 = arith.mulf %558, %559 : vector<1x1xf32>
    %561 = arith.mulf %553, %553 : vector<1x1xf32>
    %562 = arith.subf %560, %561 : vector<1x1xf32>
    %cst_151 = arith.constant 0.000000e+00 : f32
    %563 = vector.broadcast %cst_151 : f32 to vector<1x1xf32>
    %564 = arith.maximumf %562, %563 : vector<1x1xf32>
    %cst_152 = arith.constant 9.99999974E-6 : f32
    %565 = vector.broadcast %cst_152 : f32 to vector<1x1xf32>
    %566 = arith.addf %564, %565 : vector<1x1xf32>
    %567 = math.rsqrt %566 : vector<1x1xf32>
    %568 = vector.broadcast %546 : f32 to vector<1x1xf32>
    %569 = arith.mulf %567, %568 : vector<1x1xf32>
    %570 = arith.mulf %553, %569 : vector<1x1xf32>
    %571 = vector.broadcast %547 : f32 to vector<1x1xf32>
    %572 = arith.subf %571, %570 : vector<1x1xf32>
    %573 = vector.broadcast %569 : vector<1x1xf32> to vector<2x256xf32>
    %574 = arith.mulf %444, %573 : vector<2x256xf32>
    %575 = vector.broadcast %572 : vector<1x1xf32> to vector<2x256xf32>
    %576 = arith.addf %574, %575 : vector<2x256xf32>
    %cst_153 = arith.constant 0.000000e+00 : f32
    %577 = vector.broadcast %cst_153 : f32 to vector<2x256xf32>
    %578 = arith.cmpf ogt, %576, %577 : vector<2x256xf32>
    %cst_154 = arith.constant 0.000000e+00 : f32
    %579 = vector.broadcast %cst_154 : f32 to vector<2x256xf32>
    %580 = arith.minimumf %576, %579 : vector<2x256xf32>
    %581 = math.exp %580 : vector<2x256xf32>
    %cst_155 = arith.constant 1.000000e+00 : f32
    %582 = vector.broadcast %cst_155 : f32 to vector<2x256xf32>
    %583 = arith.subf %581, %582 : vector<2x256xf32>
    %584 = arith.select %578, %576, %583 : vector<2x256xi1>, vector<2x256xf32>
    %c54 = arith.constant 54 : index
    %585 = memref.load %arg2[%c54] : memref<136xf32, #tpu.memory_space<smem>>
    %c58 = arith.constant 58 : index
    %586 = memref.load %arg2[%c58] : memref<136xf32, #tpu.memory_space<smem>>
    %cst_156 = arith.constant dense<0.000000e+00> : vector<2xf32>
    %587 = vector.multi_reduction <add>, %475, %cst_156 [1] : vector<2x256xf32> to vector<2xf32>
    %588 = vector.shape_cast %587 : vector<2xf32> to vector<2x1xf32>
    %cst_157 = arith.constant dense<0.000000e+00> : vector<1xf32>
    %589 = vector.multi_reduction <add>, %588, %cst_157 [0] : vector<2x1xf32> to vector<1xf32>
    %590 = vector.shape_cast %589 : vector<1xf32> to vector<1x1xf32>
    %cst_158 = arith.constant 0.001953125 : f32
    %591 = vector.broadcast %cst_158 : f32 to vector<1x1xf32>
    %592 = arith.mulf %590, %591 : vector<1x1xf32>
    %593 = arith.mulf %475, %475 : vector<2x256xf32>
    %cst_159 = arith.constant dense<0.000000e+00> : vector<2xf32>
    %594 = vector.multi_reduction <add>, %593, %cst_159 [1] : vector<2x256xf32> to vector<2xf32>
    %595 = vector.shape_cast %594 : vector<2xf32> to vector<2x1xf32>
    %cst_160 = arith.constant dense<0.000000e+00> : vector<1xf32>
    %596 = vector.multi_reduction <add>, %595, %cst_160 [0] : vector<2x1xf32> to vector<1xf32>
    %597 = vector.shape_cast %596 : vector<1xf32> to vector<1x1xf32>
    %cst_161 = arith.constant 0.001953125 : f32
    %598 = vector.broadcast %cst_161 : f32 to vector<1x1xf32>
    %599 = arith.mulf %597, %598 : vector<1x1xf32>
    %600 = arith.mulf %592, %592 : vector<1x1xf32>
    %601 = arith.subf %599, %600 : vector<1x1xf32>
    %cst_162 = arith.constant 0.000000e+00 : f32
    %602 = vector.broadcast %cst_162 : f32 to vector<1x1xf32>
    %603 = arith.maximumf %601, %602 : vector<1x1xf32>
    %cst_163 = arith.constant 9.99999974E-6 : f32
    %604 = vector.broadcast %cst_163 : f32 to vector<1x1xf32>
    %605 = arith.addf %603, %604 : vector<1x1xf32>
    %606 = math.rsqrt %605 : vector<1x1xf32>
    %607 = vector.broadcast %585 : f32 to vector<1x1xf32>
    %608 = arith.mulf %606, %607 : vector<1x1xf32>
    %609 = arith.mulf %592, %608 : vector<1x1xf32>
    %610 = vector.broadcast %586 : f32 to vector<1x1xf32>
    %611 = arith.subf %610, %609 : vector<1x1xf32>
    %612 = vector.broadcast %608 : vector<1x1xf32> to vector<2x256xf32>
    %613 = arith.mulf %475, %612 : vector<2x256xf32>
    %614 = vector.broadcast %611 : vector<1x1xf32> to vector<2x256xf32>
    %615 = arith.addf %613, %614 : vector<2x256xf32>
    %cst_164 = arith.constant 0.000000e+00 : f32
    %616 = vector.broadcast %cst_164 : f32 to vector<2x256xf32>
    %617 = arith.cmpf ogt, %615, %616 : vector<2x256xf32>
    %cst_165 = arith.constant 0.000000e+00 : f32
    %618 = vector.broadcast %cst_165 : f32 to vector<2x256xf32>
    %619 = arith.minimumf %615, %618 : vector<2x256xf32>
    %620 = math.exp %619 : vector<2x256xf32>
    %cst_166 = arith.constant 1.000000e+00 : f32
    %621 = vector.broadcast %cst_166 : f32 to vector<2x256xf32>
    %622 = arith.subf %620, %621 : vector<2x256xf32>
    %623 = arith.select %617, %615, %622 : vector<2x256xi1>, vector<2x256xf32>
    %c55 = arith.constant 55 : index
    %624 = memref.load %arg2[%c55] : memref<136xf32, #tpu.memory_space<smem>>
    %c59 = arith.constant 59 : index
    %625 = memref.load %arg2[%c59] : memref<136xf32, #tpu.memory_space<smem>>
    %cst_167 = arith.constant dense<0.000000e+00> : vector<2xf32>
    %626 = vector.multi_reduction <add>, %506, %cst_167 [1] : vector<2x256xf32> to vector<2xf32>
    %627 = vector.shape_cast %626 : vector<2xf32> to vector<2x1xf32>
    %cst_168 = arith.constant dense<0.000000e+00> : vector<1xf32>
    %628 = vector.multi_reduction <add>, %627, %cst_168 [0] : vector<2x1xf32> to vector<1xf32>
    %629 = vector.shape_cast %628 : vector<1xf32> to vector<1x1xf32>
    %cst_169 = arith.constant 0.001953125 : f32
    %630 = vector.broadcast %cst_169 : f32 to vector<1x1xf32>
    %631 = arith.mulf %629, %630 : vector<1x1xf32>
    %632 = arith.mulf %506, %506 : vector<2x256xf32>
    %cst_170 = arith.constant dense<0.000000e+00> : vector<2xf32>
    %633 = vector.multi_reduction <add>, %632, %cst_170 [1] : vector<2x256xf32> to vector<2xf32>
    %634 = vector.shape_cast %633 : vector<2xf32> to vector<2x1xf32>
    %cst_171 = arith.constant dense<0.000000e+00> : vector<1xf32>
    %635 = vector.multi_reduction <add>, %634, %cst_171 [0] : vector<2x1xf32> to vector<1xf32>
    %636 = vector.shape_cast %635 : vector<1xf32> to vector<1x1xf32>
    %cst_172 = arith.constant 0.001953125 : f32
    %637 = vector.broadcast %cst_172 : f32 to vector<1x1xf32>
    %638 = arith.mulf %636, %637 : vector<1x1xf32>
    %639 = arith.mulf %631, %631 : vector<1x1xf32>
    %640 = arith.subf %638, %639 : vector<1x1xf32>
    %cst_173 = arith.constant 0.000000e+00 : f32
    %641 = vector.broadcast %cst_173 : f32 to vector<1x1xf32>
    %642 = arith.maximumf %640, %641 : vector<1x1xf32>
    %cst_174 = arith.constant 9.99999974E-6 : f32
    %643 = vector.broadcast %cst_174 : f32 to vector<1x1xf32>
    %644 = arith.addf %642, %643 : vector<1x1xf32>
    %645 = math.rsqrt %644 : vector<1x1xf32>
    %646 = vector.broadcast %624 : f32 to vector<1x1xf32>
    %647 = arith.mulf %645, %646 : vector<1x1xf32>
    %648 = arith.mulf %631, %647 : vector<1x1xf32>
    %649 = vector.broadcast %625 : f32 to vector<1x1xf32>
    %650 = arith.subf %649, %648 : vector<1x1xf32>
    %651 = vector.broadcast %647 : vector<1x1xf32> to vector<2x256xf32>
    %652 = arith.mulf %506, %651 : vector<2x256xf32>
    %653 = vector.broadcast %650 : vector<1x1xf32> to vector<2x256xf32>
    %654 = arith.addf %652, %653 : vector<2x256xf32>
    %cst_175 = arith.constant 0.000000e+00 : f32
    %655 = vector.broadcast %cst_175 : f32 to vector<2x256xf32>
    %656 = arith.cmpf ogt, %654, %655 : vector<2x256xf32>
    %cst_176 = arith.constant 0.000000e+00 : f32
    %657 = vector.broadcast %cst_176 : f32 to vector<2x256xf32>
    %658 = arith.minimumf %654, %657 : vector<2x256xf32>
    %659 = math.exp %658 : vector<2x256xf32>
    %cst_177 = arith.constant 1.000000e+00 : f32
    %660 = vector.broadcast %cst_177 : f32 to vector<2x256xf32>
    %661 = arith.subf %659, %660 : vector<2x256xf32>
    %662 = arith.select %656, %654, %661 : vector<2x256xi1>, vector<2x256xf32>
    %663 = arith.mulf %545, %10 : vector<2x256xf32>
    %cst_178 = arith.constant dense<0.000000e+00> : vector<2x16xf32>
    %664 = tpu.matmul %663, %24, %cst_178 {dimension_numbers = #tpu.dot_dimension_numbers<[1], [0], [0], [1], [0, 0, 1, 1], [], []>, precision = #tpu.contract_precision<fp32>} : vector<2x256xf32>, vector<256x16xf32>, vector<2x16xf32> -> vector<2x16xf32>
    %665 = arith.mulf %584, %10 : vector<2x256xf32>
    %cst_179 = arith.constant dense<0.000000e+00> : vector<2x16xf32>
    %666 = tpu.matmul %665, %24, %cst_179 {dimension_numbers = #tpu.dot_dimension_numbers<[1], [0], [0], [1], [0, 0, 1, 1], [], []>, precision = #tpu.contract_precision<fp32>} : vector<2x256xf32>, vector<256x16xf32>, vector<2x16xf32> -> vector<2x16xf32>
    %667 = arith.mulf %623, %10 : vector<2x256xf32>
    %cst_180 = arith.constant dense<0.000000e+00> : vector<2x16xf32>
    %668 = tpu.matmul %667, %24, %cst_180 {dimension_numbers = #tpu.dot_dimension_numbers<[1], [0], [0], [1], [0, 0, 1, 1], [], []>, precision = #tpu.contract_precision<fp32>} : vector<2x256xf32>, vector<256x16xf32>, vector<2x16xf32> -> vector<2x16xf32>
    %669 = arith.mulf %662, %10 : vector<2x256xf32>
    %cst_181 = arith.constant dense<0.000000e+00> : vector<2x16xf32>
    %670 = tpu.matmul %669, %24, %cst_181 {dimension_numbers = #tpu.dot_dimension_numbers<[1], [0], [0], [1], [0, 0, 1, 1], [], []>, precision = #tpu.contract_precision<fp32>} : vector<2x256xf32>, vector<256x16xf32>, vector<2x16xf32> -> vector<2x16xf32>
    %c60 = arith.constant 60 : index
    %671 = memref.load %arg2[%c60] : memref<136xf32, #tpu.memory_space<smem>>
    %672 = vector.broadcast %671 : f32 to vector<2x16xf32>
    %673 = arith.mulf %664, %672 : vector<2x16xf32>
    %c61 = arith.constant 61 : index
    %674 = memref.load %arg2[%c61] : memref<136xf32, #tpu.memory_space<smem>>
    %675 = vector.broadcast %674 : f32 to vector<2x16xf32>
    %676 = arith.mulf %666, %675 : vector<2x16xf32>
    %677 = arith.addf %673, %676 : vector<2x16xf32>
    %c62 = arith.constant 62 : index
    %678 = memref.load %arg2[%c62] : memref<136xf32, #tpu.memory_space<smem>>
    %679 = vector.broadcast %678 : f32 to vector<2x16xf32>
    %680 = arith.mulf %668, %679 : vector<2x16xf32>
    %681 = arith.addf %677, %680 : vector<2x16xf32>
    %c63 = arith.constant 63 : index
    %682 = memref.load %arg2[%c63] : memref<136xf32, #tpu.memory_space<smem>>
    %683 = vector.broadcast %682 : f32 to vector<2x16xf32>
    %684 = arith.mulf %670, %683 : vector<2x16xf32>
    %685 = arith.addf %681, %684 : vector<2x16xf32>
    %c64 = arith.constant 64 : index
    %686 = memref.load %arg2[%c64] : memref<136xf32, #tpu.memory_space<smem>>
    %687 = vector.broadcast %686 : f32 to vector<2x16xf32>
    %688 = arith.mulf %664, %687 : vector<2x16xf32>
    %c65 = arith.constant 65 : index
    %689 = memref.load %arg2[%c65] : memref<136xf32, #tpu.memory_space<smem>>
    %690 = vector.broadcast %689 : f32 to vector<2x16xf32>
    %691 = arith.mulf %666, %690 : vector<2x16xf32>
    %692 = arith.addf %688, %691 : vector<2x16xf32>
    %c66 = arith.constant 66 : index
    %693 = memref.load %arg2[%c66] : memref<136xf32, #tpu.memory_space<smem>>
    %694 = vector.broadcast %693 : f32 to vector<2x16xf32>
    %695 = arith.mulf %668, %694 : vector<2x16xf32>
    %696 = arith.addf %692, %695 : vector<2x16xf32>
    %c67 = arith.constant 67 : index
    %697 = memref.load %arg2[%c67] : memref<136xf32, #tpu.memory_space<smem>>
    %698 = vector.broadcast %697 : f32 to vector<2x16xf32>
    %699 = arith.mulf %670, %698 : vector<2x16xf32>
    %700 = arith.addf %696, %699 : vector<2x16xf32>
    %c68 = arith.constant 68 : index
    %701 = memref.load %arg2[%c68] : memref<136xf32, #tpu.memory_space<smem>>
    %702 = vector.broadcast %701 : f32 to vector<2x16xf32>
    %703 = arith.mulf %664, %702 : vector<2x16xf32>
    %c69 = arith.constant 69 : index
    %704 = memref.load %arg2[%c69] : memref<136xf32, #tpu.memory_space<smem>>
    %705 = vector.broadcast %704 : f32 to vector<2x16xf32>
    %706 = arith.mulf %666, %705 : vector<2x16xf32>
    %707 = arith.addf %703, %706 : vector<2x16xf32>
    %c70 = arith.constant 70 : index
    %708 = memref.load %arg2[%c70] : memref<136xf32, #tpu.memory_space<smem>>
    %709 = vector.broadcast %708 : f32 to vector<2x16xf32>
    %710 = arith.mulf %668, %709 : vector<2x16xf32>
    %711 = arith.addf %707, %710 : vector<2x16xf32>
    %c71 = arith.constant 71 : index
    %712 = memref.load %arg2[%c71] : memref<136xf32, #tpu.memory_space<smem>>
    %713 = vector.broadcast %712 : f32 to vector<2x16xf32>
    %714 = arith.mulf %670, %713 : vector<2x16xf32>
    %715 = arith.addf %711, %714 : vector<2x16xf32>
    %c72 = arith.constant 72 : index
    %716 = memref.load %arg2[%c72] : memref<136xf32, #tpu.memory_space<smem>>
    %717 = vector.broadcast %716 : f32 to vector<2x16xf32>
    %718 = arith.mulf %664, %717 : vector<2x16xf32>
    %c73 = arith.constant 73 : index
    %719 = memref.load %arg2[%c73] : memref<136xf32, #tpu.memory_space<smem>>
    %720 = vector.broadcast %719 : f32 to vector<2x16xf32>
    %721 = arith.mulf %666, %720 : vector<2x16xf32>
    %722 = arith.addf %718, %721 : vector<2x16xf32>
    %c74 = arith.constant 74 : index
    %723 = memref.load %arg2[%c74] : memref<136xf32, #tpu.memory_space<smem>>
    %724 = vector.broadcast %723 : f32 to vector<2x16xf32>
    %725 = arith.mulf %668, %724 : vector<2x16xf32>
    %726 = arith.addf %722, %725 : vector<2x16xf32>
    %c75 = arith.constant 75 : index
    %727 = memref.load %arg2[%c75] : memref<136xf32, #tpu.memory_space<smem>>
    %728 = vector.broadcast %727 : f32 to vector<2x16xf32>
    %729 = arith.mulf %670, %728 : vector<2x16xf32>
    %730 = arith.addf %726, %729 : vector<2x16xf32>
    %c80 = arith.constant 80 : index
    %731 = memref.load %arg2[%c80] : memref<136xf32, #tpu.memory_space<smem>>
    %c84 = arith.constant 84 : index
    %732 = memref.load %arg2[%c84] : memref<136xf32, #tpu.memory_space<smem>>
    %cst_182 = arith.constant dense<0.000000e+00> : vector<2xf32>
    %733 = vector.multi_reduction <add>, %685, %cst_182 [1] : vector<2x16xf32> to vector<2xf32>
    %734 = vector.shape_cast %733 : vector<2xf32> to vector<2x1xf32>
    %cst_183 = arith.constant dense<0.000000e+00> : vector<1xf32>
    %735 = vector.multi_reduction <add>, %734, %cst_183 [0] : vector<2x1xf32> to vector<1xf32>
    %736 = vector.shape_cast %735 : vector<1xf32> to vector<1x1xf32>
    %cst_184 = arith.constant 3.125000e-02 : f32
    %737 = vector.broadcast %cst_184 : f32 to vector<1x1xf32>
    %738 = arith.mulf %736, %737 : vector<1x1xf32>
    %739 = arith.mulf %685, %685 : vector<2x16xf32>
    %cst_185 = arith.constant dense<0.000000e+00> : vector<2xf32>
    %740 = vector.multi_reduction <add>, %739, %cst_185 [1] : vector<2x16xf32> to vector<2xf32>
    %741 = vector.shape_cast %740 : vector<2xf32> to vector<2x1xf32>
    %cst_186 = arith.constant dense<0.000000e+00> : vector<1xf32>
    %742 = vector.multi_reduction <add>, %741, %cst_186 [0] : vector<2x1xf32> to vector<1xf32>
    %743 = vector.shape_cast %742 : vector<1xf32> to vector<1x1xf32>
    %cst_187 = arith.constant 3.125000e-02 : f32
    %744 = vector.broadcast %cst_187 : f32 to vector<1x1xf32>
    %745 = arith.mulf %743, %744 : vector<1x1xf32>
    %746 = arith.mulf %738, %738 : vector<1x1xf32>
    %747 = arith.subf %745, %746 : vector<1x1xf32>
    %cst_188 = arith.constant 0.000000e+00 : f32
    %748 = vector.broadcast %cst_188 : f32 to vector<1x1xf32>
    %749 = arith.maximumf %747, %748 : vector<1x1xf32>
    %cst_189 = arith.constant 9.99999974E-6 : f32
    %750 = vector.broadcast %cst_189 : f32 to vector<1x1xf32>
    %751 = arith.addf %749, %750 : vector<1x1xf32>
    %752 = math.rsqrt %751 : vector<1x1xf32>
    %753 = vector.broadcast %731 : f32 to vector<1x1xf32>
    %754 = arith.mulf %752, %753 : vector<1x1xf32>
    %755 = arith.mulf %738, %754 : vector<1x1xf32>
    %756 = vector.broadcast %732 : f32 to vector<1x1xf32>
    %757 = arith.subf %756, %755 : vector<1x1xf32>
    %758 = vector.broadcast %754 : vector<1x1xf32> to vector<2x16xf32>
    %759 = arith.mulf %685, %758 : vector<2x16xf32>
    %760 = vector.broadcast %757 : vector<1x1xf32> to vector<2x16xf32>
    %761 = arith.addf %759, %760 : vector<2x16xf32>
    %cst_190 = arith.constant 0.000000e+00 : f32
    %762 = vector.broadcast %cst_190 : f32 to vector<2x16xf32>
    %763 = arith.maximumf %761, %762 : vector<2x16xf32>
    %c81 = arith.constant 81 : index
    %764 = memref.load %arg2[%c81] : memref<136xf32, #tpu.memory_space<smem>>
    %c85 = arith.constant 85 : index
    %765 = memref.load %arg2[%c85] : memref<136xf32, #tpu.memory_space<smem>>
    %cst_191 = arith.constant dense<0.000000e+00> : vector<2xf32>
    %766 = vector.multi_reduction <add>, %700, %cst_191 [1] : vector<2x16xf32> to vector<2xf32>
    %767 = vector.shape_cast %766 : vector<2xf32> to vector<2x1xf32>
    %cst_192 = arith.constant dense<0.000000e+00> : vector<1xf32>
    %768 = vector.multi_reduction <add>, %767, %cst_192 [0] : vector<2x1xf32> to vector<1xf32>
    %769 = vector.shape_cast %768 : vector<1xf32> to vector<1x1xf32>
    %cst_193 = arith.constant 3.125000e-02 : f32
    %770 = vector.broadcast %cst_193 : f32 to vector<1x1xf32>
    %771 = arith.mulf %769, %770 : vector<1x1xf32>
    %772 = arith.mulf %700, %700 : vector<2x16xf32>
    %cst_194 = arith.constant dense<0.000000e+00> : vector<2xf32>
    %773 = vector.multi_reduction <add>, %772, %cst_194 [1] : vector<2x16xf32> to vector<2xf32>
    %774 = vector.shape_cast %773 : vector<2xf32> to vector<2x1xf32>
    %cst_195 = arith.constant dense<0.000000e+00> : vector<1xf32>
    %775 = vector.multi_reduction <add>, %774, %cst_195 [0] : vector<2x1xf32> to vector<1xf32>
    %776 = vector.shape_cast %775 : vector<1xf32> to vector<1x1xf32>
    %cst_196 = arith.constant 3.125000e-02 : f32
    %777 = vector.broadcast %cst_196 : f32 to vector<1x1xf32>
    %778 = arith.mulf %776, %777 : vector<1x1xf32>
    %779 = arith.mulf %771, %771 : vector<1x1xf32>
    %780 = arith.subf %778, %779 : vector<1x1xf32>
    %cst_197 = arith.constant 0.000000e+00 : f32
    %781 = vector.broadcast %cst_197 : f32 to vector<1x1xf32>
    %782 = arith.maximumf %780, %781 : vector<1x1xf32>
    %cst_198 = arith.constant 9.99999974E-6 : f32
    %783 = vector.broadcast %cst_198 : f32 to vector<1x1xf32>
    %784 = arith.addf %782, %783 : vector<1x1xf32>
    %785 = math.rsqrt %784 : vector<1x1xf32>
    %786 = vector.broadcast %764 : f32 to vector<1x1xf32>
    %787 = arith.mulf %785, %786 : vector<1x1xf32>
    %788 = arith.mulf %771, %787 : vector<1x1xf32>
    %789 = vector.broadcast %765 : f32 to vector<1x1xf32>
    %790 = arith.subf %789, %788 : vector<1x1xf32>
    %791 = vector.broadcast %787 : vector<1x1xf32> to vector<2x16xf32>
    %792 = arith.mulf %700, %791 : vector<2x16xf32>
    %793 = vector.broadcast %790 : vector<1x1xf32> to vector<2x16xf32>
    %794 = arith.addf %792, %793 : vector<2x16xf32>
    %cst_199 = arith.constant 0.000000e+00 : f32
    %795 = vector.broadcast %cst_199 : f32 to vector<2x16xf32>
    %796 = arith.maximumf %794, %795 : vector<2x16xf32>
    %c82 = arith.constant 82 : index
    %797 = memref.load %arg2[%c82] : memref<136xf32, #tpu.memory_space<smem>>
    %c86 = arith.constant 86 : index
    %798 = memref.load %arg2[%c86] : memref<136xf32, #tpu.memory_space<smem>>
    %cst_200 = arith.constant dense<0.000000e+00> : vector<2xf32>
    %799 = vector.multi_reduction <add>, %715, %cst_200 [1] : vector<2x16xf32> to vector<2xf32>
    %800 = vector.shape_cast %799 : vector<2xf32> to vector<2x1xf32>
    %cst_201 = arith.constant dense<0.000000e+00> : vector<1xf32>
    %801 = vector.multi_reduction <add>, %800, %cst_201 [0] : vector<2x1xf32> to vector<1xf32>
    %802 = vector.shape_cast %801 : vector<1xf32> to vector<1x1xf32>
    %cst_202 = arith.constant 3.125000e-02 : f32
    %803 = vector.broadcast %cst_202 : f32 to vector<1x1xf32>
    %804 = arith.mulf %802, %803 : vector<1x1xf32>
    %805 = arith.mulf %715, %715 : vector<2x16xf32>
    %cst_203 = arith.constant dense<0.000000e+00> : vector<2xf32>
    %806 = vector.multi_reduction <add>, %805, %cst_203 [1] : vector<2x16xf32> to vector<2xf32>
    %807 = vector.shape_cast %806 : vector<2xf32> to vector<2x1xf32>
    %cst_204 = arith.constant dense<0.000000e+00> : vector<1xf32>
    %808 = vector.multi_reduction <add>, %807, %cst_204 [0] : vector<2x1xf32> to vector<1xf32>
    %809 = vector.shape_cast %808 : vector<1xf32> to vector<1x1xf32>
    %cst_205 = arith.constant 3.125000e-02 : f32
    %810 = vector.broadcast %cst_205 : f32 to vector<1x1xf32>
    %811 = arith.mulf %809, %810 : vector<1x1xf32>
    %812 = arith.mulf %804, %804 : vector<1x1xf32>
    %813 = arith.subf %811, %812 : vector<1x1xf32>
    %cst_206 = arith.constant 0.000000e+00 : f32
    %814 = vector.broadcast %cst_206 : f32 to vector<1x1xf32>
    %815 = arith.maximumf %813, %814 : vector<1x1xf32>
    %cst_207 = arith.constant 9.99999974E-6 : f32
    %816 = vector.broadcast %cst_207 : f32 to vector<1x1xf32>
    %817 = arith.addf %815, %816 : vector<1x1xf32>
    %818 = math.rsqrt %817 : vector<1x1xf32>
    %819 = vector.broadcast %797 : f32 to vector<1x1xf32>
    %820 = arith.mulf %818, %819 : vector<1x1xf32>
    %821 = arith.mulf %804, %820 : vector<1x1xf32>
    %822 = vector.broadcast %798 : f32 to vector<1x1xf32>
    %823 = arith.subf %822, %821 : vector<1x1xf32>
    %824 = vector.broadcast %820 : vector<1x1xf32> to vector<2x16xf32>
    %825 = arith.mulf %715, %824 : vector<2x16xf32>
    %826 = vector.broadcast %823 : vector<1x1xf32> to vector<2x16xf32>
    %827 = arith.addf %825, %826 : vector<2x16xf32>
    %cst_208 = arith.constant 0.000000e+00 : f32
    %828 = vector.broadcast %cst_208 : f32 to vector<2x16xf32>
    %829 = arith.maximumf %827, %828 : vector<2x16xf32>
    %c83 = arith.constant 83 : index
    %830 = memref.load %arg2[%c83] : memref<136xf32, #tpu.memory_space<smem>>
    %c87 = arith.constant 87 : index
    %831 = memref.load %arg2[%c87] : memref<136xf32, #tpu.memory_space<smem>>
    %cst_209 = arith.constant dense<0.000000e+00> : vector<2xf32>
    %832 = vector.multi_reduction <add>, %730, %cst_209 [1] : vector<2x16xf32> to vector<2xf32>
    %833 = vector.shape_cast %832 : vector<2xf32> to vector<2x1xf32>
    %cst_210 = arith.constant dense<0.000000e+00> : vector<1xf32>
    %834 = vector.multi_reduction <add>, %833, %cst_210 [0] : vector<2x1xf32> to vector<1xf32>
    %835 = vector.shape_cast %834 : vector<1xf32> to vector<1x1xf32>
    %cst_211 = arith.constant 3.125000e-02 : f32
    %836 = vector.broadcast %cst_211 : f32 to vector<1x1xf32>
    %837 = arith.mulf %835, %836 : vector<1x1xf32>
    %838 = arith.mulf %730, %730 : vector<2x16xf32>
    %cst_212 = arith.constant dense<0.000000e+00> : vector<2xf32>
    %839 = vector.multi_reduction <add>, %838, %cst_212 [1] : vector<2x16xf32> to vector<2xf32>
    %840 = vector.shape_cast %839 : vector<2xf32> to vector<2x1xf32>
    %cst_213 = arith.constant dense<0.000000e+00> : vector<1xf32>
    %841 = vector.multi_reduction <add>, %840, %cst_213 [0] : vector<2x1xf32> to vector<1xf32>
    %842 = vector.shape_cast %841 : vector<1xf32> to vector<1x1xf32>
    %cst_214 = arith.constant 3.125000e-02 : f32
    %843 = vector.broadcast %cst_214 : f32 to vector<1x1xf32>
    %844 = arith.mulf %842, %843 : vector<1x1xf32>
    %845 = arith.mulf %837, %837 : vector<1x1xf32>
    %846 = arith.subf %844, %845 : vector<1x1xf32>
    %cst_215 = arith.constant 0.000000e+00 : f32
    %847 = vector.broadcast %cst_215 : f32 to vector<1x1xf32>
    %848 = arith.maximumf %846, %847 : vector<1x1xf32>
    %cst_216 = arith.constant 9.99999974E-6 : f32
    %849 = vector.broadcast %cst_216 : f32 to vector<1x1xf32>
    %850 = arith.addf %848, %849 : vector<1x1xf32>
    %851 = math.rsqrt %850 : vector<1x1xf32>
    %852 = vector.broadcast %830 : f32 to vector<1x1xf32>
    %853 = arith.mulf %851, %852 : vector<1x1xf32>
    %854 = arith.mulf %837, %853 : vector<1x1xf32>
    %855 = vector.broadcast %831 : f32 to vector<1x1xf32>
    %856 = arith.subf %855, %854 : vector<1x1xf32>
    %857 = vector.broadcast %853 : vector<1x1xf32> to vector<2x16xf32>
    %858 = arith.mulf %730, %857 : vector<2x16xf32>
    %859 = vector.broadcast %856 : vector<1x1xf32> to vector<2x16xf32>
    %860 = arith.addf %858, %859 : vector<2x16xf32>
    %cst_217 = arith.constant 0.000000e+00 : f32
    %861 = vector.broadcast %cst_217 : f32 to vector<2x16xf32>
    %862 = arith.maximumf %860, %861 : vector<2x16xf32>
    %c88 = arith.constant 88 : index
    %863 = memref.load %arg2[%c88] : memref<136xf32, #tpu.memory_space<smem>>
    %c92 = arith.constant 92 : index
    %864 = memref.load %arg2[%c92] : memref<136xf32, #tpu.memory_space<smem>>
    %cst_218 = arith.constant dense<0.000000e+00> : vector<2xf32>
    %865 = vector.multi_reduction <add>, %763, %cst_218 [1] : vector<2x16xf32> to vector<2xf32>
    %866 = vector.shape_cast %865 : vector<2xf32> to vector<2x1xf32>
    %cst_219 = arith.constant dense<0.000000e+00> : vector<1xf32>
    %867 = vector.multi_reduction <add>, %866, %cst_219 [0] : vector<2x1xf32> to vector<1xf32>
    %868 = vector.shape_cast %867 : vector<1xf32> to vector<1x1xf32>
    %cst_220 = arith.constant 3.125000e-02 : f32
    %869 = vector.broadcast %cst_220 : f32 to vector<1x1xf32>
    %870 = arith.mulf %868, %869 : vector<1x1xf32>
    %871 = arith.mulf %763, %763 : vector<2x16xf32>
    %cst_221 = arith.constant dense<0.000000e+00> : vector<2xf32>
    %872 = vector.multi_reduction <add>, %871, %cst_221 [1] : vector<2x16xf32> to vector<2xf32>
    %873 = vector.shape_cast %872 : vector<2xf32> to vector<2x1xf32>
    %cst_222 = arith.constant dense<0.000000e+00> : vector<1xf32>
    %874 = vector.multi_reduction <add>, %873, %cst_222 [0] : vector<2x1xf32> to vector<1xf32>
    %875 = vector.shape_cast %874 : vector<1xf32> to vector<1x1xf32>
    %cst_223 = arith.constant 3.125000e-02 : f32
    %876 = vector.broadcast %cst_223 : f32 to vector<1x1xf32>
    %877 = arith.mulf %875, %876 : vector<1x1xf32>
    %878 = arith.mulf %870, %870 : vector<1x1xf32>
    %879 = arith.subf %877, %878 : vector<1x1xf32>
    %cst_224 = arith.constant 0.000000e+00 : f32
    %880 = vector.broadcast %cst_224 : f32 to vector<1x1xf32>
    %881 = arith.maximumf %879, %880 : vector<1x1xf32>
    %cst_225 = arith.constant 9.99999974E-6 : f32
    %882 = vector.broadcast %cst_225 : f32 to vector<1x1xf32>
    %883 = arith.addf %881, %882 : vector<1x1xf32>
    %884 = math.rsqrt %883 : vector<1x1xf32>
    %885 = vector.broadcast %863 : f32 to vector<1x1xf32>
    %886 = arith.mulf %884, %885 : vector<1x1xf32>
    %887 = arith.mulf %870, %886 : vector<1x1xf32>
    %888 = vector.broadcast %864 : f32 to vector<1x1xf32>
    %889 = arith.subf %888, %887 : vector<1x1xf32>
    %890 = vector.broadcast %886 : vector<1x1xf32> to vector<2x16xf32>
    %891 = arith.mulf %763, %890 : vector<2x16xf32>
    %892 = vector.broadcast %889 : vector<1x1xf32> to vector<2x16xf32>
    %893 = arith.addf %891, %892 : vector<2x16xf32>
    %cst_226 = arith.constant 0.000000e+00 : f32
    %894 = vector.broadcast %cst_226 : f32 to vector<2x16xf32>
    %895 = arith.cmpf ogt, %893, %894 : vector<2x16xf32>
    %cst_227 = arith.constant 0.000000e+00 : f32
    %896 = vector.broadcast %cst_227 : f32 to vector<2x16xf32>
    %897 = arith.minimumf %893, %896 : vector<2x16xf32>
    %898 = math.exp %897 : vector<2x16xf32>
    %cst_228 = arith.constant 1.000000e+00 : f32
    %899 = vector.broadcast %cst_228 : f32 to vector<2x16xf32>
    %900 = arith.subf %898, %899 : vector<2x16xf32>
    %901 = arith.select %895, %893, %900 : vector<2x16xi1>, vector<2x16xf32>
    %c89 = arith.constant 89 : index
    %902 = memref.load %arg2[%c89] : memref<136xf32, #tpu.memory_space<smem>>
    %c93 = arith.constant 93 : index
    %903 = memref.load %arg2[%c93] : memref<136xf32, #tpu.memory_space<smem>>
    %cst_229 = arith.constant dense<0.000000e+00> : vector<2xf32>
    %904 = vector.multi_reduction <add>, %796, %cst_229 [1] : vector<2x16xf32> to vector<2xf32>
    %905 = vector.shape_cast %904 : vector<2xf32> to vector<2x1xf32>
    %cst_230 = arith.constant dense<0.000000e+00> : vector<1xf32>
    %906 = vector.multi_reduction <add>, %905, %cst_230 [0] : vector<2x1xf32> to vector<1xf32>
    %907 = vector.shape_cast %906 : vector<1xf32> to vector<1x1xf32>
    %cst_231 = arith.constant 3.125000e-02 : f32
    %908 = vector.broadcast %cst_231 : f32 to vector<1x1xf32>
    %909 = arith.mulf %907, %908 : vector<1x1xf32>
    %910 = arith.mulf %796, %796 : vector<2x16xf32>
    %cst_232 = arith.constant dense<0.000000e+00> : vector<2xf32>
    %911 = vector.multi_reduction <add>, %910, %cst_232 [1] : vector<2x16xf32> to vector<2xf32>
    %912 = vector.shape_cast %911 : vector<2xf32> to vector<2x1xf32>
    %cst_233 = arith.constant dense<0.000000e+00> : vector<1xf32>
    %913 = vector.multi_reduction <add>, %912, %cst_233 [0] : vector<2x1xf32> to vector<1xf32>
    %914 = vector.shape_cast %913 : vector<1xf32> to vector<1x1xf32>
    %cst_234 = arith.constant 3.125000e-02 : f32
    %915 = vector.broadcast %cst_234 : f32 to vector<1x1xf32>
    %916 = arith.mulf %914, %915 : vector<1x1xf32>
    %917 = arith.mulf %909, %909 : vector<1x1xf32>
    %918 = arith.subf %916, %917 : vector<1x1xf32>
    %cst_235 = arith.constant 0.000000e+00 : f32
    %919 = vector.broadcast %cst_235 : f32 to vector<1x1xf32>
    %920 = arith.maximumf %918, %919 : vector<1x1xf32>
    %cst_236 = arith.constant 9.99999974E-6 : f32
    %921 = vector.broadcast %cst_236 : f32 to vector<1x1xf32>
    %922 = arith.addf %920, %921 : vector<1x1xf32>
    %923 = math.rsqrt %922 : vector<1x1xf32>
    %924 = vector.broadcast %902 : f32 to vector<1x1xf32>
    %925 = arith.mulf %923, %924 : vector<1x1xf32>
    %926 = arith.mulf %909, %925 : vector<1x1xf32>
    %927 = vector.broadcast %903 : f32 to vector<1x1xf32>
    %928 = arith.subf %927, %926 : vector<1x1xf32>
    %929 = vector.broadcast %925 : vector<1x1xf32> to vector<2x16xf32>
    %930 = arith.mulf %796, %929 : vector<2x16xf32>
    %931 = vector.broadcast %928 : vector<1x1xf32> to vector<2x16xf32>
    %932 = arith.addf %930, %931 : vector<2x16xf32>
    %cst_237 = arith.constant 0.000000e+00 : f32
    %933 = vector.broadcast %cst_237 : f32 to vector<2x16xf32>
    %934 = arith.cmpf ogt, %932, %933 : vector<2x16xf32>
    %cst_238 = arith.constant 0.000000e+00 : f32
    %935 = vector.broadcast %cst_238 : f32 to vector<2x16xf32>
    %936 = arith.minimumf %932, %935 : vector<2x16xf32>
    %937 = math.exp %936 : vector<2x16xf32>
    %cst_239 = arith.constant 1.000000e+00 : f32
    %938 = vector.broadcast %cst_239 : f32 to vector<2x16xf32>
    %939 = arith.subf %937, %938 : vector<2x16xf32>
    %940 = arith.select %934, %932, %939 : vector<2x16xi1>, vector<2x16xf32>
    %c90 = arith.constant 90 : index
    %941 = memref.load %arg2[%c90] : memref<136xf32, #tpu.memory_space<smem>>
    %c94 = arith.constant 94 : index
    %942 = memref.load %arg2[%c94] : memref<136xf32, #tpu.memory_space<smem>>
    %cst_240 = arith.constant dense<0.000000e+00> : vector<2xf32>
    %943 = vector.multi_reduction <add>, %829, %cst_240 [1] : vector<2x16xf32> to vector<2xf32>
    %944 = vector.shape_cast %943 : vector<2xf32> to vector<2x1xf32>
    %cst_241 = arith.constant dense<0.000000e+00> : vector<1xf32>
    %945 = vector.multi_reduction <add>, %944, %cst_241 [0] : vector<2x1xf32> to vector<1xf32>
    %946 = vector.shape_cast %945 : vector<1xf32> to vector<1x1xf32>
    %cst_242 = arith.constant 3.125000e-02 : f32
    %947 = vector.broadcast %cst_242 : f32 to vector<1x1xf32>
    %948 = arith.mulf %946, %947 : vector<1x1xf32>
    %949 = arith.mulf %829, %829 : vector<2x16xf32>
    %cst_243 = arith.constant dense<0.000000e+00> : vector<2xf32>
    %950 = vector.multi_reduction <add>, %949, %cst_243 [1] : vector<2x16xf32> to vector<2xf32>
    %951 = vector.shape_cast %950 : vector<2xf32> to vector<2x1xf32>
    %cst_244 = arith.constant dense<0.000000e+00> : vector<1xf32>
    %952 = vector.multi_reduction <add>, %951, %cst_244 [0] : vector<2x1xf32> to vector<1xf32>
    %953 = vector.shape_cast %952 : vector<1xf32> to vector<1x1xf32>
    %cst_245 = arith.constant 3.125000e-02 : f32
    %954 = vector.broadcast %cst_245 : f32 to vector<1x1xf32>
    %955 = arith.mulf %953, %954 : vector<1x1xf32>
    %956 = arith.mulf %948, %948 : vector<1x1xf32>
    %957 = arith.subf %955, %956 : vector<1x1xf32>
    %cst_246 = arith.constant 0.000000e+00 : f32
    %958 = vector.broadcast %cst_246 : f32 to vector<1x1xf32>
    %959 = arith.maximumf %957, %958 : vector<1x1xf32>
    %cst_247 = arith.constant 9.99999974E-6 : f32
    %960 = vector.broadcast %cst_247 : f32 to vector<1x1xf32>
    %961 = arith.addf %959, %960 : vector<1x1xf32>
    %962 = math.rsqrt %961 : vector<1x1xf32>
    %963 = vector.broadcast %941 : f32 to vector<1x1xf32>
    %964 = arith.mulf %962, %963 : vector<1x1xf32>
    %965 = arith.mulf %948, %964 : vector<1x1xf32>
    %966 = vector.broadcast %942 : f32 to vector<1x1xf32>
    %967 = arith.subf %966, %965 : vector<1x1xf32>
    %968 = vector.broadcast %964 : vector<1x1xf32> to vector<2x16xf32>
    %969 = arith.mulf %829, %968 : vector<2x16xf32>
    %970 = vector.broadcast %967 : vector<1x1xf32> to vector<2x16xf32>
    %971 = arith.addf %969, %970 : vector<2x16xf32>
    %cst_248 = arith.constant 0.000000e+00 : f32
    %972 = vector.broadcast %cst_248 : f32 to vector<2x16xf32>
    %973 = arith.cmpf ogt, %971, %972 : vector<2x16xf32>
    %cst_249 = arith.constant 0.000000e+00 : f32
    %974 = vector.broadcast %cst_249 : f32 to vector<2x16xf32>
    %975 = arith.minimumf %971, %974 : vector<2x16xf32>
    %976 = math.exp %975 : vector<2x16xf32>
    %cst_250 = arith.constant 1.000000e+00 : f32
    %977 = vector.broadcast %cst_250 : f32 to vector<2x16xf32>
    %978 = arith.subf %976, %977 : vector<2x16xf32>
    %979 = arith.select %973, %971, %978 : vector<2x16xi1>, vector<2x16xf32>
    %c91 = arith.constant 91 : index
    %980 = memref.load %arg2[%c91] : memref<136xf32, #tpu.memory_space<smem>>
    %c95 = arith.constant 95 : index
    %981 = memref.load %arg2[%c95] : memref<136xf32, #tpu.memory_space<smem>>
    %cst_251 = arith.constant dense<0.000000e+00> : vector<2xf32>
    %982 = vector.multi_reduction <add>, %862, %cst_251 [1] : vector<2x16xf32> to vector<2xf32>
    %983 = vector.shape_cast %982 : vector<2xf32> to vector<2x1xf32>
    %cst_252 = arith.constant dense<0.000000e+00> : vector<1xf32>
    %984 = vector.multi_reduction <add>, %983, %cst_252 [0] : vector<2x1xf32> to vector<1xf32>
    %985 = vector.shape_cast %984 : vector<1xf32> to vector<1x1xf32>
    %cst_253 = arith.constant 3.125000e-02 : f32
    %986 = vector.broadcast %cst_253 : f32 to vector<1x1xf32>
    %987 = arith.mulf %985, %986 : vector<1x1xf32>
    %988 = arith.mulf %862, %862 : vector<2x16xf32>
    %cst_254 = arith.constant dense<0.000000e+00> : vector<2xf32>
    %989 = vector.multi_reduction <add>, %988, %cst_254 [1] : vector<2x16xf32> to vector<2xf32>
    %990 = vector.shape_cast %989 : vector<2xf32> to vector<2x1xf32>
    %cst_255 = arith.constant dense<0.000000e+00> : vector<1xf32>
    %991 = vector.multi_reduction <add>, %990, %cst_255 [0] : vector<2x1xf32> to vector<1xf32>
    %992 = vector.shape_cast %991 : vector<1xf32> to vector<1x1xf32>
    %cst_256 = arith.constant 3.125000e-02 : f32
    %993 = vector.broadcast %cst_256 : f32 to vector<1x1xf32>
    %994 = arith.mulf %992, %993 : vector<1x1xf32>
    %995 = arith.mulf %987, %987 : vector<1x1xf32>
    %996 = arith.subf %994, %995 : vector<1x1xf32>
    %cst_257 = arith.constant 0.000000e+00 : f32
    %997 = vector.broadcast %cst_257 : f32 to vector<1x1xf32>
    %998 = arith.maximumf %996, %997 : vector<1x1xf32>
    %cst_258 = arith.constant 9.99999974E-6 : f32
    %999 = vector.broadcast %cst_258 : f32 to vector<1x1xf32>
    %1000 = arith.addf %998, %999 : vector<1x1xf32>
    %1001 = math.rsqrt %1000 : vector<1x1xf32>
    %1002 = vector.broadcast %980 : f32 to vector<1x1xf32>
    %1003 = arith.mulf %1001, %1002 : vector<1x1xf32>
    %1004 = arith.mulf %987, %1003 : vector<1x1xf32>
    %1005 = vector.broadcast %981 : f32 to vector<1x1xf32>
    %1006 = arith.subf %1005, %1004 : vector<1x1xf32>
    %1007 = vector.broadcast %1003 : vector<1x1xf32> to vector<2x16xf32>
    %1008 = arith.mulf %862, %1007 : vector<2x16xf32>
    %1009 = vector.broadcast %1006 : vector<1x1xf32> to vector<2x16xf32>
    %1010 = arith.addf %1008, %1009 : vector<2x16xf32>
    %cst_259 = arith.constant 0.000000e+00 : f32
    %1011 = vector.broadcast %cst_259 : f32 to vector<2x16xf32>
    %1012 = arith.cmpf ogt, %1010, %1011 : vector<2x16xf32>
    %cst_260 = arith.constant 0.000000e+00 : f32
    %1013 = vector.broadcast %cst_260 : f32 to vector<2x16xf32>
    %1014 = arith.minimumf %1010, %1013 : vector<2x16xf32>
    %1015 = math.exp %1014 : vector<2x16xf32>
    %cst_261 = arith.constant 1.000000e+00 : f32
    %1016 = vector.broadcast %cst_261 : f32 to vector<2x16xf32>
    %1017 = arith.subf %1015, %1016 : vector<2x16xf32>
    %1018 = arith.select %1012, %1010, %1017 : vector<2x16xi1>, vector<2x16xf32>
    %c96 = arith.constant 96 : index
    %1019 = memref.load %arg2[%c96] : memref<136xf32, #tpu.memory_space<smem>>
    %1020 = vector.broadcast %1019 : f32 to vector<2x16xf32>
    %1021 = arith.mulf %901, %1020 : vector<2x16xf32>
    %c97 = arith.constant 97 : index
    %1022 = memref.load %arg2[%c97] : memref<136xf32, #tpu.memory_space<smem>>
    %1023 = vector.broadcast %1022 : f32 to vector<2x16xf32>
    %1024 = arith.mulf %940, %1023 : vector<2x16xf32>
    %1025 = arith.addf %1021, %1024 : vector<2x16xf32>
    %c98 = arith.constant 98 : index
    %1026 = memref.load %arg2[%c98] : memref<136xf32, #tpu.memory_space<smem>>
    %1027 = vector.broadcast %1026 : f32 to vector<2x16xf32>
    %1028 = arith.mulf %979, %1027 : vector<2x16xf32>
    %1029 = arith.addf %1025, %1028 : vector<2x16xf32>
    %c99 = arith.constant 99 : index
    %1030 = memref.load %arg2[%c99] : memref<136xf32, #tpu.memory_space<smem>>
    %1031 = vector.broadcast %1030 : f32 to vector<2x16xf32>
    %1032 = arith.mulf %1018, %1031 : vector<2x16xf32>
    %1033 = arith.addf %1029, %1032 : vector<2x16xf32>
    %c128 = arith.constant 128 : index
    %1034 = memref.load %arg2[%c128] : memref<136xf32, #tpu.memory_space<smem>>
    %1035 = vector.broadcast %1034 : f32 to vector<2x16xf32>
    %1036 = arith.addf %1033, %1035 : vector<2x16xf32>
    %c100 = arith.constant 100 : index
    %1037 = memref.load %arg2[%c100] : memref<136xf32, #tpu.memory_space<smem>>
    %1038 = vector.broadcast %1037 : f32 to vector<2x16xf32>
    %1039 = arith.mulf %901, %1038 : vector<2x16xf32>
    %c101 = arith.constant 101 : index
    %1040 = memref.load %arg2[%c101] : memref<136xf32, #tpu.memory_space<smem>>
    %1041 = vector.broadcast %1040 : f32 to vector<2x16xf32>
    %1042 = arith.mulf %940, %1041 : vector<2x16xf32>
    %1043 = arith.addf %1039, %1042 : vector<2x16xf32>
    %c102 = arith.constant 102 : index
    %1044 = memref.load %arg2[%c102] : memref<136xf32, #tpu.memory_space<smem>>
    %1045 = vector.broadcast %1044 : f32 to vector<2x16xf32>
    %1046 = arith.mulf %979, %1045 : vector<2x16xf32>
    %1047 = arith.addf %1043, %1046 : vector<2x16xf32>
    %c103 = arith.constant 103 : index
    %1048 = memref.load %arg2[%c103] : memref<136xf32, #tpu.memory_space<smem>>
    %1049 = vector.broadcast %1048 : f32 to vector<2x16xf32>
    %1050 = arith.mulf %1018, %1049 : vector<2x16xf32>
    %1051 = arith.addf %1047, %1050 : vector<2x16xf32>
    %c129 = arith.constant 129 : index
    %1052 = memref.load %arg2[%c129] : memref<136xf32, #tpu.memory_space<smem>>
    %1053 = vector.broadcast %1052 : f32 to vector<2x16xf32>
    %1054 = arith.addf %1051, %1053 : vector<2x16xf32>
    %c104 = arith.constant 104 : index
    %1055 = memref.load %arg2[%c104] : memref<136xf32, #tpu.memory_space<smem>>
    %1056 = vector.broadcast %1055 : f32 to vector<2x16xf32>
    %1057 = arith.mulf %901, %1056 : vector<2x16xf32>
    %c105 = arith.constant 105 : index
    %1058 = memref.load %arg2[%c105] : memref<136xf32, #tpu.memory_space<smem>>
    %1059 = vector.broadcast %1058 : f32 to vector<2x16xf32>
    %1060 = arith.mulf %940, %1059 : vector<2x16xf32>
    %1061 = arith.addf %1057, %1060 : vector<2x16xf32>
    %c106 = arith.constant 106 : index
    %1062 = memref.load %arg2[%c106] : memref<136xf32, #tpu.memory_space<smem>>
    %1063 = vector.broadcast %1062 : f32 to vector<2x16xf32>
    %1064 = arith.mulf %979, %1063 : vector<2x16xf32>
    %1065 = arith.addf %1061, %1064 : vector<2x16xf32>
    %c107 = arith.constant 107 : index
    %1066 = memref.load %arg2[%c107] : memref<136xf32, #tpu.memory_space<smem>>
    %1067 = vector.broadcast %1066 : f32 to vector<2x16xf32>
    %1068 = arith.mulf %1018, %1067 : vector<2x16xf32>
    %1069 = arith.addf %1065, %1068 : vector<2x16xf32>
    %c130 = arith.constant 130 : index
    %1070 = memref.load %arg2[%c130] : memref<136xf32, #tpu.memory_space<smem>>
    %1071 = vector.broadcast %1070 : f32 to vector<2x16xf32>
    %1072 = arith.addf %1069, %1071 : vector<2x16xf32>
    %c108 = arith.constant 108 : index
    %1073 = memref.load %arg2[%c108] : memref<136xf32, #tpu.memory_space<smem>>
    %1074 = vector.broadcast %1073 : f32 to vector<2x16xf32>
    %1075 = arith.mulf %901, %1074 : vector<2x16xf32>
    %c109 = arith.constant 109 : index
    %1076 = memref.load %arg2[%c109] : memref<136xf32, #tpu.memory_space<smem>>
    %1077 = vector.broadcast %1076 : f32 to vector<2x16xf32>
    %1078 = arith.mulf %940, %1077 : vector<2x16xf32>
    %1079 = arith.addf %1075, %1078 : vector<2x16xf32>
    %c110 = arith.constant 110 : index
    %1080 = memref.load %arg2[%c110] : memref<136xf32, #tpu.memory_space<smem>>
    %1081 = vector.broadcast %1080 : f32 to vector<2x16xf32>
    %1082 = arith.mulf %979, %1081 : vector<2x16xf32>
    %1083 = arith.addf %1079, %1082 : vector<2x16xf32>
    %c111 = arith.constant 111 : index
    %1084 = memref.load %arg2[%c111] : memref<136xf32, #tpu.memory_space<smem>>
    %1085 = vector.broadcast %1084 : f32 to vector<2x16xf32>
    %1086 = arith.mulf %1018, %1085 : vector<2x16xf32>
    %1087 = arith.addf %1083, %1086 : vector<2x16xf32>
    %c131 = arith.constant 131 : index
    %1088 = memref.load %arg2[%c131] : memref<136xf32, #tpu.memory_space<smem>>
    %1089 = vector.broadcast %1088 : f32 to vector<2x16xf32>
    %1090 = arith.addf %1087, %1089 : vector<2x16xf32>
    %c112 = arith.constant 112 : index
    %1091 = memref.load %arg2[%c112] : memref<136xf32, #tpu.memory_space<smem>>
    %1092 = vector.broadcast %1091 : f32 to vector<2x16xf32>
    %1093 = arith.mulf %901, %1092 : vector<2x16xf32>
    %c113 = arith.constant 113 : index
    %1094 = memref.load %arg2[%c113] : memref<136xf32, #tpu.memory_space<smem>>
    %1095 = vector.broadcast %1094 : f32 to vector<2x16xf32>
    %1096 = arith.mulf %940, %1095 : vector<2x16xf32>
    %1097 = arith.addf %1093, %1096 : vector<2x16xf32>
    %c114 = arith.constant 114 : index
    %1098 = memref.load %arg2[%c114] : memref<136xf32, #tpu.memory_space<smem>>
    %1099 = vector.broadcast %1098 : f32 to vector<2x16xf32>
    %1100 = arith.mulf %979, %1099 : vector<2x16xf32>
    %1101 = arith.addf %1097, %1100 : vector<2x16xf32>
    %c115 = arith.constant 115 : index
    %1102 = memref.load %arg2[%c115] : memref<136xf32, #tpu.memory_space<smem>>
    %1103 = vector.broadcast %1102 : f32 to vector<2x16xf32>
    %1104 = arith.mulf %1018, %1103 : vector<2x16xf32>
    %1105 = arith.addf %1101, %1104 : vector<2x16xf32>
    %c132 = arith.constant 132 : index
    %1106 = memref.load %arg2[%c132] : memref<136xf32, #tpu.memory_space<smem>>
    %1107 = vector.broadcast %1106 : f32 to vector<2x16xf32>
    %1108 = arith.addf %1105, %1107 : vector<2x16xf32>
    %c116 = arith.constant 116 : index
    %1109 = memref.load %arg2[%c116] : memref<136xf32, #tpu.memory_space<smem>>
    %1110 = vector.broadcast %1109 : f32 to vector<2x16xf32>
    %1111 = arith.mulf %901, %1110 : vector<2x16xf32>
    %c117 = arith.constant 117 : index
    %1112 = memref.load %arg2[%c117] : memref<136xf32, #tpu.memory_space<smem>>
    %1113 = vector.broadcast %1112 : f32 to vector<2x16xf32>
    %1114 = arith.mulf %940, %1113 : vector<2x16xf32>
    %1115 = arith.addf %1111, %1114 : vector<2x16xf32>
    %c118 = arith.constant 118 : index
    %1116 = memref.load %arg2[%c118] : memref<136xf32, #tpu.memory_space<smem>>
    %1117 = vector.broadcast %1116 : f32 to vector<2x16xf32>
    %1118 = arith.mulf %979, %1117 : vector<2x16xf32>
    %1119 = arith.addf %1115, %1118 : vector<2x16xf32>
    %c119 = arith.constant 119 : index
    %1120 = memref.load %arg2[%c119] : memref<136xf32, #tpu.memory_space<smem>>
    %1121 = vector.broadcast %1120 : f32 to vector<2x16xf32>
    %1122 = arith.mulf %1018, %1121 : vector<2x16xf32>
    %1123 = arith.addf %1119, %1122 : vector<2x16xf32>
    %c133 = arith.constant 133 : index
    %1124 = memref.load %arg2[%c133] : memref<136xf32, #tpu.memory_space<smem>>
    %1125 = vector.broadcast %1124 : f32 to vector<2x16xf32>
    %1126 = arith.addf %1123, %1125 : vector<2x16xf32>
    %c120 = arith.constant 120 : index
    %1127 = memref.load %arg2[%c120] : memref<136xf32, #tpu.memory_space<smem>>
    %1128 = vector.broadcast %1127 : f32 to vector<2x16xf32>
    %1129 = arith.mulf %901, %1128 : vector<2x16xf32>
    %c121 = arith.constant 121 : index
    %1130 = memref.load %arg2[%c121] : memref<136xf32, #tpu.memory_space<smem>>
    %1131 = vector.broadcast %1130 : f32 to vector<2x16xf32>
    %1132 = arith.mulf %940, %1131 : vector<2x16xf32>
    %1133 = arith.addf %1129, %1132 : vector<2x16xf32>
    %c122 = arith.constant 122 : index
    %1134 = memref.load %arg2[%c122] : memref<136xf32, #tpu.memory_space<smem>>
    %1135 = vector.broadcast %1134 : f32 to vector<2x16xf32>
    %1136 = arith.mulf %979, %1135 : vector<2x16xf32>
    %1137 = arith.addf %1133, %1136 : vector<2x16xf32>
    %c123 = arith.constant 123 : index
    %1138 = memref.load %arg2[%c123] : memref<136xf32, #tpu.memory_space<smem>>
    %1139 = vector.broadcast %1138 : f32 to vector<2x16xf32>
    %1140 = arith.mulf %1018, %1139 : vector<2x16xf32>
    %1141 = arith.addf %1137, %1140 : vector<2x16xf32>
    %c134 = arith.constant 134 : index
    %1142 = memref.load %arg2[%c134] : memref<136xf32, #tpu.memory_space<smem>>
    %1143 = vector.broadcast %1142 : f32 to vector<2x16xf32>
    %1144 = arith.addf %1141, %1143 : vector<2x16xf32>
    %c124 = arith.constant 124 : index
    %1145 = memref.load %arg2[%c124] : memref<136xf32, #tpu.memory_space<smem>>
    %1146 = vector.broadcast %1145 : f32 to vector<2x16xf32>
    %1147 = arith.mulf %901, %1146 : vector<2x16xf32>
    %c125 = arith.constant 125 : index
    %1148 = memref.load %arg2[%c125] : memref<136xf32, #tpu.memory_space<smem>>
    %1149 = vector.broadcast %1148 : f32 to vector<2x16xf32>
    %1150 = arith.mulf %940, %1149 : vector<2x16xf32>
    %1151 = arith.addf %1147, %1150 : vector<2x16xf32>
    %c126 = arith.constant 126 : index
    %1152 = memref.load %arg2[%c126] : memref<136xf32, #tpu.memory_space<smem>>
    %1153 = vector.broadcast %1152 : f32 to vector<2x16xf32>
    %1154 = arith.mulf %979, %1153 : vector<2x16xf32>
    %1155 = arith.addf %1151, %1154 : vector<2x16xf32>
    %c127 = arith.constant 127 : index
    %1156 = memref.load %arg2[%c127] : memref<136xf32, #tpu.memory_space<smem>>
    %1157 = vector.broadcast %1156 : f32 to vector<2x16xf32>
    %1158 = arith.mulf %1018, %1157 : vector<2x16xf32>
    %1159 = arith.addf %1155, %1158 : vector<2x16xf32>
    %c135 = arith.constant 135 : index
    %1160 = memref.load %arg2[%c135] : memref<136xf32, #tpu.memory_space<smem>>
    %1161 = vector.broadcast %1160 : f32 to vector<2x16xf32>
    %1162 = arith.addf %1159, %1161 : vector<2x16xf32>
    %cst_262 = arith.constant dense<0.000000e+00> : vector<2x256xf32>
    %1163 = tpu.matmul %1036, %38, %cst_262 {dimension_numbers = #tpu.dot_dimension_numbers<[1], [0], [0], [1], [0, 0, 1, 1], [], []>, precision = #tpu.contract_precision<fp32>} : vector<2x16xf32>, vector<16x256xf32>, vector<2x256xf32> -> vector<2x256xf32>
    %1164 = arith.addf %1163, %42 : vector<2x256xf32>
    %c0_263 = arith.constant 0 : index
    %c0_264 = arith.constant 0 : index
    %c0_265 = arith.constant 0 : index
    %1165 = vector.load %arg3[%c0_263, %c0_264, %c0_265] : memref<2x8x256xf32, #tpu.memory_space<vmem>>, vector<2x1x256xf32>
    %1166 = vector.shape_cast %1165 : vector<2x1x256xf32> to vector<2x256xf32>
    %1167 = vector.shape_cast %1164 : vector<2x256xf32> to vector<2x1x256xf32>
    tpu.vector_store %arg3[%c0_263, %c0_264, %c0_265], %1167 {strides = array<i32>} : memref<2x8x256xf32, #tpu.memory_space<vmem>>, vector<2x1x256xf32>,
    %cst_266 = arith.constant dense<0.000000e+00> : vector<2x256xf32>
    %1168 = tpu.matmul %1054, %38, %cst_266 {dimension_numbers = #tpu.dot_dimension_numbers<[1], [0], [0], [1], [0, 0, 1, 1], [], []>, precision = #tpu.contract_precision<fp32>} : vector<2x16xf32>, vector<16x256xf32>, vector<2x256xf32> -> vector<2x256xf32>
    %1169 = arith.addf %1168, %46 : vector<2x256xf32>
    %c0_267 = arith.constant 0 : index
    %c1_268 = arith.constant 1 : index
    %c0_269 = arith.constant 0 : index
    %1170 = vector.load %arg3[%c0_267, %c1_268, %c0_269] : memref<2x8x256xf32, #tpu.memory_space<vmem>>, vector<2x1x256xf32>
    %1171 = vector.shape_cast %1170 : vector<2x1x256xf32> to vector<2x256xf32>
    %1172 = vector.shape_cast %1169 : vector<2x256xf32> to vector<2x1x256xf32>
    tpu.vector_store %arg3[%c0_267, %c1_268, %c0_269], %1172 {strides = array<i32>} : memref<2x8x256xf32, #tpu.memory_space<vmem>>, vector<2x1x256xf32>,
    %cst_270 = arith.constant dense<0.000000e+00> : vector<2x256xf32>
    %1173 = tpu.matmul %1072, %38, %cst_270 {dimension_numbers = #tpu.dot_dimension_numbers<[1], [0], [0], [1], [0, 0, 1, 1], [], []>, precision = #tpu.contract_precision<fp32>} : vector<2x16xf32>, vector<16x256xf32>, vector<2x256xf32> -> vector<2x256xf32>
    %1174 = arith.addf %1173, %50 : vector<2x256xf32>
    %c0_271 = arith.constant 0 : index
    %c2_272 = arith.constant 2 : index
    %c0_273 = arith.constant 0 : index
    %1175 = vector.load %arg3[%c0_271, %c2_272, %c0_273] : memref<2x8x256xf32, #tpu.memory_space<vmem>>, vector<2x1x256xf32>
    %1176 = vector.shape_cast %1175 : vector<2x1x256xf32> to vector<2x256xf32>
    %1177 = vector.shape_cast %1174 : vector<2x256xf32> to vector<2x1x256xf32>
    tpu.vector_store %arg3[%c0_271, %c2_272, %c0_273], %1177 {strides = array<i32>} : memref<2x8x256xf32, #tpu.memory_space<vmem>>, vector<2x1x256xf32>,
    %cst_274 = arith.constant dense<0.000000e+00> : vector<2x256xf32>
    %1178 = tpu.matmul %1090, %38, %cst_274 {dimension_numbers = #tpu.dot_dimension_numbers<[1], [0], [0], [1], [0, 0, 1, 1], [], []>, precision = #tpu.contract_precision<fp32>} : vector<2x16xf32>, vector<16x256xf32>, vector<2x256xf32> -> vector<2x256xf32>
    %1179 = arith.addf %1178, %54 : vector<2x256xf32>
    %c0_275 = arith.constant 0 : index
    %c3_276 = arith.constant 3 : index
    %c0_277 = arith.constant 0 : index
    %1180 = vector.load %arg3[%c0_275, %c3_276, %c0_277] : memref<2x8x256xf32, #tpu.memory_space<vmem>>, vector<2x1x256xf32>
    %1181 = vector.shape_cast %1180 : vector<2x1x256xf32> to vector<2x256xf32>
    %1182 = vector.shape_cast %1179 : vector<2x256xf32> to vector<2x1x256xf32>
    tpu.vector_store %arg3[%c0_275, %c3_276, %c0_277], %1182 {strides = array<i32>} : memref<2x8x256xf32, #tpu.memory_space<vmem>>, vector<2x1x256xf32>,
    %cst_278 = arith.constant dense<0.000000e+00> : vector<2x256xf32>
    %1183 = tpu.matmul %1108, %38, %cst_278 {dimension_numbers = #tpu.dot_dimension_numbers<[1], [0], [0], [1], [0, 0, 1, 1], [], []>, precision = #tpu.contract_precision<fp32>} : vector<2x16xf32>, vector<16x256xf32>, vector<2x256xf32> -> vector<2x256xf32>
    %1184 = arith.addf %1183, %58 : vector<2x256xf32>
    %c0_279 = arith.constant 0 : index
    %c4_280 = arith.constant 4 : index
    %c0_281 = arith.constant 0 : index
    %1185 = vector.load %arg3[%c0_279, %c4_280, %c0_281] : memref<2x8x256xf32, #tpu.memory_space<vmem>>, vector<2x1x256xf32>
    %1186 = vector.shape_cast %1185 : vector<2x1x256xf32> to vector<2x256xf32>
    %1187 = vector.shape_cast %1184 : vector<2x256xf32> to vector<2x1x256xf32>
    tpu.vector_store %arg3[%c0_279, %c4_280, %c0_281], %1187 {strides = array<i32>} : memref<2x8x256xf32, #tpu.memory_space<vmem>>, vector<2x1x256xf32>,
    %cst_282 = arith.constant dense<0.000000e+00> : vector<2x256xf32>
    %1188 = tpu.matmul %1126, %38, %cst_282 {dimension_numbers = #tpu.dot_dimension_numbers<[1], [0], [0], [1], [0, 0, 1, 1], [], []>, precision = #tpu.contract_precision<fp32>} : vector<2x16xf32>, vector<16x256xf32>, vector<2x256xf32> -> vector<2x256xf32>
    %1189 = arith.addf %1188, %62 : vector<2x256xf32>
    %c0_283 = arith.constant 0 : index
    %c5_284 = arith.constant 5 : index
    %c0_285 = arith.constant 0 : index
    %1190 = vector.load %arg3[%c0_283, %c5_284, %c0_285] : memref<2x8x256xf32, #tpu.memory_space<vmem>>, vector<2x1x256xf32>
    %1191 = vector.shape_cast %1190 : vector<2x1x256xf32> to vector<2x256xf32>
    %1192 = vector.shape_cast %1189 : vector<2x256xf32> to vector<2x1x256xf32>
    tpu.vector_store %arg3[%c0_283, %c5_284, %c0_285], %1192 {strides = array<i32>} : memref<2x8x256xf32, #tpu.memory_space<vmem>>, vector<2x1x256xf32>,
    %cst_286 = arith.constant dense<0.000000e+00> : vector<2x256xf32>
    %1193 = tpu.matmul %1144, %38, %cst_286 {dimension_numbers = #tpu.dot_dimension_numbers<[1], [0], [0], [1], [0, 0, 1, 1], [], []>, precision = #tpu.contract_precision<fp32>} : vector<2x16xf32>, vector<16x256xf32>, vector<2x256xf32> -> vector<2x256xf32>
    %1194 = arith.addf %1193, %66 : vector<2x256xf32>
    %c0_287 = arith.constant 0 : index
    %c6_288 = arith.constant 6 : index
    %c0_289 = arith.constant 0 : index
    %1195 = vector.load %arg3[%c0_287, %c6_288, %c0_289] : memref<2x8x256xf32, #tpu.memory_space<vmem>>, vector<2x1x256xf32>
    %1196 = vector.shape_cast %1195 : vector<2x1x256xf32> to vector<2x256xf32>
    %1197 = vector.shape_cast %1194 : vector<2x256xf32> to vector<2x1x256xf32>
    tpu.vector_store %arg3[%c0_287, %c6_288, %c0_289], %1197 {strides = array<i32>} : memref<2x8x256xf32, #tpu.memory_space<vmem>>, vector<2x1x256xf32>,
    %cst_290 = arith.constant dense<0.000000e+00> : vector<2x256xf32>
    %1198 = tpu.matmul %1162, %38, %cst_290 {dimension_numbers = #tpu.dot_dimension_numbers<[1], [0], [0], [1], [0, 0, 1, 1], [], []>, precision = #tpu.contract_precision<fp32>} : vector<2x16xf32>, vector<16x256xf32>, vector<2x256xf32> -> vector<2x256xf32>
    %1199 = arith.addf %1198, %70 : vector<2x256xf32>
    %c0_291 = arith.constant 0 : index
    %c7_292 = arith.constant 7 : index
    %c0_293 = arith.constant 0 : index
    %1200 = vector.load %arg3[%c0_291, %c7_292, %c0_293] : memref<2x8x256xf32, #tpu.memory_space<vmem>>, vector<2x1x256xf32>
    %1201 = vector.shape_cast %1200 : vector<2x1x256xf32> to vector<2x256xf32>
    %1202 = vector.shape_cast %1199 : vector<2x256xf32> to vector<2x1x256xf32>
    tpu.vector_store %arg3[%c0_291, %c7_292, %c0_293], %1202 {strides = array<i32>} : memref<2x8x256xf32, #tpu.memory_space<vmem>>, vector<2x1x256xf32>,
    return
  }
}

</mosaic_0001>

<bundles_post_ra>
// kernel: tpu_custom_call.1
= control target key start
LH: loop header
LB: loop body
LE: loop exit
PB: predicated region body
PF: predicated region fallthrough
CT: control target
= control target key end

     0   :  { %8 = vsyncpa [#allocation3], 0  ;;  %s11268_s0 = inlined_call_operand.hbm [shape: f32[2,256], index: 0, kind: input, shape index: {}]   ;;  %s11269_s1 = inlined_call_operand.hbm [shape: f32[2,8,256], index: 1, kind: input, shape index: {}]   ;;  %s11270_s2 = inlined_call_operand.hbm [shape: f32[136], index: 2, kind: input, shape index: {}]   ;;  %s11271_s3 = inlined_call_operand.hbm [shape: f32[2,8,256], index: 3, kind: output, shape index: {}]  }
   0x1   :  { %9 = vsyncpa [#allocation7], 0 }
   0x2   :  { %10 = vsyncpa [#allocation5], 0 }
   0x3   :  { %11 = vsyncpa [#allocation4], 0  ;;  %s17_s14 = sshll.u32 %s11268_s0, 4  ;;  %s7229_s15 = smov [#allocation2]   ;;  %s18_s14 = int_to_ptr.hbm [resolvable:$true] %s17_s14 }
   0x4   :  { %s19_s16 = sshll.u32 %s7229_s15, 4  ;;  %s27_s19 = sshll.u32 %s11269_s1, 4  ;;  %s20_s16 = int_to_ptr.vmem [resolvable:$true] %s19_s16  ;;  %s28_s19 = int_to_ptr.hbm [resolvable:$true] %s27_s19 }
   0x5   :  { %22 = dma.hbm_to_vmem [thread:$0]  %s18_s14, 64, %s20_s16, [#allocation3]  }
   0x6   :  { %s7230_s20 = smov [#allocation6]   ;;  %s7231_s22 = smov 256  }
   0x7   :  { %s29_s21 = sshll.u32 %s7230_s20, 4  ;;  %s7232_s23 = smov 16   ;;  %s30_s21 = int_to_ptr.vmem [resolvable:$true] %s29_s21 }
   0x8   :  { %35 = dma.hbm_to_vmem [thread:$0]  %s28_s19, 512, %s30_s21, [#allocation7], %s7231_s22, %s7231_s22, %s7232_s23  }
   0x9   :  { %s41_s25 = sshll.u32 %s11270_s2, 4  ;;  %s7233_s26 = smov [#allocation8]   ;;  %s42_s25 = int_to_ptr.hbm [resolvable:$true] %s41_s25 }
   0xa   :  { %44 = dma.hbm_to_smem %s42_s25, 32, %s7233_s26, [#allocation5]  }
   0xb   :  { %7221 = dma.done.wait [#allocation3], 64  }
   0xc   :  { %7222 = vsyncadd [#allocation3], 4294967232 }
   0xd   :  { %7223 = dma.done.wait [#allocation7], 512  }
   0xe   :  { %7224 = vsyncadd [#allocation7], 4294966784 }
   0xf   :  { %7225 = dma.done.wait [#allocation5], 32  }
  0x10   :  { %7226 = vsyncadd [#allocation5], 4294967264 }
  0x11   :  { %57 = sfence }
  0x12   :  { %v253_v0 = vld [vmem:[#allocation6] ss:$8 sm:$0x3]  ;;  %v255_v1 = vld [vmem:[#allocation6 + $0x10] ss:$8 sm:$0x3] }
  0x13   :  { %258 = vst [vmem:[#allocation1] ss:$2 sm:$0xff] %v253_v0  ;;  %v265_v2 = vld [vmem:[#allocation6 + $0x1] ss:$8 sm:$0x3]  ;;  %vm11284_vm1 = vcmask 1041408  }
  0x14   :  { %260 = vst [vmem:[#allocation1 + $0x1] ss:$2 sm:$0xff] %v255_v1  ;;  %v267_v3 = vld [vmem:[#allocation6 + $0x11] ss:$8 sm:$0x3]  ;;  %s7452_s1 = sld [smem:[#allocation8]] }
  0x15   :  { %v277_v5 = vld [vmem:[#allocation6 + $0x2] ss:$8 sm:$0x3]  ;;  %v279_v6 = vld [vmem:[#allocation6 + $0x12] ss:$8 sm:$0x3] }
  0x16   :  { %v289_v8 = vld [vmem:[#allocation6 + $0x3] ss:$8 sm:$0x3]  ;;  %v291_v9 = vld [vmem:[#allocation6 + $0x13] ss:$8 sm:$0x3] }
  0x17   :  { %v301_v11 = vld [vmem:[#allocation6 + $0x4] ss:$8 sm:$0x3]  ;;  %v303_v12 = vld [vmem:[#allocation6 + $0x14] ss:$8 sm:$0x3] }
  0x18   :  { %v313_v14 = vld [vmem:[#allocation6 + $0x5] ss:$8 sm:$0x3]  ;;  %v315_v15 = vld [vmem:[#allocation6 + $0x15] ss:$8 sm:$0x3] }
  0x19   :  { %v325_v17 = vld [vmem:[#allocation6 + $0x6] ss:$8 sm:$0x3]  ;;  %v327_v18 = vld [vmem:[#allocation6 + $0x16] ss:$8 sm:$0x3] }
  0x1a   :  { %v337_v20 = vld [vmem:[#allocation6 + $0x7] ss:$8 sm:$0x3]  ;;  %v339_v21 = vld [vmem:[#allocation6 + $0x17] ss:$8 sm:$0x3] }
  0x1b   :  { %v261_v4 = vld [vmem:[#allocation1] sm:$0xff]  ;;  %v7277_v23 = vld [vmem:[#allocation2] sm:$0xf]  ;;  %s7458_s2 = sld [smem:[#allocation8 + $0x1]] }
  0x1c   :  { %270 = vst [vmem:[#allocation1] ss:$2 sm:$0xff] %v265_v2  ;;  %vm59_vm0 = vcmp.lt.f32.partialorder %v7277_v23, 1.0  ;;  %s7471_s27 = sld [smem:[#allocation8 + $0x2]] }
  0x1d   :  { %272 = vst [vmem:[#allocation1 + $0x1] ss:$2 sm:$0xff] %v267_v3  ;;  %v7282_v24 = vsel %vm59_vm0, %v261_v4, 0.0  ;;  %s7498_s28 = sld [smem:[#allocation8 + $0x3]] }
  0x1e   :  { %11638 = vst [vmem:[#allocation14_spill] sm:$0xff] %v7282_v24  ;;  %v370_v26 = vmul.f32 %v7282_v24, %v7282_v24  ;;  %s7501_s29 = sld [smem:[#allocation8 + $0x8]] }
  0x1f   :  { %s7520_s30 = sld [smem:[#allocation8 + $0x4]] }
  0x20   :  { %s7522_s4 = sld [smem:[#allocation8 + $0x9]] }
  0x21   :  { %s7532_s5 = sld [smem:[#allocation8 + $0x5]] }
  0x22   :  { %s7536_s6 = sld [smem:[#allocation8 + $0xa]] }
  0x23   :  { %s7545_s7 = sld [smem:[#allocation8 + $0xb]] }
  0x24   :  { %v273_v7 = vld [vmem:[#allocation1] sm:$0xff]  ;;  %s7569_s8 = sld [smem:[#allocation8 + $0xc]] }
  0x25   :  { %282 = vst [vmem:[#allocation1] ss:$2 sm:$0xff] %v277_v5  ;;  %v7293_v32 = vsel %vm59_vm0, %v273_v7, 0.0  ;;  %s7577_s9 = sld [smem:[#allocation8 + $0xd]] }
  0x26   :  { %284 = vst [vmem:[#allocation1 + $0x1] ss:$2 sm:$0xff] %v279_v6  ;;  %v438_v38 = vmul.f32 %v7293_v32, %v7293_v32  ;;  %s7584_s10 = sld [smem:[#allocation8 + $0x6]] }
  0x27   :  { %11639 = vst [vmem:[#allocation15_spill] sm:$0xff] %v7293_v32  ;;  %s7597_s11 = sld [smem:[#allocation8 + $0xe]] }
  0x28   :  { %s7624_s12 = sld [smem:[#allocation8 + $0x7]] }
  0x29   :  { %s7630_s13 = sld [smem:[#allocation8 + $0xf]] }
  0x2a   :  { %s7633_s14 = sld [smem:[#allocation8 + $0x10]] }
  0x2b   :  { %s7635_s15 = sld [smem:[#allocation8 + $0x11]] }
  0x2c   :  { %s7638_s16 = sld [smem:[#allocation8 + $0x12]] }
  0x2d   :  { %v285_v10 = vld [vmem:[#allocation1] sm:$0xff]  ;;  %s7640_s17 = sld [smem:[#allocation8 + $0x13]] }
  0x2e   :  { %294 = vst [vmem:[#allocation1] ss:$2 sm:$0xff] %v289_v8  ;;  %v7304_v44 = vsel %vm59_vm0, %v285_v10, 0.0  ;;  %s7646_s18 = sld [smem:[#allocation8 + $0x14]] }
  0x2f   :  { %296 = vst [vmem:[#allocation1 + $0x1] ss:$2 sm:$0xff] %v291_v9  ;;  %v506_v50 = vmul.f32 %v7304_v44, %v7304_v44  ;;  %s7658_s19 = sld [smem:[#allocation8 + $0x15]] }
  0x30   :  { %11640 = vst [vmem:[#allocation16_spill] sm:$0xff] %v7304_v44  ;;  %s7664_s20 = sld [smem:[#allocation8 + $0x16]] }
  0x31   :  { %s7679_s21 = sld [smem:[#allocation8 + $0x17]] }
  0x32   :  { %s7681_s0 = sld [smem:[#allocation8 + $0x18]] }
  0x33   :  { %s6465_s24 = sld [smem:[#allocation8 + $0x19]] }
  0x34   :  { %s6466_s25 = sld [smem:[#allocation8 + $0x1a]] }
  0x35   :  { %s6467_s26 = sld [smem:[#allocation8 + $0x1b]] }
  0x36   :  { %v7269_v13 = vld [vmem:[#allocation1] sm:$0xff] }
  0x37   :  { %306 = vst [vmem:[#allocation1] ss:$2 sm:$0xff] %v301_v11  ;;  %v7316_v56 = vsel %vm59_vm0, %v7269_v13, 0.0 }
  0x38   :  { %308 = vst [vmem:[#allocation1 + $0x1] ss:$2 sm:$0xff] %v303_v12  ;;  %v574_v62 = vmul.f32 %v7316_v56, %v7316_v56 }
  0x39   :  { %11641 = vst [vmem:[#allocation17_spill] sm:$0xff] %v7316_v56 }
  0x3f   :  { %v7271_v16 = vld [vmem:[#allocation1] sm:$0xff] }
  0x40   :  { %318 = vst [vmem:[#allocation1] ss:$2 sm:$0xff] %v313_v14  ;;  %v7328_v4 = vsel %vm59_vm0, %v7271_v16, 0.0 }
  0x41   :  { %320 = vst [vmem:[#allocation1 + $0x1] ss:$2 sm:$0xff] %v315_v15  ;;  %v642_v10 = vmul.f32 %v7328_v4, %v7328_v4 }
  0x42   :  { %11642 = vst [vmem:[#allocation18_spill] sm:$0xff] %v7328_v4 }
  0x48   :  { %v7273_v19 = vld [vmem:[#allocation1] sm:$0xff] }
  0x49   :  { %330 = vst [vmem:[#allocation1] ss:$2 sm:$0xff] %v325_v17  ;;  %v7340_v16 = vsel %vm59_vm0, %v7273_v19, 0.0 }
  0x4a   :  { %332 = vst [vmem:[#allocation1 + $0x1] ss:$2 sm:$0xff] %v327_v18 }
  0x4b   :  { %11643 = vst [vmem:[#allocation19_spill] sm:$0xff] %v7340_v16 }
  0x51   :  { %v7275_v22 = vld [vmem:[#allocation1] sm:$0xff] }
  0x52   :  { %342 = vst [vmem:[#allocation1] ss:$2 sm:$0xff] %v337_v20 }
  0x53   :  { %344 = vst [vmem:[#allocation1 + $0x1] ss:$2 sm:$0xff] %v339_v21 }
  0x5a   :  { %v7284_v25 = vld [vmem:[#allocation1] sm:$0xff] }
  0x5b   :  { %351 = vst [vmem:[#allocation1] ss:$4 sm:$0xff] %v7282_v24 }
  0x62   :  { %v352_v27 = vld.sshfl [vmem:[#allocation1] sm:$0xff pattern:$0x73625140]  ;;  %v353_v28 = vld.sshfl [vmem:[#allocation1 + $0x8] sm:$0xff pattern:$0x73625140] }
  0x63   :  { %v357_v29 = vsel %vm11284_vm1, %v352_v27, 0.0  ;;  %v358_v30 = vsel %vm11284_vm1, %v353_v28, 0.0  ;;  %372 = vst [vmem:[#allocation1] ss:$4 sm:$0xff] %v370_v26  ;;  %v710_v27 = vmul.f32 %v7340_v16, %v7340_v16 }
  0x64   :  { %v359_v31 = vadd.f32 %v358_v30, %v357_v29 }
  0x66   :  { %360 = vadd.xlane.f32.xlu0 %v359_v31 }
  0x6a   :  { %v373_v33 = vld.sshfl [vmem:[#allocation1] sm:$0xff pattern:$0x73625140]  ;;  %v374_v34 = vld.sshfl [vmem:[#allocation1 + $0x8] sm:$0xff pattern:$0x73625140] }
  0x6b   :  { %v377_v35 = vsel %vm11284_vm1, %v373_v33, 0.0  ;;  %v378_v36 = vsel %vm11284_vm1, %v374_v34, 0.0  ;;  %420 = vst [vmem:[#allocation1] ss:$4 sm:$0xff] %v7293_v32  ;;  %v7352_v33 = vsel %vm59_vm0, %v7275_v22, 0.0 }
  0x6c   :  { %v379_v37 = vadd.f32 %v378_v36, %v377_v35  ;;  %11644 = vst [vmem:[#allocation20_spill] sm:$0xff] %v7352_v33 }
  0x6e   :  { %380 = vadd.xlane.f32.xlu1 %v379_v37 }
  0x72   :  { %v421_v39 = vld.sshfl [vmem:[#allocation1] sm:$0xff pattern:$0x73625140]  ;;  %v422_v40 = vld.sshfl [vmem:[#allocation1 + $0x8] sm:$0xff pattern:$0x73625140] }
  0x73   :  { %440 = vst [vmem:[#allocation1] ss:$4 sm:$0xff] %v438_v38  ;;  %v425_v41 = vsel %vm11284_vm1, %v421_v39, 0.0  ;;  %v426_v42 = vsel %vm11284_vm1, %v422_v40, 0.0  ;;  %v778_v39 = vmul.f32 %v7352_v33, %v7352_v33 }
  0x74   :  { %v427_v43 = vadd.f32 %v426_v42, %v425_v41 }
  0x76   :  { %428 = vadd.xlane.f32.xlu0 %v427_v43 }
  0x7a   :  { %v441_v45 = vld.sshfl [vmem:[#allocation1] sm:$0xff pattern:$0x73625140]  ;;  %v442_v46 = vld.sshfl [vmem:[#allocation1 + $0x8] sm:$0xff pattern:$0x73625140] }
  0x7b   :  { %488 = vst [vmem:[#allocation1] ss:$4 sm:$0xff] %v7304_v44  ;;  %v445_v47 = vsel %vm11284_vm1, %v441_v45, 0.0  ;;  %v446_v48 = vsel %vm11284_vm1, %v442_v46, 0.0  ;;  %v7364_v45 = vsel %vm59_vm0, %v7284_v25, 0.0 }
  0x7c   :  { %v447_v49 = vadd.f32 %v446_v48, %v445_v47  ;;  %11645 = vst [vmem:[#allocation21_spill] sm:$0xff] %v7364_v45 }
  0x7e   :  { %448 = vadd.xlane.f32.xlu1 %v447_v49 }
  0x82   :  { %v489_v51 = vld.sshfl [vmem:[#allocation1] sm:$0xff pattern:$0x73625140]  ;;  %v490_v52 = vld.sshfl [vmem:[#allocation1 + $0x8] sm:$0xff pattern:$0x73625140] }
  0x83   :  { %v493_v53 = vsel %vm11284_vm1, %v489_v51, 0.0  ;;  %v494_v54 = vsel %vm11284_vm1, %v490_v52, 0.0  ;;  %508 = vst [vmem:[#allocation1] ss:$4 sm:$0xff] %v506_v50  ;;  %v846_v51 = vmul.f32 %v7364_v45, %v7364_v45 }
  0x84   :  { %v495_v55 = vadd.f32 %v494_v54, %v493_v53 }
  0x86   :  { %496 = vadd.xlane.f32.xlu2 %v495_v55 }
  0x8a   :  { %v509_v57 = vld.sshfl [vmem:[#allocation1] sm:$0xff pattern:$0x73625140]  ;;  %v510_v58 = vld.sshfl [vmem:[#allocation1 + $0x8] sm:$0xff pattern:$0x73625140] }
  0x8b   :  { %v513_v59 = vsel %vm11284_vm1, %v509_v57, 0.0  ;;  %v514_v60 = vsel %vm11284_vm1, %v510_v58, 0.0  ;;  %556 = vst [vmem:[#allocation1] ss:$4 sm:$0xff] %v7316_v56 }
  0x8c   :  { %v515_v61 = vadd.f32 %v514_v60, %v513_v59 }
  0x8e   :  { %516 = vadd.xlane.f32.xlu2 %v515_v61 }
  0x92   :  { %v557_v63 = vld.sshfl [vmem:[#allocation1] sm:$0xff pattern:$0x73625140]  ;;  %v558_v0 = vld.sshfl [vmem:[#allocation1 + $0x8] sm:$0xff pattern:$0x73625140] }
  0x93   :  { %v561_v1 = vsel %vm11284_vm1, %v557_v63, 0.0  ;;  %v562_v2 = vsel %vm11284_vm1, %v558_v0, 0.0  ;;  %576 = vst [vmem:[#allocation1] ss:$4 sm:$0xff] %v574_v62 }
  0x94   :  { %v563_v3 = vadd.f32 %v562_v2, %v561_v1 }
  0x96   :  { %564 = vadd.xlane.f32.xlu0 %v563_v3 }
  0x9a   :  { %v577_v5 = vld.sshfl [vmem:[#allocation1] sm:$0xff pattern:$0x73625140]  ;;  %v578_v6 = vld.sshfl [vmem:[#allocation1 + $0x8] sm:$0xff pattern:$0x73625140] }
  0x9b   :  { %v581_v7 = vsel %vm11284_vm1, %v577_v5, 0.0  ;;  %v582_v8 = vsel %vm11284_vm1, %v578_v6, 0.0  ;;  %624 = vst [vmem:[#allocation1] ss:$4 sm:$0xff] %v7328_v4 }
  0x9c   :  { %v583_v9 = vadd.f32 %v582_v8, %v581_v7 }
  0x9e   :  { %584 = vadd.xlane.f32.xlu1 %v583_v9 }
  0xa2   :  { %v625_v11 = vld.sshfl [vmem:[#allocation1] sm:$0xff pattern:$0x73625140]  ;;  %v626_v12 = vld.sshfl [vmem:[#allocation1 + $0x8] sm:$0xff pattern:$0x73625140] }
  0xa3   :  { %v629_v13 = vsel %vm11284_vm1, %v625_v11, 0.0  ;;  %v630_v14 = vsel %vm11284_vm1, %v626_v12, 0.0  ;;  %644 = vst [vmem:[#allocation1] ss:$4 sm:$0xff] %v642_v10 }
  0xa4   :  { %v631_v15 = vadd.f32 %v630_v14, %v629_v13 }
  0xa6   :  { %632 = vadd.xlane.f32.xlu2 %v631_v15 }
  0xaa   :  { %v645_v17 = vld.sshfl [vmem:[#allocation1] sm:$0xff pattern:$0x73625140]  ;;  %v646_v18 = vld.sshfl [vmem:[#allocation1 + $0x8] sm:$0xff pattern:$0x73625140] }
  0xab   :  { %v649_v20 = vsel %vm11284_vm1, %v645_v17, 0.0  ;;  %v650_v21 = vsel %vm11284_vm1, %v646_v18, 0.0  ;;  %692 = vst [vmem:[#allocation1] ss:$4 sm:$0xff] %v7340_v16 }
  0xac   :  { %v651_v26 = vadd.f32 %v650_v21, %v649_v20 }
  0xae   :  { %652 = vadd.xlane.f32.xlu0 %v651_v26 }
  0xb2   :  { %v693_v28 = vld.sshfl [vmem:[#allocation1] sm:$0xff pattern:$0x73625140]  ;;  %v694_v29 = vld.sshfl [vmem:[#allocation1 + $0x8] sm:$0xff pattern:$0x73625140] }
  0xb3   :  { %v697_v30 = vsel %vm11284_vm1, %v693_v28, 0.0  ;;  %v698_v19 = vsel %vm11284_vm1, %v694_v29, 0.0  ;;  %712 = vst [vmem:[#allocation1] ss:$4 sm:$0xff] %v710_v27 }
  0xb4   :  { %v699_v31 = vadd.f32 %v698_v19, %v697_v30 }
  0xb6   :  { %700 = vadd.xlane.f32.xlu1 %v699_v31 }
  0xba   :  { %v713_v34 = vld.sshfl [vmem:[#allocation1] sm:$0xff pattern:$0x73625140]  ;;  %v714_v35 = vld.sshfl [vmem:[#allocation1 + $0x8] sm:$0xff pattern:$0x73625140] }
  0xbb   :  { %v717_v36 = vsel %vm11284_vm1, %v713_v34, 0.0  ;;  %v718_v37 = vsel %vm11284_vm1, %v714_v35, 0.0  ;;  %760 = vst [vmem:[#allocation1] ss:$4 sm:$0xff] %v7352_v33 }
  0xbc   :  { %v719_v38 = vadd.f32 %v718_v37, %v717_v36 }
  0xbe   :  { %720 = vadd.xlane.f32.xlu2 %v719_v38 }
  0xc2   :  { %v761_v40 = vld.sshfl [vmem:[#allocation1] sm:$0xff pattern:$0x73625140]  ;;  %v762_v41 = vld.sshfl [vmem:[#allocation1 + $0x8] sm:$0xff pattern:$0x73625140] }
  0xc3   :  { %v765_v42 = vsel %vm11284_vm1, %v761_v40, 0.0  ;;  %v766_v22 = vsel %vm11284_vm1, %v762_v41, 0.0  ;;  %780 = vst [vmem:[#allocation1] ss:$4 sm:$0xff] %v778_v39 }
  0xc4   :  { %v767_v43 = vadd.f32 %v766_v22, %v765_v42 }
  0xc6   :  { %768 = vadd.xlane.f32.xlu0 %v767_v43 }
  0xca   :  { %v781_v46 = vld.sshfl [vmem:[#allocation1] sm:$0xff pattern:$0x73625140]  ;;  %v782_v47 = vld.sshfl [vmem:[#allocation1 + $0x8] sm:$0xff pattern:$0x73625140] }
  0xcb   :  { %v785_v48 = vsel %vm11284_vm1, %v781_v46, 0.0  ;;  %v786_v49 = vsel %vm11284_vm1, %v782_v47, 0.0  ;;  %828 = vst [vmem:[#allocation1] ss:$4 sm:$0xff] %v7364_v45 }
  0xcc   :  { %v787_v50 = vadd.f32 %v786_v49, %v785_v48 }
  0xce   :  { %788 = vadd.xlane.f32.xlu1 %v787_v50 }
  0xd2   :  { %v829_v52 = vld.sshfl [vmem:[#allocation1] sm:$0xff pattern:$0x73625140]  ;;  %v830_v53 = vld.sshfl [vmem:[#allocation1 + $0x8] sm:$0xff pattern:$0x73625140] }
  0xd3   :  { %v833_v54 = vsel %vm11284_vm1, %v829_v52, 0.0  ;;  %v834_v23 = vsel %vm11284_vm1, %v830_v53, 0.0  ;;  %848 = vst [vmem:[#allocation1] ss:$4 sm:$0xff] %v846_v51 }
  0xd4   :  { %v835_v25 = vadd.f32 %v834_v23, %v833_v54 }
  0xd6   :  { %836 = vadd.xlane.f32.xlu2 %v835_v25 }
  0xd9   :  { %v361_v61 = vpop.xlane.xlu0 %360 }
  0xda   :  { %v849_v55 = vld.sshfl [vmem:[#allocation1] sm:$0xff pattern:$0x73625140]  ;;  %v850_v57 = vld.sshfl [vmem:[#allocation1 + $0x8] sm:$0xff pattern:$0x73625140] }
  0xdb   :  { %v853_v58 = vsel %vm11284_vm1, %v849_v55, 0.0  ;;  %v854_v59 = vsel %vm11284_vm1, %v850_v57, 0.0  ;;  %v362_v1 = vsel %vm11284_vm1, %v361_v61, 0.0 }
  0xdc   :  { %v855_v60 = vadd.f32 %v854_v59, %v853_v58  ;;  %v363_v5 = vrot.slane %v362_v1, 4 }
  0xde   :  { %856 = vadd.xlane.f32.xlu0 %v855_v60  ;;  %v364_v12 = vadd.f32 %v363_v5, %v362_v1 }
  0xe0   :  { %v365_v26 = vrot.slane %v364_v12, 2 }
  0xe1   :  { %v381_v62 = vpop.xlane.xlu1 %380 }
  0xe2   :  { %v382_v8 = vsel %vm11284_vm1, %v381_v62, 0.0  ;;  %v366_v40 = vadd.f32 %v365_v26, %v364_v12 }
  0xe3   :  { %v383_v13 = vrot.slane %v382_v8, 4 }
  0xe4   :  { %v367_v51 = vrot.slane %v366_v40, 1 }
  0xe5   :  { %v384_v29 = vadd.f32 %v383_v13, %v382_v8 }
  0xe6   :  { %v368_v61 = vadd.f32 %v367_v51, %v366_v40 }
  0xe7   :  { %v385_v41 = vrot.slane %v384_v29, 2 }
  0xe9   :  { %v429_v0 = vpop.xlane.xlu0 %428  ;;  %v386_v52 = vadd.f32 %v385_v41, %v384_v29 }
  0xea   :  { %v430_v2 = vsel %vm11284_vm1, %v429_v0, 0.0 }
  0xeb   :  { %v431_v7 = vrot.slane %v430_v2, 4  ;;  %v387_v62 = vrot.slane %v386_v52, 1 }
  0xed   :  { %v432_v14 = vadd.f32 %v431_v7, %v430_v2 }
  0xef   :  { %v433_v30 = vrot.slane %v432_v14, 2 }
  0xf1   :  { %v449_v3 = vpop.xlane.xlu1 %448  ;;  %v434_v42 = vadd.f32 %v433_v30, %v432_v14 }
  0xf2   :  { %v450_v11 = vsel %vm11284_vm1, %v449_v3, 0.0 }
  0xf3   :  { %v451_v18 = vrot.slane %v450_v11, 4  ;;  %v435_v53 = vrot.slane %v434_v42, 1 }
  0xf5   :  { %v452_v35 = vadd.f32 %v451_v18, %v450_v11  ;;  %v388_v11 = vadd.f32 %v387_v62, %v386_v52 }
  0xf7   :  { %v453_v43 = vrot.slane %v452_v35, 2  ;;  %v389_v29 = vmul.f32 0.001953125, %v388_v11 }
  0xf9   :  { %v497_v63 = vpop.xlane.xlu2 %496  ;;  %v454_v25 = vadd.f32 %v453_v43, %v452_v35 }
  0xfa   :  { %v498_v10 = vsel %vm11284_vm1, %v497_v63, 0.0  ;;  %v436_v63 = vadd.f32 %v435_v53, %v434_v42 }
  0xfb   :  { %v499_v17 = vrot.slane %v498_v10, 4  ;;  %v455_v1 = vrot.slane %v454_v25, 1 }
  0xfc   :  { %v7388_v14 = vmul.f32 0.001953125, %v436_v63 }
  0xfd   :  { %v500_v34 = vadd.f32 %v499_v17, %v498_v10  ;;  %v7385_v10 = vmul.f32 0.001953125, %v368_v61 }
  0xff   :  { %v501_v22 = vrot.slane %v500_v34, 2 }
 0x101   :  { %v517_v6 = vpop.xlane.xlu2 %516  ;;  %v502_v23 = vadd.f32 %v501_v22, %v500_v34 }
 0x102   :  { %v518_v21 = vsel %vm11284_vm1, %v517_v6, 0.0 }
 0x103   :  { %v519_v36 = vrot.slane %v518_v21, 4  ;;  %v503_v0 = vrot.slane %v502_v23, 1 }
 0x105   :  { %v520_v46 = vadd.f32 %v519_v36, %v518_v21  ;;  %v504_v13 = vadd.f32 %v503_v0, %v502_v23 }
 0x107   :  { %v521_v55 = vrot.slane %v520_v46, 2 }
 0x109   :  { %v565_v9 = vpop.xlane.xlu0 %564  ;;  %v522_v2 = vadd.f32 %v521_v55, %v520_v46 }
 0x10a   :  { %v566_v15 = vsel %vm11284_vm1, %v565_v9, 0.0 }
 0x10b   :  { %v567_v27 = vrot.slane %v566_v15, 4  ;;  %v523_v17 = vrot.slane %v522_v2, 1 }
 0x10d   :  { %v568_v38 = vadd.f32 %v567_v27, %v566_v15  ;;  %v456_v15 = vadd.f32 %v455_v1, %v454_v25  ;;  %v524_v35 = vadd.f32 %v523_v17, %v522_v2 }
 0x10f   :  { %v569_v48 = vrot.slane %v568_v38, 2  ;;  %v457_v34 = vmul.f32 0.001953125, %v456_v15  ;;  %v525_v43 = vmul.f32 0.001953125, %v524_v35 }
 0x111   :  { %v585_v20 = vpop.xlane.xlu1 %584  ;;  %v570_v58 = vadd.f32 %v569_v48, %v568_v38 }
 0x112   :  { %v586_v19 = vsel %vm11284_vm1, %v585_v20, 0.0 }
 0x113   :  { %v587_v39 = vrot.slane %v586_v19, 4  ;;  %v571_v6 = vrot.slane %v570_v58, 1 }
 0x115   :  { %v588_v49 = vadd.f32 %v587_v39, %v586_v19  ;;  %v572_v26 = vadd.f32 %v571_v6, %v570_v58  ;;  %v7392_v19 = vmul.f32 0.001953125, %v504_v13 }
 0x117   :  { %v589_v59 = vrot.slane %v588_v49, 2  ;;  %v7396_v38 = vmul.f32 0.001953125, %v572_v26  ;;  %v526_v42 = vmul.f32 %v7392_v19, %v7392_v19 }
 0x119   :  { %v633_v28 = vpop.xlane.xlu2 %632  ;;  %v590_v7 = vadd.f32 %v589_v59, %v588_v49  ;;  %v594_v49 = vmul.f32 %v7396_v38, %v7396_v38 }
 0x11a   :  { %v634_v31 = vsel %vm11284_vm1, %v633_v28, 0.0  ;;  %v390_v28 = vmul.f32 %v7385_v10, %v7385_v10 }
 0x11b   :  { %v635_v37 = vrot.slane %v634_v31, 4  ;;  %v591_v27 = vrot.slane %v590_v7, 1 }
 0x11c   :  { %v391_v41 = vsub.f32 %v389_v29, %v390_v28 }
 0x11d   :  { %v636_v47 = vadd.f32 %v635_v37, %v634_v31  ;;  %v458_v31 = vmul.f32 %v7388_v14, %v7388_v14  ;;  %v592_v39 = vadd.f32 %v591_v27, %v590_v7 }
 0x11e   :  { %v392_v52 = vmax.f32 %v391_v41, 0.0 }
 0x11f   :  { %v637_v57 = vrot.slane %v636_v47, 2  ;;  %v459_v22 = vsub.f32 %v457_v34, %v458_v31 }
 0x120   :  { %v7407_v62 = vadd.f32 1e-05, %v392_v52 }
 0x121   :  { %v653_v50 = vpop.xlane.xlu0 %652  ;;  %v638_v5 = vadd.f32 %v637_v57, %v636_v47  ;;  %v460_v53 = vmax.f32 %v459_v22, 0.0 }
 0x122   :  { %v654_v54 = vsel %vm11284_vm1, %v653_v50, 0.0  ;;  %v593_v50 = vmul.f32 0.001953125, %v592_v39  ;;  %7064 = vrsqrt.f32 %v7407_v62  ;;  %vm400_vm2 = vweird.f32 %v7407_v62 }
 0x123   :  { %v655_v60 = vrot.slane %v654_v54, 4  ;;  %v639_v18 = vrot.slane %v638_v5, 1  ;;  %v7410_v1 = vadd.f32 1e-05, %v460_v53 }
 0x124   :  { %v595_v59 = vsub.f32 %v593_v50, %v594_v49 }
 0x125   :  { %v656_v3 = vadd.f32 %v655_v60, %v654_v54  ;;  %v640_v36 = vadd.f32 %v639_v18, %v638_v5  ;;  %v527_v54 = vsub.f32 %v525_v43, %v526_v42  ;;  %7066 = vrsqrt.f32 %v7410_v1 }
 0x126   :  { %v596_v6 = vmax.f32 %v595_v59, 0.0  ;;  %vm468_vm4 = vweird.f32 %v7410_v1 }
 0x127   :  { %v657_v8 = vrot.slane %v656_v3, 2  ;;  %v7400_v46 = vmul.f32 0.001953125, %v640_v36  ;;  %v528_v63 = vmax.f32 %v527_v54, 0.0 }
 0x128   :  { %v7418_v13 = vadd.f32 1e-05, %v596_v6  ;;  %v7425_v27 = vpop.eup %7064 }
 0x129   :  { %v701_v9 = vpop.xlane.xlu1 %700  ;;  %v658_v20 = vadd.f32 %v657_v8, %v656_v3  ;;  %v662_v25 = vmul.f32 %v7400_v46, %v7400_v46  ;;  %v7413_v8 = vadd.f32 1e-05, %v528_v63  ;;  %v395_v34 = vmul.f32 %v7425_v27, %v7407_v62 }
 0x12a   :  { %v702_v12 = vsel %vm11284_vm1, %v701_v9, 0.0  ;;  %vm401_vm3 = vweird.f32 %v7425_v27  ;;  %vm604_vm10 = vweird.f32 %v7418_v13 }
 0x12b   :  { %v703_v21 = vrot.slane %v702_v12, 4  ;;  %v659_v37 = vrot.slane %v658_v20, 1  ;;  %7068 = vrsqrt.f32 %v7413_v8  ;;  %v7428_v28 = vpop.eup %7066  ;;  %v396_v50 = vmul.f32 %v7425_v27, %v395_v34  ;;  %vm7483_vm6 = vmor %vm400_vm2, %vm401_vm3 }
 0x12c   :  { %7070 = vrsqrt.f32 %v7418_v13  ;;  %v463_v39 = vmul.f32 %v7428_v28, %v7410_v1  ;;  %vm469_vm5 = vweird.f32 %v7428_v28  ;;  %vm536_vm8 = vweird.f32 %v7413_v8 }
 0x12d   :  { %v704_v30 = vadd.f32 %v703_v21, %v702_v12  ;;  %v660_v47 = vadd.f32 %v659_v37, %v658_v20  ;;  %vm7492_vm7 = vmor %vm468_vm4, %vm469_vm5 }
 0x12e   :  { %v464_v53 = vmul.f32 %v7428_v28, %v463_v39 }
 0x12f   :  { %v705_v40 = vrot.slane %v704_v30, 2  ;;  %v661_v55 = vmul.f32 0.001953125, %v660_v47 }
 0x131   :  { %v721_v48 = vpop.xlane.xlu2 %720  ;;  %v706_v51 = vadd.f32 %v705_v40, %v704_v30  ;;  %v663_v2 = vsub.f32 %v661_v55, %v662_v25  ;;  %v7434_v37 = vpop.eup %7068 }
 0x132   :  { %v722_v23 = vsel %vm11284_vm1, %v721_v48, 0.0  ;;  %v7439_v43 = vpop.eup %7070  ;;  %vm537_vm9 = vweird.f32 %v7434_v37 }
 0x133   :  { %v707_v57 = vrot.slane %v706_v51, 1  ;;  %v723_v58 = vrot.slane %v722_v23, 4  ;;  %v664_v11 = vmax.f32 %v663_v2, 0.0  ;;  %v599_v25 = vmul.f32 %v7439_v43, %v7418_v13  ;;  %vm7516_vm12 = vmor %vm536_vm8, %vm537_vm9 }
 0x134   :  { %vm605_vm11 = vweird.f32 %v7439_v43 }
 0x135   :  { %v724_v61 = vadd.f32 %v723_v58, %v722_v23  ;;  %v708_v3 = vadd.f32 %v707_v57, %v706_v51  ;;  %v7421_v18 = vadd.f32 1e-05, %v664_v11  ;;  %v531_v51 = vmul.f32 %v7434_v37, %v7413_v8  ;;  %vm7527_vm14 = vmor %vm604_vm10, %vm605_vm11 }
 0x136   :  { %v397_v58 = vmul.f32 0.5, %v396_v50  ;;  %v472_v50 = vstv %s7458_s2  ;;  %s6469_s2 = sld [smem:[#allocation8 + $0x1d]] }
 0x137   :  { %v725_v5 = vrot.slane %v724_v61, 2  ;;  %v7416_v12 = vmul.f32 0.001953125, %v708_v3  ;;  %7072 = vrsqrt.f32 %v7421_v18  ;;  %v532_v59 = vmul.f32 %v7434_v37, %v531_v51 }
 0x138   :  { %vm672_vm13 = vweird.f32 %v7421_v18 }
 0x139   :  { %v769_v60 = vpop.xlane.xlu0 %768  ;;  %v726_v9 = vadd.f32 %v725_v5, %v724_v61  ;;  %v730_v20 = vmul.f32 %v7416_v12, %v7416_v12  ;;  %v465_v61 = vmul.f32 0.5, %v464_v53  ;;  %v533_v11 = vmul.f32 0.5, %v532_v59 }
 0x13a   :  { %v770_v0 = vsel %vm11284_vm1, %v769_v60, 0.0 }
 0x13b   :  { %v771_v7 = vrot.slane %v770_v0, 4  ;;  %v727_v15 = vrot.slane %v726_v9, 1  ;;  %v534_v39 = vsub.f32 1.5, %v533_v11 }
 0x13d   :  { %v772_v17 = vadd.f32 %v771_v7, %v770_v0  ;;  %v728_v21 = vadd.f32 %v727_v15, %v726_v9  ;;  %v7447_v23 = vpop.eup %7072  ;;  %v600_v0 = vmul.f32 %v7439_v43, %v599_v25  ;;  %v398_v9 = vsub.f32 1.5, %v397_v58 }
 0x13e   :  { %v667_v63 = vmul.f32 %v7447_v23, %v7421_v18  ;;  %v466_v15 = vsub.f32 1.5, %v465_v61  ;;  %v535_v1 = vmul.f32 %v7434_v37, %v534_v39  ;;  %vm673_vm15 = vweird.f32 %v7447_v23 }
 0x13f   :  { %v729_v29 = vmul.f32 0.001953125, %v728_v21  ;;  %v773_v30 = vrot.slane %v772_v17, 2  ;;  %v601_v21 = vmul.f32 0.5, %v600_v0  ;;  %vm7555_vm3 = vmor %vm672_vm13, %vm673_vm15  ;;  %v475_v39 = vstv %s7522_s4  ;;  %s7712_s4 = sld [smem:[#allocation8 + $0x22]] }
 0x141   :  { %v789_v26 = vpop.xlane.xlu1 %788  ;;  %v731_v35 = vsub.f32 %v729_v29, %v730_v20  ;;  %v774_v36 = vadd.f32 %v773_v30, %v772_v17  ;;  %v668_v17 = vmul.f32 %v7447_v23, %v667_v63  ;;  %v602_v62 = vsub.f32 1.5, %v601_v21 }
 0x142   :  { %v790_v31 = vsel %vm11284_vm1, %v789_v26, 0.0 }
 0x143   :  { %v791_v40 = vrot.slane %v790_v31, 4  ;;  %v732_v42 = vmax.f32 %v731_v35, 0.0  ;;  %v775_v47 = vrot.slane %v774_v36, 1 }
 0x145   :  { %v792_v48 = vadd.f32 %v791_v40, %v790_v31  ;;  %v7444_v52 = vadd.f32 1e-05, %v732_v42  ;;  %v776_v55 = vadd.f32 %v775_v47, %v774_v36  ;;  %v404_v36 = vstv %s7452_s1  ;;  %s6468_s1 = sld [smem:[#allocation8 + $0x1c]] }
 0x146   :  { %v399_v40 = vmul.f32 %v7425_v27, %v398_v9  ;;  %v467_v42 = vmul.f32 %v7428_v28, %v466_v15  ;;  %v608_v15 = vstv %s7498_s28  ;;  %s6471_s28 = sld [smem:[#allocation8 + $0x1f]] }
 0x147   :  { %v793_v54 = vrot.slane %v792_v48, 2  ;;  %7074 = vrsqrt.f32 %v7444_v52  ;;  %v7460_v2 = vmul.f32 0.001953125, %v776_v55  ;;  %vm740_vm0 = vweird.f32 %v7444_v52 }
 0x148   :  { %v403_v55 = vsel %vm7483_vm6, %v7425_v27, %v399_v40  ;;  %v603_v27 = vmul.f32 %v7439_v43, %v602_v62 }
 0x149   :  { %v837_v41 = vpop.xlane.xlu2 %836  ;;  %v794_v60 = vadd.f32 %v793_v54, %v792_v48  ;;  %v798_v31 = vmul.f32 %v7460_v2, %v7460_v2 }
 0x14a   :  { %v838_v22 = vsel %vm11284_vm1, %v837_v41, 0.0 }
 0x14b   :  { %v839_v49 = vrot.slane %v838_v22, 4  ;;  %v795_v3 = vrot.slane %v794_v60, 1 }
 0x14d   :  { %v840_v57 = vadd.f32 %v839_v49, %v838_v22  ;;  %v7462_v7 = vpop.eup %7074  ;;  %v796_v26 = vadd.f32 %v795_v3, %v794_v60  ;;  %v669_v22 = vmul.f32 0.5, %v668_v17  ;;  %v540_v60 = vstv %s7471_s27  ;;  %s6470_s27 = sld [smem:[#allocation8 + $0x1e]] }
 0x14e   :  { %v735_v20 = vmul.f32 %v7462_v7, %v7444_v52  ;;  %v405_v3 = vmul.f32 %v404_v36, %v403_v55  ;;  %vm741_vm2 = vweird.f32 %v7462_v7  ;;  %v607_v17 = vsel %vm7527_vm14, %v7439_v43, %v603_v27 }
 0x14f   :  { %v841_v5 = vrot.slane %v840_v57, 2  ;;  %v797_v47 = vmul.f32 0.001953125, %v796_v26  ;;  %v670_v13 = vsub.f32 1.5, %v669_v22  ;;  %v407_v26 = vstv %s7501_s29  ;;  %vm7564_vm4 = vmor %vm740_vm0, %vm741_vm2  ;;  %s7708_s29 = sld [smem:[#allocation8 + $0x20]] }
 0x150   :  { %v736_v30 = vmul.f32 %v7462_v7, %v735_v20  ;;  %v409_v36 = vmul.f32 %v405_v3, %v7282_v24  ;;  %v679_v27 = vstv %s7569_s8  ;;  %s7727_s8 = sld [smem:[#allocation8 + $0x26]] }
 0x151   :  { %v857_v6 = vpop.xlane.xlu0 %856  ;;  %v842_v34 = vadd.f32 %v841_v5, %v840_v57  ;;  %v799_v53 = vsub.f32 %v797_v47, %v798_v31  ;;  %v471_v57 = vsel %vm7492_vm7, %v7428_v28, %v467_v42  ;;  %v671_v11 = vmul.f32 %v7447_v23, %v670_v13 }
 0x152   :  { %v858_v29 = vsel %vm11284_vm1, %v857_v6, 0.0  ;;  %v737_v51 = vmul.f32 0.5, %v736_v30  ;;  %v473_v5 = vmul.f32 %v472_v50, %v471_v57  ;;  %v539_v6 = vsel %vm7516_vm12, %v7434_v37, %v535_v1 }
 0x153   :  { %v859_v35 = vrot.slane %v858_v29, 4  ;;  %v843_v54 = vrot.slane %v842_v34, 1  ;;  %v800_v59 = vmax.f32 %v799_v53, 0.0  ;;  %v541_v52 = vmul.f32 %v540_v60, %v539_v6 }
 0x154   :  { %v738_v8 = vsub.f32 1.5, %v737_v51  ;;  %v474_v18 = vmul.f32 %v473_v5, %v7388_v14  ;;  %v609_v31 = vmul.f32 %v608_v15, %v607_v17  ;;  %v744_v14 = vstv %s7532_s5  ;;  %s7714_s5 = sld [smem:[#allocation8 + $0x23]] }
 0x155   :  { %v860_v49 = vadd.f32 %v859_v35, %v858_v29  ;;  %v7534_v63 = vadd.f32 1e-05, %v800_v59  ;;  %v844_v0 = vadd.f32 %v843_v54, %v842_v34  ;;  %v406_v29 = vmul.f32 %v405_v3, %v7385_v10 }
 0x156   :  { %v739_v20 = vmul.f32 %v7462_v7, %v738_v8  ;;  %v676_v34 = vstv %s7520_s30  ;;  %v675_v35 = vsel %vm7555_vm3, %v7447_v23, %v671_v11  ;;  %v542_v41 = vmul.f32 %v541_v52, %v7392_v19  ;;  %s6473_s30 = sld [smem:[#allocation8 + $0x21]] }
 0x157   :  { %v861_v25 = vrot.slane %v860_v49, 2  ;;  %7076 = vrsqrt.f32 %v7534_v63  ;;  %v7560_v21 = vmul.f32 0.001953125, %v844_v0  ;;  %v408_v22 = vsub.f32 %v407_v26, %v406_v29 }
 0x158   :  { %v743_v42 = vsel %vm7564_vm4, %v7462_v7, %v739_v20  ;;  %v543_v47 = vstv %s7536_s6  ;;  %v677_v48 = vmul.f32 %v676_v34, %v675_v35  ;;  %v477_v50 = vmul.f32 %v473_v5, %v7293_v32  ;;  %s7722_s6 = sld [smem:[#allocation8 + $0x24]] }
 0x159   :  { %v862_v28 = vadd.f32 %v861_v25, %v860_v49  ;;  %v866_v23 = vmul.f32 %v7560_v21, %v7560_v21  ;;  %v476_v49 = vsub.f32 %v475_v39, %v474_v18  ;;  %v610_v19 = vmul.f32 %v609_v31, %v7396_v38 }
 0x15a   :  { %v611_v53 = vstv %s7545_s7  ;;  %v745_v54 = vmul.f32 %v744_v14, %v743_v42  ;;  %v544_v1 = vsub.f32 %v543_v47, %v542_v41  ;;  %v545_v25 = vmul.f32 %v541_v52, %v7304_v44  ;;  %s6477_s7 = sld [smem:[#allocation8 + $0x25]] }
 0x15b   :  { %v863_v9 = vrot.slane %v862_v28, 1  ;;  %v7594_v55 = vadd.f32 %v409_v36, %v408_v22  ;;  %v678_v57 = vmul.f32 %v677_v48, %v7400_v46  ;;  %v7599_v59 = vadd.f32 %v477_v50, %v476_v49 }
 0x15c   :  { %v612_v38 = vsub.f32 %v611_v53, %v610_v19  ;;  %v613_v60 = vmul.f32 %v609_v31, %v7316_v56  ;;  %v7604_v0 = vadd.f32 %v545_v25, %v544_v1  ;;  %v681_v3 = vmul.f32 %v677_v48, %v7328_v4 }
 0x15d   :  { %v864_v43 = vadd.f32 %v863_v9, %v862_v28  ;;  %v7077_v40 = vpop.eup %7076  ;;  %v746_v28 = vmul.f32 %v745_v54, %v7416_v12  ;;  %v747_v46 = vstv %s7577_s9  ;;  %v812_v5 = vstv %s7584_s10  ;;  %s7731_s9 = sld [smem:[#allocation8 + $0x27]] }
 0x15e   :  { %v803_v62 = vmul.f32 %v7077_v40, %v7534_v63  ;;  %vm809_vm5 = vweird.f32 %v7077_v40  ;;  %v680_v6 = vsub.f32 %v679_v27, %v678_v57  ;;  %vm808_vm6 = vweird.f32 %v7534_v63  ;;  %s7741_s10 = sld [smem:[#allocation8 + $0x28]] }
 0x15f   :  { %v865_v10 = vmul.f32 0.001953125, %v864_v43  ;;  %v412_v11 = vmin.f32 %v7594_v55, 0.0  ;;  %v480_v15 = vmin.f32 %v7599_v59, 0.0  ;;  %vm810_vm7 = vmor %vm808_vm6, %vm809_vm5  ;;  %v7612_v12 = vadd.f32 %v613_v60, %v612_v38 }
 0x160   :  { %v804_v7 = vmul.f32 %v7077_v40, %v803_v62  ;;  %v748_v17 = vsub.f32 %v747_v46, %v746_v28  ;;  %v749_v37 = vmul.f32 %v745_v54, %v7340_v16  ;;  %v548_v26 = vmin.f32 %v7604_v0, 0.0 }
 0x161   :  { %v867_v51 = vsub.f32 %v865_v10, %v866_v23  ;;  %v7616_v29 = vadd.f32 %v681_v3, %v680_v6  ;;  %v815_v30 = vstv %s7597_s11  ;;  %v413_v43 = vmul.f32 1.442695, %v412_v11  ;;  %s7744_s11 = sld [smem:[#allocation8 + $0x29]] }
 0x162   :  { %v805_v58 = vmul.f32 0.5, %v804_v7  ;;  %v481_v31 = vmul.f32 1.442695, %v480_v15  ;;  %v616_v34 = vmin.f32 %v7612_v12, 0.0  ;;  %v7621_v35 = vadd.f32 %v749_v37, %v748_v17 }
 0x163   :  { %v868_v13 = vmax.f32 %v867_v51, 0.0  ;;  %v684_v41 = vmin.f32 %v7616_v29, 0.0  ;;  %v880_v19 = vstv %s7624_s12  ;;  %vm411_vm11 = vcmp.gt.f32.partialorder %v7594_v55, 0.0  ;;  %s7747_s12 = sld [smem:[#allocation8 + $0x2a]] }
 0x164   :  { %v806_v61 = vsub.f32 1.5, %v805_v58  ;;  %v752_v23 = vmin.f32 %v7621_v35, 0.0  ;;  %vm479_vm12 = vcmp.gt.f32.partialorder %v7599_v59, 0.0  ;;  %vm547_vm13 = vcmp.gt.f32.partialorder %v7604_v0, 0.0 }
 0x165   :  { %v869_v8 = vadd.f32 1e-05, %v868_v13  ;;  %v685_v47 = vmul.f32 1.442695, %v684_v41  ;;  %v883_v13 = vstv %s7630_s13  ;;  %v901_v15 = vstv %s7638_s16  ;;  %s7750_s13 = sld [smem:[#allocation8 + $0x2b]] }
 0x166   :  { %v807_v9 = vmul.f32 %v7077_v40, %v806_v61  ;;  %v753_v49 = vmul.f32 1.442695, %v752_v23  ;;  %v894_v61 = vstv %s7633_s14  ;;  %vm615_vm14 = vcmp.gt.f32.partialorder %v7612_v12, 0.0  ;;  %s6484_s14 = sld [smem:[#allocation8 + $0x2c]] }
 0x167   :  { %7078 = vrsqrt.f32 %v869_v8  ;;  %vm876_vm9 = vweird.f32 %v869_v8  ;;  %vm683_vm15 = vcmp.gt.f32.partialorder %v7616_v29, 0.0  ;;  %vm751_vm0 = vcmp.gt.f32.partialorder %v7621_v35, 0.0  ;;  %s6486_s16 = sld [smem:[#allocation8 + $0x2e]] }
 0x168   :  { %v811_v52 = vsel %vm810_vm7, %v7077_v40, %v807_v9  ;;  %v549_v40 = vmul.f32 1.442695, %v548_v26  ;;  %7080 = vpow2.f32 %v413_v43  ;;  %v905_v26 = vstv %s7640_s17  ;;  %s7765_s17 = sld [smem:[#allocation8 + $0x2f]] }
 0x169   :  { %v813_v20 = vmul.f32 %v812_v5, %v811_v52  ;;  %7082 = vpow2.f32 %v481_v31  ;;  %v897_v5 = vstv %s7635_s15  ;;  %v917_v41 = vstv %s7664_s20  ;;  %s6485_s15 = sld [smem:[#allocation8 + $0x2d]] }
 0x16a   :  { %7084 = vpow2.f32 %v549_v40  ;;  %s8500_s20 = sld [smem:[#allocation8 + $0x35]] }
 0x16b   :  { %v814_v63 = vmul.f32 %v813_v20, %v7460_v2  ;;  %v817_v39 = vmul.f32 %v813_v20, %v7352_v33  ;;  %v617_v2 = vmul.f32 1.442695, %v616_v34 }
 0x16d   :  { %v7079_v18 = vpop.eup %7078  ;;  %v816_v36 = vsub.f32 %v815_v30, %v814_v63  ;;  %7086 = vpow2.f32 %v617_v2 }
 0x16e   :  { %v871_v10 = vmul.f32 %v7079_v18, %v869_v8  ;;  %vm877_vm8 = vweird.f32 %v7079_v18  ;;  %v7081_v50 = vpop.eup %7080  ;;  %7088 = vpow2.f32 %v685_v47 }
 0x16f   :  { %v7627_v14 = vadd.f32 %v817_v39, %v816_v36  ;;  %v7083_v53 = vpop.eup %7082  ;;  %vm878_vm10 = vmor %vm876_vm9, %vm877_vm8  ;;  %7090 = vpow2.f32 %v753_v49  ;;  %v6434_v57 = vadd.f32 -1.0, %v7081_v50  ;;  %v913_v39 = vstv %s7658_s19  ;;  %s8453_s19 = sld [smem:[#allocation8 + $0x38]] }
 0x170   :  { %v872_v42 = vmul.f32 %v7079_v18, %v871_v10  ;;  %v7085_v1 = vpop.eup %7084  ;;  %v6437_v58 = vadd.f32 -1.0, %v7083_v53  ;;  %v925_v50 = vstv %s7681_s0  ;;  %s8660_s0 = sld [smem:[#allocation8 + $0x36]] }
 0x171   :  { %v820_v48 = vmin.f32 %v7627_v14, 0.0  ;;  %v6440_v27 = vadd.f32 -1.0, %v7085_v1  ;;  %v7652_v46 = vsel %vm411_vm11, %v7594_v55, %v6434_v57  ;;  %vm819_vm2 = vcmp.gt.f32.partialorder %v7627_v14, 0.0 }
 0x172   :  { %v873_v22 = vmul.f32 0.5, %v872_v42  ;;  %v7656_v6 = vsel %vm479_vm12, %v7599_v59, %v6437_v58  ;;  %v895_v52 = vmul.f32 %v894_v61, %v7652_v46  ;;  %v936_v57 = vstv %s6467_s26  ;;  %s8869_s26 = sld [smem:[#allocation8 + $0x3b]] }
 0x173   :  { %v821_v54 = vmul.f32 1.442695, %v820_v48  ;;  %v7087_v38 = vpop.eup %7086  ;;  %v7662_v17 = vsel %vm547_vm13, %v7604_v0, %v6440_v27  ;;  %v898_v20 = vmul.f32 %v897_v5, %v7656_v6  ;;  %v921_v48 = vstv %s7679_s21  ;;  %s8610_s21 = sld [smem:[#allocation8 + $0x39]] }
 0x174   :  { %v874_v62 = vsub.f32 1.5, %v873_v22  ;;  %v7089_v28 = vpop.eup %7088  ;;  %v6443_v9 = vadd.f32 -1.0, %v7087_v38  ;;  %v902_v0 = vmul.f32 %v901_v15, %v7662_v17  ;;  %v944_v27 = vstv %s6469_s2  ;;  %s10279_s2 = sld [smem:[#allocation8 + $0x40]] }
 0x175   :  { %7092 = vpow2.f32 %v821_v54  ;;  %v6446_v37 = vadd.f32 -1.0, %v7089_v28  ;;  %v899_v36 = vadd.f32 %v898_v20, %v895_v52  ;;  %v932_v54 = vstv %s6466_s25  ;;  %s8849_s25 = sld [smem:[#allocation8 + $0x37]] }
 0x176   :  { %v875_v51 = vmul.f32 %v7079_v18, %v874_v62  ;;  %v7671_v30 = vsel %vm615_vm14, %v7612_v12, %v6443_v9  ;;  %v933_v58 = vmul.f32 %v932_v54, %v7662_v17 }
 0x177   :  { %v7677_v31 = vsel %vm683_vm15, %v7616_v29, %v6446_v37  ;;  %v906_v12 = vmul.f32 %v905_v26, %v7671_v30  ;;  %v903_v40 = vadd.f32 %v902_v0, %v899_v36  ;;  %v956_v0 = vstv %s7708_s29  ;;  %s10286_s29 = sld [smem:[#allocation8 + $0x41]] }
 0x178   :  { %v879_v7 = vsel %vm878_vm10, %v7079_v18, %v875_v51  ;;  %v909_v18 = vstv %s7646_s18  ;;  %v957_v36 = vmul.f32 %v956_v0, %v7652_v46  ;;  %v1002_v0 = vstv %s6484_s14  ;;  %s8331_s18 = sld [smem:[#allocation8 + $0x34]] }
 0x179   :  { %v881_v25 = vmul.f32 %v880_v19, %v879_v7  ;;  %v910_v29 = vmul.f32 %v909_v18, %v7677_v31  ;;  %v907_v2 = vadd.f32 %v906_v12, %v903_v40  ;;  %v928_v19 = vstv %s6465_s24  ;;  %s8706_s24 = sld [smem:[#allocation8 + $0x3a]] }
 0x17a   :  { %v926_v7 = vmul.f32 %v925_v50, %v7652_v46  ;;  %v929_v1 = vmul.f32 %v928_v19, %v7656_v6  ;;  %v967_v40 = vstv %s7714_s5  ;;  %s10292_s5 = sld [smem:[#allocation8 + $0x45]] }
 0x17b   :  { %v882_v60 = vmul.f32 %v881_v25, %v7560_v21  ;;  %v885_v3 = vmul.f32 %v881_v25, %v7364_v45  ;;  %v7091_v21 = vpop.eup %7090  ;;  %v911_v47 = vadd.f32 %v910_v29, %v907_v2  ;;  %v11723_v45 = vmov 0  ;;  %s6900_s14 = sld [smem:[#allocation8 + $0x50]] }
 0x17c   :  { %v7093_v55 = vpop.eup %7092  ;;  %v6449_v43 = vadd.f32 -1.0, %v7091_v21  ;;  %v930_v38 = vadd.f32 %v929_v1, %v926_v7  ;;  %v952_v21 = vstv %s6471_s28  ;;  %v983_v1 = vstv %s7731_s9  ;;  %s10283_s28 = sld [smem:[#allocation8 + $0x3d]] }
 0x17d   :  { %v884_v8 = vsub.f32 %v883_v13, %v882_v60  ;;  %v6452_v34 = vadd.f32 -1.0, %v7093_v55  ;;  %v940_v13 = vstv %s6468_s1  ;;  %v937_v60 = vmul.f32 %v936_v57, %v7671_v30  ;;  %s10277_s1 = sld [smem:[#allocation8 + $0x3c]] }
 0x17e   :  { %v7687_v10 = vsel %vm751_vm0, %v7621_v35, %v6449_v43  ;;  %v934_v28 = vadd.f32 %v933_v58, %v930_v38  ;;  %v941_v61 = vmul.f32 %v940_v13, %v7677_v31  ;;  %s10302_s9 = sld [smem:[#allocation8 + $0x49]] }
 0x17f   :  { %v886_v11 = vadd.f32 %v885_v3, %v884_v8  ;;  %v7693_v42 = vsel %vm819_vm2, %v7627_v14, %v6452_v34  ;;  %v914_v23 = vmul.f32 %v913_v39, %v7687_v10  ;;  %v948_v8 = vstv %s6470_s27  ;;  %s10281_s27 = sld [smem:[#allocation8 + $0x44]] }
 0x180   :  { %v918_v35 = vmul.f32 %v917_v41, %v7693_v42  ;;  %v938_v3 = vadd.f32 %v937_v60, %v934_v28  ;;  %v945_v5 = vmul.f32 %v944_v27, %v7687_v10  ;;  %v949_v55 = vmul.f32 %v948_v8, %v7693_v42 }
 0x181   :  { %v888_v59 = vmin.f32 %v886_v11, 0.0  ;;  %v915_v49 = vadd.f32 %v914_v23, %v911_v47  ;;  %vm887_vm3 = vcmp.gt.f32.partialorder %v886_v11, 0.0  ;;  %v963_v34 = vstv %s7712_s4  ;;  %s10290_s4 = sld [smem:[#allocation8 + $0x3e]] }
 0x182   :  { %v942_v37 = vadd.f32 %v941_v61, %v938_v3  ;;  %v964_v2 = vmul.f32 %v963_v34, %v7662_v17  ;;  %v971_v47 = vstv %s7722_s6  ;;  %v987_v3 = vstv %s7741_s10  ;;  %s10295_s6 = sld [smem:[#allocation8 + $0x46]] }
 0x183   :  { %v889_v63 = vmul.f32 1.442695, %v888_v59  ;;  %v919_v14 = vadd.f32 %v918_v35, %v915_v49  ;;  %v975_v49 = vstv %s6477_s7  ;;  %v972_v19 = vmul.f32 %v971_v47, %v7677_v31  ;;  %s10297_s7 = sld [smem:[#allocation8 + $0x43]] }
 0x184   :  { %v946_v26 = vadd.f32 %v945_v5, %v942_v37  ;;  %v976_v54 = vmul.f32 %v975_v49, %v7687_v10  ;;  %v990_v5 = vstv %s7744_s11  ;;  %s10307_s10 = sld [smem:[#allocation8 + $0x47]] }
 0x185   :  { %7094 = vpow2.f32 %v889_v63  ;;  %v959_v63 = vstv %s6473_s30  ;;  %s10288_s30 = sld [smem:[#allocation8 + $0x42]] }
 0x186   :  { %v950_v18 = vadd.f32 %v949_v55, %v946_v26  ;;  %v960_v12 = vmul.f32 %v959_v63, %v7656_v6  ;;  %v998_v55 = vstv %s7750_s13  ;;  %s10313_s11 = sld [smem:[#allocation8 + $0x48]] }
 0x187   :  { %s10322_s13 = sld [smem:[#allocation8 + $0x4b]] }
 0x18b   :  { %v7095_v22 = vpop.eup %7094 }
 0x18c   :  { %v6455_v62 = vadd.f32 -1.0, %v7095_v22 }
 0x18e   :  { %v7699_v51 = vsel %vm887_vm3, %v886_v11, %v6455_v62  ;;  %v968_v62 = vmul.f32 %v967_v40, %v7671_v30 }
 0x18f   :  { %v922_v53 = vmul.f32 %v921_v48, %v7699_v51  ;;  %v953_v43 = vmul.f32 %v952_v21, %v7699_v51  ;;  %v961_v48 = vadd.f32 %v960_v12, %v957_v36  ;;  %v984_v8 = vmul.f32 %v983_v1, %v7699_v51 }
 0x190   :  { %v994_v21 = vstv %s7747_s12  ;;  %v1003_v36 = vmul.f32 %v1002_v0, %v7677_v31  ;;  %v1010_v12 = vstv %s6486_s16  ;;  %s10317_s12 = sld [smem:[#allocation8 + $0x4a]] }
 0x191   :  { %v7704_v25 = vadd.f32 %v922_v53, %v919_v14  ;;  %v7733_v39 = vadd.f32 %v953_v43, %v950_v18  ;;  %v965_v50 = vadd.f32 %v964_v2, %v961_v48  ;;  %v979_v14 = vstv %s7727_s8  ;;  %s10299_s8 = sld [smem:[#allocation8 + $0x3f]] }
 0x192   :  { %v980_v38 = vmul.f32 %v979_v14, %v7693_v42  ;;  %v1006_v18 = vstv %s6485_s15  ;;  %v1011_v47 = vmul.f32 %v1010_v12, %v7693_v42  ;;  %s10381_s15 = sld [smem:[#allocation8 + $0x54]] }
 0x193   :  { %1020 = vst [vmem:[#allocation1] ss:$4 sm:$0xff] %v7704_v25  ;;  %v1038_v9 = vmul.f32 %v7704_v25, %v7704_v25  ;;  %v969_v53 = vadd.f32 %v968_v62, %v965_v50  ;;  %v1106_v7 = vmul.f32 %v7733_v39, %v7733_v39  ;;  %s10383_s16 = sld [smem:[#allocation8 + $0x51]] }
 0x195   :  { %v973_v13 = vadd.f32 %v972_v19, %v969_v53 }
 0x197   :  { %v977_v61 = vadd.f32 %v976_v54, %v973_v13 }
 0x19a   :  { %v1021_v11 = vld.sshfl [vmem:[#allocation1] sm:$0xff pattern:$0x73625140]  ;;  %v1022_v15 = vld.sshfl [vmem:[#allocation1 + $0x8] sm:$0xff pattern:$0x73625140] }
 0x19b   :  { %v1025_v52 = vsel %vm11284_vm1, %v1021_v11, 0.0  ;;  %v1026_v20 = vsel %vm11284_vm1, %v1022_v15, 0.0  ;;  %1040 = vst [vmem:[#allocation1] ss:$4 sm:$0xff] %v1038_v9  ;;  %v981_v9 = vadd.f32 %v980_v38, %v977_v61  ;;  %v988_v11 = vmul.f32 %v987_v3, %v7652_v46 }
 0x19c   :  { %v1027_v59 = vadd.f32 %v1026_v20, %v1025_v52  ;;  %v991_v15 = vmul.f32 %v990_v5, %v7656_v6  ;;  %v999_v6 = vmul.f32 %v998_v55, %v7671_v30  ;;  %v11272_v61 = vlaneseq }
 0x19d   :  { %v7767_v37 = vadd.f32 %v984_v8, %v981_v9  ;;  %v11661_v55 = vmov 0 }
 0x19e   :  { %1028 = vadd.xlane.f32.xlu1 %v1027_v59  ;;  %v995_v59 = vmul.f32 %v994_v21, %v7662_v17  ;;  %v992_v63 = vadd.f32 %v991_v15, %v988_v11  ;;  %v1007_v17 = vmul.f32 %v1006_v18, %v7687_v10  ;;  %v7796_v8 = vand.u32 127, %v11272_v61 }
 0x19f   :  { %v7799_v3 = vshrl.u32 %v11272_v61, 7  ;;  %v11670_v18 = vmov 0 }
 0x1a0   :  { %v996_v34 = vadd.f32 %v995_v59, %v992_v63  ;;  %11659 = vst [vmem:[#allocation23_spill] sm:$0xff] %v7796_v8  ;;  %v132_v5 = vadd.s32 1, %v7796_v8  ;;  %v7804_v21 = vmul.u32 16, %v7796_v8 }
 0x1a1   :  { %11660 = vst [vmem:[#allocation24_spill] sm:$0xff] %v7799_v3  ;;  %v80_v9 = vadd.s32 120, %v7799_v3  ;;  %v79_v15 = vadd.s32 112, %v7799_v3  ;;  %v78_v59 = vadd.s32 104, %v7799_v3  ;;  %v8075_v33 = vadd.s32 8, %v7799_v3 }
 0x1a2   :  { %v1041_v29 = vld.sshfl [vmem:[#allocation1] sm:$0xff pattern:$0x73625140]  ;;  %v1042_v41 = vld.sshfl [vmem:[#allocation1 + $0x8] sm:$0xff pattern:$0x73625140]  ;;  %v1000_v40 = vadd.f32 %v999_v6, %v996_v34 }
 0x1a3   :  { %v1045_v23 = vsel %vm11284_vm1, %v1041_v29, 0.0  ;;  %v1046_v22 = vsel %vm11284_vm1, %v1042_v41, 0.0  ;;  %1088 = vst [vmem:[#allocation1] ss:$4 sm:$0xff] %v7733_v39  ;;  %v1174_v29 = vmul.f32 %v7767_v37, %v7767_v37  ;;  %v1014_v41 = vstv %s7765_s17  ;;  %s10385_s17 = sld [smem:[#allocation8 + $0x52]] }
 0x1a4   :  { %v1047_v35 = vadd.f32 %v1046_v22, %v1045_v23  ;;  %v1004_v22 = vadd.f32 %v1003_v36, %v1000_v40  ;;  %v1015_v62 = vmul.f32 %v1014_v41, %v7699_v51  ;;  %v7806_v11 = vmul.u32 16, %v132_v5  ;;  %11727 = vst [vmem:[#allocation66_spill] sm:$0xff] %v8075_v33 }
 0x1a5   :  { %vm115_vm4 = vcmp.ge.s32.totalorder %v80_v9, %v7804_v21  ;;  %vm114_vm7 = vcmp.ge.s32.totalorder %v79_v15, %v7804_v21  ;;  %vm113_vm10 = vcmp.ge.s32.totalorder %v78_v59, %v7804_v21 }
 0x1a6   :  { %1048 = vadd.xlane.f32.xlu2 %v1047_v35  ;;  %v1008_v31 = vadd.f32 %v1007_v17, %v1004_v22  ;;  %vm149_vm5 = vcmp.lt.s32.totalorder %v80_v9, %v7806_v11  ;;  %vm148_vm8 = vcmp.lt.s32.totalorder %v79_v15, %v7806_v11  ;;  %vm147_vm11 = vcmp.lt.s32.totalorder %v78_v59, %v7806_v11 }
 0x1a7   :  { %vm7811_vm6 = vmand %vm115_vm4, %vm149_vm5  ;;  %v76_v17 = vadd.s32 88, %v7799_v3  ;;  %v11698_v9 = vmov 0 }
 0x1a8   :  { %v1012_v10 = vadd.f32 %v1011_v47, %v1008_v31  ;;  %v11662_v55 = vsel %vm7811_vm6, 4294967295, %v11661_v55  ;;  %vm7823_vm9 = vmand %vm114_vm7, %vm148_vm8 }
 0x1a9   :  { %11663 = vst [vmem:[#allocation25_spill] sm:$0xff] %v11662_v55  ;;  %vm7839_vm12 = vmand %vm113_vm10, %vm147_vm11  ;;  %vm111_vm0 = vcmp.ge.s32.totalorder %v76_v17, %v7804_v21  ;;  %vm145_vm2 = vcmp.lt.s32.totalorder %v76_v17, %v7806_v11  ;;  %v11706_v17 = vmov 0 }
 0x1aa   :  { %v1089_v57 = vld.sshfl [vmem:[#allocation1] sm:$0xff pattern:$0x73625140]  ;;  %v1090_v58 = vld.sshfl [vmem:[#allocation1 + $0x8] sm:$0xff pattern:$0x73625140]  ;;  %v7784_v49 = vadd.f32 %v1015_v62, %v1012_v10  ;;  %vm7880_vm3 = vmand %vm111_vm0, %vm145_vm2 }
 0x1ab   :  { %v1093_v60 = vsel %vm11284_vm1, %v1089_v57, 0.0  ;;  %v1094_v27 = vsel %vm11284_vm1, %v1090_v58, 0.0  ;;  %1108 = vst [vmem:[#allocation1] ss:$4 sm:$0xff] %v1106_v7  ;;  %v11671_v18 = vsel %vm7839_vm12, 4294967295, %v11670_v18  ;;  %v11685_v10 = vmov 0 }
 0x1ac   :  { %v1095_v28 = vadd.f32 %v1094_v27, %v1093_v60  ;;  %11658 = vst [vmem:[#allocation22_spill] sm:$0xff] %v7784_v49  ;;  %v1242_v54 = vmul.f32 %v7784_v49, %v7784_v49 }
 0x1ad   :  { %11672 = vst [vmem:[#allocation30_spill] sm:$0xff] %v11671_v18 }
 0x1ae   :  { %1096 = vadd.xlane.f32.xlu0 %v1095_v28 }
 0x1b2   :  { %v1109_v52 = vld.sshfl [vmem:[#allocation1] sm:$0xff pattern:$0x73625140]  ;;  %v1110_v20 = vld.sshfl [vmem:[#allocation1 + $0x8] sm:$0xff pattern:$0x73625140] }
 0x1b3   :  { %v1113_v26 = vsel %vm11284_vm1, %v1109_v52, 0.0  ;;  %v1114_v43 = vsel %vm11284_vm1, %v1110_v20, 0.0  ;;  %1156 = vst [vmem:[#allocation1] ss:$4 sm:$0xff] %v7767_v37  ;;  %v11274_v52 = vmov 0.0  }
 0x1b4   :  { %v1115_v46 = vadd.f32 %v1114_v43, %v1113_v26  ;;  %v213_v20 = vsel %vm7811_vm6, 1.0, %v11274_v52  ;;  %v11665_v43 = vmov 0  ;;  %v212_v0 = vsel %vm7823_vm9, 1.0, %v11274_v52 }
 0x1b5   :  { %v7821_v26 = vsub.f32 %v213_v20, %v213_v20  ;;  %v11666_v43 = vsel %vm7823_vm9, 4294967295, %v11665_v43  ;;  %v7836_v6 = vsub.f32 %v212_v0, %v212_v0  ;;  %v211_v12 = vsel %vm7839_vm12, 1.0, %v11274_v52 }
 0x1b6   :  { %1116 = vadd.xlane.f32.xlu1 %v1115_v46  ;;  %11667 = vst [vmem:[#allocation27_spill] sm:$0xff] %v11666_v43  ;;  %v77_v46 = vadd.s32 96, %v7799_v3  ;;  %v7853_v40 = vsub.f32 %v211_v12, %v211_v12  ;;  %v209_v62 = vsel %vm7880_vm3, 1.0, %v11274_v52 }
 0x1b7   :  { %11664 = vst [vmem:[#allocation26_spill] sm:$0xff] %v7821_v26  ;;  %v7834_v63 = vand.u32 4294901760, %v7821_v26  ;;  %1407 = vmatpush.msra.mxu2 %v7821_v26  ;;  %v7846_v36 = vand.u32 4294901760, %v7836_v6 }
 0x1b8   :  { %11669 = vst [vmem:[#allocation29_spill] sm:$0xff] %v7836_v6  ;;  %vm112_vm13 = vcmp.ge.s32.totalorder %v77_v46, %v7804_v21  ;;  %vm146_vm14 = vcmp.lt.s32.totalorder %v77_v46, %v7806_v11  ;;  %v7867_v22 = vand.u32 4294901760, %v7853_v40 }
 0x1b9   :  { %11668 = vst [vmem:[#allocation28_spill] sm:$0xff] %v7834_v63  ;;  %v1323_v34 = vsub.f32 %v7821_v26, %v7834_v63  ;;  %1409 = vmatpush.msra.mxu2 %v7836_v6  ;;  %v1328_v41 = vsub.f32 %v7836_v6, %v7846_v36  ;;  %vm7861_vm15 = vmand %vm112_vm13, %vm146_vm14 }
 0x1ba   :  { %v1157_v2 = vld.sshfl [vmem:[#allocation1] sm:$0xff pattern:$0x73625140]  ;;  %v1158_v23 = vld.sshfl [vmem:[#allocation1 + $0x8] sm:$0xff pattern:$0x73625140]  ;;  %v1333_v31 = vsub.f32 %v7853_v40, %v7867_v22 }
 0x1bb   :  { %v1161_v30 = vsel %vm11284_vm1, %v1157_v2, 0.0  ;;  %v1162_v35 = vsel %vm11284_vm1, %v1158_v23, 0.0  ;;  %1176 = vst [vmem:[#allocation1] ss:$4 sm:$0xff] %v1174_v29  ;;  %v7857_v29 = vand.u32 4294901760, %v1323_v34  ;;  %v11676_v2 = vmov 0  ;;  %1411 = vmatpush.msra.mxu2 %v7853_v40 }
 0x1bc   :  { %v1163_v48 = vadd.f32 %v1162_v35, %v1161_v30  ;;  %11673 = vst [vmem:[#allocation31_spill] sm:$0xff] %v7846_v36  ;;  %v11677_v2 = vsel %vm7861_vm15, 4294967295, %v11676_v2  ;;  %v75_v23 = vadd.s32 80, %v7799_v3  ;;  %v210_v47 = vsel %vm7861_vm15, 1.0, %v11274_v52 }
 0x1bd   :  { %11674 = vst [vmem:[#allocation32_spill] sm:$0xff] %v7853_v40  ;;  %1325 = vmatpush.msra.mxu1 %v7857_v29  ;;  %v7876_v30 = vand.u32 4294901760, %v1328_v41  ;;  %v7878_v35 = vsub.f32 %v210_v47, %v210_v47  ;;  %v70_v41 = vadd.s32 40, %v7799_v3 }
 0x1be   :  { %1164 = vadd.xlane.f32.xlu2 %v1163_v48  ;;  %11675 = vst [vmem:[#allocation33_spill] sm:$0xff] %v7857_v29  ;;  %v11682_v48 = vmov 0  ;;  %vm110_vm4 = vcmp.ge.s32.totalorder %v75_v23, %v7804_v21  ;;  %vm144_vm5 = vcmp.lt.s32.totalorder %v75_v23, %v7806_v11 }
 0x1bf   :  { %11678 = vst [vmem:[#allocation34_spill] sm:$0xff] %v11677_v2  ;;  %v11683_v48 = vsel %vm7880_vm3, 4294967295, %v11682_v48  ;;  %vm7891_vm7 = vmand %vm110_vm4, %vm144_vm5  ;;  %1330 = vmatpush.msra.mxu1 %v7876_v30  ;;  %1413 = vmatpush.msra.mxu2 %v7878_v35 }
 0x1c0   :  { %11679 = vst [vmem:[#allocation35_spill] sm:$0xff] %v7867_v22  ;;  %v11686_v10 = vsel %vm7891_vm7, 4294967295, %v11685_v10 }
 0x1c1   :  { %11680 = vst [vmem:[#allocation36_spill] sm:$0xff] %v7876_v30 }
 0x1c2   :  { %v1177_v50 = vld.sshfl [vmem:[#allocation1] sm:$0xff pattern:$0x73625140]  ;;  %v1178_v19 = vld.sshfl [vmem:[#allocation1 + $0x8] sm:$0xff pattern:$0x73625140] }
 0x1c3   :  { %v1181_v14 = vsel %vm11284_vm1, %v1177_v50, 0.0  ;;  %v1182_v53 = vsel %vm11284_vm1, %v1178_v19, 0.0  ;;  %1224 = vst [vmem:[#allocation1] ss:$4 sm:$0xff] %v7784_v49  ;;  %v74_v50 = vadd.s32 72, %v7799_v3  ;;  %v73_v19 = vadd.s32 64, %v7799_v3 }
 0x1c4   :  { %v1183_v42 = vadd.f32 %v1182_v53, %v1181_v14  ;;  %11681 = vst [vmem:[#allocation37_spill] sm:$0xff] %v7878_v35  ;;  %v7899_v14 = vand.u32 4294901760, %v7878_v35  ;;  %v7901_v53 = vsub.f32 %v209_v62, %v209_v62  ;;  %v69_v62 = vadd.s32 32, %v7799_v3 }
 0x1c5   :  { %11684 = vst [vmem:[#allocation38_spill] sm:$0xff] %v11683_v48  ;;  %vm109_vm8 = vcmp.ge.s32.totalorder %v74_v50, %v7804_v21  ;;  %vm143_vm10 = vcmp.lt.s32.totalorder %v74_v50, %v7806_v11  ;;  %vm108_vm11 = vcmp.ge.s32.totalorder %v73_v19, %v7804_v21  ;;  %vm142_vm14 = vcmp.lt.s32.totalorder %v73_v19, %v7806_v11 }
 0x1c6   :  { %1184 = vadd.xlane.f32.xlu0 %v1183_v42  ;;  %11687 = vst [vmem:[#allocation39_spill] sm:$0xff] %v11686_v10  ;;  %v208_v42 = vsel %vm7891_vm7, 1.0, %v11274_v52  ;;  %1415 = vmatpush.msra.mxu2 %v7901_v53  ;;  %vm7930_vm13 = vmand %vm109_vm8, %vm143_vm10  ;;  %v89_v49 = vadd.s32 192, %v7799_v3 }
 0x1c7   :  { %11688 = vst [vmem:[#allocation40_spill] sm:$0xff] %v7899_v14  ;;  %v207_v5 = vsel %vm7930_vm13, 1.0, %v11274_v52  ;;  %vm7950_vm0 = vmand %vm108_vm11, %vm142_vm14  ;;  %vm105_vm14 = vcmp.ge.s32.totalorder %v70_v41, %v7804_v21 }
 0x1c8   :  { %11689 = vst [vmem:[#allocation41_spill] sm:$0xff] %v7901_v53  ;;  %v11699_v9 = vsel %vm7950_vm0, 4294967295, %v11698_v9  ;;  %v7956_v20 = vsub.f32 %v207_v5, %v207_v5  ;;  %v206_v59 = vsel %vm7950_vm0, 1.0, %v11274_v52 }
 0x1c9   :  { %11700 = vst [vmem:[#allocation48_spill] sm:$0xff] %v11699_v9  ;;  %v7969_v46 = vsub.f32 %v206_v59, %v206_v59 }
 0x1ca   :  { %v1225_v7 = vld.sshfl [vmem:[#allocation1] sm:$0xff pattern:$0x73625140]  ;;  %v1226_v1 = vld.sshfl [vmem:[#allocation1 + $0x8] sm:$0xff pattern:$0x73625140] }
 0x1cb   :  { %v1229_v51 = vsel %vm11284_vm1, %v1225_v7, 0.0  ;;  %v1230_v57 = vsel %vm11284_vm1, %v1226_v1, 0.0  ;;  %1244 = vst [vmem:[#allocation1] ss:$4 sm:$0xff] %v1242_v54  ;;  %v7907_v54 = vand.u32 4294901760, %v1333_v31  ;;  %v7909_v7 = vsub.f32 %v208_v42, %v208_v42 }
 0x1cc   :  { %v1231_v58 = vadd.f32 %v1230_v57, %v1229_v51  ;;  %v11293_v1 = vmov 1.0   ;;  %v1338_v51 = vsub.f32 %v7878_v35, %v7899_v14  ;;  %v7921_v57 = vand.u32 4294901760, %v7901_v53  ;;  %11701 = vst [vmem:[#allocation49_spill] sm:$0xff] %v7956_v20 }
 0x1cd   :  { %11690 = vst [vmem:[#allocation42_spill] sm:$0xff] %v7907_v54  ;;  %6516 = vmatpush.msk.msra.mxu3 %vm7811_vm6, %v11293_v1  ;;  %6500 = vmatpush.msk.msra.mxu0 %vm7811_vm6, %v11293_v1  ;;  %v7979_v12 = vand.u32 4294901760, %v7956_v20  ;;  %v7993_v23 = vand.u32 4294901760, %v7969_v46  ;;  %v11710_v31 = vmov 0 }
 0x1ce   :  { %1232 = vadd.xlane.f32.xlu1 %v1231_v58  ;;  %11691 = vst [vmem:[#allocation43_spill] sm:$0xff] %v7909_v7  ;;  %1335 = vmatpush.msra.mxu1 %v7907_v54  ;;  %v7927_v58 = vand.u32 4294901760, %v7909_v7 }
 0x1cf   :  { %11692 = vst [vmem:[#allocation44_spill] sm:$0xff] %v7921_v57  ;;  %6517 = vmatpush.msk.msra.mxu3 %vm7823_vm9, %v11293_v1  ;;  %6501 = vmatpush.msk.msra.mxu0 %vm7823_vm9, %v11293_v1  ;;  %v1353_v19 = vsub.f32 %v7956_v20, %v7979_v12 }
 0x1d0   :  { %11693 = vst [vmem:[#allocation45_spill] sm:$0xff] %v7927_v58  ;;  %v1348_v15 = vsub.f32 %v7909_v7, %v7927_v58  ;;  %1417 = vmatpush.msra.mxu2 %v7909_v7 }
 0x1d1   :  { %6518 = vmatpush.msk.msra.mxu3 %vm7839_vm12, %v11293_v1  ;;  %11703 = vst [vmem:[#allocation51_spill] sm:$0xff] %v7969_v46  ;;  %6502 = vmatpush.msk.msra.mxu0 %vm7839_vm12, %v11293_v1 }
 0x1d2   :  { %v1245_v13 = vld.sshfl [vmem:[#allocation1] sm:$0xff pattern:$0x73625140]  ;;  %v1246_v38 = vld.sshfl [vmem:[#allocation1 + $0x8] sm:$0xff pattern:$0x73625140]  ;;  %1419 = vmatpush.msra.mxu2 %v7956_v20 }
 0x1d3   :  { %v1249_v60 = vsel %vm11284_vm1, %v1245_v13, 0.0  ;;  %v1250_v27 = vsel %vm11284_vm1, %v1246_v38, 0.0  ;;  %v11694_v13 = vmov 0  ;;  %v72_v38 = vadd.s32 56, %v7799_v3  ;;  %11705 = vst [vmem:[#allocation53_spill] sm:$0xff] %v7979_v12  ;;  %6519 = vmatpush.msk.msra.mxu3 %vm7861_vm15, %v11293_v1  ;;  %6503 = vmatpush.msk.msra.mxu0 %vm7861_vm15, %v11293_v1 }
 0x1d4   :  { %v1251_v28 = vadd.f32 %v1250_v27, %v1249_v60  ;;  %v11695_v13 = vsel %vm7930_vm13, 4294967295, %v11694_v13  ;;  %v71_v60 = vadd.s32 48, %v7799_v3  ;;  %v7937_v27 = vand.u32 4294901760, %v1338_v51  ;;  %11709 = vst [vmem:[#allocation55_spill] sm:$0xff] %v7993_v23  ;;  %1421 = vmatpush.msra.mxu2 %v7969_v46 }
 0x1d5   :  { %11696 = vst [vmem:[#allocation46_spill] sm:$0xff] %v11695_v13  ;;  %vm107_vm2 = vcmp.ge.s32.totalorder %v72_v38, %v7804_v21  ;;  %vm141_vm4 = vcmp.lt.s32.totalorder %v72_v38, %v7806_v11  ;;  %v7973_v34 = vand.u32 4294901760, %v1348_v15  ;;  %6520 = vmatpush.msk.msra.mxu3 %vm7880_vm3, %v11293_v1  ;;  %v8025_v15 = vand.u32 4294901760, %v1353_v19  ;;  %6504 = vmatpush.msk.msra.mxu0 %vm7880_vm3, %v11293_v1 }
 0x1d6   :  { %1252 = vadd.xlane.f32.xlu2 %v1251_v28  ;;  %11697 = vst [vmem:[#allocation47_spill] sm:$0xff] %v7937_v27  ;;  %v1343_v28 = vsub.f32 %v7901_v53, %v7921_v57  ;;  %1340 = vmatpush.msra.mxu1 %v7937_v27  ;;  %vm106_vm5 = vcmp.ge.s32.totalorder %v71_v60, %v7804_v21  ;;  %vm7982_vm8 = vmand %vm107_vm2, %vm141_vm4 }
 0x1d7   :  { %11704 = vst [vmem:[#allocation52_spill] sm:$0xff] %v7973_v34  ;;  %v11707_v17 = vsel %vm7982_vm8, 4294967295, %v11706_v17  ;;  %vm140_vm10 = vcmp.lt.s32.totalorder %v71_v60, %v7806_v11  ;;  %v205_v47 = vsel %vm7982_vm8, 1.0, %v11274_v52  ;;  %v1358_v60 = vsub.f32 %v7969_v46, %v7993_v23  ;;  %6521 = vmatpush.msk.msra.mxu3 %vm7891_vm7, %v11293_v1  ;;  %6505 = vmatpush.msk.msra.mxu0 %vm7891_vm7, %v11293_v1 }
 0x1d8   :  { %v7964_v0 = vand.u32 4294901760, %v1343_v28  ;;  %11708 = vst [vmem:[#allocation54_spill] sm:$0xff] %v11707_v17  ;;  %vm7998_vm11 = vmand %vm106_vm5, %vm140_vm10  ;;  %v8008_v42 = vsub.f32 %v205_v47, %v205_v47  ;;  %vm139_vm2 = vcmp.lt.s32.totalorder %v70_v41, %v7806_v11  ;;  %v11717_v47 = vmov 0 }
 0x1d9   :  { %v11711_v31 = vsel %vm7998_vm11, 4294967295, %v11710_v31  ;;  %v204_v51 = vsel %vm7998_vm11, 1.0, %v11274_v52  ;;  %11715 = vst [vmem:[#allocation59_spill] sm:$0xff] %v8025_v15  ;;  %vm8034_vm4 = vmand %vm105_vm14, %vm139_vm2  ;;  %vm104_vm5 = vcmp.ge.s32.totalorder %v69_v62, %v7804_v21  ;;  %vm138_vm10 = vcmp.lt.s32.totalorder %v69_v62, %v7806_v11  ;;  %6522 = vmatpush.msk.msra.mxu3 %vm7930_vm13, %v11293_v1  ;;  %6506 = vmatpush.msk.msra.mxu0 %vm7930_vm13, %v11293_v1 }
 0x1da   :  { %11702 = vst [vmem:[#allocation50_spill] sm:$0xff] %v7964_v0  ;;  %1345 = vmatpush.msra.mxu1 %v7964_v0  ;;  %v8022_v28 = vsub.f32 %v204_v51, %v204_v51  ;;  %v8031_v59 = vand.u32 4294901760, %v8008_v42  ;;  %1423 = vmatpush.msra.mxu2 %v8008_v42  ;;  %v11718_v47 = vsel %vm8034_vm4, 4294967295, %v11717_v47  ;;  %v203_v19 = vsel %vm8034_vm4, 1.0, %v11274_v52  ;;  %vm8059_vm14 = vmand %vm104_vm5, %vm138_vm10 }
 0x1db   :  { %11712 = vst [vmem:[#allocation56_spill] sm:$0xff] %v11711_v31  ;;  %v8057_v61 = vsub.f32 %v203_v19, %v203_v19  ;;  %v11724_v45 = vsel %vm8059_vm14, 4294967295, %v11723_v45  ;;  %v68_v52 = vadd.s32 24, %v7799_v3  ;;  %v67_v19 = vadd.s32 16, %v7799_v3  ;;  %6523 = vmatpush.msk.msra.mxu3 %vm7950_vm0, %v11293_v1  ;;  %6507 = vmatpush.msk.msra.mxu0 %vm7950_vm0, %v11293_v1 }
 0x1dc   :  { %11713 = vst [vmem:[#allocation57_spill] sm:$0xff] %v8008_v42  ;;  %1350 = vmatpush.msra.mxu1 %v7973_v34  ;;  %v8045_v41 = vand.u32 4294901760, %v8022_v28  ;;  %1425 = vmatpush.msra.mxu2 %v8022_v28  ;;  %vm11736_vm7 = vcmask 1041408   ;;  %v11741_v46 = vmov 1.0  }
 0x1dd   :  { %11714 = vst [vmem:[#allocation58_spill] sm:$0xff] %v8022_v28  ;;  %v8084_v56 = vand.u32 4294901760, %v8057_v61  ;;  %vm103_vm2 = vcmp.ge.s32.totalorder %v68_v52, %v7804_v21  ;;  %vm137_vm5 = vcmp.lt.s32.totalorder %v68_v52, %v7806_v11  ;;  %vm102_vm10 = vcmp.ge.s32.totalorder %v67_v19, %v7804_v21  ;;  %6524 = vmatpush.msk.msra.mxu3 %vm7982_vm8, %v11293_v1 }
 0x1de   :  { %11716 = vst [vmem:[#allocation60_spill] sm:$0xff] %v8031_v59  ;;  %1355 = vmatpush.msra.mxu1 %v8025_v15  ;;  %v1368_v62 = vsub.f32 %v8022_v28, %v8045_v41  ;;  %1427 = vmatpush.msra.mxu2 %v8057_v61  ;;  %vm136_vm13 = vcmp.lt.s32.totalorder %v67_v19, %v7806_v11 }
 0x1df   :  { %11719 = vst [vmem:[#allocation61_spill] sm:$0xff] %v11718_v47  ;;  %vm8119_vm0 = vmand %vm102_vm10, %vm136_vm13  ;;  %6508 = vmatpush.msk.msra.mxu0 %vm7982_vm8, %v11741_v46  ;;  %6525 = vmatpush.msk.msra.mxu3 %vm7998_vm11, %v11741_v46  ;;  %vm134_vm10 = vcmp.lt.s32.totalorder %v7799_v3, %v7806_v11 }
 0x1e0   :  { %11721 = vst [vmem:[#allocation63_spill] sm:$0xff] %v8045_v41  ;;  %v8088_v32 = vand.u32 4294901760, %v1368_v62  ;;  %v1373_v62 = vsub.f32 %v8057_v61, %v8084_v56 }
 0x1e1   :  { %11722 = vst [vmem:[#allocation64_spill] sm:$0xff] %v8057_v61  ;;  %6509 = vmatpush.msk.msra.mxu0 %vm7998_vm11, %v11741_v46  ;;  %6526 = vmatpush.msk.msra.mxu3 %vm8034_vm4, %v11741_v46 }
 0x1e2   :  { %11725 = vst [vmem:[#allocation65_spill] sm:$0xff] %v11724_v45  ;;  %v8128_v1 = vand.u32 4294901760, %v1373_v62 }
 0x1e3   :  { %11729 = vst [vmem:[#allocation68_spill] sm:$0xff] %v8084_v56  ;;  %6510 = vmatpush.msk.msra.mxu0 %vm8034_vm4, %v11741_v46  ;;  %6527 = vmatpush.msk.msra.mxu3 %vm8059_vm14, %v11741_v46 }
 0x1e4   :  { %11731 = vst [vmem:[#allocation70_spill] sm:$0xff] %v8088_v32 }
 0x1e5   :  { %11740 = vst [vmem:[#allocation74_spill] sm:$0xff] %v8128_v1  ;;  %6511 = vmatpush.msk.msra.mxu0 %vm8059_vm14, %v11741_v46 }
 0x211   :  { %v1029_v50 = vpop.xlane.xlu1 %1028 }
 0x212   :  { %v1030_v38 = vsel %vm11284_vm1, %v1029_v50, 0.0  ;;  %v8039_v50 = vand.u32 4294901760, %v1358_v60  ;;  %v1363_v60 = vsub.f32 %v8008_v42, %v8031_v59  ;;  %vm8106_vm1 = vmand %vm103_vm2, %vm137_vm5  ;;  %v11733_v42 = vmov 0 }
 0x213   :  { %v1031_v5 = vrot.slane %v1030_v38, 4  ;;  %v11734_v42 = vsel %vm8106_vm1, 4294967295, %v11733_v42  ;;  %vm101_vm2 = vcmp.ge.s32.totalorder %v8075_v33, %v7804_v21  ;;  %vm100_vm5 = vcmp.ge.s32.totalorder %v7799_v3, %v7804_v21  ;;  %6528 = vmatpush.msk.msra.mxu3 %vm8106_vm1, %v11741_v46  ;;  %6512 = vmatpush.msk.msra.mxu0 %vm8106_vm1, %v11741_v46 }
 0x214   :  { %11720 = vst [vmem:[#allocation62_spill] sm:$0xff] %v8039_v50  ;;  %1360 = vmatpush.msra.mxu1 %v8039_v50  ;;  %v8078_v4 = vand.u32 4294901760, %v1363_v60 }
 0x215   :  { %v1032_v51 = vadd.f32 %v1031_v5, %v1030_v38  ;;  %v11726_v38 = vmov 0.0   ;;  %11735 = vst [vmem:[#allocation72_spill] sm:$0xff] %v11734_v42  ;;  %6529 = vmatpush.msk.msra.mxu3 %vm8119_vm0, %v11741_v46  ;;  %6513 = vmatpush.msk.msra.mxu0 %vm8119_vm0, %v11741_v46 }
 0x216   :  { %v202_v5 = vsel %vm8059_vm14, 1.0, %v11726_v38  ;;  %11728 = vst [vmem:[#allocation67_spill] sm:$0xff] %v8078_v4  ;;  %1365 = vmatpush.msra.mxu1 %v8078_v4  ;;  %v201_v52 = vsel %vm8106_vm1, 1.0, %v11726_v38  ;;  %v11742_v4 = vmov 0  ;;  %v200_v62 = vsel %vm8119_vm0, 1.0, %v11726_v38 }
 0x217   :  { %v1033_v16 = vrot.slane %v1032_v51, 2  ;;  %v8086_v44 = vsub.f32 %v202_v5, %v202_v5  ;;  %v8142_v20 = vsub.f32 %v201_v52, %v201_v52  ;;  %v8158_v52 = vsub.f32 %v200_v62, %v200_v62 }
 0x218   :  { %1370 = vmatpush.msra.mxu1 %v8088_v32 }
 0x219   :  { %11730 = vst [vmem:[#allocation69_spill] sm:$0xff] %v8086_v44  ;;  %v1034_v60 = vadd.f32 %v1033_v16, %v1032_v51  ;;  %v1049_v28 = vpop.xlane.xlu2 %1048  ;;  %v8104_v5 = vand.u32 4294901760, %v8086_v44  ;;  %1429 = vmatpush.msra.mxu2 %v8086_v44  ;;  %v11737_v51 = vmov 0  ;;  %v8161_v15 = vand.u32 4294901760, %v8142_v20 }
 0x21a   :  { %v1050_v16 = vsel %vm11736_vm7, %v1049_v28, 0.0  ;;  %v11738_v51 = vsel %vm8119_vm0, 4294967295, %v11737_v51  ;;  %vm135_vm7 = vcmp.lt.s32.totalorder %v8075_v33, %v7806_v11  ;;  %11745 = vst [vmem:[#allocation76_spill] sm:$0xff] %v8142_v20  ;;  %1375 = vmatpush.msra.mxu1 %v8128_v1 }
 0x21b   :  { %11732 = vst [vmem:[#allocation71_spill] sm:$0xff] %v8104_v5  ;;  %v1035_v28 = vrot.slane %v1034_v60, 1  ;;  %v1051_v19 = vrot.slane %v1050_v16, 4  ;;  %v1378_v61 = vsub.f32 %v8086_v44, %v8104_v5  ;;  %vm8135_vm13 = vmand %vm101_vm2, %vm135_vm7  ;;  %1431 = vmatpush.msra.mxu2 %v8142_v20  ;;  %v1383_v62 = vsub.f32 %v8142_v20, %v8161_v15 }
 0x21c   :  { %11739 = vst [vmem:[#allocation73_spill] sm:$0xff] %v11738_v51  ;;  %v11743_v4 = vsel %vm8135_vm13, 4294967295, %v11742_v4  ;;  %v199_v44 = vsel %vm8135_vm13, 1.0, %v11726_v38  ;;  %vm8182_vm2 = vmand %vm100_vm5, %vm134_vm10  ;;  %vm11756_vm5 = vcmask 1041408   ;;  %6530 = vmatpush.msk.msra.mxu3 %vm8135_vm13, %v11741_v46  ;;  %6514 = vmatpush.msk.msra.mxu0 %vm8135_vm13, %v11741_v46 }
 0x21d   :  { %11744 = vst [vmem:[#allocation75_spill] sm:$0xff] %v11743_v4  ;;  %v1036_v32 = vadd.f32 %v1035_v28, %v1034_v60  ;;  %v1052_v50 = vadd.f32 %v1051_v19, %v1050_v16  ;;  %v8153_v7 = vand.u32 4294901760, %v1378_v61  ;;  %v8167_v60 = vsub.f32 %v199_v44, %v199_v44  ;;  %1433 = vmatpush.msra.mxu2 %v8158_v52 }
 0x21e   :  { %11747 = vst [vmem:[#allocation78_spill] sm:$0xff] %v8158_v52  ;;  %v96_v61 = vadd.s32 248, %v7799_v3  ;;  %v8174_v28 = vand.u32 4294901760, %v8158_v52  ;;  %v11751_v44 = vmov 0  ;;  %v95_v19 = vadd.s32 240, %v7799_v3  ;;  %6531 = vmatpush.msk.msra.mxu3 %vm8182_vm2, %v11741_v46  ;;  %6515 = vmatpush.msk.msra.mxu0 %vm8182_vm2, %v11741_v46 }
 0x21f   :  { %11746 = vst [vmem:[#allocation77_spill] sm:$0xff] %v8153_v7  ;;  %v1053_v16 = vrot.slane %v1052_v50, 2  ;;  %1380 = vmatpush.msra.mxu1 %v8153_v7  ;;  %v11752_v44 = vsel %vm8182_vm2, 4294967295, %v11751_v44  ;;  %v8193_v7 = vand.u32 4294901760, %v8167_v60  ;;  %v198_v1 = vsel %vm8182_vm2, 1.0, %v11726_v38  ;;  %1435 = vmatpush.msra.mxu2 %v8167_v60 }
 0x220   :  { %11748 = vst [vmem:[#allocation79_spill] sm:$0xff] %v8161_v15  ;;  %vm131_vm7 = vcmp.ge.s32.totalorder %v96_v61, %v7804_v21  ;;  %v8200_v24 = vmul.f32 0.001953125, %v1036_v32  ;;  %v1388_v20 = vsub.f32 %v8158_v52, %v8174_v28  ;;  %v8207_v35 = vsub.f32 %v198_v1, %v198_v1  ;;  %1469 = vmatpush.msrb.mxu0 %v7834_v63 }
 0x221   :  { %11749 = vst [vmem:[#allocation80_spill] sm:$0xff] %v8167_v60  ;;  %v1054_v53 = vadd.f32 %v1053_v16, %v1052_v50  ;;  %v1097_v34 = vpop.xlane.xlu0 %1096  ;;  %v8210_v40 = vand.u32 4294901760, %v1383_v62  ;;  %v1393_v27 = vsub.f32 %v8167_v60, %v8193_v7  ;;  %vm165_vm10 = vcmp.lt.s32.totalorder %v96_v61, %v7806_v11 }
 0x222   :  { %11750 = vst [vmem:[#allocation81_spill] sm:$0xff] %v8174_v28  ;;  %v1098_v0 = vsel %vm11756_vm5, %v1097_v34, 0.0  ;;  %v8219_v16 = vand.u32 4294901760, %v1388_v20  ;;  %v8222_v1 = vand.u32 4294901760, %v8207_v35  ;;  %vm8229_vm5 = vmand %vm131_vm7, %vm165_vm10  ;;  %v11760_v34 = vmov 0  ;;  %1437 = vmatpush.msra.mxu2 %v8207_v35  ;;  %1472 = vmatpush.msrb.mxu0 %v7846_v36 }
 0x223   :  { %11753 = vst [vmem:[#allocation82_spill] sm:$0xff] %v11752_v44  ;;  %v1055_v32 = vrot.slane %v1054_v53, 1  ;;  %v1099_v50 = vrot.slane %v1098_v0, 4  ;;  %v11761_v34 = vsel %vm8229_vm5, 4294967295, %v11760_v34  ;;  %1385 = vmatpush.msra.mxu1 %v8210_v40  ;;  %v8234_v62 = vand.u32 4294901760, %v1393_v27 }
 0x224   :  { %11754 = vst [vmem:[#allocation83_spill] sm:$0xff] %v8193_v7  ;;  %vm130_vm14 = vcmp.ge.s32.totalorder %v95_v19, %v7804_v21  ;;  %vm164_vm4 = vcmp.lt.s32.totalorder %v95_v19, %v7806_v11  ;;  %v229_v20 = vsel %vm8229_vm5, 1.0, %v11726_v38  ;;  %v1398_v52 = vsub.f32 %v8207_v35, %v8222_v1  ;;  %6548 = vmatpush.msk.msrb.mxu2 %vm8229_vm5, %v11741_v46 }
 0x225   :  { %11755 = vst [vmem:[#allocation84_spill] sm:$0xff] %v8207_v35  ;;  %v1056_v61 = vadd.f32 %v1055_v32, %v1054_v53  ;;  %v1100_v60 = vadd.f32 %v1099_v50, %v1098_v0  ;;  %vm8250_vm7 = vmand %vm130_vm14, %vm164_vm4  ;;  %v94_v19 = vadd.s32 232, %v7799_v3  ;;  %1390 = vmatpush.msra.mxu1 %v8219_v16  ;;  %v8261_v53 = vsub.f32 %v229_v20, %v229_v20 }
 0x226   :  { %11757 = vst [vmem:[#allocation85_spill] sm:$0xff] %v8210_v40  ;;  %v1058_v40 = vmul.f32 %v8200_v24, %v8200_v24  ;;  %v228_v0 = vsel %vm8250_vm7, 1.0, %v11726_v38  ;;  %v93_v32 = vadd.s32 224, %v7799_v3  ;;  %v8267_v6 = vand.u32 4294901760, %v1398_v52  ;;  %6549 = vmatpush.msk.msrb.mxu2 %vm8250_vm7, %v11741_v46  ;;  %1475 = vmatpush.msrb.mxu0 %v7867_v22 }
 0x227   :  { %11758 = vst [vmem:[#allocation86_spill] sm:$0xff] %v8219_v16  ;;  %v1057_v50 = vmul.f32 0.001953125, %v1056_v61  ;;  %v1101_v35 = vrot.slane %v1100_v60, 2  ;;  %vm129_vm4 = vcmp.ge.s32.totalorder %v94_v19, %v7804_v21  ;;  %1395 = vmatpush.msra.mxu1 %v8234_v62  ;;  %v8281_v20 = vand.u32 4294901760, %v8261_v53 }
 0x228   :  { %11759 = vst [vmem:[#allocation87_spill] sm:$0xff] %v8222_v1  ;;  %vm163_vm14 = vcmp.lt.s32.totalorder %v94_v19, %v7806_v11  ;;  %v8284_v52 = vsub.f32 %v228_v0, %v228_v0  ;;  %vm162_vm13 = vcmp.lt.s32.totalorder %v93_v32, %v7806_v11  ;;  %v92_v19 = vadd.s32 216, %v7799_v3  ;;  %1478 = vmatpush.msrb.mxu0 %v7899_v14 }
 0x229   :  { %11762 = vst [vmem:[#allocation88_spill] sm:$0xff] %v8234_v62  ;;  %v1059_v61 = vsub.f32 %v1057_v50, %v1058_v40  ;;  %v1102_v16 = vadd.f32 %v1101_v35, %v1100_v60  ;;  %v1117_v54 = vpop.xlane.xlu1 %1116  ;;  %vm8290_vm5 = vmand %vm129_vm4, %vm163_vm14  ;;  %vm11770_vm10 = vcmask 1041408   ;;  %1400 = vmatpush.msra.mxu1 %v8267_v6  ;;  %v1568_v35 = vsub.f32 %v8261_v53, %v8281_v20 }
 0x22a   :  { %11765 = vst [vmem:[#allocation89_spill] sm:$0xff] %v8267_v6  ;;  %v1118_v40 = vsel %vm11770_vm10, %v1117_v54, 0.0  ;;  %v8304_v60 = vand.u32 4294901760, %v8284_v52  ;;  %v227_v0 = vsel %vm8290_vm5, 1.0, %v11726_v38  ;;  %6550 = vmatpush.msk.msrb.mxu2 %vm8290_vm5, %v11741_v46  ;;  %vm11771_vm4 = vcmp.ge.s32.totalorder %v93_v32, %v7804_v21  ;;  %1481 = vmatpush.msrb.mxu0 %v7921_v57 }
 0x22b   :  { %11766 = vst [vmem:[#allocation90_spill] sm:$0xff] %v8281_v20  ;;  %v1060_v50 = vmax.f32 %v1059_v61, 0.0  ;;  %v1103_v26 = vrot.slane %v1102_v16, 1  ;;  %v1119_v30 = vrot.slane %v1118_v40, 4  ;;  %6532 = vmatpush.msk.msrb.mxu1 %vm7811_vm6, %v11741_v46  ;;  %vm8318_vm14 = vmand %vm11771_vm4, %vm162_vm13  ;;  %v11772_v54 = vmov 0 }
 0x22c   :  { %11767 = vst [vmem:[#allocation91_spill] sm:$0xff] %v8284_v52  ;;  %v11773_v54 = vsel %vm8318_vm14, 4294967295, %v11772_v54  ;;  %v8322_v63 = vsub.f32 %v227_v0, %v227_v0  ;;  %v8324_v6 = vand.u32 4294901760, %v1568_v35  ;;  %v1573_v61 = vsub.f32 %v8284_v52, %v8304_v60  ;;  %6551 = vmatpush.msk.msrb.mxu2 %vm8318_vm14, %v11741_v46  ;;  %1484 = vmatpush.msrb.mxu0 %v7927_v58 }
 0x22d   :  { %vm127_vm10 = vcmp.ge.s32.totalorder %v92_v19, %v7804_v21  ;;  %vm161_vm6 = vcmp.lt.s32.totalorder %v92_v19, %v7806_v11  ;;  %v8333_v32 = vadd.f32 1e-05, %v1060_v50  ;;  %v1104_v55 = vadd.f32 %v1103_v26, %v1102_v16  ;;  %6533 = vmatpush.msk.msrb.mxu1 %vm7823_vm9, %v11741_v46 }
 0x22e   :  { %11774 = vst [vmem:[#allocation92_spill] sm:$0xff] %v8322_v63  ;;  %v1120_v29 = vadd.f32 %v1119_v30, %v1118_v40  ;;  %v8342_v35 = vand.u32 4294901760, %v8322_v63  ;;  %vm8344_vm13 = vmand %vm127_vm10, %vm161_vm6  ;;  %1570 = vmatpush.msrb.mxu3 %v8324_v6  ;;  %v8349_v19 = vand.u32 4294901760, %v1573_v61  ;;  %v226_v26 = vsel %vm8318_vm14, 1.0, %v11726_v38  ;;  %1487 = vmatpush.msrb.mxu0 %v7979_v12 }
 0x22f   :  { %11775 = vst [vmem:[#allocation93_spill] sm:$0xff] %v8324_v6  ;;  %v91_v30 = vadd.s32 208, %v7799_v3  ;;  %v225_v16 = vsel %vm8344_vm13, 1.0, %v11726_v38  ;;  %7096 = vrsqrt.f32 %v8333_v32  ;;  %v8360_v40 = vmul.f32 0.001953125, %v1104_v55  ;;  %6534 = vmatpush.msk.msrb.mxu1 %vm7839_vm12, %v11741_v46  ;;  %6552 = vmatpush.msk.msrb.mxu2 %vm8344_vm13, %v11741_v46 }
 0x230   :  { %11778 = vst [vmem:[#allocation94_spill] sm:$0xff] %v8349_v19  ;;  %v1121_v50 = vrot.slane %v1120_v29, 2  ;;  %1575 = vmatpush.msrb.mxu3 %v8349_v19  ;;  %v1578_v61 = vsub.f32 %v8322_v63, %v8342_v35  ;;  %v8371_v22 = vsub.f32 %v226_v26, %v226_v26  ;;  %v11779_v19 = vmov 0  ;;  %1490 = vmatpush.msrb.mxu0 %v7993_v23 }
 0x231   :  { %vm126_vm6 = vcmp.ge.s32.totalorder %v91_v30, %v7804_v21  ;;  %vm160_vm4 = vcmp.lt.s32.totalorder %v91_v30, %v7806_v11  ;;  %v1126_v55 = vmul.f32 %v8360_v40, %v8360_v40  ;;  %v1165_v6 = vpop.xlane.xlu2 %1164  ;;  %6535 = vmatpush.msk.msrb.mxu1 %vm7861_vm15, %v11741_v46  ;;  %v8384_v18 = vsub.f32 %v225_v16, %v225_v16 }
 0x232   :  { %v1122_v36 = vadd.f32 %v1121_v50, %v1120_v29  ;;  %vm8380_vm10 = vmand %vm126_vm6, %vm160_vm4  ;;  %vm11782_vm12 = vcmask 1041408   ;;  %v8388_v30 = vand.u32 4294901760, %v1578_v61  ;;  %v8391_v29 = vand.u32 4294901760, %v8371_v22  ;;  %1493 = vmatpush.msrb.mxu0 %v8031_v59 }
 0x233   :  { %v11780_v19 = vsel %vm8380_vm10, 4294967295, %v11779_v19  ;;  %11781 = vst [vmem:[#allocation95_spill] sm:$0xff] %v8384_v18  ;;  %v1166_v26 = vsel %vm11782_vm12, %v1165_v6, 0.0  ;;  %6553 = vmatpush.msk.msrb.mxu2 %vm8380_vm10, %v11741_v46  ;;  %v90_v50 = vadd.s32 200, %v7799_v3  ;;  %6536 = vmatpush.msk.msrb.mxu1 %vm7880_vm3, %v11741_v46  ;;  %v8401_v6 = vand.u32 4294901760, %v8384_v18 }
 0x234   :  { %11783 = vst [vmem:[#allocation96_spill] sm:$0xff] %v8388_v30  ;;  %v1123_v2 = vrot.slane %v1122_v36, 1  ;;  %v1167_v43 = vrot.slane %v1166_v26, 4  ;;  %v224_v16 = vsel %vm8380_vm10, 1.0, %v11726_v38  ;;  %1580 = vmatpush.msrb.mxu3 %v8388_v30  ;;  %v1583_v61 = vsub.f32 %v8371_v22, %v8391_v29  ;;  %1496 = vmatpush.msrb.mxu0 %v8045_v41 }
 0x235   :  { %vm125_vm12 = vcmp.ge.s32.totalorder %v90_v50, %v7804_v21  ;;  %vm159_vm6 = vcmp.lt.s32.totalorder %v90_v50, %v7806_v11  ;;  %v8412_v14 = vsub.f32 %v224_v16, %v224_v16  ;;  %v8414_v48 = vpop.eup %7096  ;;  %vm11785_vm4 = vnez %v11686_v10 }
 0x236   :  { %v1124_v63 = vadd.f32 %v1123_v2, %v1122_v36  ;;  %v1168_v52 = vadd.f32 %v1167_v43, %v1166_v26  ;;  %6537 = vmatpush.msk.msrb.mxu1 %vm11785_vm4, %v11741_v46  ;;  %v1588_v57 = vsub.f32 %v8384_v18, %v8401_v6  ;;  %vm8422_vm3 = vmand %vm125_vm12, %vm159_vm6  ;;  %v11786_v30 = vmov 0  ;;  %1499 = vmatpush.msrb.mxu0 %v8084_v56 }
 0x237   :  { %11784 = vst [vmem:[#allocation97_spill] sm:$0xff] %v8412_v14  ;;  %v11787_v30 = vsel %vm8422_vm3, 4294967295, %v11786_v30  ;;  %v1063_v50 = vmul.f32 %v8414_v48, %v8333_v32  ;;  %v8430_v36 = vand.u32 4294901760, %v1583_v61  ;;  %6554 = vmatpush.msk.msrb.mxu2 %vm8422_vm3, %v11741_v46  ;;  %v8436_v43 = vand.u32 4294901760, %v8412_v14 }
 0x238   :  { %v1125_v2 = vmul.f32 0.001953125, %v1124_v63  ;;  %v1169_v26 = vrot.slane %v1168_v52, 2  ;;  %vm11789_vm12 = vnez %v11695_v13  ;;  %v8441_v16 = vand.u32 4294901760, %v1588_v57  ;;  %1502 = vmatpush.msrb.mxu0 %v8104_v5 }
 0x239   :  { %11788 = vst [vmem:[#allocation98_spill] sm:$0xff] %v8430_v36  ;;  %6538 = vmatpush.msk.msrb.mxu1 %vm11789_vm12, %v11741_v46  ;;  %v1064_v61 = vmul.f32 %v8414_v48, %v1063_v50  ;;  %1585 = vmatpush.msrb.mxu3 %v8430_v36  ;;  %v1593_v58 = vsub.f32 %v8412_v14, %v8436_v43  ;;  %v223_v63 = vsel %vm8422_vm3, 1.0, %v11726_v38  ;;  %v88_v13 = vadd.s32 184, %v7799_v3  ;;  %v1185_v18 = vpop.xlane.xlu0 %1184 }
 0x23a   :  { %11790 = vst [vmem:[#allocation99_spill] sm:$0xff] %v8441_v16  ;;  %v1127_v57 = vsub.f32 %v1125_v2, %v1126_v55  ;;  %v1170_v10 = vadd.f32 %v1169_v26, %v1168_v52  ;;  %vm11791_vm6 = vnez %v11699_v9  ;;  %vm124_vm15 = vcmp.ge.s32.totalorder %v89_v49, %v7804_v21  ;;  %1505 = vmatpush.msrb.mxu0 %v8161_v15 }
 0x23b   :  { %6539 = vmatpush.msk.msrb.mxu1 %vm11791_vm6, %v11741_v46  ;;  %vm158_vm12 = vcmp.lt.s32.totalorder %v89_v49, %v7806_v11  ;;  %v1065_v50 = vmul.f32 0.5, %v1064_v61  ;;  %vm11792_vm4 = vcmask 1041408   ;;  %1590 = vmatpush.msrb.mxu3 %v8441_v16  ;;  %v8462_v36 = vand.u32 4294901760, %v1593_v58 }
 0x23c   :  { %v1186_v12 = vsel %vm11792_vm4, %v1185_v18, 0.0  ;;  %vm8464_vm9 = vmand %vm124_vm15, %vm158_vm12  ;;  %v11794_v14 = vmov 0  ;;  %v8468_v52 = vsub.f32 %v223_v63, %v223_v63  ;;  %v1128_v55 = vmax.f32 %v1127_v57, 0.0  ;;  %1508 = vmatpush.msrb.mxu0 %v8174_v28 }
 0x23d   :  { %11793 = vst [vmem:[#allocation100_spill] sm:$0xff] %v8462_v36  ;;  %v11795_v14 = vsel %vm8464_vm9, 4294967295, %v11794_v14  ;;  %v1171_v2 = vrot.slane %v1170_v10, 1  ;;  %v1187_v26 = vrot.slane %v1186_v12, 4  ;;  %6540 = vmatpush.msk.msrb.mxu1 %vm7982_vm8, %v11741_v46  ;;  %6555 = vmatpush.msk.msrb.mxu2 %vm8464_vm9, %v11741_v46  ;;  %vm123_vm15 = vcmp.ge.s32.totalorder %v88_v13, %v7804_v21 }
 0x23e   :  { %11796 = vst [vmem:[#allocation101_spill] sm:$0xff] %v8468_v52  ;;  %v1066_v49 = vsub.f32 1.5, %v1065_v50  ;;  %1595 = vmatpush.msrb.mxu3 %v8462_v36  ;;  %v8480_v18 = vand.u32 4294901760, %v8468_v52  ;;  %vm157_vm4 = vcmp.lt.s32.totalorder %v88_v13, %v7806_v11  ;;  %v222_v58 = vsel %vm8464_vm9, 1.0, %v11726_v38  ;;  %1511 = vmatpush.msrb.mxu0 %v8193_v7  ;;  %v12200_v62 = vld [vmem:[#allocation97_spill] sm:$0xff] }
 0x23f   :  { %v8487_v61 = vadd.f32 1e-05, %v1128_v55  ;;  %v1172_v63 = vadd.f32 %v1171_v2, %v1170_v10  ;;  %v1188_v57 = vadd.f32 %v1187_v26, %v1186_v12  ;;  %6541 = vmatpush.msk.msrb.mxu1 %vm7998_vm11, %v11741_v46  ;;  %vm8492_vm12 = vmand %vm123_vm15, %vm157_vm4  ;;  %v11797_v50 = vmov 0 }
 0x240   :  { %v11798_v50 = vsel %vm8492_vm12, 4294967295, %v11797_v50  ;;  %v8496_v23 = vsub.f32 %v222_v58, %v222_v58  ;;  %v1067_v13 = vmul.f32 %v8414_v48, %v1066_v49  ;;  %vm1068_vm8 = vweird.f32 %v8333_v32  ;;  %6556 = vmatpush.msk.msrb.mxu2 %vm8492_vm12, %v11741_v46  ;;  %1514 = vmatpush.msrb.mxu0 %v8222_v1 }
 0x241   :  { %v1598_v10 = vsub.f32 %v8468_v52, %v8480_v18  ;;  %v87_v12 = vadd.s32 176, %v7799_v3  ;;  %vm11800_vm15 = vweird.f32 %v8414_v48  ;;  %7098 = vrsqrt.f32 %v8487_v61  ;;  %v1233_v16 = vpop.xlane.xlu1 %1232 }
 0x242   :  { %11799 = vst [vmem:[#allocation102_spill] sm:$0xff] %v8496_v23  ;;  %vm1070_vm4 = vmor %vm1068_vm8, %vm11800_vm15  ;;  %v8512_v32 = vmul.f32 0.001953125, %v1172_v63  ;;  %v1189_v55 = vrot.slane %v1188_v57, 2  ;;  %vm11801_vm11 = vnez %v11718_v47  ;;  %v221_v2 = vsel %vm8492_vm12, 1.0, %v11726_v38 }
 0x243   :  { %6542 = vmatpush.msk.msrb.mxu1 %vm11801_vm11, %v11741_v46  ;;  %v1071_v26 = vsel %vm1070_vm4, %v8414_v48, %v1067_v13  ;;  %v8521_v49 = vand.u32 4294901760, %v1598_v10  ;;  %v8524_v58 = vand.u32 4294901760, %v8496_v23  ;;  %v1075_v63 = vstv %s8453_s19  ;;  %s10390_s19 = sld [smem:[#allocation8 + $0x56]] }
 0x244   :  { %v11804_v41 = vstv %s8331_s18  ;;  %v1190_v36 = vadd.f32 %v1189_v55, %v1188_v57  ;;  %vm11805_vm15 = vnez %v11724_v45  ;;  %vm11806_vm11 = vcmask 1041408   ;;  %s10387_s18 = sld [smem:[#allocation8 + $0x55]] }
 0x245   :  { %11802 = vst [vmem:[#allocation103_spill] sm:$0xff] %v8521_v49  ;;  %v1073_v59 = vmul.f32 %v11804_v41, %v1071_v26  ;;  %6543 = vmatpush.msk.msrb.mxu1 %vm11805_vm15, %v11741_v46  ;;  %v1234_v48 = vsel %vm11806_vm11, %v1233_v16, 0.0  ;;  %1600 = vmatpush.msrb.mxu3 %v8521_v49  ;;  %v1603_v13 = vsub.f32 %v8496_v23, %v8524_v58  ;;  %v8542_v41 = vld [vmem:[#allocation2] sm:$0xf]  ;;  %vm11813_vm8 = vnez %v11743_v4 }
 0x246   :  { %11803 = vst [vmem:[#allocation104_spill] sm:$0xff] %v8524_v58  ;;  %vm156_vm4 = vcmp.lt.s32.totalorder %v87_v12, %v7806_v11  ;;  %v8539_v10 = vsub.f32 %v221_v2, %v221_v2  ;;  %v1194_v16 = vmul.f32 %v8512_v32, %v8512_v32  ;;  %v1191_v55 = vrot.slane %v1190_v36, 1 }
 0x247   :  { %v1074_v57 = vmul.f32 %v1073_v59, %v8200_v24  ;;  %v1235_v26 = vrot.slane %v1234_v48, 4  ;;  %vm11808_vm11 = vcmp.ge.s32.totalorder %v87_v12, %v7804_v21  ;;  %v11809_v2 = vmov 0  ;;  %6544 = vmatpush.msk.msrb.mxu1 %vm8106_vm1, %v11741_v46  ;;  %v8569_v49 = vpop.eup %7098 }
 0x248   :  { %11807 = vst [vmem:[#allocation105_spill] sm:$0xff] %v8539_v10  ;;  %vm8551_vm15 = vmand %vm11808_vm11, %vm156_vm4  ;;  %v1077_v5 = vmul.f32 %v1073_v59, %v7704_v25  ;;  %v8559_v56 = vand.u32 4294901760, %v1603_v13  ;;  %v8565_v24 = vand.u32 4294901760, %v8539_v10  ;;  %v86_v12 = vadd.s32 168, %v7799_v3 }
 0x249   :  { %v11810_v2 = vsel %vm8551_vm15, 4294967295, %v11809_v2  ;;  %6557 = vmatpush.msk.msrb.mxu2 %vm8551_vm15, %v11741_v46  ;;  %v1076_v45 = vsub.f32 %v1075_v63, %v1074_v57  ;;  %v1192_v42 = vadd.f32 %v1191_v55, %v1190_v36  ;;  %v1236_v47 = vadd.f32 %v1235_v26, %v1234_v48  ;;  %6545 = vmatpush.msk.msrb.mxu1 %vm8119_vm0, %v11741_v46  ;;  %v1253_v28 = vpop.xlane.xlu2 %1252 }
 0x24a   :  { %11811 = vst [vmem:[#allocation106_spill] sm:$0xff] %v8559_v56  ;;  %v220_v25 = vsel %vm8551_vm15, 1.0, %v11726_v38  ;;  %v1140_v59 = vstv %s8500_s20  ;;  %v1131_v13 = vmul.f32 %v8569_v49, %v8487_v61  ;;  %1605 = vmatpush.msrb.mxu3 %v8559_v56  ;;  %v1608_v15 = vsub.f32 %v8539_v10, %v8565_v24  ;;  %s10395_s20 = sld [smem:[#allocation8 + $0x53]] }
 0x24b   :  { %11812 = vst [vmem:[#allocation107_spill] sm:$0xff] %v8565_v24  ;;  %vm121_vm4 = vcmp.ge.s32.totalorder %v86_v12, %v7804_v21  ;;  %v8585_v36 = vadd.f32 %v1077_v5, %v1076_v45  ;;  %v1193_v63 = vmul.f32 0.001953125, %v1192_v42  ;;  %v1237_v48 = vrot.slane %v1236_v47, 2  ;;  %6546 = vmatpush.msk.msrb.mxu1 %vm11813_vm8, %v11741_v46 }
 0x24c   :  { %vm155_vm11 = vcmp.lt.s32.totalorder %v86_v12, %v7806_v11  ;;  %v1132_v57 = vmul.f32 %v8569_v49, %v1131_v13  ;;  %v8592_v55 = vand.u32 4294901760, %v1608_v15  ;;  %v11815_v26 = vmov 0 }
 0x24d   :  { %vm8594_vm6 = vmand %vm121_vm4, %vm155_vm11  ;;  %v8598_v56 = vsub.f32 %v220_v25, %v220_v25  ;;  %v85_v45 = vadd.s32 160, %v7799_v3  ;;  %v1080_v42 = vmin.f32 %v8585_v36, 0.0  ;;  %v1195_v5 = vsub.f32 %v1193_v63, %v1194_v16  ;;  %6547 = vmatpush.msk.msrb.mxu1 %vm8182_vm2, %v11741_v46 }
 0x24e   :  { %11814 = vst [vmem:[#allocation108_spill] sm:$0xff] %v8592_v55  ;;  %v11816_v26 = vsel %vm8594_vm6, 4294967295, %v11815_v26  ;;  %v1238_v12 = vadd.f32 %v1237_v48, %v1236_v47  ;;  %6558 = vmatpush.msk.msrb.mxu2 %vm8594_vm6, %v11741_v46  ;;  %v1133_v15 = vmul.f32 0.5, %v1132_v57  ;;  %vm11818_vm4 = vcmask 1041408   ;;  %1610 = vmatpush.msrb.mxu3 %v8592_v55 }
 0x24f   :  { %11817 = vst [vmem:[#allocation109_spill] sm:$0xff] %v8598_v56  ;;  %v1254_v25 = vsel %vm11818_vm4, %v1253_v28, 0.0  ;;  %v8615_v13 = vand.u32 4294901760, %v8598_v56  ;;  %vm120_vm11 = vcmp.ge.s32.totalorder %v85_v45, %v7804_v21  ;;  %v1081_v47 = vmul.f32 1.442695, %v1080_v42 }
 0x250   :  { %v1196_v16 = vmax.f32 %v1195_v5, 0.0  ;;  %v1255_v63 = vrot.slane %v1254_v25, 4  ;;  %v1134_v48 = vsub.f32 1.5, %v1133_v15  ;;  %vm154_vm4 = vcmp.lt.s32.totalorder %v85_v45, %v7806_v11 }
 0x251   :  { %11819 = vst [vmem:[#allocation110_spill] sm:$0xff] %v8615_v13  ;;  %v1613_v57 = vsub.f32 %v8598_v56, %v8615_v13  ;;  %v219_v28 = vsel %vm8594_vm6, 1.0, %v11726_v38  ;;  %7100 = vpow2.f32 %v1081_v47  ;;  %v1239_v55 = vrot.slane %v1238_v12, 1  ;;  %vm8628_vm2 = vmand %vm120_vm11, %vm154_vm4 }
 0x252   :  { %v8626_v7 = vadd.f32 1e-05, %v1196_v16  ;;  %v1256_v1 = vadd.f32 %v1255_v63, %v1254_v25  ;;  %v11820_v42 = vmov 0  ;;  %vm11822_vm0 = vcmp.eq.f32.partialorder %v8542_v41, -1.0  ;;  %6559 = vmatpush.msk.msrb.mxu2 %vm8628_vm2, %v11741_v46 }
 0x253   :  { %v11821_v42 = vsel %vm8628_vm2, 4294967295, %v11820_v42  ;;  %vm11823_vm8 = vcmp.eq.f32.partialorder %v8542_v41, 1.0  ;;  %v1135_v45 = vmul.f32 %v8569_v49, %v1134_v48  ;;  %v8637_v5 = vand.u32 4294901760, %v1613_v57 }
 0x254   :  { %vm62_vm1 = vmor %vm11823_vm8, %vm11822_vm0  ;;  %v8642_v15 = vsub.f32 %v219_v28, %v219_v28  ;;  %v84_v25 = vadd.s32 152, %v7799_v3  ;;  %vm11826_vm11 = vweird.f32 %v8569_v49  ;;  %vm11827_vm4 = vweird.f32 %v8487_v61 }
 0x255   :  { %11824 = vst [vmem:[#allocation111_spill] sm:$0xff] %v8637_v5  ;;  %vm1138_vm6 = vmor %vm11827_vm4, %vm11826_vm11  ;;  %7102 = vrsqrt.f32 %v8626_v7  ;;  %v1257_v41 = vrot.slane %v1256_v1, 2  ;;  %1615 = vmatpush.msrb.mxu3 %v8637_v5  ;;  %v8658_v63 = vsel %vm62_vm1, 1.0, %v11726_v38  ;;  %v1240_v61 = vadd.f32 %v1239_v55, %v1238_v12 }
 0x256   :  { %11825 = vst [vmem:[#allocation112_spill] sm:$0xff] %v8642_v15  ;;  %v1139_v47 = vsel %vm1138_vm6, %v8569_v49, %v1135_v45  ;;  %v8653_v16 = vand.u32 4294901760, %v8642_v15  ;;  %vm119_vm0 = vcmp.ge.s32.totalorder %v84_v25, %v7804_v21  ;;  %vm153_vm8 = vcmp.lt.s32.totalorder %v84_v25, %v7806_v11 }
 0x257   :  { %v1141_v48 = vmul.f32 %v1140_v59, %v1139_v47  ;;  %v1258_v57 = vadd.f32 %v1257_v41, %v1256_v1  ;;  %vm8662_vm11 = vmand %vm119_vm0, %vm153_vm8  ;;  %v11829_v28 = vmov 0  ;;  %v1143_v49 = vstv %s8610_s21  ;;  %v7101_v55 = vpop.eup %7100  ;;  %s6907_s21 = sld [smem:[#allocation8 + $0x57]] }
 0x258   :  { %11828 = vst [vmem:[#allocation113_spill] sm:$0xff] %v8653_v16  ;;  %v11830_v28 = vsel %vm8662_vm11, 4294967295, %v11829_v28  ;;  %v1618_v45 = vsub.f32 %v8642_v15, %v8653_v16  ;;  %6560 = vmatpush.msk.msrb.mxu2 %vm8662_vm11, %v11741_v46  ;;  %v218_v59 = vsel %vm8628_vm2, 1.0, %v11726_v38  ;;  %v83_v25 = vadd.s32 144, %v7799_v3  ;;  %v12201_v27 = vld [vmem:[#allocation110_spill] sm:$0xff] }
 0x259   :  { %v1142_v1 = vmul.f32 %v1141_v48, %v8360_v40  ;;  %v1259_v12 = vrot.slane %v1258_v57, 1  ;;  %v8677_v41 = vsub.f32 %v218_v59, %v218_v59  ;;  %v217_v47 = vsel %vm8662_vm11, 1.0, %v11726_v38 }
 0x25a   :  { %v6490_v5 = vadd.f32 -1.0, %v7101_v55  ;;  %v8682_v44 = vand.u32 4294901760, %v1618_v45  ;;  %vm118_vm1 = vcmp.ge.s32.totalorder %v83_v25, %v7804_v21  ;;  %vm152_vm6 = vcmp.lt.s32.totalorder %v83_v25, %v7806_v11 }
 0x25b   :  { %11831 = vst [vmem:[#allocation114_spill] sm:$0xff] %v8677_v41  ;;  %v7103_v4 = vpop.eup %7102  ;;  %vm1079_vm4 = vcmp.gt.f32.partialorder %v8585_v36, 0.0  ;;  %v1144_v51 = vsub.f32 %v1143_v49, %v1142_v1  ;;  %v1145_v40 = vmul.f32 %v1141_v48, %v7733_v39  ;;  %v8688_v31 = vmul.f32 0.001953125, %v1240_v61  ;;  %vm8690_vm0 = vmand %vm118_vm1, %vm152_vm6 }
 0x25c   :  { %11832 = vst [vmem:[#allocation115_spill] sm:$0xff] %v8682_v44  ;;  %v11833_v59 = vmov 0  ;;  %v1084_v55 = vsel %vm1079_vm4, %v8585_v36, %v6490_v5  ;;  %v1199_v45 = vmul.f32 %v7103_v4, %v8626_v7  ;;  %v1260_v17 = vadd.f32 %v1259_v12, %v1258_v57  ;;  %1620 = vmatpush.msrb.mxu3 %v8682_v44 }
 0x25d   :  { %v11834_v59 = vsel %vm8690_vm0, 4294967295, %v11833_v59  ;;  %v8698_v25 = vand.u32 4294901760, %v8677_v41  ;;  %6561 = vmatpush.msk.msrb.mxu2 %vm8690_vm0, %v11741_v46  ;;  %v1289_v39 = vmul.f32 %v1084_v55, %v8658_v63  ;;  %v8704_v48 = vadd.f32 %v1145_v40, %v1144_v51 }
 0x25e   :  { %v230_v36 = vadd.s32 128, %v7796_v8  ;;  %v8709_v5 = vsub.f32 %v217_v47, %v217_v47  ;;  %v1200_v61 = vmul.f32 %v7103_v4, %v1199_v45  ;;  %v11491_v57 = vmul.u32 16, %v7799_v3 }
 0x25f   :  { %11835 = vst [vmem:[#allocation116_spill] sm:$0xff] %v8698_v25  ;;  %v8713_v49 = vadd.s32 1, %v7799_v3  ;;  %v8716_v1 = vadd.s32 1, %v8075_v33  ;;  %v1148_v12 = vmin.f32 %v8704_v48, 0.0  ;;  %v1208_v51 = vstv %s8660_s0  ;;  %s6908_s0 = sld [smem:[#allocation8 + $0x58]] }
 0x260   :  { %11836 = vst [vmem:[#allocation117_spill] sm:$0xff] %v8709_v5  ;;  %v1262_v40 = vmul.f32 %v8688_v31, %v8688_v31  ;;  %v1201_v47 = vmul.f32 0.5, %v1200_v61  ;;  %v11499_v55 = vmul.u32 16, %v8075_v33  ;;  %vm8726_vm1 = vcmp.ge.s32.totalorder %v230_v36, %v11491_v57 }
 0x261   :  { %11837 = vst [vmem:[#allocation118_spill] sm:$0xff] %v8713_v49  ;;  %v11492_v8 = vmul.u32 16, %v8713_v49  ;;  %v11498_v44 = vmul.u32 16, %v8716_v1  ;;  %v1261_v9 = vmul.f32 0.001953125, %v1260_v17  ;;  %v1623_v15 = vsub.f32 %v8677_v41, %v8698_v25 }
 0x262   :  { %11838 = vst [vmem:[#allocation119_spill] sm:$0xff] %v8716_v1  ;;  %v1202_v56 = vsub.f32 1.5, %v1201_v47  ;;  %vm1205_vm6 = vweird.f32 %v7103_v4  ;;  %v8737_v61 = vand.u32 4294901760, %v8709_v5  ;;  %vm236_vm8 = vcmp.ge.s32.totalorder %v230_v36, %v11499_v55 }
 0x263   :  { %1291 = vst [vmem:[#allocation1] ss:$4 sm:$0xff] %v1289_v39  ;;  %v1149_v39 = vmul.f32 1.442695, %v1148_v12  ;;  %vm242_vm4 = vcmp.lt.s32.totalorder %v230_v36, %v11492_v8  ;;  %vm244_vm11 = vcmp.lt.s32.totalorder %v230_v36, %v11498_v44  ;;  %v1263_v12 = vsub.f32 %v1261_v9, %v1262_v40 }
 0x264   :  { %11841 = vst [vmem:[#allocation120_spill] sm:$0xff] %v8737_v61  ;;  %v1203_v17 = vmul.f32 %v7103_v4, %v1202_v56  ;;  %vm8745_vm2 = vmand %vm8726_vm1, %vm242_vm4  ;;  %v11842_v47 = vmov 0  ;;  %v8749_v57 = vand.u32 4294901760, %v1623_v15  ;;  %v1628_v8 = vsub.f32 %v8709_v5, %v8737_v61 }
 0x265   :  { %7104 = vpow2.f32 %v1149_v39  ;;  %v11843_v47 = vsel %vm8745_vm2, 4294967295, %v11842_v47  ;;  %v82_v39 = vadd.s32 136, %v7799_v3  ;;  %v1211_v49 = vstv %s8706_s24  ;;  %vm8761_vm1 = vmand %vm236_vm8, %vm244_vm11  ;;  %s6909_s24 = sld [smem:[#allocation8 + $0x5c]] }
 0x266   :  { %11844 = vst [vmem:[#allocation121_spill] sm:$0xff] %v11843_v47  ;;  %vm11846_vm15 = vweird.f32 %v8626_v7  ;;  %v1264_v36 = vmax.f32 %v1263_v12, 0.0  ;;  %v216_v56 = vsel %vm8690_vm0, 1.0, %v11726_v38  ;;  %v81_v9 = vadd.s32 128, %v7799_v3  ;;  %1625 = vmatpush.msrb.mxu3 %v8749_v57 }
 0x267   :  { %11845 = vst [vmem:[#allocation122_spill] sm:$0xff] %v8749_v57  ;;  %vm1206_vm12 = vmor %vm11846_vm15, %vm1205_vm6  ;;  %v11847_v15 = vmov 0  ;;  %v8766_v45 = vand.u32 4294901760, %v1628_v8  ;;  %vm117_vm4 = vcmp.ge.s32.totalorder %v82_v39, %v7804_v21  ;;  %vm151_vm15 = vcmp.lt.s32.totalorder %v82_v39, %v7806_v11 }
 0x268   :  { %v1207_v40 = vsel %vm1206_vm12, %v7103_v4, %v1203_v17  ;;  %v11848_v15 = vsel %vm8761_vm1, 4294967295, %v11847_v15  ;;  %v8770_v44 = vadd.f32 1e-05, %v1264_v36  ;;  %vm8772_vm6 = vmand %vm117_vm4, %vm151_vm15  ;;  %v11851_v55 = vmov 0 }
 0x269   :  { %11849 = vst [vmem:[#allocation123_spill] sm:$0xff] %v11848_v15  ;;  %v1209_v12 = vmul.f32 %v1208_v51, %v1207_v40  ;;  %v11852_v55 = vsel %vm8772_vm6, 4294967295, %v11851_v55  ;;  %v8776_v4 = vsub.f32 %v216_v56, %v216_v56  ;;  %1630 = vmatpush.msrb.mxu3 %v8766_v45  ;;  %6562 = vmatpush.msk.msrb.mxu2 %vm8772_vm6, %v11741_v46  ;;  %v215_v8 = vsel %vm8772_vm6, 1.0, %v11726_v38 }
 0x26a   :  { %11850 = vst [vmem:[#allocation124_spill] sm:$0xff] %v8766_v45  ;;  %v1292_v7 = vld.sshfl [vmem:[#allocation1] sm:$0xff pattern:$0x73625140]  ;;  %vm116_vm12 = vcmp.ge.s32.totalorder %v81_v9, %v7804_v21  ;;  %vm150_vm11 = vcmp.lt.s32.totalorder %v81_v9, %v7806_v11  ;;  %vm1147_vm8 = vcmp.gt.f32.partialorder %v8704_v48, 0.0  ;;  %7106 = vrsqrt.f32 %v8770_v44 }
 0x26b   :  { %11853 = vst [vmem:[#allocation125_spill] sm:$0xff] %v8776_v4  ;;  %v8778_v17 = vand.u32 4294901760, %v1292_v7  ;;  %v1293_v47 = vld.sshfl [vmem:[#allocation1 + $0x8] sm:$0xff pattern:$0x73625140]  ;;  %v7105_v39 = vpop.eup %7104  ;;  %v1210_v36 = vmul.f32 %v1209_v12, %v8512_v32  ;;  %vm8795_vm4 = vmand %vm116_vm12, %vm150_vm11  ;;  %v11854_v56 = vmov 0  ;;  %vm11857_vm15 = vnez %v11761_v34 }
 0x26c   :  { %v8789_v51 = vand.u32 4294901760, %v1293_v47  ;;  %v11855_v56 = vsel %vm8795_vm4, 4294967295, %v11854_v56  ;;  %v6493_v21 = vadd.f32 -1.0, %v7105_v39  ;;  %v8800_v11 = vand.u32 4294901760, %v8776_v4  ;;  %6563 = vmatpush.msk.msrb.mxu2 %vm8795_vm4, %v11741_v46  ;;  %v12198_v34 = vld [vmem:[#allocation95_spill] sm:$0xff]  ;;  %v12207_v0 = vld [vmem:[#allocation120_spill] sm:$0xff] }
 0x26d   :  { %1402 = vmatmul.f32.vlgmr.msra.gmra.mxu1 %v8778_v17  ;;  %v8808_v32 = vsub.f32 %v215_v8, %v215_v8  ;;  %v1313_v9 = vsub.f32 %v1292_v7, %v8778_v17  ;;  %v1212_v40 = vsub.f32 %v1211_v49, %v1210_v36  ;;  %v1213_v15 = vmul.f32 %v1209_v12, %v7767_v37 }
 0x26e   :  { %11856 = vst [vmem:[#allocation126_spill] sm:$0xff] %v8800_v11  ;;  %6564 = vmatpush.msk.msra.mxu1 %vm11857_vm15, %v11741_v46  ;;  %v214_v39 = vsel %vm8795_vm4, 1.0, %v11726_v38  ;;  %v8816_v3 = vsub.f32 %v1293_v47, %v8789_v51  ;;  %v1152_v1 = vsel %vm1147_vm8, %v8704_v48, %v6493_v21  ;;  %v1633_v33 = vsub.f32 %v8776_v4, %v8800_v11 }
 0x26f   :  { %11858 = vst [vmem:[#allocation127_spill] sm:$0xff] %v8808_v32  ;;  %v8822_v8 = vand.u32 4294901760, %v8808_v32  ;;  %1440 = vmatmul.f32.vlgmr.msra.gmra.mxu2 %v1313_v9  ;;  %v8827_v37 = vsub.f32 %v214_v39, %v214_v39  ;;  %v1786_v49 = vmul.f32 %v1152_v1, %v8658_v63  ;;  %v8830_v7 = vadd.f32 %v1213_v15, %v1212_v40 }
 0x270   :  { %6565 = vmatpush.msk.msra.mxu1 %vm8250_vm7, %v11741_v46  ;;  %1714 = vmatpush.msra.mxu2 %v8281_v20  ;;  %v1314_v48 = vand.u32 4294901760, %v1313_v9  ;;  %v11510_v47 = vand.u32 4294901760, %v8816_v3  ;;  %v8834_v12 = vand.u32 4294901760, %v1633_v33  ;;  %v7107_v1 = vpop.eup %7106  ;;  %vm1272_vm11 = vweird.f32 %v8770_v44 }
 0x271   :  { %11859 = vst [vmem:[#allocation128_spill] sm:$0xff] %v8822_v8  ;;  %v1638_v36 = vsub.f32 %v8808_v32, %v8822_v8  ;;  %v8839_v21 = vand.u32 4294901760, %v8827_v37  ;;  %v1216_v15 = vmin.f32 %v8830_v7, 0.0  ;;  %v1267_v39 = vmul.f32 %v7107_v1, %v8770_v44 }
 0x272   :  { %11860 = vst [vmem:[#allocation129_spill] sm:$0xff] %v8827_v37  ;;  %6566 = vmatpush.msk.msra.mxu1 %vm8290_vm5, %v11741_v46  ;;  %1463 = vmatmul.f32.vlgmr.msra.gmra.mxu3 %v1314_v48  ;;  %v1315_v40 = vsub.f32 %v1313_v9, %v1314_v48  ;;  %v1560_v33 = vsub.f32 %v8816_v3, %v11510_v47  ;;  %vm1273_vm12 = vweird.f32 %v7107_v1  ;;  %vm1215_vm2 = vcmp.gt.f32.partialorder %v8830_v7, 0.0 }
 0x273   :  { %11861 = vst [vmem:[#allocation130_spill] sm:$0xff] %v8834_v12  ;;  %1717 = vmatpush.msra.mxu2 %v8304_v60  ;;  %1635 = vmatpush.msrb.mxu3 %v8834_v12  ;;  %v8853_v38 = vand.u32 4294901760, %v1638_v36  ;;  %v1643_v20 = vsub.f32 %v8827_v37, %v8839_v21  ;;  %v1217_v9 = vmul.f32 1.442695, %v1216_v15  ;;  %vm1274_vm8 = vmor %vm1272_vm11, %vm1273_vm12  ;;  %vm11866_vm12 = vnez %v11798_v50 }
 0x274   :  { %11862 = vst [vmem:[#allocation131_spill] sm:$0xff] %v8839_v21  ;;  %6567 = vmatpush.msk.msra.mxu1 %vm8318_vm14, %v11741_v46  ;;  %v1316_v48 = vand.u32 4294901760, %v1315_v40  ;;  %v1561_v36 = vand.u32 4294901760, %v1560_v33  ;;  %v11863_v40 = vld [vmem:[#allocation91_spill] sm:$0xff]  ;;  %v1276_v33 = vstv %s8849_s25  ;;  %vm11870_vm11 = vnez %v11816_v26  ;;  %s10455_s25 = sld [smem:[#allocation8 + $0x59]] }
 0x275   :  { %1788 = vst [vmem:[#allocation1] ss:$4 sm:$0xff] %v1786_v49  ;;  %1720 = vmatpush.msra.mxu2 %v8342_v35  ;;  %1537 = vmatmul.f32.vlgmr.msrb.gmra.mxu1 %v8778_v17  ;;  %v1268_v49 = vmul.f32 %v7107_v1, %v1267_v39  ;;  %v8863_v47 = vand.u32 4294901760, %v1643_v20  ;;  %7108 = vpow2.f32 %v1217_v9  ;;  %v11864_v9 = vld [vmem:[#allocation92_spill] sm:$0xff]  ;;  %vm11872_vm1 = vnez %v11830_v28 }
 0x276   :  { %1640 = vmatpush.msrb.mxu3 %v8853_v38  ;;  %6568 = vmatpush.msk.msra.mxu1 %vm8344_vm13, %v11741_v46 }
 0x277   :  { %1317 = vmatmul.f32.vlgmr.msra.gmra.mxu0 %v1316_v48  ;;  %1723 = vmatpush.msra.mxu2 %v8391_v29  ;;  %v1269_v15 = vmul.f32 0.5, %v1268_v49 }
 0x278   :  { %1645 = vmatpush.msrb.mxu3 %v8863_v47  ;;  %1652 = vmatpush.msra.mxu0 %v8261_v53 }
 0x279   :  { %1562 = vmatmul.f32.vlgmr.msrb.gmra.mxu2 %v1561_v36  ;;  %v1270_v20 = vsub.f32 1.5, %v1269_v15  ;;  %6569 = vmatpush.msk.msra.mxu1 %vm8380_vm10, %v11741_v46 }
 0x27a   :  { %6580 = vmatpush.msk.msra.mxu3 %vm11857_vm15, %v11741_v46  ;;  %1654 = vmatpush.msra.mxu0 %v11863_v40 }
 0x27b   :  { %1726 = vmatpush.msra.mxu2 %v8401_v6  ;;  %v1271_v39 = vmul.f32 %v7107_v1, %v1270_v20  ;;  %1647 = vmatmul.f32.vlgmr.msrb.gmra.mxu3 %v8789_v51  ;;  %v7109_v48 = vpop.eup %7108  ;;  %v1279_v20 = vstv %s8869_s26  ;;  %s10463_s26 = sld [smem:[#allocation8 + $0x5d]] }
 0x27c   :  { %6581 = vmatpush.msk.msra.mxu3 %vm8250_vm7, %v11741_v46  ;;  %1656 = vmatpush.msra.mxu0 %v11864_v9  ;;  %v6496_v49 = vadd.f32 -1.0, %v7109_v48  ;;  %v8919_v48 = vld.sshfl [vmem:[#allocation1 + $0x8] sm:$0xff pattern:$0x73625140] }
 0x27d   :  { %6570 = vmatpush.msk.msra.mxu1 %vm8422_vm3, %v11741_v46  ;;  %v1275_v36 = vsel %vm1274_vm8, %v7107_v1, %v1271_v39  ;;  %1729 = vmatpush.msra.mxu2 %v8436_v43  ;;  %vm11871_vm8 = vnez %v11821_v42 }
 0x27e   :  { %6582 = vmatpush.msk.msra.mxu3 %vm8290_vm5, %v11741_v46  ;;  %1658 = vmatpush.msra.mxu0 %v8371_v22  ;;  %v1277_v44 = vmul.f32 %v1276_v33, %v1275_v36  ;;  %v1220_v15 = vsel %vm1215_vm2, %v8830_v7, %v6496_v49  ;;  %v11865_v33 = vld [vmem:[#allocation95_spill] sm:$0xff]  ;;  %v8917_v7 = vld.sshfl [vmem:[#allocation1] sm:$0xff pattern:$0x73625140]  ;;  %v11867_v49 = vld [vmem:[#allocation22_spill] sm:$0xff]  ;;  %vm11869_vm2 = vnez %v11810_v2 }
 0x27f   :  { %6571 = vmatpush.msk.msra.mxu1 %vm8464_vm9, %v11741_v46  ;;  %1732 = vmatpush.msra.mxu2 %v8480_v18  ;;  %v2283_v1 = vmul.f32 %v1220_v15, %v8658_v63 }
 0x280   :  { %6583 = vmatpush.msk.msra.mxu3 %vm8318_vm14, %v11741_v46  ;;  %1516 = vmatmul.f32.vlgmr.msrb.gmra.mxu0 %v8778_v17  ;;  %v1278_v39 = vmul.f32 %v1277_v44, %v8688_v31  ;;  %v1281_v36 = vmul.f32 %v1277_v44, %v11867_v49  ;;  %v11868_v31 = vld [vmem:[#allocation97_spill] sm:$0xff]  ;;  %v11875_v49 = vand.u32 4294901760, %v8816_v3 }
 0x281   :  { %1660 = vmatpush.msra.mxu0 %v11865_v33  ;;  %6572 = vmatpush.msk.msra.mxu1 %vm11866_vm12, %v11741_v46  ;;  %2285 = vst [vmem:[#allocation1] ss:$4 sm:$0xff] %v2283_v1  ;;  %v11873_v1 = vld [vmem:[#allocation109_spill] sm:$0xff] }
 0x282   :  { %6584 = vmatpush.msk.msra.mxu3 %vm8344_vm13, %v11741_v46  ;;  %1735 = vmatpush.msra.mxu2 %v8524_v58  ;;  %v1280_v17 = vsub.f32 %v1279_v20, %v1278_v39  ;;  %v11874_v39 = vld [vmem:[#allocation112_spill] sm:$0xff] }
 0x283   :  { %1662 = vmatpush.msra.mxu0 %v11868_v31  ;;  %6573 = vmatpush.msk.msra.mxu1 %vm11869_vm2, %v11741_v46 }
 0x284   :  { %6585 = vmatpush.msk.msra.mxu3 %vm8380_vm10, %v11741_v46  ;;  %1738 = vmatpush.msra.mxu2 %v8565_v24  ;;  %v1282_v15 = vadd.f32 %v1281_v36, %v1280_v17 }
 0x285   :  { %1664 = vmatpush.msra.mxu0 %v8468_v52  ;;  %6574 = vmatpush.msk.msra.mxu1 %vm11870_vm11, %v11741_v46 }
 0x286   :  { %6586 = vmatpush.msk.msra.mxu3 %vm8422_vm3, %v11741_v46  ;;  %1741 = vmatpush.msra.mxu2 %v8615_v13  ;;  %v1284_v44 = vmin.f32 %v1282_v15, 0.0 }
 0x287   :  { %1666 = vmatpush.msra.mxu0 %v8496_v23  ;;  %6575 = vmatpush.msk.msra.mxu1 %vm11871_vm8, %v11741_v46 }
 0x288   :  { %6587 = vmatpush.msk.msra.mxu3 %vm8464_vm9, %v11741_v46  ;;  %1744 = vmatpush.msra.mxu2 %v8653_v16  ;;  %v1285_v20 = vmul.f32 1.442695, %v1284_v44  ;;  %v11876_v44 = vld [vmem:[#allocation33_spill] sm:$0xff] }
 0x289   :  { %1668 = vmatpush.msra.mxu0 %v8539_v10  ;;  %6576 = vmatpush.msk.msra.mxu1 %vm11872_vm1, %v11741_v46 }
 0x28a   :  { %6588 = vmatpush.msk.msra.mxu3 %vm11866_vm12, %v11741_v46  ;;  %1747 = vmatpush.msra.mxu2 %v8698_v25  ;;  %7110 = vpow2.f32 %v1285_v20 }
 0x28b   :  { %1670 = vmatpush.msra.mxu0 %v11873_v1  ;;  %6577 = vmatpush.msk.msra.mxu1 %vm8690_vm0, %v11741_v46  ;;  %v11934_v1 = vld [vmem:[#allocation72_spill] sm:$0xff] }
 0x28c   :  { %6589 = vmatpush.msk.msra.mxu3 %vm11869_vm2, %v11741_v46  ;;  %1750 = vmatpush.msra.mxu2 %v8737_v61  ;;  %v11938_v61 = vld [vmem:[#allocation73_spill] sm:$0xff] }
 0x28d   :  { %1672 = vmatpush.msra.mxu0 %v11874_v39  ;;  %6578 = vmatpush.msk.msra.mxu1 %vm8772_vm6, %v11741_v46  ;;  %v11930_v39 = vld [vmem:[#allocation65_spill] sm:$0xff] }
 0x28e   :  { %6590 = vmatpush.msk.msra.mxu3 %vm11870_vm11, %v11741_v46  ;;  %1753 = vmatpush.msra.mxu2 %v8800_v11  ;;  %v11933_v11 = vld [vmem:[#allocation78_spill] sm:$0xff] }
 0x28f   :  { %1674 = vmatpush.msra.mxu0 %v8677_v41  ;;  %6579 = vmatpush.msk.msra.mxu1 %vm8795_vm4, %v11741_v46  ;;  %v11877_v41 = vld [vmem:[#allocation36_spill] sm:$0xff] }
 0x290   :  { %6591 = vmatpush.msk.msra.mxu3 %vm11871_vm8, %v11741_v46  ;;  %1756 = vmatpush.msra.mxu2 %v8822_v8  ;;  %v7111_v17 = vpop.eup %7110  ;;  %vm1283_vm8 = vcmp.gt.f32.partialorder %v1282_v15, 0.0 }
 0x291   :  { %1708 = vmatmul.f32.vlgmr.msra.gmra.mxu1 %v11875_v49  ;;  %v6499_v36 = vadd.f32 -1.0, %v7111_v17  ;;  %1676 = vmatpush.msra.mxu0 %v8709_v5  ;;  %v11878_v17 = vld [vmem:[#allocation26_spill] sm:$0xff]  ;;  %v8998_v5 = vld.sshfl [vmem:[#allocation1] sm:$0xff pattern:$0x73625140] }
 0x292   :  { %6592 = vmatpush.msk.msra.mxu3 %vm11872_vm1, %v11741_v46  ;;  %1822 = vmatpush.msrb.mxu1 %v11876_v44  ;;  %v11879_v49 = vld [vmem:[#allocation42_spill] sm:$0xff]  ;;  %11880 = vst [vmem:[#allocation91_spill] sm:$0xff] %v8998_v5 }
 0x293   :  { %1759 = vmatpush.msra.mxu2 %v8839_v21  ;;  %v1288_v20 = vsel %vm1283_vm8, %v1282_v15, %v6499_v36  ;;  %1678 = vmatpush.msra.mxu0 %v8776_v4  ;;  %v9000_v44 = vld.sshfl [vmem:[#allocation1 + $0x8] sm:$0xff pattern:$0x73625140]  ;;  %v11885_v36 = vld [vmem:[#allocation47_spill] sm:$0xff] }
 0x294   :  { %6593 = vmatpush.msk.msra.mxu3 %vm8690_vm0, %v11741_v46  ;;  %1761 = vmatmul.f32.vlgmr.msra.gmra.mxu2 %v8789_v51  ;;  %v2780_v8 = vmul.f32 %v1288_v20, %v8658_v63  ;;  %11881 = vst [vmem:[#allocation92_spill] sm:$0xff] %v9000_v44  ;;  %v11882_v15 = vld [vmem:[#allocation29_spill] sm:$0xff]  ;;  %v11886_v20 = vld [vmem:[#allocation32_spill] sm:$0xff]  ;;  %v11887_v44 = vld [vmem:[#allocation27_spill] sm:$0xff] }
 0x295   :  { %1827 = vmatpush.msrb.mxu1 %v11877_v41  ;;  %1904 = vmatpush.msrb.mxu2 %v11878_v17  ;;  %v11883_v63 = vld [vmem:[#allocation25_spill] sm:$0xff]  ;;  %v11891_v5 = vld [vmem:[#allocation30_spill] sm:$0xff]  ;;  %v11922_v17 = vld [vmem:[#allocation56_spill] sm:$0xff] }
 0x296   :  { %6594 = vmatpush.msk.msra.mxu3 %vm8772_vm6, %v11741_v46  ;;  %2782 = vst [vmem:[#allocation1] ss:$4 sm:$0xff] %v2780_v8  ;;  %1680 = vmatpush.msra.mxu0 %v8808_v32  ;;  %vm11884_vm8 = vnez %v11883_v63  ;;  %v11890_v8 = vld [vmem:[#allocation37_spill] sm:$0xff]  ;;  %vm11892_vm6 = vnez %v11891_v5  ;;  %v11900_v32 = vld [vmem:[#allocation59_spill] sm:$0xff]  ;;  %v11918_v4 = vld [vmem:[#allocation54_spill] sm:$0xff]  ;;  %vm11923_vm3 = vnez %v11922_v17 }
 0x297   :  { %1832 = vmatpush.msrb.mxu1 %v11879_v49  ;;  %1906 = vmatpush.msrb.mxu2 %v11882_v15  ;;  %v11901_v15 = vld [vmem:[#allocation43_spill] sm:$0xff]  ;;  %v11914_v49 = vld [vmem:[#allocation48_spill] sm:$0xff]  ;;  %vm11919_vm9 = vnez %v11918_v4  ;;  %v11925_v41 = vld [vmem:[#allocation69_spill] sm:$0xff] }
 0x298   :  { %6595 = vmatpush.msk.msra.mxu3 %vm8795_vm4, %v11741_v46  ;;  %1682 = vmatpush.msra.mxu0 %v8827_v37  ;;  %vm11888_vm4 = vnez %v11887_v44  ;;  %v11893_v37 = vld [vmem:[#allocation52_spill] sm:$0xff]  ;;  %vm11915_vm12 = vnez %v11914_v49  ;;  %v11926_v21 = vld [vmem:[#allocation61_spill] sm:$0xff] }
 0x299   :  { %1782 = vmatmul.f32.vlgmr.msra.gmra.mxu3 %v8789_v51  ;;  %1837 = vmatpush.msrb.mxu1 %v11885_v36  ;;  %v11889_v51 = vld [vmem:[#allocation50_spill] sm:$0xff]  ;;  %v11896_v36 = vld [vmem:[#allocation41_spill] sm:$0xff] }
 0x29a   :  { %6612 = vmatpush.msk.msrb.mxu3 %vm11884_vm8, %v11741_v46  ;;  %1908 = vmatpush.msrb.mxu2 %v11886_v20 }
 0x29b   :  { %1685 = vmatmul.f32.vlgmr.msra.gmra.mxu0 %v8816_v3  ;;  %1842 = vmatpush.msrb.mxu1 %v11889_v51  ;;  %v11897_v51 = vld [vmem:[#allocation34_spill] sm:$0xff] }
 0x29c   :  { %6613 = vmatpush.msk.msrb.mxu3 %vm11888_vm4, %v11741_v46  ;;  %6596 = vmatpush.msk.msrb.mxu0 %vm11884_vm8, %v11741_v46  ;;  %vm11898_vm0 = vnez %v11897_v51  ;;  %v11948_v51 = vld [vmem:[#allocation96_spill] sm:$0xff] }
 0x29d   :  { %1910 = vmatpush.msrb.mxu2 %v11890_v8  ;;  %1847 = vmatpush.msrb.mxu1 %v11893_v37  ;;  %v9030_v20 = vld.sshfl [vmem:[#allocation1] sm:$0xff pattern:$0x73625140]  ;;  %v9032_v3 = vld.sshfl [vmem:[#allocation1 + $0x8] sm:$0xff pattern:$0x73625140] }
 0x29e   :  { %6614 = vmatpush.msk.msrb.mxu3 %vm11892_vm6, %v11741_v46  ;;  %6597 = vmatpush.msk.msrb.mxu0 %vm11888_vm4, %v11741_v46  ;;  %11894 = vst [vmem:[#allocation22_spill] sm:$0xff] %v9030_v20  ;;  %v11899_v8 = vld [vmem:[#allocation14_spill] sm:$0xff] }
 0x29f   :  { %11895 = vst [vmem:[#allocation25_spill] sm:$0xff] %v9032_v3  ;;  %1912 = vmatpush.msrb.mxu2 %v11896_v36  ;;  %1852 = vmatpush.msrb.mxu1 %v11900_v32  ;;  %v11902_v20 = vld [vmem:[#allocation38_spill] sm:$0xff]  ;;  %v11905_v36 = vld [vmem:[#allocation49_spill] sm:$0xff]  ;;  %v11909_v32 = vld [vmem:[#allocation51_spill] sm:$0xff] }
 0x2a0   :  { %6615 = vmatpush.msk.msrb.mxu3 %vm11898_vm0, %v11741_v46  ;;  %3878 = vst [vmem:[#allocation1] ss:$4 sm:$0xff] %v11899_v8  ;;  %6598 = vmatpush.msk.msrb.mxu0 %vm11892_vm6, %v11741_v46  ;;  %vm11903_vm1 = vnez %v11902_v20  ;;  %v11904_v3 = vld [vmem:[#allocation62_spill] sm:$0xff]  ;;  %v11906_v8 = vld [vmem:[#allocation39_spill] sm:$0xff] }
 0x2a1   :  { %1914 = vmatpush.msrb.mxu2 %v11901_v15  ;;  %1857 = vmatpush.msrb.mxu1 %v11904_v3  ;;  %vm11907_vm11 = vnez %v11906_v8  ;;  %v11908_v15 = vld [vmem:[#allocation67_spill] sm:$0xff]  ;;  %v11910_v37 = vld [vmem:[#allocation46_spill] sm:$0xff]  ;;  %v11913_v3 = vld [vmem:[#allocation57_spill] sm:$0xff] }
 0x2a2   :  { %6616 = vmatpush.msk.msrb.mxu3 %vm11903_vm1, %v11741_v46  ;;  %6599 = vmatpush.msk.msrb.mxu0 %vm11898_vm0, %v11741_v46  ;;  %vm11911_vm2 = vnez %v11910_v37 }
 0x2a3   :  { %1916 = vmatpush.msrb.mxu2 %v11905_v36  ;;  %1862 = vmatpush.msrb.mxu1 %v11908_v15  ;;  %v11912_v36 = vld [vmem:[#allocation70_spill] sm:$0xff] }
 0x2a4   :  { %6617 = vmatpush.msk.msrb.mxu3 %vm11907_vm11, %v11741_v46  ;;  %6600 = vmatpush.msk.msrb.mxu0 %vm11903_vm1, %v11741_v46  ;;  %v11917_v15 = vld [vmem:[#allocation58_spill] sm:$0xff] }
 0x2a5   :  { %1918 = vmatpush.msrb.mxu2 %v11909_v32  ;;  %1867 = vmatpush.msrb.mxu1 %v11912_v36  ;;  %v11916_v32 = vld [vmem:[#allocation74_spill] sm:$0xff]  ;;  %v11921_v36 = vld [vmem:[#allocation64_spill] sm:$0xff] }
 0x2a6   :  { %6618 = vmatpush.msk.msrb.mxu3 %vm11911_vm2, %v11741_v46  ;;  %6601 = vmatpush.msk.msrb.mxu0 %vm11907_vm11, %v11741_v46 }
 0x2a7   :  { %1920 = vmatpush.msrb.mxu2 %v11913_v3  ;;  %1872 = vmatpush.msrb.mxu1 %v11916_v32  ;;  %v11920_v3 = vld [vmem:[#allocation77_spill] sm:$0xff]  ;;  %v9092_v32 = vand.u32 4294901760, %v8917_v7 }
 0x2a8   :  { %6619 = vmatpush.msk.msrb.mxu3 %vm11915_vm12, %v11741_v46  ;;  %6602 = vmatpush.msk.msrb.mxu0 %vm11911_vm2, %v11741_v46 }
 0x2a9   :  { %1922 = vmatpush.msrb.mxu2 %v11917_v15  ;;  %1877 = vmatpush.msrb.mxu1 %v11920_v3  ;;  %v11924_v15 = vld [vmem:[#allocation85_spill] sm:$0xff]  ;;  %v11929_v3 = vld [vmem:[#allocation76_spill] sm:$0xff] }
 0x2aa   :  { %6620 = vmatpush.msk.msrb.mxu3 %vm11919_vm9, %v11741_v46  ;;  %6603 = vmatpush.msk.msrb.mxu0 %vm11915_vm12, %v11741_v46  ;;  %vm11927_vm12 = vnez %v11926_v21 }
 0x2ab   :  { %1924 = vmatpush.msrb.mxu2 %v11921_v36  ;;  %1882 = vmatpush.msrb.mxu1 %v11924_v15  ;;  %v11928_v36 = vld [vmem:[#allocation86_spill] sm:$0xff]  ;;  %v1810_v15 = vsub.f32 %v8917_v7, %v9092_v32 }
 0x2ac   :  { %6621 = vmatpush.msk.msrb.mxu3 %vm11923_vm3, %v11741_v46  ;;  %6604 = vmatpush.msk.msrb.mxu0 %vm11919_vm9, %v11741_v46  ;;  %vm11931_vm9 = vnez %v11930_v39 }
 0x2ad   :  { %1926 = vmatpush.msrb.mxu2 %v11925_v41  ;;  %1887 = vmatpush.msrb.mxu1 %v11928_v36  ;;  %v11932_v41 = vld [vmem:[#allocation88_spill] sm:$0xff]  ;;  %v1811_v7 = vand.u32 4294901760, %v1810_v15 }
 0x2ae   :  { %6622 = vmatpush.msk.msrb.mxu3 %vm11927_vm12, %v11741_v46  ;;  %6605 = vmatpush.msk.msrb.mxu0 %vm11923_vm3, %v11741_v46  ;;  %vm11935_vm3 = vnez %v11934_v1  ;;  %v11937_v36 = vld [vmem:[#allocation80_spill] sm:$0xff] }
 0x2af   :  { %1928 = vmatpush.msrb.mxu2 %v11929_v3  ;;  %1892 = vmatpush.msrb.mxu1 %v11932_v41  ;;  %v11936_v3 = vld [vmem:[#allocation89_spill] sm:$0xff] }
 0x2b0   :  { %6623 = vmatpush.msk.msrb.mxu3 %vm11931_vm9, %v11741_v46  ;;  %6606 = vmatpush.msk.msrb.mxu0 %vm11927_vm12, %v11741_v46  ;;  %vm11939_vm12 = vnez %v11938_v61  ;;  %v11945_v41 = vld [vmem:[#allocation93_spill] sm:$0xff] }
 0x2b1   :  { %1930 = vmatpush.msrb.mxu2 %v11933_v11  ;;  %1897 = vmatpush.msrb.mxu1 %v11936_v3  ;;  %v11940_v11 = vld [vmem:[#allocation84_spill] sm:$0xff]  ;;  %v11941_v3 = vld [vmem:[#allocation75_spill] sm:$0xff] }
 0x2b2   :  { %6624 = vmatpush.msk.msrb.mxu3 %vm11935_vm3, %v11741_v46  ;;  %6607 = vmatpush.msk.msrb.mxu0 %vm11931_vm9, %v11741_v46  ;;  %vm11942_vm9 = vnez %v11941_v3 }
 0x2b3   :  { %1932 = vmatpush.msrb.mxu2 %v11937_v36  ;;  %1899 = vmatmul.f32.vlgmr.msrb.gmra.mxu1 %v9092_v32  ;;  %v11943_v36 = vld [vmem:[#allocation82_spill] sm:$0xff] }
 0x2b4   :  { %6625 = vmatpush.msk.msrb.mxu3 %vm11939_vm12, %v11741_v46  ;;  %6608 = vmatpush.msk.msrb.mxu0 %vm11935_vm3, %v11741_v46 }
 0x2b5   :  { %6628 = vmatpush.msk.msra.mxu1 %vm11884_vm8, %v11741_v46  ;;  %1934 = vmatpush.msrb.mxu2 %v11940_v11  ;;  %vm11944_vm8 = vnez %v11943_v36  ;;  %v1812_v11 = vsub.f32 %v1810_v15, %v1811_v7 }
 0x2b6   :  { %6626 = vmatpush.msk.msrb.mxu3 %vm11942_vm9, %v11741_v46  ;;  %1937 = vmatmul.f32.vlgmr.msrb.gmra.mxu2 %v1810_v15  ;;  %v11946_v15 = vld [vmem:[#allocation94_spill] sm:$0xff] }
 0x2b7   :  { %6629 = vmatpush.msk.msra.mxu1 %vm11888_vm4, %v11741_v46  ;;  %6644 = vmatpush.msk.msra.mxu2 %vm11857_vm15, %v11741_v46  ;;  %vm11966_vm4 = vnez %v11810_v2 }
 0x2b8   :  { %6609 = vmatpush.msk.msrb.mxu0 %vm11939_vm12, %v11741_v46  ;;  %6627 = vmatpush.msk.msrb.mxu3 %vm11944_vm8, %v11741_v46 }
 0x2b9   :  { %1960 = vmatmul.f32.vlgmr.msrb.gmra.mxu3 %v1811_v7  ;;  %6630 = vmatpush.msk.msra.mxu1 %vm11892_vm6, %v11741_v46  ;;  %v1813_v7 = vand.u32 4294901760, %v1812_v11  ;;  %v11949_v11 = vld [vmem:[#allocation31_spill] sm:$0xff]  ;;  %vm11962_vm6 = vnez %v11798_v50 }
 0x2ba   :  { %6645 = vmatpush.msk.msra.mxu2 %vm8250_vm7, %v11741_v46  ;;  %2067 = vmatpush.msra.mxu3 %v11945_v41  ;;  %v11947_v41 = vld [vmem:[#allocation28_spill] sm:$0xff] }
 0x2bb   :  { %6610 = vmatpush.msk.msrb.mxu0 %vm11942_vm9, %v11741_v46  ;;  %6631 = vmatpush.msk.msra.mxu1 %vm11898_vm0, %v11741_v46  ;;  %vm11958_vm0 = vnez %v11795_v14 }
 0x2bc   :  { %6646 = vmatpush.msk.msra.mxu2 %vm8290_vm5, %v11741_v46  ;;  %2072 = vmatpush.msra.mxu3 %v11946_v15  ;;  %v11950_v15 = vld [vmem:[#allocation98_spill] sm:$0xff] }
 0x2bd   :  { %6611 = vmatpush.msk.msrb.mxu0 %vm11944_vm8, %v11741_v46  ;;  %6632 = vmatpush.msk.msra.mxu1 %vm11903_vm1, %v11741_v46  ;;  %vm11954_vm1 = vnez %v11787_v30 }
 0x2be   :  { %1814 = vmatmul.f32.vlgmr.msrb.gmra.mxu0 %v1813_v7  ;;  %6647 = vmatpush.msk.msra.mxu2 %vm8318_vm14, %v11741_v46  ;;  %v11951_v7 = vld [vmem:[#allocation35_spill] sm:$0xff] }
 0x2bf   :  { %1966 = vmatpush.msra.mxu0 %v11947_v41  ;;  %2077 = vmatpush.msra.mxu3 %v11948_v51  ;;  %v11952_v51 = vld [vmem:[#allocation99_spill] sm:$0xff] }
 0x2c0   :  { %6633 = vmatpush.msk.msra.mxu1 %vm11907_vm11, %v11741_v46  ;;  %6648 = vmatpush.msk.msra.mxu2 %vm8344_vm13, %v11741_v46  ;;  %vm11953_vm11 = vnez %v11914_v49  ;;  %v11960_v41 = vld [vmem:[#allocation103_spill] sm:$0xff] }
 0x2c1   :  { %1969 = vmatpush.msra.mxu0 %v11949_v11  ;;  %2082 = vmatpush.msra.mxu3 %v11950_v15  ;;  %v11955_v15 = vld [vmem:[#allocation40_spill] sm:$0xff] }
 0x2c2   :  { %6634 = vmatpush.msk.msra.mxu1 %vm11911_vm2, %v11741_v46  ;;  %6649 = vmatpush.msk.msra.mxu2 %vm8380_vm10, %v11741_v46  ;;  %v11956_v11 = vld [vmem:[#allocation100_spill] sm:$0xff]  ;;  %vm11957_vm2 = vnez %v11918_v4 }
 0x2c3   :  { %1972 = vmatpush.msra.mxu0 %v11951_v7  ;;  %2087 = vmatpush.msra.mxu3 %v11952_v51  ;;  %v9206_v51 = vand.u32 4294901760, %v8919_v48  ;;  %v11959_v7 = vld [vmem:[#allocation44_spill] sm:$0xff] }
 0x2c4   :  { %6635 = vmatpush.msk.msra.mxu1 %vm11953_vm11, %v11741_v46  ;;  %6650 = vmatpush.msk.msra.mxu2 %vm11954_vm1, %v11741_v46  ;;  %vm11961_vm11 = vnez %v11922_v17  ;;  %v11968_v17 = vld [vmem:[#allocation108_spill] sm:$0xff] }
 0x2c5   :  { %1975 = vmatpush.msra.mxu0 %v11955_v15  ;;  %2092 = vmatpush.msra.mxu3 %v11956_v11  ;;  %v11963_v11 = vld [vmem:[#allocation45_spill] sm:$0xff]  ;;  %v11964_v15 = vld [vmem:[#allocation106_spill] sm:$0xff] }
 0x2c6   :  { %6636 = vmatpush.msk.msra.mxu1 %vm11957_vm2, %v11741_v46  ;;  %6651 = vmatpush.msk.msra.mxu2 %vm11958_vm0, %v11741_v46  ;;  %vm11965_vm2 = vnez %v11926_v21 }
 0x2c7   :  { %1978 = vmatpush.msra.mxu0 %v11959_v7  ;;  %2097 = vmatpush.msra.mxu3 %v11960_v41  ;;  %v9226_v41 = vsub.f32 %v8919_v48, %v9206_v51  ;;  %v11967_v7 = vld [vmem:[#allocation53_spill] sm:$0xff] }
 0x2c8   :  { %6637 = vmatpush.msk.msra.mxu1 %vm11961_vm11, %v11741_v46  ;;  %6652 = vmatpush.msk.msra.mxu2 %vm11962_vm6, %v11741_v46  ;;  %vm11969_vm11 = vnez %v11930_v39  ;;  %vm11970_vm6 = vnez %v11816_v26 }
 0x2c9   :  { %1981 = vmatpush.msra.mxu0 %v11963_v11  ;;  %2102 = vmatpush.msra.mxu3 %v11964_v15  ;;  %v11971_v15 = vld [vmem:[#allocation55_spill] sm:$0xff]  ;;  %v11569_v48 = vand.u32 4294901760, %v9226_v41 }
 0x2ca   :  { %6638 = vmatpush.msk.msra.mxu1 %vm11965_vm2, %v11741_v46  ;;  %6653 = vmatpush.msk.msra.mxu2 %vm11966_vm4, %v11741_v46  ;;  %v11972_v11 = vld [vmem:[#allocation111_spill] sm:$0xff]  ;;  %vm11973_vm2 = vnez %v11821_v42 }
 0x2cb   :  { %1984 = vmatpush.msra.mxu0 %v11967_v7  ;;  %2107 = vmatpush.msra.mxu3 %v11968_v17  ;;  %v11974_v17 = vld [vmem:[#allocation60_spill] sm:$0xff]  ;;  %v11975_v7 = vld [vmem:[#allocation115_spill] sm:$0xff] }
 0x2cc   :  { %6639 = vmatpush.msk.msra.mxu1 %vm11969_vm11, %v11741_v46  ;;  %6654 = vmatpush.msk.msra.mxu2 %vm11970_vm6, %v11741_v46  ;;  %vm11976_vm11 = vnez %v11830_v28 }
 0x2cd   :  { %1987 = vmatpush.msra.mxu0 %v11971_v15  ;;  %2112 = vmatpush.msra.mxu3 %v11972_v11  ;;  %v11977_v11 = vld [vmem:[#allocation63_spill] sm:$0xff] }
 0x2ce   :  { %6640 = vmatpush.msk.msra.mxu1 %vm11935_vm3, %v11741_v46  ;;  %6655 = vmatpush.msk.msra.mxu2 %vm11973_vm2, %v11741_v46  ;;  %vm11978_vm3 = vnez %v11834_v59 }
 0x2cf   :  { %1990 = vmatpush.msra.mxu0 %v11974_v17  ;;  %2117 = vmatpush.msra.mxu3 %v11975_v7  ;;  %v2057_v7 = vsub.f32 %v9226_v41, %v11569_v48  ;;  %v11979_v17 = vld [vmem:[#allocation68_spill] sm:$0xff] }
 0x2d0   :  { %6641 = vmatpush.msk.msra.mxu1 %vm11939_vm12, %v11741_v46  ;;  %6656 = vmatpush.msk.msra.mxu2 %vm11976_vm11, %v11741_v46  ;;  %vm11980_vm12 = vnez %v11852_v55 }
 0x2d1   :  { %1993 = vmatpush.msra.mxu0 %v11977_v11  ;;  %2122 = vmatpush.msra.mxu3 %v8749_v57  ;;  %v11981_v57 = vld [vmem:[#allocation71_spill] sm:$0xff]  ;;  %v2058_v48 = vand.u32 4294901760, %v2057_v7 }
 0x2d2   :  { %6642 = vmatpush.msk.msra.mxu1 %vm11942_vm9, %v11741_v46  ;;  %6657 = vmatpush.msk.msra.mxu2 %vm11978_vm3, %v11741_v46  ;;  %vm11982_vm9 = vnez %v11855_v56  ;;  %v11986_v7 = vld [vmem:[#allocation83_spill] sm:$0xff] }
 0x2d3   :  { %1996 = vmatpush.msra.mxu0 %v11979_v17  ;;  %2127 = vmatpush.msra.mxu3 %v8766_v45  ;;  %v11983_v45 = vld [vmem:[#allocation79_spill] sm:$0xff] }
 0x2d4   :  { %6643 = vmatpush.msk.msra.mxu1 %vm11944_vm8, %v11741_v46  ;;  %6658 = vmatpush.msk.msra.mxu2 %vm11980_vm12, %v11741_v46 }
 0x2d5   :  { %1999 = vmatpush.msra.mxu0 %v11981_v57  ;;  %2132 = vmatpush.msra.mxu3 %v8834_v12  ;;  %v11984_v12 = vld [vmem:[#allocation90_spill] sm:$0xff]  ;;  %v11985_v57 = vld [vmem:[#allocation81_spill] sm:$0xff] }
 0x2d6   :  { %2034 = vmatmul.f32.vlgmr.msra.gmra.mxu1 %v9092_v32  ;;  %6659 = vmatpush.msk.msra.mxu2 %vm11982_vm9, %v11741_v46 }
 0x2d7   :  { %6660 = vmatpush.msk.msrb.mxu1 %vm11857_vm15, %v11741_v46  ;;  %2002 = vmatpush.msra.mxu0 %v11983_v45 }
 0x2d8   :  { %2137 = vmatpush.msra.mxu3 %v8853_v38  ;;  %2059 = vmatmul.f32.vlgmr.msra.gmra.mxu2 %v2058_v48  ;;  %v11987_v48 = vld [vmem:[#allocation87_spill] sm:$0xff] }
 0x2d9   :  { %6661 = vmatpush.msk.msrb.mxu1 %vm8250_vm7, %v11741_v46  ;;  %2211 = vmatpush.msrb.mxu2 %v11984_v12 }
 0x2da   :  { %2005 = vmatpush.msra.mxu0 %v11985_v57  ;;  %2142 = vmatpush.msra.mxu3 %v8863_v47 }
 0x2db   :  { %2144 = vmatmul.f32.vlgmr.msra.gmra.mxu3 %v9206_v51  ;;  %6662 = vmatpush.msk.msrb.mxu1 %vm8290_vm5, %v11741_v46 }
 0x2dc   :  { %2214 = vmatpush.msrb.mxu2 %v8304_v60  ;;  %6676 = vmatpush.msk.msrb.mxu3 %vm11857_vm15, %v11741_v46 }
 0x2dd   :  { %2008 = vmatpush.msra.mxu0 %v11986_v7  ;;  %6663 = vmatpush.msk.msrb.mxu1 %vm8318_vm14, %v11741_v46 }
 0x2de   :  { %2217 = vmatpush.msrb.mxu2 %v8342_v35  ;;  %6677 = vmatpush.msk.msrb.mxu3 %vm8250_vm7, %v11741_v46 }
 0x2df   :  { %2011 = vmatpush.msra.mxu0 %v11987_v48  ;;  %6664 = vmatpush.msk.msrb.mxu1 %vm8344_vm13, %v11741_v46 }
 0x2e0   :  { %2013 = vmatmul.f32.vlgmr.msra.gmra.mxu0 %v9092_v32  ;;  %2220 = vmatpush.msrb.mxu2 %v8391_v29  ;;  %v11989_v32 = vld [vmem:[#allocation120_spill] sm:$0xff] }
 0x2e1   :  { %2149 = vmatpush.msrb.mxu0 %v8261_v53  ;;  %6678 = vmatpush.msk.msrb.mxu3 %vm8290_vm5, %v11741_v46 }
 0x2e2   :  { %6665 = vmatpush.msk.msrb.mxu1 %vm8380_vm10, %v11741_v46  ;;  %2223 = vmatpush.msrb.mxu2 %v8401_v6 }
 0x2e3   :  { %2151 = vmatpush.msrb.mxu0 %v11863_v40  ;;  %6679 = vmatpush.msk.msrb.mxu3 %vm8318_vm14, %v11741_v46  ;;  %vm11988_vm14 = vnez %v11798_v50 }
 0x2e4   :  { %6666 = vmatpush.msk.msrb.mxu1 %vm11954_vm1, %v11741_v46  ;;  %2226 = vmatpush.msrb.mxu2 %v8436_v43 }
 0x2e5   :  { %2153 = vmatpush.msrb.mxu0 %v11864_v9  ;;  %6680 = vmatpush.msk.msrb.mxu3 %vm8344_vm13, %v11741_v46 }
 0x2e6   :  { %6667 = vmatpush.msk.msrb.mxu1 %vm11958_vm0, %v11741_v46  ;;  %2229 = vmatpush.msrb.mxu2 %v8480_v18 }
 0x2e7   :  { %2155 = vmatpush.msrb.mxu0 %v8371_v22  ;;  %6681 = vmatpush.msk.msrb.mxu3 %vm8380_vm10, %v11741_v46  ;;  %vm12039_vm10 = vnez %v11926_v21 }
 0x2e8   :  { %6668 = vmatpush.msk.msrb.mxu1 %vm11988_vm14, %v11741_v46  ;;  %2232 = vmatpush.msrb.mxu2 %v8524_v58 }
 0x2e9   :  { %2157 = vmatpush.msrb.mxu0 %v11865_v33  ;;  %6682 = vmatpush.msk.msrb.mxu3 %vm11954_vm1, %v11741_v46 }
 0x2ea   :  { %6669 = vmatpush.msk.msrb.mxu1 %vm11966_vm4, %v11741_v46  ;;  %2235 = vmatpush.msrb.mxu2 %v8565_v24 }
 0x2eb   :  { %2159 = vmatpush.msrb.mxu0 %v11868_v31  ;;  %6683 = vmatpush.msk.msrb.mxu3 %vm11958_vm0, %v11741_v46  ;;  %vm12031_vm0 = vnez %v11918_v4 }
 0x2ec   :  { %6670 = vmatpush.msk.msrb.mxu1 %vm11970_vm6, %v11741_v46  ;;  %2238 = vmatpush.msrb.mxu2 %v8615_v13  ;;  %v12001_v13 = vld [vmem:[#allocation125_spill] sm:$0xff] }
 0x2ed   :  { %2161 = vmatpush.msrb.mxu0 %v8468_v52  ;;  %6684 = vmatpush.msk.msrb.mxu3 %vm11988_vm14, %v11741_v46  ;;  %v11998_v52 = vld [vmem:[#allocation117_spill] sm:$0xff]  ;;  %vm12028_vm14 = vnez %v11914_v49 }
 0x2ee   :  { %6671 = vmatpush.msk.msrb.mxu1 %vm11973_vm2, %v11741_v46  ;;  %2241 = vmatpush.msrb.mxu2 %v8653_v16  ;;  %v11997_v16 = vld [vmem:[#allocation33_spill] sm:$0xff] }
 0x2ef   :  { %2163 = vmatpush.msrb.mxu0 %v8496_v23  ;;  %6685 = vmatpush.msk.msrb.mxu3 %vm11966_vm4, %v11741_v46  ;;  %v11990_v23 = vld [vmem:[#allocation109_spill] sm:$0xff]  ;;  %vm12025_vm4 = vnez %v11910_v37 }
 0x2f0   :  { %6672 = vmatpush.msk.msrb.mxu1 %vm11976_vm11, %v11741_v46  ;;  %2244 = vmatpush.msrb.mxu2 %v8698_v25  ;;  %v11992_v25 = vld [vmem:[#allocation112_spill] sm:$0xff] }
 0x2f1   :  { %2165 = vmatpush.msrb.mxu0 %v8539_v10  ;;  %6686 = vmatpush.msk.msrb.mxu3 %vm11970_vm6, %v11741_v46  ;;  %v11991_v10 = vld [vmem:[#allocation126_spill] sm:$0xff]  ;;  %vm12022_vm6 = vnez %v11906_v8 }
 0x2f2   :  { %6673 = vmatpush.msk.msrb.mxu1 %vm11978_vm3, %v11741_v46  ;;  %2247 = vmatpush.msrb.mxu2 %v11989_v32  ;;  %v11994_v32 = vld [vmem:[#allocation114_spill] sm:$0xff]  ;;  %v1441_v36 = vpop.f32.mrf.mxu2 }
 0x2f3   :  { %2167 = vmatpush.msrb.mxu0 %v11990_v23  ;;  %6687 = vmatpush.msk.msrb.mxu3 %vm11973_vm2, %v11741_v46  ;;  %v11993_v23 = vld [vmem:[#allocation128_spill] sm:$0xff]  ;;  %vm12019_vm2 = vnez %v11902_v20 }
 0x2f4   :  { %6674 = vmatpush.msk.msrb.mxu1 %vm11980_vm12, %v11741_v46  ;;  %2250 = vmatpush.msrb.mxu2 %v11991_v10  ;;  %v11995_v10 = vand.u32 4294901760, %v9226_v41 }
 0x2f5   :  { %2169 = vmatpush.msrb.mxu0 %v11992_v25  ;;  %6688 = vmatpush.msk.msrb.mxu3 %vm11976_vm11, %v11741_v46  ;;  %v11996_v25 = vld [vmem:[#allocation131_spill] sm:$0xff] }
 0x2f6   :  { %6675 = vmatpush.msk.msrb.mxu1 %vm11982_vm9, %v11741_v46  ;;  %2253 = vmatpush.msrb.mxu2 %v11993_v23  ;;  %v12000_v23 = vld [vmem:[#allocation26_spill] sm:$0xff] }
 0x2f7   :  { %2171 = vmatpush.msrb.mxu0 %v11994_v32  ;;  %6689 = vmatpush.msk.msrb.mxu3 %vm11978_vm3, %v11741_v46  ;;  %v11999_v32 = vld [vmem:[#allocation36_spill] sm:$0xff]  ;;  %vm12008_vm3 = vnez %v11887_v44 }
 0x2f8   :  { %2205 = vmatmul.f32.vlgmr.msrb.gmra.mxu1 %v11995_v10  ;;  %2256 = vmatpush.msrb.mxu2 %v11996_v25  ;;  %v12002_v10 = vld [vmem:[#allocation42_spill] sm:$0xff] }
 0x2f9   :  { %2319 = vmatpush.msra.mxu1 %v11997_v16  ;;  %2173 = vmatpush.msrb.mxu0 %v11998_v52  ;;  %v12003_v52 = vld [vmem:[#allocation29_spill] sm:$0xff]  ;;  %v12005_v16 = vld [vmem:[#allocation127_spill] sm:$0xff] }
 0x2fa   :  { %6690 = vmatpush.msk.msrb.mxu3 %vm11980_vm12, %v11741_v46  ;;  %2258 = vmatmul.f32.vlgmr.msrb.gmra.mxu2 %v9206_v51  ;;  %vm12004_vm12 = vnez %v11883_v63 }
 0x2fb   :  { %2324 = vmatpush.msra.mxu1 %v11999_v32  ;;  %2401 = vmatpush.msra.mxu2 %v12000_v23  ;;  %v12006_v32 = vld [vmem:[#allocation47_spill] sm:$0xff]  ;;  %v12007_v23 = vld [vmem:[#allocation32_spill] sm:$0xff] }
 0x2fc   :  { %2175 = vmatpush.msrb.mxu0 %v12001_v13  ;;  %6691 = vmatpush.msk.msrb.mxu3 %vm11982_vm9, %v11741_v46  ;;  %v12009_v13 = vld [vmem:[#allocation129_spill] sm:$0xff]  ;;  %vm12012_vm9 = vnez %v11891_v5 }
 0x2fd   :  { %2279 = vmatmul.f32.vlgmr.msrb.gmra.mxu3 %v9206_v51  ;;  %2329 = vmatpush.msra.mxu1 %v12002_v10  ;;  %v12010_v51 = vld [vmem:[#allocation50_spill] sm:$0xff] }
 0x2fe   :  { %2403 = vmatpush.msra.mxu2 %v12003_v52  ;;  %6708 = vmatpush.msk.msra.mxu3 %vm12004_vm12, %v11741_v46  ;;  %v12011_v52 = vld [vmem:[#allocation37_spill] sm:$0xff] }
 0x2ff   :  { %2177 = vmatpush.msrb.mxu0 %v12005_v16  ;;  %2334 = vmatpush.msra.mxu1 %v12006_v32  ;;  %v12014_v32 = vld [vmem:[#allocation41_spill] sm:$0xff]  ;;  %v12038_v16 = vld [vmem:[#allocation91_spill] sm:$0xff] }
 0x300   :  { %2405 = vmatpush.msra.mxu2 %v12007_v23  ;;  %6709 = vmatpush.msk.msra.mxu3 %vm12008_vm3, %v11741_v46  ;;  %v12013_v23 = vld [vmem:[#allocation52_spill] sm:$0xff]  ;;  %v9499_v10 = vand.u32 4294901760, %v12038_v16 }
 0x301   :  { %2179 = vmatpush.msrb.mxu0 %v12009_v13  ;;  %2339 = vmatpush.msra.mxu1 %v12010_v51  ;;  %v12018_v51 = vld [vmem:[#allocation43_spill] sm:$0xff]  ;;  %v12037_v13 = vld [vmem:[#allocation69_spill] sm:$0xff] }
 0x302   :  { %2182 = vmatmul.f32.vlgmr.msrb.gmra.mxu0 %v9226_v41  ;;  %2407 = vmatpush.msra.mxu2 %v12011_v52  ;;  %v12015_v41 = vld [vmem:[#allocation34_spill] sm:$0xff]  ;;  %v12017_v52 = vld [vmem:[#allocation59_spill] sm:$0xff]  ;;  %v2307_v25 = vsub.f32 %v12038_v16, %v9499_v10  ;;  %v12049_v16 = vld [vmem:[#allocation84_spill] sm:$0xff] }
 0x303   :  { %6692 = vmatpush.msk.msra.mxu0 %vm12004_vm12, %v11741_v46  ;;  %6710 = vmatpush.msk.msra.mxu3 %vm12012_vm9, %v11741_v46  ;;  %vm12016_vm11 = vnez %v12015_v41 }
 0x304   :  { %2344 = vmatpush.msra.mxu1 %v12013_v23  ;;  %2409 = vmatpush.msra.mxu2 %v12014_v32  ;;  %v12020_v32 = vld [vmem:[#allocation62_spill] sm:$0xff]  ;;  %v12021_v23 = vld [vmem:[#allocation49_spill] sm:$0xff] }
 0x305   :  { %6693 = vmatpush.msk.msra.mxu0 %vm12008_vm3, %v11741_v46  ;;  %6711 = vmatpush.msk.msra.mxu3 %vm12016_vm11, %v11741_v46 }
 0x306   :  { %2349 = vmatpush.msra.mxu1 %v12017_v52  ;;  %2411 = vmatpush.msra.mxu2 %v12018_v51  ;;  %v12023_v51 = vld [vmem:[#allocation67_spill] sm:$0xff] }
 0x307   :  { %6694 = vmatpush.msk.msra.mxu0 %vm12012_vm9, %v11741_v46  ;;  %6712 = vmatpush.msk.msra.mxu3 %vm12019_vm2, %v11741_v46  ;;  %v12024_v52 = vld [vmem:[#allocation51_spill] sm:$0xff] }
 0x308   :  { %2354 = vmatpush.msra.mxu1 %v12020_v32  ;;  %2413 = vmatpush.msra.mxu2 %v12021_v23  ;;  %v12026_v23 = vld [vmem:[#allocation70_spill] sm:$0xff]  ;;  %v12027_v32 = vld [vmem:[#allocation57_spill] sm:$0xff] }
 0x309   :  { %6695 = vmatpush.msk.msra.mxu0 %vm12016_vm11, %v11741_v46  ;;  %6713 = vmatpush.msk.msra.mxu3 %vm12022_vm6, %v11741_v46 }
 0x30a   :  { %2359 = vmatpush.msra.mxu1 %v12023_v51  ;;  %2415 = vmatpush.msra.mxu2 %v12024_v52  ;;  %v12029_v52 = vld [vmem:[#allocation74_spill] sm:$0xff] }
 0x30b   :  { %6696 = vmatpush.msk.msra.mxu0 %vm12019_vm2, %v11741_v46  ;;  %6714 = vmatpush.msk.msra.mxu3 %vm12025_vm4, %v11741_v46  ;;  %v12030_v51 = vld [vmem:[#allocation58_spill] sm:$0xff] }
 0x30c   :  { %2364 = vmatpush.msra.mxu1 %v12026_v23  ;;  %2417 = vmatpush.msra.mxu2 %v12027_v32  ;;  %v12032_v32 = vld [vmem:[#allocation77_spill] sm:$0xff]  ;;  %v12033_v23 = vld [vmem:[#allocation64_spill] sm:$0xff] }
 0x30d   :  { %6697 = vmatpush.msk.msra.mxu0 %vm12022_vm6, %v11741_v46  ;;  %6715 = vmatpush.msk.msra.mxu3 %vm12028_vm14, %v11741_v46 }
 0x30e   :  { %2369 = vmatpush.msra.mxu1 %v12029_v52  ;;  %2419 = vmatpush.msra.mxu2 %v12030_v51  ;;  %v12034_v52 = vld [vmem:[#allocation56_spill] sm:$0xff]  ;;  %v12036_v51 = vld [vmem:[#allocation85_spill] sm:$0xff] }
 0x30f   :  { %6698 = vmatpush.msk.msra.mxu0 %vm12025_vm4, %v11741_v46  ;;  %6716 = vmatpush.msk.msra.mxu3 %vm12031_vm0, %v11741_v46  ;;  %vm12035_vm1 = vnez %v12034_v52 }
 0x310   :  { %2374 = vmatpush.msra.mxu1 %v12032_v32  ;;  %2421 = vmatpush.msra.mxu2 %v12033_v23  ;;  %v12040_v23 = vld [vmem:[#allocation86_spill] sm:$0xff]  ;;  %v12041_v32 = vld [vmem:[#allocation76_spill] sm:$0xff] }
 0x311   :  { %6699 = vmatpush.msk.msra.mxu0 %vm12028_vm14, %v11741_v46  ;;  %6717 = vmatpush.msk.msra.mxu3 %vm12035_vm1, %v11741_v46  ;;  %vm12042_vm14 = vnez %v11930_v39 }
 0x312   :  { %2379 = vmatpush.msra.mxu1 %v12036_v51  ;;  %2423 = vmatpush.msra.mxu2 %v12037_v13  ;;  %v12043_v13 = vld [vmem:[#allocation88_spill] sm:$0xff]  ;;  %v12044_v51 = vld [vmem:[#allocation78_spill] sm:$0xff] }
 0x313   :  { %6700 = vmatpush.msk.msra.mxu0 %vm12031_vm0, %v11741_v46  ;;  %6718 = vmatpush.msk.msra.mxu3 %vm12039_vm10, %v11741_v46  ;;  %vm12045_vm0 = vnez %v11934_v1 }
 0x314   :  { %2384 = vmatpush.msra.mxu1 %v12040_v23  ;;  %2425 = vmatpush.msra.mxu2 %v12041_v32  ;;  %v12046_v32 = vld [vmem:[#allocation89_spill] sm:$0xff]  ;;  %v12047_v23 = vld [vmem:[#allocation80_spill] sm:$0xff] }
 0x315   :  { %6701 = vmatpush.msk.msra.mxu0 %vm12035_vm1, %v11741_v46  ;;  %6719 = vmatpush.msk.msra.mxu3 %vm12042_vm14, %v11741_v46  ;;  %vm12048_vm1 = vnez %v11938_v61 }
 0x316   :  { %2389 = vmatpush.msra.mxu1 %v12043_v13  ;;  %2427 = vmatpush.msra.mxu2 %v12044_v51  ;;  %v2308_v51 = vand.u32 4294901760, %v2307_v25  ;;  %v12069_v13 = vld [vmem:[#allocation103_spill] sm:$0xff] }
 0x317   :  { %6702 = vmatpush.msk.msra.mxu0 %vm12039_vm10, %v11741_v46  ;;  %6720 = vmatpush.msk.msra.mxu3 %vm12045_vm0, %v11741_v46 }
 0x318   :  { %2394 = vmatpush.msra.mxu1 %v12046_v32  ;;  %2429 = vmatpush.msra.mxu2 %v12047_v23  ;;  %v12051_v23 = vld [vmem:[#allocation93_spill] sm:$0xff]  ;;  %v12055_v32 = vld [vmem:[#allocation96_spill] sm:$0xff] }
 0x319   :  { %6703 = vmatpush.msk.msra.mxu0 %vm12042_vm14, %v11741_v46  ;;  %6721 = vmatpush.msk.msra.mxu3 %vm12048_vm1, %v11741_v46  ;;  %vm12050_vm14 = vnez %v11941_v3 }
 0x31a   :  { %2396 = vmatmul.f32.vlgmr.msra.gmra.mxu1 %v9499_v10  ;;  %2431 = vmatpush.msra.mxu2 %v12049_v16  ;;  %v2309_v16 = vsub.f32 %v2307_v25, %v2308_v51 }
 0x31b   :  { %6724 = vmatpush.msk.msrb.mxu1 %vm12004_vm12, %v11741_v46  ;;  %6704 = vmatpush.msk.msra.mxu0 %vm12045_vm0, %v11741_v46  ;;  %vm12071_vm12 = vnez %v11798_v50 }
 0x31c   :  { %6722 = vmatpush.msk.msra.mxu3 %vm12050_vm14, %v11741_v46  ;;  %2434 = vmatmul.f32.vlgmr.msra.gmra.mxu2 %v2307_v25  ;;  %v12052_v25 = vld [vmem:[#allocation94_spill] sm:$0xff] }
 0x31d   :  { %6725 = vmatpush.msk.msrb.mxu1 %vm12008_vm3, %v11741_v46  ;;  %6740 = vmatpush.msk.msrb.mxu2 %vm11857_vm15, %v11741_v46  ;;  %vm12066_vm3 = vnez %v11795_v14 }
 0x31e   :  { %6705 = vmatpush.msk.msra.mxu0 %vm12048_vm1, %v11741_v46  ;;  %6723 = vmatpush.msk.msra.mxu3 %vm11944_vm8, %v11741_v46 }
 0x31f   :  { %2457 = vmatmul.f32.vlgmr.msra.gmra.mxu3 %v2308_v51  ;;  %6726 = vmatpush.msk.msrb.mxu1 %vm12012_vm9, %v11741_v46  ;;  %v2310_v51 = vand.u32 4294901760, %v2309_v16  ;;  %vm12053_vm9 = vnez %v11773_v54  ;;  %v12056_v16 = vld [vmem:[#allocation31_spill] sm:$0xff] }
 0x320   :  { %6741 = vmatpush.msk.msrb.mxu2 %vm8250_vm7, %v11741_v46  ;;  %2564 = vmatpush.msrb.mxu3 %v12051_v23  ;;  %v12054_v23 = vld [vmem:[#allocation28_spill] sm:$0xff] }
 0x321   :  { %6706 = vmatpush.msk.msra.mxu0 %vm12050_vm14, %v11741_v46  ;;  %6727 = vmatpush.msk.msrb.mxu1 %vm12016_vm11, %v11741_v46  ;;  %vm12062_vm11 = vnez %v11787_v30 }
 0x322   :  { %6742 = vmatpush.msk.msrb.mxu2 %vm8290_vm5, %v11741_v46  ;;  %2569 = vmatpush.msrb.mxu3 %v12052_v25  ;;  %v12057_v25 = vld [vmem:[#allocation98_spill] sm:$0xff] }
 0x323   :  { %6707 = vmatpush.msk.msra.mxu0 %vm11944_vm8, %v11741_v46  ;;  %6728 = vmatpush.msk.msrb.mxu1 %vm12019_vm2, %v11741_v46  ;;  %vm12058_vm2 = vnez %v11780_v19 }
 0x324   :  { %2311 = vmatmul.f32.vlgmr.msra.gmra.mxu0 %v2310_v51  ;;  %6743 = vmatpush.msk.msrb.mxu2 %vm12053_vm9, %v11741_v46  ;;  %v12059_v51 = vld [vmem:[#allocation35_spill] sm:$0xff] }
 0x325   :  { %2463 = vmatpush.msrb.mxu0 %v12054_v23  ;;  %2574 = vmatpush.msrb.mxu3 %v12055_v32  ;;  %v12060_v32 = vld [vmem:[#allocation99_spill] sm:$0xff]  ;;  %v12068_v23 = vld [vmem:[#allocation44_spill] sm:$0xff] }
 0x326   :  { %6729 = vmatpush.msk.msrb.mxu1 %vm12022_vm6, %v11741_v46  ;;  %6744 = vmatpush.msk.msrb.mxu2 %vm8344_vm13, %v11741_v46  ;;  %vm12061_vm6 = vnez %v11914_v49 }
 0x327   :  { %2466 = vmatpush.msrb.mxu0 %v12056_v16  ;;  %2579 = vmatpush.msrb.mxu3 %v12057_v25  ;;  %v12063_v25 = vld [vmem:[#allocation40_spill] sm:$0xff] }
 0x328   :  { %6730 = vmatpush.msk.msrb.mxu1 %vm12025_vm4, %v11741_v46  ;;  %6745 = vmatpush.msk.msrb.mxu2 %vm12058_vm2, %v11741_v46  ;;  %v12064_v16 = vld [vmem:[#allocation100_spill] sm:$0xff]  ;;  %vm12065_vm4 = vnez %v11918_v4 }
 0x329   :  { %2469 = vmatpush.msrb.mxu0 %v12059_v51  ;;  %2584 = vmatpush.msrb.mxu3 %v12060_v32  ;;  %v12067_v32 = vld [vmem:[#allocation92_spill] sm:$0xff] }
 0x32a   :  { %6731 = vmatpush.msk.msrb.mxu1 %vm12061_vm6, %v11741_v46  ;;  %6746 = vmatpush.msk.msrb.mxu2 %vm12062_vm11, %v11741_v46  ;;  %v9615_v51 = vand.u32 4294901760, %v12067_v32  ;;  %vm12070_vm6 = vnez %v12034_v52  ;;  %v12076_v52 = vld [vmem:[#allocation108_spill] sm:$0xff] }
 0x32b   :  { %2472 = vmatpush.msrb.mxu0 %v12063_v25  ;;  %2589 = vmatpush.msrb.mxu3 %v12064_v16  ;;  %v12072_v16 = vld [vmem:[#allocation45_spill] sm:$0xff]  ;;  %v12073_v25 = vld [vmem:[#allocation106_spill] sm:$0xff] }
 0x32c   :  { %6732 = vmatpush.msk.msrb.mxu1 %vm12065_vm4, %v11741_v46  ;;  %6747 = vmatpush.msk.msrb.mxu2 %vm12066_vm3, %v11741_v46  ;;  %vm12074_vm4 = vnez %v11810_v2 }
 0x32d   :  { %2475 = vmatpush.msrb.mxu0 %v12068_v23  ;;  %2594 = vmatpush.msrb.mxu3 %v12069_v13  ;;  %v9635_v13 = vsub.f32 %v12067_v32, %v9615_v51  ;;  %v12075_v23 = vld [vmem:[#allocation53_spill] sm:$0xff] }
 0x32e   :  { %6733 = vmatpush.msk.msrb.mxu1 %vm12070_vm6, %v11741_v46  ;;  %6748 = vmatpush.msk.msrb.mxu2 %vm12071_vm12, %v11741_v46  ;;  %vm12077_vm6 = vnez %v11930_v39  ;;  %vm12078_vm12 = vnez %v11816_v26 }
 0x32f   :  { %2478 = vmatpush.msrb.mxu0 %v12072_v16  ;;  %2599 = vmatpush.msrb.mxu3 %v12073_v25  ;;  %v12079_v25 = vld [vmem:[#allocation111_spill] sm:$0xff]  ;;  %v11617_v32 = vand.u32 4294901760, %v9635_v13 }
 0x330   :  { %6734 = vmatpush.msk.msrb.mxu1 %vm12039_vm10, %v11741_v46  ;;  %6749 = vmatpush.msk.msrb.mxu2 %vm12074_vm4, %v11741_v46  ;;  %vm12080_vm10 = vnez %v11821_v42 }
 0x331   :  { %2481 = vmatpush.msrb.mxu0 %v12075_v23  ;;  %2604 = vmatpush.msrb.mxu3 %v12076_v52  ;;  %v12081_v52 = vld [vmem:[#allocation60_spill] sm:$0xff]  ;;  %v12082_v23 = vld [vmem:[#allocation115_spill] sm:$0xff] }
 0x332   :  { %6735 = vmatpush.msk.msrb.mxu1 %vm12077_vm6, %v11741_v46  ;;  %6750 = vmatpush.msk.msrb.mxu2 %vm12078_vm12, %v11741_v46  ;;  %vm12083_vm6 = vnez %v11830_v28 }
 0x333   :  { %2484 = vmatpush.msrb.mxu0 %v11971_v15  ;;  %2609 = vmatpush.msrb.mxu3 %v12079_v25  ;;  %v12084_v25 = vld [vmem:[#allocation122_spill] sm:$0xff] }
 0x334   :  { %6736 = vmatpush.msk.msrb.mxu1 %vm12045_vm0, %v11741_v46  ;;  %6751 = vmatpush.msk.msrb.mxu2 %vm12080_vm10, %v11741_v46  ;;  %vm12085_vm0 = vnez %v11834_v59 }
 0x335   :  { %2487 = vmatpush.msrb.mxu0 %v12081_v52  ;;  %2614 = vmatpush.msrb.mxu3 %v12082_v23  ;;  %v2554_v23 = vsub.f32 %v9635_v13, %v11617_v32  ;;  %v12086_v52 = vld [vmem:[#allocation124_spill] sm:$0xff] }
 0x336   :  { %6737 = vmatpush.msk.msrb.mxu1 %vm12048_vm1, %v11741_v46  ;;  %6752 = vmatpush.msk.msrb.mxu2 %vm12083_vm6, %v11741_v46  ;;  %vm12087_vm1 = vnez %v11852_v55 }
 0x337   :  { %2490 = vmatpush.msrb.mxu0 %v11977_v11  ;;  %2619 = vmatpush.msrb.mxu3 %v12084_v25  ;;  %v12088_v25 = vld [vmem:[#allocation71_spill] sm:$0xff]  ;;  %v12089_v11 = vld [vmem:[#allocation130_spill] sm:$0xff]  ;;  %v2555_v32 = vand.u32 4294901760, %v2554_v23 }
 0x338   :  { %6738 = vmatpush.msk.msrb.mxu1 %vm12050_vm14, %v11741_v46  ;;  %6753 = vmatpush.msk.msrb.mxu2 %vm12085_vm0, %v11741_v46  ;;  %vm12090_vm14 = vnez %v11855_v56  ;;  %v12092_v23 = vld [vmem:[#allocation110_spill] sm:$0xff] }
 0x339   :  { %2493 = vmatpush.msrb.mxu0 %v11979_v17  ;;  %2624 = vmatpush.msrb.mxu3 %v12086_v52 }
 0x33a   :  { %6739 = vmatpush.msk.msrb.mxu1 %vm11944_vm8, %v11741_v46  ;;  %6754 = vmatpush.msk.msrb.mxu2 %vm12087_vm1, %v11741_v46 }
 0x33b   :  { %2496 = vmatpush.msrb.mxu0 %v12088_v25  ;;  %2629 = vmatpush.msrb.mxu3 %v12089_v11 }
 0x33c   :  { %2531 = vmatmul.f32.vlgmr.msrb.gmra.mxu1 %v9499_v10  ;;  %6755 = vmatpush.msk.msrb.mxu2 %vm12090_vm14, %v11741_v46 }
 0x33d   :  { %6756 = vmatpush.msk.msra.mxu1 %vm11857_vm15, %v11741_v46  ;;  %2499 = vmatpush.msrb.mxu0 %v11983_v45 }
 0x33e   :  { %2634 = vmatpush.msrb.mxu3 %v8853_v38  ;;  %2556 = vmatmul.f32.vlgmr.msrb.gmra.mxu2 %v2555_v32  ;;  %v12094_v32 = vld [vmem:[#allocation113_spill] sm:$0xff] }
 0x33f   :  { %6757 = vmatpush.msk.msra.mxu1 %vm8250_vm7, %v11741_v46  ;;  %2708 = vmatpush.msra.mxu2 %v11984_v12 }
 0x340   :  { %2502 = vmatpush.msrb.mxu0 %v11985_v57  ;;  %2639 = vmatpush.msrb.mxu3 %v8863_v47 }
 0x341   :  { %2641 = vmatmul.f32.vlgmr.msrb.gmra.mxu3 %v9615_v51  ;;  %6758 = vmatpush.msk.msra.mxu1 %vm8290_vm5, %v11741_v46 }
 0x342   :  { %2711 = vmatpush.msra.mxu2 %v8304_v60  ;;  %6772 = vmatpush.msk.msra.mxu3 %vm11857_vm15, %v11741_v46 }
 0x343   :  { %2505 = vmatpush.msrb.mxu0 %v11986_v7  ;;  %6759 = vmatpush.msk.msra.mxu1 %vm12053_vm9, %v11741_v46 }
 0x344   :  { %2714 = vmatpush.msra.mxu2 %v8342_v35  ;;  %6773 = vmatpush.msk.msra.mxu3 %vm8250_vm7, %v11741_v46 }
 0x345   :  { %2508 = vmatpush.msrb.mxu0 %v11987_v48  ;;  %6760 = vmatpush.msk.msra.mxu1 %vm8344_vm13, %v11741_v46 }
 0x346   :  { %2510 = vmatmul.f32.vlgmr.msrb.gmra.mxu0 %v9499_v10  ;;  %2717 = vmatpush.msra.mxu2 %v8391_v29  ;;  %v12093_v10 = vld [vmem:[#allocation101_spill] sm:$0xff] }
 0x347   :  { %2646 = vmatpush.msra.mxu0 %v8261_v53  ;;  %6774 = vmatpush.msk.msra.mxu3 %vm8290_vm5, %v11741_v46 }
 0x348   :  { %6761 = vmatpush.msk.msra.mxu1 %vm12058_vm2, %v11741_v46  ;;  %2720 = vmatpush.msra.mxu2 %v8401_v6 }
 0x349   :  { %2648 = vmatpush.msra.mxu0 %v11863_v40  ;;  %6775 = vmatpush.msk.msra.mxu3 %vm12053_vm9, %v11741_v46  ;;  %vm12091_vm9 = vnez %v11798_v50 }
 0x34a   :  { %6762 = vmatpush.msk.msra.mxu1 %vm12062_vm11, %v11741_v46  ;;  %2723 = vmatpush.msra.mxu2 %v8436_v43 }
 0x34b   :  { %2650 = vmatpush.msra.mxu0 %v11864_v9  ;;  %6776 = vmatpush.msk.msra.mxu3 %vm8344_vm13, %v11741_v46 }
 0x34c   :  { %6763 = vmatpush.msk.msra.mxu1 %vm12066_vm3, %v11741_v46  ;;  %2726 = vmatpush.msra.mxu2 %v8480_v18 }
 0x34d   :  { %2652 = vmatpush.msra.mxu0 %v8371_v22  ;;  %6777 = vmatpush.msk.msra.mxu3 %vm12058_vm2, %v11741_v46  ;;  %vm12147_vm2 = vnez %v11926_v21  ;;  %v12186_v21 = vld [vmem:[#allocation111_spill] sm:$0xff] }
 0x34e   :  { %6764 = vmatpush.msk.msra.mxu1 %vm12091_vm9, %v11741_v46  ;;  %2729 = vmatpush.msra.mxu2 %v8524_v58  ;;  %v12110_v58 = vld [vmem:[#allocation125_spill] sm:$0xff] }
 0x34f   :  { %2654 = vmatpush.msra.mxu0 %v11865_v33  ;;  %6778 = vmatpush.msk.msra.mxu3 %vm12062_vm11, %v11741_v46  ;;  %v12107_v33 = vld [vmem:[#allocation117_spill] sm:$0xff] }
 0x350   :  { %6765 = vmatpush.msk.msra.mxu1 %vm12074_vm4, %v11741_v46  ;;  %2732 = vmatpush.msra.mxu2 %v8565_v24  ;;  %v12106_v24 = vld [vmem:[#allocation33_spill] sm:$0xff] }
 0x351   :  { %2656 = vmatpush.msra.mxu0 %v11868_v31  ;;  %6779 = vmatpush.msk.msra.mxu3 %vm12066_vm3, %v11741_v46  ;;  %v12095_v31 = vld [vmem:[#allocation102_spill] sm:$0xff]  ;;  %vm12139_vm3 = vnez %v11918_v4 }
 0x352   :  { %6766 = vmatpush.msk.msra.mxu1 %vm12078_vm12, %v11741_v46  ;;  %2735 = vmatpush.msra.mxu2 %v12092_v23  ;;  %v12097_v23 = vld [vmem:[#allocation105_spill] sm:$0xff] }
 0x353   :  { %2658 = vmatpush.msra.mxu0 %v12093_v10  ;;  %6780 = vmatpush.msk.msra.mxu3 %vm12091_vm9, %v11741_v46  ;;  %v12096_v10 = vld [vmem:[#allocation116_spill] sm:$0xff]  ;;  %vm12136_vm9 = vnez %v11914_v49 }
 0x354   :  { %6767 = vmatpush.msk.msra.mxu1 %vm12080_vm10, %v11741_v46  ;;  %2738 = vmatpush.msra.mxu2 %v12094_v32  ;;  %v12099_v32 = vld [vmem:[#allocation109_spill] sm:$0xff] }
 0x355   :  { %2660 = vmatpush.msra.mxu0 %v12095_v31  ;;  %6781 = vmatpush.msk.msra.mxu3 %vm12074_vm4, %v11741_v46  ;;  %v12098_v31 = vld [vmem:[#allocation120_spill] sm:$0xff]  ;;  %vm12133_vm4 = vnez %v11910_v37 }
 0x356   :  { %6768 = vmatpush.msk.msra.mxu1 %vm12083_vm6, %v11741_v46  ;;  %2741 = vmatpush.msra.mxu2 %v12096_v10  ;;  %v12101_v10 = vld [vmem:[#allocation112_spill] sm:$0xff] }
 0x357   :  { %2662 = vmatpush.msra.mxu0 %v12097_v23  ;;  %6782 = vmatpush.msk.msra.mxu3 %vm12078_vm12, %v11741_v46  ;;  %v12100_v23 = vld [vmem:[#allocation126_spill] sm:$0xff]  ;;  %vm12130_vm12 = vnez %v11906_v8  ;;  %v12168_v8 = vld [vmem:[#allocation99_spill] sm:$0xff]  ;;  %v12172_v37 = vld [vmem:[#allocation100_spill] sm:$0xff] }
 0x358   :  { %6769 = vmatpush.msk.msra.mxu1 %vm12085_vm0, %v11741_v46  ;;  %2744 = vmatpush.msra.mxu2 %v12098_v31  ;;  %v12103_v31 = vld [vmem:[#allocation114_spill] sm:$0xff] }
 0x359   :  { %2664 = vmatpush.msra.mxu0 %v12099_v32  ;;  %6783 = vmatpush.msk.msra.mxu3 %vm12080_vm10, %v11741_v46  ;;  %v12102_v32 = vld [vmem:[#allocation128_spill] sm:$0xff]  ;;  %vm12127_vm10 = vnez %v11902_v20  ;;  %v12165_v20 = vld [vmem:[#allocation98_spill] sm:$0xff] }
 0x35a   :  { %6770 = vmatpush.msk.msra.mxu1 %vm12087_vm1, %v11741_v46  ;;  %2747 = vmatpush.msra.mxu2 %v12100_v23  ;;  %v12104_v23 = vand.u32 4294901760, %v9635_v13 }
 0x35b   :  { %2666 = vmatpush.msra.mxu0 %v12101_v10  ;;  %6784 = vmatpush.msk.msra.mxu3 %vm12083_vm6, %v11741_v46  ;;  %v12105_v10 = vld [vmem:[#allocation131_spill] sm:$0xff]  ;;  %vm12124_vm6 = vnez %v12015_v41  ;;  %v12162_v41 = vld [vmem:[#allocation28_spill] sm:$0xff] }
 0x35c   :  { %6771 = vmatpush.msk.msra.mxu1 %vm12090_vm14, %v11741_v46  ;;  %2750 = vmatpush.msra.mxu2 %v12102_v32  ;;  %v12109_v32 = vld [vmem:[#allocation26_spill] sm:$0xff] }
 0x35d   :  { %2668 = vmatpush.msra.mxu0 %v12103_v31  ;;  %6785 = vmatpush.msk.msra.mxu3 %vm12085_vm0, %v11741_v46  ;;  %v12108_v31 = vld [vmem:[#allocation36_spill] sm:$0xff]  ;;  %vm12117_vm0 = vnez %v11887_v44  ;;  %v12159_v44 = vld [vmem:[#allocation93_spill] sm:$0xff] }
 0x35e   :  { %2702 = vmatmul.f32.vlgmr.msra.gmra.mxu1 %v12104_v23  ;;  %2753 = vmatpush.msra.mxu2 %v12105_v10  ;;  %v12112_v23 = vld [vmem:[#allocation29_spill] sm:$0xff] }
 0x35f   :  { %2816 = vmatpush.msrb.mxu1 %v12106_v24  ;;  %2670 = vmatpush.msra.mxu0 %v12107_v33  ;;  %v12111_v24 = vld [vmem:[#allocation42_spill] sm:$0xff]  ;;  %v12114_v33 = vld [vmem:[#allocation127_spill] sm:$0xff] }
 0x360   :  { %6786 = vmatpush.msk.msra.mxu3 %vm12087_vm1, %v11741_v46  ;;  %2755 = vmatmul.f32.vlgmr.msra.gmra.mxu2 %v9615_v51  ;;  %vm12113_vm1 = vnez %v11883_v63 }
 0x361   :  { %2821 = vmatpush.msrb.mxu1 %v12108_v31  ;;  %2898 = vmatpush.msrb.mxu2 %v12109_v32  ;;  %v12115_v31 = vld [vmem:[#allocation47_spill] sm:$0xff]  ;;  %v12116_v32 = vld [vmem:[#allocation32_spill] sm:$0xff] }
 0x362   :  { %2672 = vmatpush.msra.mxu0 %v12110_v58  ;;  %6787 = vmatpush.msk.msra.mxu3 %vm12090_vm14, %v11741_v46  ;;  %v12118_v58 = vld [vmem:[#allocation129_spill] sm:$0xff]  ;;  %vm12121_vm14 = vnez %v11891_v5  ;;  %v12160_v5 = vld [vmem:[#allocation94_spill] sm:$0xff] }
 0x363   :  { %2776 = vmatmul.f32.vlgmr.msra.gmra.mxu3 %v9615_v51  ;;  %2826 = vmatpush.msrb.mxu1 %v12111_v24  ;;  %v12119_v51 = vld [vmem:[#allocation50_spill] sm:$0xff]  ;;  %v12120_v24 = vld [vmem:[#allocation37_spill] sm:$0xff] }
 0x364   :  { %2900 = vmatpush.msrb.mxu2 %v12112_v23  ;;  %6804 = vmatpush.msk.msrb.mxu3 %vm12113_vm1, %v11741_v46  ;;  %v12122_v23 = vld [vmem:[#allocation52_spill] sm:$0xff] }
 0x365   :  { %2674 = vmatpush.msra.mxu0 %v12114_v33  ;;  %2831 = vmatpush.msrb.mxu1 %v12115_v31  ;;  %v12123_v31 = vld [vmem:[#allocation41_spill] sm:$0xff] }
 0x366   :  { %2902 = vmatpush.msrb.mxu2 %v12116_v32  ;;  %6805 = vmatpush.msk.msrb.mxu3 %vm12117_vm0, %v11741_v46  ;;  %v12126_v32 = vld [vmem:[#allocation43_spill] sm:$0xff] }
 0x367   :  { %2676 = vmatpush.msra.mxu0 %v12118_v58  ;;  %2836 = vmatpush.msrb.mxu1 %v12119_v51  ;;  %v12128_v51 = vld [vmem:[#allocation62_spill] sm:$0xff] }
 0x368   :  { %2679 = vmatmul.f32.vlgmr.msra.gmra.mxu0 %v9635_v13  ;;  %2904 = vmatpush.msrb.mxu2 %v12120_v24  ;;  %v12125_v13 = vld [vmem:[#allocation59_spill] sm:$0xff]  ;;  %v12129_v24 = vld [vmem:[#allocation49_spill] sm:$0xff] }
 0x369   :  { %6788 = vmatpush.msk.msrb.mxu0 %vm12113_vm1, %v11741_v46  ;;  %6806 = vmatpush.msk.msrb.mxu3 %vm12121_vm14, %v11741_v46 }
 0x36a   :  { %2841 = vmatpush.msrb.mxu1 %v12122_v23  ;;  %2906 = vmatpush.msrb.mxu2 %v12123_v31  ;;  %v12131_v23 = vld [vmem:[#allocation67_spill] sm:$0xff] }
 0x36b   :  { %6789 = vmatpush.msk.msrb.mxu0 %vm12117_vm0, %v11741_v46  ;;  %6807 = vmatpush.msk.msrb.mxu3 %vm12124_vm6, %v11741_v46  ;;  %v12132_v31 = vld [vmem:[#allocation51_spill] sm:$0xff] }
 0x36c   :  { %2846 = vmatpush.msrb.mxu1 %v12125_v13  ;;  %2908 = vmatpush.msrb.mxu2 %v12126_v32  ;;  %v12134_v13 = vld [vmem:[#allocation70_spill] sm:$0xff]  ;;  %v12135_v32 = vld [vmem:[#allocation57_spill] sm:$0xff] }
 0x36d   :  { %6790 = vmatpush.msk.msrb.mxu0 %vm12121_vm14, %v11741_v46  ;;  %6808 = vmatpush.msk.msrb.mxu3 %vm12127_vm10, %v11741_v46 }
 0x36e   :  { %2851 = vmatpush.msrb.mxu1 %v12128_v51  ;;  %2910 = vmatpush.msrb.mxu2 %v12129_v24  ;;  %v12137_v51 = vld [vmem:[#allocation74_spill] sm:$0xff] }
 0x36f   :  { %6791 = vmatpush.msk.msrb.mxu0 %vm12124_vm6, %v11741_v46  ;;  %6809 = vmatpush.msk.msrb.mxu3 %vm12130_vm12, %v11741_v46  ;;  %v12138_v24 = vld [vmem:[#allocation58_spill] sm:$0xff] }
 0x370   :  { %2856 = vmatpush.msrb.mxu1 %v12131_v23  ;;  %2912 = vmatpush.msrb.mxu2 %v12132_v31  ;;  %v12140_v23 = vld [vmem:[#allocation77_spill] sm:$0xff]  ;;  %v12141_v31 = vld [vmem:[#allocation64_spill] sm:$0xff] }
 0x371   :  { %6792 = vmatpush.msk.msrb.mxu0 %vm12127_vm10, %v11741_v46  ;;  %6810 = vmatpush.msk.msrb.mxu3 %vm12133_vm4, %v11741_v46 }
 0x372   :  { %2861 = vmatpush.msrb.mxu1 %v12134_v13  ;;  %2914 = vmatpush.msrb.mxu2 %v12135_v32  ;;  %v12142_v13 = vld [vmem:[#allocation56_spill] sm:$0xff]  ;;  %v12144_v32 = vld [vmem:[#allocation85_spill] sm:$0xff] }
 0x373   :  { %6793 = vmatpush.msk.msrb.mxu0 %vm12130_vm12, %v11741_v46  ;;  %6811 = vmatpush.msk.msrb.mxu3 %vm12136_vm9, %v11741_v46  ;;  %vm12143_vm11 = vnez %v12142_v13 }
 0x374   :  { %2866 = vmatpush.msrb.mxu1 %v12137_v51  ;;  %2916 = vmatpush.msrb.mxu2 %v12138_v24  ;;  %v12145_v51 = vld [vmem:[#allocation69_spill] sm:$0xff]  ;;  %v12146_v24 = vld [vmem:[#allocation22_spill] sm:$0xff] }
 0x375   :  { %6794 = vmatpush.msk.msrb.mxu0 %vm12133_vm4, %v11741_v46  ;;  %6812 = vmatpush.msk.msrb.mxu3 %vm12139_vm3, %v11741_v46  ;;  %v9908_v58 = vand.u32 4294901760, %v12146_v24 }
 0x376   :  { %2871 = vmatpush.msrb.mxu1 %v12140_v23  ;;  %2918 = vmatpush.msrb.mxu2 %v12141_v31  ;;  %v12148_v23 = vld [vmem:[#allocation86_spill] sm:$0xff]  ;;  %v12149_v31 = vld [vmem:[#allocation76_spill] sm:$0xff] }
 0x377   :  { %6795 = vmatpush.msk.msrb.mxu0 %vm12136_vm9, %v11741_v46  ;;  %6813 = vmatpush.msk.msrb.mxu3 %vm12143_vm11, %v11741_v46  ;;  %vm12150_vm9 = vnez %v11930_v39  ;;  %v2804_v33 = vsub.f32 %v12146_v24, %v9908_v58  ;;  %v12157_v24 = vld [vmem:[#allocation84_spill] sm:$0xff] }
 0x378   :  { %2876 = vmatpush.msrb.mxu1 %v12144_v32  ;;  %2920 = vmatpush.msrb.mxu2 %v12145_v51  ;;  %v12151_v32 = vld [vmem:[#allocation88_spill] sm:$0xff]  ;;  %v12152_v51 = vld [vmem:[#allocation78_spill] sm:$0xff] }
 0x379   :  { %6796 = vmatpush.msk.msrb.mxu0 %vm12139_vm3, %v11741_v46  ;;  %6814 = vmatpush.msk.msrb.mxu3 %vm12147_vm2, %v11741_v46  ;;  %vm12153_vm3 = vnez %v11934_v1  ;;  %v12191_v1 = vld [vmem:[#allocation63_spill] sm:$0xff] }
 0x37a   :  { %2881 = vmatpush.msrb.mxu1 %v12148_v23  ;;  %2922 = vmatpush.msrb.mxu2 %v12149_v31  ;;  %v12154_v23 = vld [vmem:[#allocation89_spill] sm:$0xff]  ;;  %v12155_v31 = vld [vmem:[#allocation80_spill] sm:$0xff] }
 0x37b   :  { %6797 = vmatpush.msk.msrb.mxu0 %vm12143_vm11, %v11741_v46  ;;  %6815 = vmatpush.msk.msrb.mxu3 %vm12150_vm9, %v11741_v46  ;;  %vm12156_vm11 = vnez %v11938_v61 }
 0x37c   :  { %2886 = vmatpush.msrb.mxu1 %v12151_v32  ;;  %2924 = vmatpush.msrb.mxu2 %v12152_v51  ;;  %v2805_v32 = vand.u32 4294901760, %v2804_v33  ;;  %v12163_v51 = vld [vmem:[#allocation96_spill] sm:$0xff] }
 0x37d   :  { %6798 = vmatpush.msk.msrb.mxu0 %vm12147_vm2, %v11741_v46  ;;  %6816 = vmatpush.msk.msrb.mxu3 %vm12153_vm3, %v11741_v46 }
 0x37e   :  { %2891 = vmatpush.msrb.mxu1 %v12154_v23  ;;  %2926 = vmatpush.msrb.mxu2 %v12155_v31  ;;  %v2806_v63 = vsub.f32 %v2804_v33, %v2805_v32  ;;  %v12164_v23 = vld [vmem:[#allocation31_spill] sm:$0xff] }
 0x37f   :  { %6799 = vmatpush.msk.msrb.mxu0 %vm12150_vm9, %v11741_v46  ;;  %6817 = vmatpush.msk.msrb.mxu3 %vm12156_vm11, %v11741_v46  ;;  %vm12158_vm9 = vnez %v11941_v3  ;;  %v12167_v31 = vld [vmem:[#allocation35_spill] sm:$0xff]  ;;  %v1464_v3 = vpop.f32.mrf.mxu3 }
 0x380   :  { %2893 = vmatmul.f32.vlgmr.msrb.gmra.mxu1 %v9908_v58  ;;  %2928 = vmatpush.msrb.mxu2 %v12157_v24  ;;  %v12171_v24 = vld [vmem:[#allocation40_spill] sm:$0xff] }
 0x381   :  { %6820 = vmatpush.msk.msra.mxu1 %vm12113_vm1, %v11741_v46  ;;  %6800 = vmatpush.msk.msrb.mxu0 %vm12153_vm3, %v11741_v46  ;;  %vm12170_vm1 = vnez %v11787_v30  ;;  %v12209_v30 = vld [vmem:[#allocation126_spill] sm:$0xff] }
 0x382   :  { %6818 = vmatpush.msk.msrb.mxu3 %vm12158_vm9, %v11741_v46  ;;  %2931 = vmatmul.f32.vlgmr.msrb.gmra.mxu2 %v2804_v33  ;;  %v2807_v33 = vand.u32 4294901760, %v2806_v63 }
 0x383   :  { %6821 = vmatpush.msk.msra.mxu1 %vm12117_vm0, %v11741_v46  ;;  %6836 = vmatpush.msk.msra.mxu2 %vm11857_vm15, %v11741_v46  ;;  %vm12169_vm0 = vnez %v11914_v49  ;;  %v12176_v49 = vld [vmem:[#allocation44_spill] sm:$0xff] }
 0x384   :  { %6801 = vmatpush.msk.msrb.mxu0 %vm12156_vm11, %v11741_v46  ;;  %6819 = vmatpush.msk.msrb.mxu3 %vm11944_vm8, %v11741_v46 }
 0x385   :  { %2954 = vmatmul.f32.vlgmr.msrb.gmra.mxu3 %v2805_v32  ;;  %6822 = vmatpush.msk.msra.mxu1 %vm12121_vm14, %v11741_v46  ;;  %vm12161_vm14 = vnez %v11773_v54  ;;  %v12175_v32 = vld [vmem:[#allocation25_spill] sm:$0xff]  ;;  %v12205_v54 = vld [vmem:[#allocation116_spill] sm:$0xff] }
 0x386   :  { %6837 = vmatpush.msk.msra.mxu2 %vm8250_vm7, %v11741_v46  ;;  %3061 = vmatpush.msra.mxu3 %v12159_v44  ;;  %v10024_v63 = vand.u32 4294901760, %v12175_v32  ;;  %v12177_v44 = vld [vmem:[#allocation103_spill] sm:$0xff] }
 0x387   :  { %6802 = vmatpush.msk.msrb.mxu0 %vm12158_vm9, %v11741_v46  ;;  %6823 = vmatpush.msk.msra.mxu1 %vm12124_vm6, %v11741_v46  ;;  %vm12173_vm6 = vnez %v11918_v4  ;;  %v12180_v4 = vld [vmem:[#allocation106_spill] sm:$0xff] }
 0x388   :  { %6838 = vmatpush.msk.msra.mxu2 %vm8290_vm5, %v11741_v46  ;;  %3066 = vmatpush.msra.mxu3 %v12160_v5  ;;  %v12182_v5 = vld [vmem:[#allocation53_spill] sm:$0xff] }
 0x389   :  { %6803 = vmatpush.msk.msrb.mxu0 %vm11944_vm8, %v11741_v46  ;;  %6824 = vmatpush.msk.msra.mxu1 %vm12127_vm10, %v11741_v46  ;;  %vm12166_vm10 = vnez %v11780_v19  ;;  %v12208_v19 = vld [vmem:[#allocation109_spill] sm:$0xff] }
 0x38a   :  { %2808 = vmatmul.f32.vlgmr.msrb.gmra.mxu0 %v2807_v33  ;;  %6839 = vmatpush.msk.msra.mxu2 %vm12161_vm14, %v11741_v46  ;;  %v12183_v33 = vld [vmem:[#allocation108_spill] sm:$0xff] }
 0x38b   :  { %2960 = vmatpush.msra.mxu0 %v12162_v41  ;;  %3071 = vmatpush.msra.mxu3 %v12163_v51  ;;  %v12189_v41 = vld [vmem:[#allocation115_spill] sm:$0xff] }
 0x38c   :  { %6825 = vmatpush.msk.msra.mxu1 %vm12130_vm12, %v11741_v46  ;;  %6840 = vmatpush.msk.msra.mxu2 %vm8344_vm13, %v11741_v46  ;;  %vm12178_vm12 = vnez %v12142_v13  ;;  %v10044_v13 = vsub.f32 %v12175_v32, %v10024_v63 }
 0x38d   :  { %2963 = vmatpush.msra.mxu0 %v12164_v23  ;;  %3076 = vmatpush.msra.mxu3 %v12165_v20 }
 0x38e   :  { %6826 = vmatpush.msk.msra.mxu1 %vm12133_vm4, %v11741_v46  ;;  %6841 = vmatpush.msk.msra.mxu2 %vm12166_vm10, %v11741_v46  ;;  %vm12174_vm4 = vnez %v11795_v14  ;;  %v12204_v14 = vld [vmem:[#allocation102_spill] sm:$0xff] }
 0x38f   :  { %2966 = vmatpush.msra.mxu0 %v12167_v31  ;;  %3081 = vmatpush.msra.mxu3 %v12168_v8 }
 0x390   :  { %6827 = vmatpush.msk.msra.mxu1 %vm12169_vm0, %v11741_v46  ;;  %6842 = vmatpush.msk.msra.mxu2 %vm12170_vm1, %v11741_v46  ;;  %vm12179_vm0 = vnez %v11798_v50 }
 0x391   :  { %2969 = vmatpush.msra.mxu0 %v12171_v24  ;;  %3086 = vmatpush.msra.mxu3 %v12172_v37 }
 0x392   :  { %6828 = vmatpush.msk.msra.mxu1 %vm12173_vm6, %v11741_v46  ;;  %6843 = vmatpush.msk.msra.mxu2 %vm12174_vm4, %v11741_v46  ;;  %vm12181_vm6 = vnez %v11810_v2 }
 0x393   :  { %2972 = vmatpush.msra.mxu0 %v12176_v49  ;;  %3091 = vmatpush.msra.mxu3 %v12177_v44 }
 0x394   :  { %6829 = vmatpush.msk.msra.mxu1 %vm12178_vm12, %v11741_v46  ;;  %6844 = vmatpush.msk.msra.mxu2 %vm12179_vm0, %v11741_v46  ;;  %vm12184_vm12 = vnez %v11930_v39  ;;  %vm12185_vm0 = vnez %v11816_v26  ;;  %v12188_v39 = vld [vmem:[#allocation60_spill] sm:$0xff]  ;;  %v12218_v26 = vld [vmem:[#allocation117_spill] sm:$0xff] }
 0x395   :  { %2975 = vmatpush.msra.mxu0 %v12072_v16  ;;  %3096 = vmatpush.msra.mxu3 %v12180_v4  ;;  %v3050_v16 = vand.u32 4294901760, %v10044_v13 }
 0x396   :  { %6830 = vmatpush.msk.msra.mxu1 %vm12147_vm2, %v11741_v46  ;;  %6845 = vmatpush.msk.msra.mxu2 %vm12181_vm6, %v11741_v46  ;;  %vm12187_vm2 = vnez %v11821_v42  ;;  %v12219_v42 = vld [vmem:[#allocation24_spill] sm:$0xff] }
 0x397   :  { %2978 = vmatpush.msra.mxu0 %v12182_v5  ;;  %3101 = vmatpush.msra.mxu3 %v12183_v33  ;;  %v3051_v61 = vsub.f32 %v10044_v13, %v3050_v16 }
 0x398   :  { %6831 = vmatpush.msk.msra.mxu1 %vm12184_vm12, %v11741_v46  ;;  %6846 = vmatpush.msk.msra.mxu2 %vm12185_vm0, %v11741_v46  ;;  %vm12190_vm12 = vnez %v11830_v28  ;;  %v12220_v28 = vmul.u32 16, %v12219_v42 }
 0x399   :  { %2981 = vmatpush.msra.mxu0 %v11971_v15  ;;  %3106 = vmatpush.msra.mxu3 %v12186_v21  ;;  %v12192_v15 = vld [vmem:[#allocation122_spill] sm:$0xff] }
 0x39a   :  { %6832 = vmatpush.msk.msra.mxu1 %vm12153_vm3, %v11741_v46  ;;  %6847 = vmatpush.msk.msra.mxu2 %vm12187_vm2, %v11741_v46  ;;  %vm12193_vm3 = vnez %v11834_v59  ;;  %v12221_v59 = vld [vmem:[#allocation118_spill] sm:$0xff] }
 0x39b   :  { %2984 = vmatpush.msra.mxu0 %v12188_v39  ;;  %3111 = vmatpush.msra.mxu3 %v12189_v41 }
 0x39c   :  { %6833 = vmatpush.msk.msra.mxu1 %vm12156_vm11, %v11741_v46  ;;  %6848 = vmatpush.msk.msra.mxu2 %vm12190_vm12, %v11741_v46  ;;  %vm12194_vm11 = vnez %v11852_v55  ;;  %v12226_v55 = vld [vmem:[#allocation127_spill] sm:$0xff] }
 0x39d   :  { %2987 = vmatpush.msra.mxu0 %v12191_v1  ;;  %3116 = vmatpush.msra.mxu3 %v12192_v15 }
 0x39e   :  { %6834 = vmatpush.msk.msra.mxu1 %vm12158_vm9, %v11741_v46  ;;  %6849 = vmatpush.msk.msra.mxu2 %vm12193_vm3, %v11741_v46  ;;  %vm12195_vm9 = vnez %v11855_v56  ;;  %v1318_v56 = vpop.f32.mrf.mxu0 }
 0x39f   :  { %2990 = vmatpush.msra.mxu0 %v11979_v17  ;;  %3121 = vmatpush.msra.mxu3 %v12086_v52  ;;  %v3052_v17 = vand.u32 4294901760, %v3051_v61  ;;  %v12213_v52 = vld [vmem:[#allocation66_spill] sm:$0xff] }
 0x3a0   :  { %6835 = vmatpush.msk.msra.mxu1 %vm11944_vm8, %v11741_v46  ;;  %6850 = vmatpush.msk.msra.mxu2 %vm12194_vm11, %v11741_v46 }
 0x3a1   :  { %2993 = vmatpush.msra.mxu0 %v12088_v25  ;;  %3126 = vmatpush.msra.mxu3 %v12089_v11 }
 0x3a2   :  { %3028 = vmatmul.f32.vlgmr.msra.gmra.mxu1 %v9908_v58  ;;  %6851 = vmatpush.msk.msra.mxu2 %vm12195_vm9, %v11741_v46 }
 0x3a3   :  { %6852 = vmatpush.msk.msrb.mxu1 %vm11857_vm15, %v11741_v46  ;;  %2996 = vmatpush.msra.mxu0 %v11983_v45  ;;  %v12223_v45 = vld [vmem:[#allocation125_spill] sm:$0xff] }
 0x3a4   :  { %3131 = vmatpush.msra.mxu3 %v8853_v38  ;;  %3053 = vmatmul.f32.vlgmr.msra.gmra.mxu2 %v3052_v17  ;;  %v12197_v38 = vld [vmem:[#allocation104_spill] sm:$0xff] }
 0x3a5   :  { %6853 = vmatpush.msk.msrb.mxu1 %vm8250_vm7, %v11741_v46  ;;  %3205 = vmatpush.msrb.mxu2 %v11984_v12 }
 0x3a6   :  { %2999 = vmatpush.msra.mxu0 %v11985_v57  ;;  %3136 = vmatpush.msra.mxu3 %v8863_v47  ;;  %v12222_v57 = vmul.u32 16, %v12221_v59  ;;  %v1517_v11 = vpop.f32.mrf.mxu0 }
 0x3a7   :  { %3138 = vmatmul.f32.vlgmr.msra.gmra.mxu3 %v10024_v63  ;;  %6854 = vmatpush.msk.msrb.mxu1 %vm8290_vm5, %v11741_v46 }
 0x3a8   :  { %3208 = vmatpush.msrb.mxu2 %v8304_v60  ;;  %6868 = vmatpush.msk.msrb.mxu3 %vm11857_vm15, %v11741_v46  ;;  %v12203_v60 = vld [vmem:[#allocation113_spill] sm:$0xff] }
 0x3a9   :  { %3002 = vmatpush.msra.mxu0 %v11986_v7  ;;  %6855 = vmatpush.msk.msrb.mxu1 %vm12161_vm14, %v11741_v46 }
 0x3aa   :  { %3211 = vmatpush.msrb.mxu2 %v8342_v35  ;;  %6869 = vmatpush.msk.msrb.mxu3 %vm8250_vm7, %v11741_v46  ;;  %v12206_v35 = vld [vmem:[#allocation105_spill] sm:$0xff] }
 0x3ab   :  { %3005 = vmatpush.msra.mxu0 %v11987_v48  ;;  %6856 = vmatpush.msk.msrb.mxu1 %vm8344_vm13, %v11741_v46  ;;  %v1563_v48 = vpop.f32.mrf.mxu2 }
 0x3ac   :  { %3007 = vmatmul.f32.vlgmr.msra.gmra.mxu0 %v9908_v58  ;;  %3214 = vmatpush.msrb.mxu2 %v8391_v29  ;;  %v12210_v29 = vld [vmem:[#allocation112_spill] sm:$0xff]  ;;  %v12216_v58 = vld [vmem:[#allocation119_spill] sm:$0xff] }
 0x3ad   :  { %3143 = vmatpush.msrb.mxu0 %v8261_v53  ;;  %6870 = vmatpush.msk.msrb.mxu3 %vm8290_vm5, %v11741_v46  ;;  %vm12196_vm5 = vnez %v11798_v50  ;;  %v12202_v53 = vld [vmem:[#allocation101_spill] sm:$0xff]  ;;  %v12215_v50 = vld [vmem:[#allocation23_spill] sm:$0xff]  ;;  %v12217_v2 = vmul.u32 16, %v12216_v58 }
 0x3ae   :  { %6857 = vmatpush.msk.msrb.mxu1 %vm12166_vm10, %v11741_v46  ;;  %3217 = vmatpush.msrb.mxu2 %v8401_v6  ;;  %v12211_v6 = vld [vmem:[#allocation128_spill] sm:$0xff]  ;;  %vm233_vm15 = vcmp.ge.s32.totalorder %v12215_v50, %v12220_v28  ;;  %vm241_vm8 = vcmp.lt.s32.totalorder %v12215_v50, %v12222_v57  ;;  %v1686_v25 = vpop.f32.mrf.mxu0 }
 0x3af   :  { %3145 = vmatpush.msrb.mxu0 %v11863_v40  ;;  %6871 = vmatpush.msk.msrb.mxu3 %vm12161_vm14, %v11741_v46  ;;  %v12229_v40 = vld [vmem:[#allocation129_spill] sm:$0xff] }
 0x3b0   :  { %6858 = vmatpush.msk.msrb.mxu1 %vm12170_vm1, %v11741_v46  ;;  %3220 = vmatpush.msrb.mxu2 %v8436_v43  ;;  %v12212_v43 = vld [vmem:[#allocation114_spill] sm:$0xff] }
 0x3b1   :  { %3147 = vmatpush.msrb.mxu0 %v11864_v9  ;;  %6872 = vmatpush.msk.msrb.mxu3 %vm8344_vm13, %v11741_v46  ;;  %vm243_vm13 = vcmp.lt.s32.totalorder %v12215_v50, %v12217_v2  ;;  %v1403_v9 = vpop.f32.mrf.mxu1 }
 0x3b2   :  { %6859 = vmatpush.msk.msrb.mxu1 %vm12174_vm4, %v11741_v46  ;;  %3223 = vmatpush.msrb.mxu2 %v8480_v18  ;;  %v12214_v18 = vmul.u32 16, %v12213_v52  ;;  %v1404_v17 = vadd.f32 %v1403_v9, %v1318_v56 }
 0x3b3   :  { %3149 = vmatpush.msrb.mxu0 %v8371_v22  ;;  %6873 = vmatpush.msk.msrb.mxu3 %vm12166_vm10, %v11741_v46  ;;  %v12199_v22 = vld [vmem:[#allocation107_spill] sm:$0xff]  ;;  %vm10254_vm10 = vmand %vm233_vm15, %vm241_vm8  ;;  %v10271_v23 = vpop.f32.mrf.mxu2 }
 0x3b4   :  { %6860 = vmatpush.msk.msrb.mxu1 %vm12196_vm5, %v11741_v46  ;;  %3226 = vmatpush.msrb.mxu2 %v12197_v38  ;;  %vm235_vm7 = vcmp.ge.s32.totalorder %v12215_v50, %v12214_v18 }
 0x3b5   :  { %3151 = vmatpush.msrb.mxu0 %v12198_v34  ;;  %6874 = vmatpush.msk.msrb.mxu3 %vm12170_vm1, %v11741_v46  ;;  %vm10245_vm14 = vmand %vm235_vm7, %vm243_vm13  ;;  %vm3339_vm1 = vcmask 123904  }
 0x3b6   :  { %6861 = vmatpush.msk.msrb.mxu1 %vm12181_vm6, %v11741_v46  ;;  %3229 = vmatpush.msrb.mxu2 %v12199_v22  ;;  %v1815_v20 = vpop.f32.mrf.mxu0 }
 0x3b7   :  { %3153 = vmatpush.msrb.mxu0 %v12200_v62  ;;  %6875 = vmatpush.msk.msrb.mxu3 %vm12174_vm4, %v11741_v46  ;;  %vm12230_vm4 = vcmask 1041408  }
 0x3b8   :  { %6862 = vmatpush.msk.msrb.mxu1 %vm12185_vm0, %v11741_v46  ;;  %3232 = vmatpush.msrb.mxu2 %v12201_v27  ;;  %v1442_v27 = vadd.f32 %v1441_v36, %v1404_v17 }
 0x3b9   :  { %3155 = vmatpush.msrb.mxu0 %v12202_v53  ;;  %6876 = vmatpush.msk.msrb.mxu3 %vm12196_vm5, %v11741_v46  ;;  %v1538_v7 = vpop.f32.mrf.mxu1 }
 0x3ba   :  { %6863 = vmatpush.msk.msrb.mxu1 %vm12187_vm2, %v11741_v46  ;;  %3235 = vmatpush.msrb.mxu2 %v12203_v60 }
 0x3bb   :  { %3157 = vmatpush.msrb.mxu0 %v12204_v14  ;;  %6877 = vmatpush.msk.msrb.mxu3 %vm12181_vm6, %v11741_v46  ;;  %v1938_v24 = vpop.f32.mrf.mxu2 }
 0x3bc   :  { %6864 = vmatpush.msk.msrb.mxu1 %vm12190_vm12, %v11741_v46  ;;  %3238 = vmatpush.msrb.mxu2 %v12205_v54 }
 0x3bd   :  { %3159 = vmatpush.msrb.mxu0 %v12206_v35  ;;  %6878 = vmatpush.msk.msrb.mxu3 %vm12185_vm0, %v11741_v46  ;;  %v1465_v35 = vadd.f32 %v1464_v3, %v1442_v27  ;;  %vm12231_vm0 = vmmov %vm12230_vm4 }
 0x3be   :  { %6865 = vmatpush.msk.msrb.mxu1 %vm12193_vm3, %v11741_v46  ;;  %3241 = vmatpush.msrb.mxu2 %v12207_v0  ;;  %v2014_v37 = vpop.f32.mrf.mxu0  ;;  %vm12232_vm6 = vmmov %vm12231_vm0 }
 0x3bf   :  { %3161 = vmatpush.msrb.mxu0 %v12208_v19  ;;  %6879 = vmatpush.msk.msrb.mxu3 %vm12187_vm2, %v11741_v46  ;;  %vm12233_vm2 = vmmov %vm12231_vm0 }
 0x3c0   :  { %6866 = vmatpush.msk.msrb.mxu1 %vm12194_vm11, %v11741_v46  ;;  %3244 = vmatpush.msrb.mxu2 %v12209_v30 }
 0x3c1   :  { %3163 = vmatpush.msrb.mxu0 %v12210_v29  ;;  %6880 = vmatpush.msk.msrb.mxu3 %vm12190_vm12, %v11741_v46  ;;  %v10269_v51 = vpop.f32.mrf.mxu1  ;;  %v1518_v29 = vadd.f32 %v1517_v11, %v1465_v35  ;;  %vm12234_vm12 = vmmov %vm12231_vm0 }
 0x3c2   :  { %6867 = vmatpush.msk.msrb.mxu1 %vm12195_vm9, %v11741_v46  ;;  %3247 = vmatpush.msrb.mxu2 %v12211_v6 }
 0x3c3   :  { %3165 = vmatpush.msrb.mxu0 %v12212_v43  ;;  %6881 = vmatpush.msk.msrb.mxu3 %vm12193_vm3, %v11741_v46  ;;  %v2060_v49 = vpop.f32.mrf.mxu2  ;;  %v1539_v2 = vadd.f32 %v1538_v7, %v1518_v29  ;;  %v3304_v29 = vstv %s10297_s7  ;;  %vm12235_vm3 = vmmov %vm12231_vm0  ;;  %s10501_s7 = sld [smem:[#allocation8 + $0x62]] }
 0x3c4   :  { %3199 = vmatmul.f32.vlgmr.msrb.gmra.mxu1 %v3050_v16  ;;  %3250 = vmatpush.msrb.mxu2 %v12105_v10  ;;  %v1648_v10 = vpop.f32.mrf.mxu3 }
 0x3c5   :  { %3167 = vmatpush.msrb.mxu0 %v12218_v26  ;;  %6882 = vmatpush.msk.msrb.mxu3 %vm12194_vm11, %v11741_v46  ;;  %v1564_v57 = vadd.f32 %v1563_v48, %v1539_v2  ;;  %v3326_v2 = vstv %s10302_s9  ;;  %vm12236_vm11 = vmmov %vm12231_vm0  ;;  %s10514_s9 = sld [smem:[#allocation8 + $0x6e]] }
 0x3c6   :  { %3252 = vmatmul.f32.vlgmr.msrb.gmra.mxu2 %v10024_v63  ;;  %v2183_v44 = vpop.f32.mrf.mxu0 }
 0x3c7   :  { %3169 = vmatpush.msrb.mxu0 %v12223_v45  ;;  %6883 = vmatpush.msk.msrb.mxu3 %vm12195_vm9, %v11741_v46  ;;  %v1649_v36 = vadd.f32 %v1648_v10, %v1564_v57  ;;  %vm12237_vm9 = vmmov %vm12231_vm0 }
 0x3c8   :  { %3273 = vmatmul.f32.vlgmr.msrb.gmra.mxu3 %v10024_v63 }
 0x3c9   :  { %3171 = vmatpush.msrb.mxu0 %v12226_v55  ;;  %6962 = vmatpush.msk.msra.mxu3 %vm10245_vm14, %v11741_v46  ;;  %v1900_v8 = vpop.f32.mrf.mxu1 }
 0x3ca   :  { %v1901_v61 = vadd.f32 %v1900_v8, %v1815_v20  ;;  %v1687_v8 = vadd.f32 %v1686_v25, %v1649_v36  ;;  %v3323_v36 = vstv %s10313_s11  ;;  %s10530_s11 = sld [smem:[#allocation8 + $0x71]] }
 0x3cb   :  { %3173 = vmatpush.msrb.mxu0 %v12229_v40  ;;  %6963 = vmatpush.msk.msra.mxu3 %vm10254_vm10, %v11741_v46  ;;  %v2259_v5 = vpop.f32.mrf.mxu2 }
 0x3cc   :  { %3176 = vmatmul.f32.vlgmr.msrb.gmra.mxu0 %v10044_v13  ;;  %v10273_v31 = vpop.f32.mrf.mxu3  ;;  %v1939_v62 = vadd.f32 %v1938_v24, %v1901_v61 }
 0x3cd   :  { %6960 = vmatpush.msk.msra.mxu0 %vm10245_vm14, %v11741_v46 }
 0x3ce   :  { %v2312_v33 = vpop.f32.mrf.mxu0 }
 0x3cf   :  { %6961 = vmatpush.msk.msra.mxu0 %vm10254_vm10, %v11741_v46 }
 0x3d1   :  { %v2035_v63 = vpop.f32.mrf.mxu1 }
 0x3d3   :  { %v2435_v39 = vpop.f32.mrf.mxu2 }
 0x3d4   :  { %v1961_v32 = vpop.f32.mrf.mxu3 }
 0x3d5   :  { %v1962_v54 = vadd.f32 %v1961_v32, %v1939_v62  ;;  %v1710_v32 = vadd.f32 %v10269_v51, %v1687_v8 }
 0x3d6   :  { %v2511_v41 = vpop.f32.mrf.mxu0 }
 0x3d7   :  { %v2015_v19 = vadd.f32 %v2014_v37, %v1962_v54 }
 0x3d9   :  { %v2206_v13 = vpop.f32.mrf.mxu1  ;;  %v2036_v50 = vadd.f32 %v2035_v63, %v2015_v19  ;;  %v3315_v19 = vstv %s10295_s6  ;;  %s10495_s6 = sld [smem:[#allocation8 + $0x61]] }
 0x3db   :  { %v2557_v38 = vpop.f32.mrf.mxu2  ;;  %v2061_v28 = vadd.f32 %v2060_v49, %v2036_v50 }
 0x3dc   :  { %v2145_v4 = vpop.f32.mrf.mxu3 }
 0x3dd   :  { %v2146_v56 = vadd.f32 %v2145_v4, %v2061_v28 }
 0x3df   :  { %v2184_v3 = vadd.f32 %v2183_v44, %v2146_v56  ;;  %v1763_v44 = vadd.f32 %v10271_v23, %v1710_v32 }
 0x3e1   :  { %v2397_v16 = vpop.f32.mrf.mxu1  ;;  %v2207_v37 = vadd.f32 %v2206_v13, %v2184_v3 }
 0x3e2   :  { %v2398_v34 = vadd.f32 %v2397_v16, %v2312_v33  ;;  %v1784_v33 = vadd.f32 %v10273_v31, %v1763_v44  ;;  %v3281_v16 = vstv %s10283_s28  ;;  %s10480_s28 = sld [smem:[#allocation8 + $0x60]] }
 0x3e3   :  { %v2756_v0 = vpop.f32.mrf.mxu2  ;;  %v2260_v63 = vadd.f32 %v2259_v5, %v2207_v37  ;;  %v3334_v37 = vstv %s10322_s13  ;;  %s10542_s13 = sld [smem:[#allocation8 + $0x72]] }
 0x3e4   :  { %v10275_v21 = vpop.f32.mrf.mxu3  ;;  %v2436_v14 = vadd.f32 %v2435_v39, %v2398_v34  ;;  %v3296_v39 = vstv %s10286_s29  ;;  %s10485_s29 = sld [smem:[#allocation8 + $0x64]] }
 0x3e5   :  { %v2680_v22 = vpop.f32.mrf.mxu0  ;;  %v2281_v13 = vadd.f32 %v10275_v21, %v2260_v63  ;;  %v3285_v21 = vstv %s10290_s4  ;;  %s10490_s4 = sld [smem:[#allocation8 + $0x6c]] }
 0x3e7   :  { %v3282_v31 = vmul.f32 %v3281_v16, %v2281_v13  ;;  %v3297_v34 = vmul.f32 %v3296_v39, %v2281_v13  ;;  %v3327_v3 = vmul.f32 %v3326_v2, %v2281_v13 }
 0x3e9   :  { %v2532_v15 = vpop.f32.mrf.mxu1 }
 0x3ec   :  { %v2458_v1 = vpop.f32.mrf.mxu3 }
 0x3ed   :  { %v2459_v30 = vadd.f32 %v2458_v1, %v2436_v14  ;;  %v3293_v1 = vstv %s10279_s2  ;;  %s10471_s2 = sld [smem:[#allocation8 + $0x5e]] }
 0x3ee   :  { %v3294_v27 = vmul.f32 %v3293_v1, %v1784_v33 }
 0x3ef   :  { %v2512_v43 = vadd.f32 %v2511_v41, %v2459_v30  ;;  %v3278_v41 = vstv %s10277_s1  ;;  %s10469_s1 = sld [smem:[#allocation8 + $0x5a]] }
 0x3f0   :  { %v3279_v62 = vmul.f32 %v3278_v41, %v1784_v33 }
 0x3f1   :  { %v2703_v60 = vpop.f32.mrf.mxu1  ;;  %v2533_v26 = vadd.f32 %v2532_v15, %v2512_v43 }
 0x3f2   :  { %v3283_v50 = vadd.f32 %v3282_v31, %v3279_v62 }
 0x3f3   :  { %v2558_v45 = vadd.f32 %v2557_v38, %v2533_v26  ;;  %v3300_v38 = vstv %s10288_s30  ;;  %s10488_s30 = sld [smem:[#allocation8 + $0x5f]] }
 0x3f4   :  { %v2642_v53 = vpop.f32.mrf.mxu3 }
 0x3f5   :  { %v2643_v11 = vadd.f32 %v2642_v53, %v2558_v45  ;;  %v3308_v53 = vstv %s10281_s27  ;;  %s10477_s27 = sld [smem:[#allocation8 + $0x5b]] }
 0x3f7   :  { %v2681_v7 = vadd.f32 %v2680_v22, %v2643_v11  ;;  %v3330_v11 = vstv %s10317_s12  ;;  %s10539_s12 = sld [smem:[#allocation8 + $0x74]] }
 0x3f9   :  { %v2704_v10 = vadd.f32 %v2703_v60, %v2681_v7  ;;  %v3311_v60 = vstv %s10292_s5  ;;  %s10493_s5 = sld [smem:[#allocation8 + $0x70]] }
 0x3fa   :  { %v3312_v43 = vmul.f32 %v3311_v60, %v2281_v13 }
 0x3fb   :  { %v2757_v51 = vadd.f32 %v2756_v0, %v2704_v10 }
 0x3fc   :  { %v2777_v52 = vpop.f32.mrf.mxu3 }
 0x3fd   :  { %v2894_v18 = vpop.f32.mrf.mxu1  ;;  %v2778_v15 = vadd.f32 %v2777_v52, %v2757_v51 }
 0x3ff   :  { %v3301_v35 = vmul.f32 %v3300_v38, %v2778_v15  ;;  %v3286_v0 = vmul.f32 %v3285_v21, %v2778_v15  ;;  %v3316_v26 = vmul.f32 %v3315_v19, %v2778_v15  ;;  %v3331_v32 = vmul.f32 %v3330_v11, %v2778_v15 }
 0x401   :  { %v3287_v57 = vadd.f32 %v3286_v0, %v3283_v50 }
 0x405   :  { %v2932_v42 = vpop.f32.mrf.mxu2 }
 0x407   :  { %v2809_v6 = vpop.f32.mrf.mxu0 }
 0x408   :  { %v2895_v58 = vadd.f32 %v2894_v18, %v2809_v6  ;;  %v2955_v55 = vpop.f32.mrf.mxu3  ;;  %v3289_v6 = vstv %s10299_s8  ;;  %v3298_v18 = vadd.f32 %v3297_v34, %v3294_v27  ;;  %s10506_s8 = sld [smem:[#allocation8 + $0x66]] }
 0x40a   :  { %v2933_v59 = vadd.f32 %v2932_v42, %v2895_v58  ;;  %v3309_v58 = vmul.f32 %v3308_v53, %v1784_v33  ;;  %v3319_v42 = vstv %s10307_s10  ;;  %v3302_v28 = vadd.f32 %v3301_v35, %v3298_v18  ;;  %s10527_s10 = sld [smem:[#allocation8 + $0x6d]] }
 0x40c   :  { %v2956_v9 = vadd.f32 %v2955_v55, %v2933_v59  ;;  %v3313_v56 = vadd.f32 %v3312_v43, %v3309_v58 }
 0x41f   :  { %v3029_v24 = vpop.f32.mrf.mxu1 }
 0x427   :  { %v3054_v25 = vpop.f32.mrf.mxu2 }
 0x429   :  { %v3008_v40 = vpop.f32.mrf.mxu0 }
 0x42a   :  { %v3009_v20 = vadd.f32 %v3008_v40, %v2956_v9  ;;  %v3139_v4 = vpop.f32.mrf.mxu3 }
 0x42c   :  { %v3030_v48 = vadd.f32 %v3029_v24, %v3009_v20  ;;  %v3317_v24 = vadd.f32 %v3316_v26, %v3313_v56 }
 0x42e   :  { %v3055_v49 = vadd.f32 %v3054_v25, %v3030_v48  ;;  %v3324_v48 = vmul.f32 %v3323_v36, %v1784_v33 }
 0x430   :  { %v3140_v5 = vadd.f32 %v3139_v4, %v3055_v49  ;;  %v3328_v49 = vadd.f32 %v3327_v3, %v3324_v48 }
 0x432   :  { %v3332_v4 = vadd.f32 %v3331_v32, %v3328_v49 }
 0x441   :  { %v3200_v17 = vpop.f32.mrf.mxu1 }
 0x449   :  { %v3177_v23 = vpop.f32.mrf.mxu0  ;;  %v3253_v14 = vpop.f32.mrf.mxu2 }
 0x44a   :  { %v3178_v61 = vadd.f32 %v3177_v23, %v3140_v5 }
 0x44b   :  { %v3274_v30 = vpop.f32.mrf.mxu3 }
 0x44c   :  { %v3201_v22 = vadd.f32 %v3200_v17, %v3178_v61 }
 0x44e   :  { %v3254_v54 = vadd.f32 %v3253_v14, %v3201_v22 }
 0x450   :  { %v3275_v52 = vadd.f32 %v3274_v30, %v3254_v54 }
 0x452   :  { %v3305_v59 = vmul.f32 %v3304_v29, %v3275_v52  ;;  %v3290_v45 = vmul.f32 %v3289_v6, %v3275_v52  ;;  %v3320_v9 = vmul.f32 %v3319_v42, %v3275_v52  ;;  %v3335_v44 = vmul.f32 %v3334_v37, %v3275_v52 }
 0x454   :  { %v10326_v55 = vadd.f32 %v3305_v59, %v3302_v28  ;;  %v10328_v40 = vadd.f32 %v3290_v45, %v3287_v57  ;;  %v10340_v25 = vadd.f32 %v3320_v9, %v3317_v24  ;;  %v10349_v33 = vadd.f32 %v3335_v44, %v3332_v4 }
 0x456   :  { %v3387_v20 = vsel %vm3339_vm1, %v10326_v55, 0.0  ;;  %v3340_v8 = vsel %vm3339_vm1, %v10328_v40, 0.0  ;;  %v3351_v7 = vmul.f32 %v10328_v40, %v10328_v40  ;;  %v3398_v63 = vmul.f32 %v10326_v55, %v10326_v55 }
 0x457   :  { %3388 = vadd.xlane.f32.xlu1 %v3387_v20  ;;  %3341 = vadd.xlane.f32.xlu0 %v3340_v8  ;;  %v3445_v51 = vmul.f32 %v10340_v25, %v10340_v25  ;;  %v3434_v13 = vsel %vm3339_vm1, %v10340_v25, 0.0  ;;  %v3492_v39 = vmul.f32 %v10349_v33, %v10349_v33  ;;  %v3481_v41 = vsel %vm3339_vm1, %v10349_v33, 0.0 }
 0x458   :  { %v3352_v10 = vsel %vm3339_vm1, %v3351_v7, 0.0  ;;  %v3399_v5 = vsel %vm3339_vm1, %v3398_v63, 0.0 }
 0x459   :  { %3353 = vadd.xlane.f32.xlu2 %v3352_v10  ;;  %v3446_v16 = vsel %vm3339_vm1, %v3445_v51, 0.0  ;;  %v3493_v23 = vsel %vm3339_vm1, %v3492_v39, 0.0 }
 0x45f   :  { %3435 = vadd.xlane.f32.xlu1 %v3434_v13  ;;  %3400 = vadd.xlane.f32.xlu0 %v3399_v5 }
 0x461   :  { %3447 = vadd.xlane.f32.xlu2 %v3446_v16 }
 0x467   :  { %3494 = vadd.xlane.f32.xlu1 %v3493_v23  ;;  %3482 = vadd.xlane.f32.xlu0 %v3481_v41 }
 0x4ca   :  { %v3389_v1 = vpop.xlane.xlu1 %3388  ;;  %v3342_v15 = vpop.xlane.xlu0 %3341 }
 0x4cb   :  { %v3390_v61 = vsel %vm12230_vm4, %v3389_v1, 0.0  ;;  %v3343_v17 = vsel %vm12231_vm0, %v3342_v15, 0.0 }
 0x4cc   :  { %v3391_v38 = vrot.slane %v3390_v61, 4  ;;  %v3344_v21 = vrot.slane %v3343_v17, 4  ;;  %v3354_v31 = vpop.xlane.xlu2 %3353 }
 0x4cd   :  { %v3355_v34 = vsel %vm12232_vm6, %v3354_v31, 0.0 }
 0x4ce   :  { %v3392_v22 = vadd.f32 %v3391_v38, %v3390_v61  ;;  %v3345_v62 = vadd.f32 %v3344_v21, %v3343_v17  ;;  %v3356_v27 = vrot.slane %v3355_v34, 4 }
 0x4d0   :  { %v3393_v53 = vrot.slane %v3392_v22, 2  ;;  %v3346_v60 = vrot.slane %v3345_v62, 2  ;;  %v3357_v14 = vadd.f32 %v3356_v27, %v3355_v34 }
 0x4d2   :  { %v3394_v54 = vadd.f32 %v3393_v53, %v3392_v22  ;;  %v3347_v35 = vadd.f32 %v3346_v60, %v3345_v62  ;;  %v3358_v0 = vrot.slane %v3357_v14, 2  ;;  %v3436_v19 = vpop.xlane.xlu1 %3435  ;;  %v3401_v30 = vpop.xlane.xlu0 %3400 }
 0x4d3   :  { %v3437_v29 = vsel %vm12233_vm2, %v3436_v19, 0.0  ;;  %v3402_v6 = vsel %vm12234_vm12, %v3401_v30, 0.0 }
 0x4d4   :  { %v3348_v43 = vrot.slane %v3347_v35, 1  ;;  %v3359_v52 = vadd.f32 %v3358_v0, %v3357_v14  ;;  %v3438_v18 = vrot.slane %v3437_v29, 4  ;;  %v3448_v50 = vpop.xlane.xlu2 %3447  ;;  %v3395_v58 = vrot.slane %v3394_v54, 1 }
 0x4d5   :  { %v3403_v2 = vrot.slane %v3402_v6, 4  ;;  %v3449_v26 = vsel %vm12235_vm3, %v3448_v50, 0.0 }
 0x4d6   :  { %v3349_v42 = vadd.f32 %v3348_v43, %v3347_v35  ;;  %v3360_v28 = vrot.slane %v3359_v52, 1  ;;  %v3439_v59 = vadd.f32 %v3438_v18, %v3437_v29  ;;  %v3450_v45 = vrot.slane %v3449_v26, 4 }
 0x4d7   :  { %v3404_v57 = vadd.f32 %v3403_v2, %v3402_v6  ;;  %v3396_v3 = vadd.f32 %v3395_v58, %v3394_v54 }
 0x4d8   :  { %v10363_v56 = vmul.f32 0.03125, %v3349_v42  ;;  %v3361_v9 = vadd.f32 %v3360_v28, %v3359_v52  ;;  %v3440_v36 = vrot.slane %v3439_v59, 2  ;;  %v3451_v20 = vadd.f32 %v3450_v45, %v3449_v26 }
 0x4d9   :  { %v3405_v11 = vrot.slane %v3404_v57, 2  ;;  %v10369_v5 = vmul.f32 0.03125, %v3396_v3 }
 0x4da   :  { %v3363_v8 = vmul.f32 %v10363_v56, %v10363_v56  ;;  %v3362_v7 = vmul.f32 0.03125, %v3361_v9  ;;  %v3441_v24 = vadd.f32 %v3440_v36, %v3439_v59  ;;  %v3495_v37 = vpop.xlane.xlu1 %3494  ;;  %v3483_v48 = vpop.xlane.xlu0 %3482  ;;  %v3452_v10 = vrot.slane %v3451_v20, 2 }
 0x4db   :  { %v3406_v32 = vadd.f32 %v3405_v11, %v3404_v57  ;;  %v3496_v63 = vsel %vm12236_vm11, %v3495_v37, 0.0  ;;  %v3484_v49 = vsel %vm12237_vm9, %v3483_v48, 0.0  ;;  %v3410_v22 = vmul.f32 %v10369_v5, %v10369_v5 }
 0x4dc   :  { %v3364_v44 = vsub.f32 %v3362_v7, %v3363_v8  ;;  %v3442_v51 = vrot.slane %v3441_v24, 1  ;;  %v3497_v4 = vrot.slane %v3496_v63, 4  ;;  %v3485_v13 = vrot.slane %v3484_v49, 4 }
 0x4dd   :  { %v3407_v16 = vrot.slane %v3406_v32, 1  ;;  %v3453_v39 = vadd.f32 %v3452_v10, %v3451_v20  ;;  %v3377_v48 = vstv %s6900_s14  ;;  %s10553_s14 = sld [smem:[#allocation8 + $0x75]] }
 0x4de   :  { %v3365_v23 = vmax.f32 %v3364_v44, 0.0  ;;  %v3443_v41 = vadd.f32 %v3442_v51, %v3441_v24  ;;  %v3498_v1 = vadd.f32 %v3497_v4, %v3496_v63  ;;  %v3486_v15 = vadd.f32 %v3485_v13, %v3484_v49 }
 0x4df   :  { %v3408_v61 = vadd.f32 %v3407_v16, %v3406_v32  ;;  %v3454_v17 = vrot.slane %v3453_v39, 1  ;;  %v3380_v4 = vstv %s10381_s15  ;;  %v3424_v16 = vstv %s10383_s16  ;;  %s10561_s15 = sld [smem:[#allocation8 + $0x78]] }
 0x4e0   :  { %v3366_v38 = vadd.f32 1e-05, %v3365_v23  ;;  %v10371_v21 = vmul.f32 0.03125, %v3443_v41  ;;  %v3499_v31 = vrot.slane %v3498_v1, 2  ;;  %v3487_v34 = vrot.slane %v3486_v15, 2  ;;  %s10569_s16 = sld [smem:[#allocation8 + $0x79]] }
 0x4e1   :  { %v3409_v62 = vmul.f32 0.03125, %v3408_v61  ;;  %v3455_v27 = vadd.f32 %v3454_v17, %v3453_v39 }
 0x4e2   :  { %7112 = vrsqrt.f32 %v3366_v38  ;;  %v3457_v53 = vmul.f32 %v10371_v21, %v10371_v21  ;;  %v3500_v60 = vadd.f32 %v3499_v31, %v3498_v1  ;;  %v3488_v35 = vadd.f32 %v3487_v34, %v3486_v15 }
 0x4e3   :  { %v3411_v14 = vsub.f32 %v3409_v62, %v3410_v22  ;;  %v3456_v54 = vmul.f32 0.03125, %v3455_v27  ;;  %vm3373_vm7 = vweird.f32 %v3366_v38  ;;  %v3471_v34 = vstv %s10385_s17  ;;  %s10575_s17 = sld [smem:[#allocation8 + $0x7c]] }
 0x4e4   :  { %v3501_v0 = vrot.slane %v3500_v60, 1  ;;  %v3489_v29 = vrot.slane %v3488_v35, 1  ;;  %v3427_v22 = vstv %s10387_s18  ;;  %s10582_s18 = sld [smem:[#allocation8 + $0x7d]] }
 0x4e5   :  { %v3412_v19 = vmax.f32 %v3411_v14, 0.0  ;;  %v3458_v30 = vsub.f32 %v3456_v54, %v3457_v53  ;;  %v3474_v54 = vstv %s10390_s19  ;;  %s10584_s19 = sld [smem:[#allocation8 + $0x76]] }
 0x4e6   :  { %v3490_v52 = vadd.f32 %v3489_v29, %v3488_v35  ;;  %v3502_v50 = vadd.f32 %v3501_v0, %v3500_v60 }
 0x4e7   :  { %v3413_v6 = vadd.f32 1e-05, %v3412_v19  ;;  %v3459_v43 = vmax.f32 %v3458_v30, 0.0 }
 0x4e8   :  { %v7113_v18 = vpop.eup %7112  ;;  %v10377_v26 = vmul.f32 0.03125, %v3490_v52  ;;  %v3503_v28 = vmul.f32 0.03125, %v3502_v50 }
 0x4e9   :  { %v3368_v58 = vmul.f32 %v7113_v18, %v3366_v38  ;;  %7114 = vrsqrt.f32 %v3413_v6  ;;  %v3460_v2 = vadd.f32 1e-05, %v3459_v43  ;;  %vm3374_vm5 = vweird.f32 %v7113_v18 }
 0x4ea   :  { %v3504_v59 = vmul.f32 %v10377_v26, %v10377_v26  ;;  %vm3375_vm13 = vmor %vm3373_vm7, %vm3374_vm5  ;;  %vm3420_vm8 = vweird.f32 %v3413_v6 }
 0x4eb   :  { %v3369_v42 = vmul.f32 %v7113_v18, %v3368_v58  ;;  %7116 = vrsqrt.f32 %v3460_v2  ;;  %vm3467_vm6 = vweird.f32 %v3460_v2  ;;  %vm12238_vm5 = vmmov %vm12237_vm9 }
 0x4ec   :  { %v3505_v45 = vsub.f32 %v3503_v28, %v3504_v59  ;;  %vm12239_vm7 = vmmov %vm12238_vm5 }
 0x4ed   :  { %v3370_v57 = vmul.f32 0.5, %v3369_v42 }
 0x4ee   :  { %v3506_v11 = vmax.f32 %v3505_v45, 0.0  ;;  %v3521_v45 = vstv %s6907_s21  ;;  %s10605_s21 = sld [smem:[#allocation8 + $0x7e]] }
 0x4ef   :  { %v7115_v9 = vpop.eup %7114  ;;  %v3371_v36 = vsub.f32 1.5, %v3370_v57 }
 0x4f0   :  { %v3415_v3 = vmul.f32 %v7115_v9, %v3413_v6  ;;  %v3507_v37 = vadd.f32 1e-05, %v3506_v11  ;;  %vm3421_vm15 = vweird.f32 %v7115_v9 }
 0x4f1   :  { %v7117_v20 = vpop.eup %7116  ;;  %v3372_v8 = vmul.f32 %v7113_v18, %v3371_v36  ;;  %vm3422_vm0 = vmor %vm3420_vm8, %vm3421_vm15 }
 0x4f2   :  { %v3416_v7 = vmul.f32 %v7115_v9, %v3415_v3  ;;  %v3462_v24 = vmul.f32 %v7117_v20, %v3460_v2  ;;  %7118 = vrsqrt.f32 %v3507_v37  ;;  %vm3468_vm4 = vweird.f32 %v7117_v20 }
 0x4f3   :  { %v3376_v32 = vsel %vm3375_vm13, %v7113_v18, %v3372_v8  ;;  %vm3469_vm2 = vmor %vm3467_vm6, %vm3468_vm4  ;;  %v3518_v18 = vstv %s10395_s20  ;;  %vm3514_vm3 = vweird.f32 %v3507_v37  ;;  %s10596_s20 = sld [smem:[#allocation8 + $0x7a]] }
 0x4f4   :  { %v3417_v10 = vmul.f32 0.5, %v3416_v7  ;;  %v3463_v63 = vmul.f32 %v7117_v20, %v3462_v24  ;;  %v3378_v49 = vmul.f32 %v3377_v48, %v3376_v32 }
 0x4f6   :  { %v3418_v44 = vsub.f32 1.5, %v3417_v10  ;;  %v3464_v51 = vmul.f32 0.5, %v3463_v63  ;;  %v3379_v13 = vmul.f32 %v3378_v49, %v10363_v56  ;;  %v3382_v1 = vmul.f32 %v3378_v49, %v10328_v40 }
 0x4f8   :  { %v3465_v39 = vsub.f32 1.5, %v3464_v51  ;;  %v3419_v23 = vmul.f32 %v7115_v9, %v3418_v44  ;;  %v3381_v41 = vsub.f32 %v3380_v4, %v3379_v13  ;;  %v7119_v15 = vpop.eup %7118 }
 0x4f9   :  { %v3509_v56 = vmul.f32 %v7119_v15, %v3507_v37  ;;  %vm3515_vm12 = vweird.f32 %v7119_v15 }
 0x4fa   :  { %v3423_v61 = vsel %vm3422_vm0, %v7115_v9, %v3419_v23  ;;  %v3466_v17 = vmul.f32 %v7117_v20, %v3465_v39  ;;  %v3383_v38 = vadd.f32 %v3382_v1, %v3381_v41  ;;  %vm3516_vm11 = vmor %vm3514_vm3, %vm3515_vm12 }
 0x4fb   :  { %v3425_v31 = vmul.f32 %v3424_v16, %v3423_v61  ;;  %v3510_v27 = vmul.f32 %v7119_v15, %v3509_v56 }
 0x4fc   :  { %v3470_v62 = vsel %vm3469_vm2, %v7117_v20, %v3466_v17  ;;  %v10399_v53 = vmax.f32 %v3383_v38, 0.0 }
 0x4fd   :  { %v3426_v40 = vmul.f32 %v3425_v31, %v10369_v5  ;;  %v3429_v60 = vmul.f32 %v3425_v31, %v10326_v55  ;;  %v3472_v14 = vmul.f32 %v3471_v34, %v3470_v62  ;;  %v3511_v35 = vmul.f32 0.5, %v3510_v27 }
 0x4fe   :  { %v3528_v0 = vsel %vm3339_vm1, %v10399_v53, 0.0  ;;  %v3539_v19 = vmul.f32 %v10399_v53, %v10399_v53 }
 0x4ff   :  { %v3428_v30 = vsub.f32 %v3427_v22, %v3426_v40  ;;  %3529 = vadd.xlane.f32.xlu2 %v3528_v0  ;;  %v3473_v29 = vmul.f32 %v3472_v14, %v10371_v21  ;;  %v3512_v6 = vsub.f32 1.5, %v3511_v35  ;;  %v3476_v52 = vmul.f32 %v3472_v14, %v10340_v25 }
 0x500   :  { %v3540_v5 = vsel %vm3339_vm1, %v3539_v19, 0.0 }
 0x501   :  { %v3430_v55 = vadd.f32 %v3429_v60, %v3428_v30  ;;  %3541 = vadd.xlane.f32.xlu1 %v3540_v5  ;;  %v3475_v43 = vsub.f32 %v3474_v54, %v3473_v29  ;;  %v3513_v50 = vmul.f32 %v7119_v15, %v3512_v6 }
 0x503   :  { %v10412_v58 = vmax.f32 %v3430_v55, 0.0  ;;  %v3477_v2 = vadd.f32 %v3476_v52, %v3475_v43  ;;  %v3517_v42 = vsel %vm3516_vm11, %v7119_v15, %v3513_v50 }
 0x504   :  { %v3519_v59 = vmul.f32 %v3518_v18, %v3517_v42 }
 0x505   :  { %v3580_v21 = vsel %vm3339_vm1, %v10412_v58, 0.0  ;;  %v3591_v28 = vmul.f32 %v10412_v58, %v10412_v58  ;;  %v10418_v57 = vmax.f32 %v3477_v2, 0.0 }
 0x506   :  { %3581 = vadd.xlane.f32.xlu0 %v3580_v21  ;;  %v3520_v9 = vmul.f32 %v3519_v59, %v10377_v26  ;;  %v3523_v20 = vmul.f32 %v3519_v59, %v10349_v33 }
 0x507   :  { %v3592_v25 = vsel %vm3339_vm1, %v3591_v28, 0.0  ;;  %v3643_v36 = vmul.f32 %v10418_v57, %v10418_v57  ;;  %v3632_v7 = vsel %vm3339_vm1, %v10418_v57, 0.0 }
 0x508   :  { %3593 = vadd.xlane.f32.xlu2 %v3592_v25  ;;  %v3522_v11 = vsub.f32 %v3521_v45, %v3520_v9 }
 0x509   :  { %v3644_v3 = vsel %vm3339_vm1, %v3643_v36, 0.0 }
 0x50a   :  { %3645 = vadd.xlane.f32.xlu1 %v3644_v3  ;;  %v3524_v8 = vadd.f32 %v3523_v20, %v3522_v11 }
 0x50c   :  { %v10428_v24 = vmax.f32 %v3524_v8, 0.0 }
 0x50e   :  { %3633 = vadd.xlane.f32.xlu0 %v3632_v7  ;;  %v3684_v26 = vsel %vm3339_vm1, %v10428_v24, 0.0  ;;  %v3695_v37 = vmul.f32 %v10428_v24, %v10428_v24 }
 0x510   :  { %3685 = vadd.xlane.f32.xlu2 %v3684_v26  ;;  %v3696_v48 = vsel %vm3339_vm1, %v3695_v37, 0.0  ;;  %vm12240_vm1 = vmmov %vm12238_vm5 }
 0x511   :  { %vm12241_vm13 = vmmov %vm12240_vm1 }
 0x512   :  { %vm12242_vm15 = vmmov %vm12240_vm1 }
 0x513   :  { %vm12243_vm8 = vmmov %vm12240_vm1 }
 0x514   :  { %vm12244_vm4 = vmmov %vm12240_vm1 }
 0x516   :  { %3697 = vadd.xlane.f32.xlu0 %v3696_v48 }
 0x572   :  { %v3530_v32 = vpop.xlane.xlu2 %3529 }
 0x573   :  { %v3531_v33 = vsel %vm12237_vm9, %v3530_v32, 0.0 }
 0x574   :  { %v3532_v10 = vrot.slane %v3531_v33, 4  ;;  %v3542_v63 = vpop.xlane.xlu1 %3541 }
 0x575   :  { %v3543_v49 = vsel %vm12238_vm5, %v3542_v63, 0.0 }
 0x576   :  { %v3533_v44 = vadd.f32 %v3532_v10, %v3531_v33  ;;  %v3544_v51 = vrot.slane %v3543_v49, 4 }
 0x578   :  { %v3534_v4 = vrot.slane %v3533_v44, 2  ;;  %v3545_v13 = vadd.f32 %v3544_v51, %v3543_v49 }
 0x579   :  { %v3582_v16 = vpop.xlane.xlu0 %3581 }
 0x57a   :  { %v3583_v39 = vsel %vm12239_vm7, %v3582_v16, 0.0  ;;  %v3535_v23 = vadd.f32 %v3534_v4, %v3533_v44  ;;  %v3546_v41 = vrot.slane %v3545_v13, 2 }
 0x57b   :  { %v3584_v1 = vrot.slane %v3583_v39, 4  ;;  %v3594_v15 = vpop.xlane.xlu2 %3593 }
 0x57c   :  { %v3595_v61 = vsel %vm12240_vm1, %v3594_v15, 0.0  ;;  %v3536_v17 = vrot.slane %v3535_v23, 1  ;;  %v3547_v56 = vadd.f32 %v3546_v41, %v3545_v13 }
 0x57d   :  { %v3585_v38 = vadd.f32 %v3584_v1, %v3583_v39  ;;  %v3596_v31 = vrot.slane %v3595_v61, 4  ;;  %v3646_v34 = vpop.xlane.xlu1 %3645 }
 0x57e   :  { %v3537_v22 = vadd.f32 %v3536_v17, %v3535_v23  ;;  %v3548_v62 = vrot.slane %v3547_v56, 1  ;;  %v3647_v60 = vsel %vm12241_vm13, %v3646_v34, 0.0 }
 0x57f   :  { %v3586_v27 = vrot.slane %v3585_v38, 2  ;;  %v3597_v40 = vadd.f32 %v3596_v31, %v3595_v61  ;;  %v3648_v30 = vrot.slane %v3647_v60, 4 }
 0x580   :  { %v10440_v14 = vmul.f32 0.03125, %v3537_v22  ;;  %v3549_v54 = vadd.f32 %v3548_v62, %v3547_v56 }
 0x581   :  { %v3587_v35 = vadd.f32 %v3586_v27, %v3585_v38  ;;  %v3598_v0 = vrot.slane %v3597_v40, 2  ;;  %v3634_v19 = vpop.xlane.xlu0 %3633  ;;  %v3649_v52 = vadd.f32 %v3648_v30, %v3647_v60 }
 0x582   :  { %v3635_v29 = vsel %vm12242_vm15, %v3634_v19, 0.0  ;;  %v3551_v6 = vmul.f32 %v10440_v14, %v10440_v14  ;;  %v3550_v5 = vmul.f32 0.03125, %v3549_v54 }
 0x583   :  { %v3588_v55 = vrot.slane %v3587_v35, 1  ;;  %v3599_v43 = vadd.f32 %v3598_v0, %v3597_v40  ;;  %v3636_v18 = vrot.slane %v3635_v29, 4  ;;  %v3686_v50 = vpop.xlane.xlu2 %3685  ;;  %v3650_v59 = vrot.slane %v3649_v52, 2 }
 0x584   :  { %v3552_v2 = vsub.f32 %v3550_v5, %v3551_v6  ;;  %v3687_v21 = vsel %vm12243_vm8, %v3686_v50, 0.0  ;;  %v3565_v6 = vstv %s6908_s0  ;;  %s10621_s0 = sld [smem:[#allocation8 + $0x65]] }
 0x585   :  { %v3589_v42 = vadd.f32 %v3588_v55, %v3587_v35  ;;  %v3600_v28 = vrot.slane %v3599_v43, 1  ;;  %v3637_v25 = vadd.f32 %v3636_v18, %v3635_v29  ;;  %v3688_v45 = vrot.slane %v3687_v21, 4 }
 0x586   :  { %v3553_v9 = vmax.f32 %v3552_v2, 0.0  ;;  %v3651_v11 = vadd.f32 %v3650_v59, %v3649_v52 }
 0x587   :  { %v10446_v36 = vmul.f32 0.03125, %v3589_v42  ;;  %v3601_v3 = vadd.f32 %v3600_v28, %v3599_v43  ;;  %v3638_v20 = vrot.slane %v3637_v25, 2  ;;  %v3689_v8 = vadd.f32 %v3688_v45, %v3687_v21 }
 0x588   :  { %v3554_v7 = vadd.f32 1e-05, %v3553_v9  ;;  %v3652_v10 = vrot.slane %v3651_v11, 1  ;;  %v3568_v21 = vstv %s6909_s24  ;;  %v3617_v45 = vstv %s10455_s25  ;;  %s10625_s24 = sld [smem:[#allocation8 + $0x63]] }
 0x589   :  { %v3603_v26 = vmul.f32 %v10446_v36, %v10446_v36  ;;  %v3698_v37 = vpop.xlane.xlu0 %3697  ;;  %v3602_v48 = vmul.f32 0.03125, %v3601_v3  ;;  %v3639_v32 = vadd.f32 %v3638_v20, %v3637_v25  ;;  %v3690_v33 = vrot.slane %v3689_v8, 2  ;;  %s10633_s25 = sld [smem:[#allocation8 + $0x6f]] }
 0x58a   :  { %7120 = vrsqrt.f32 %v3554_v7  ;;  %v3699_v63 = vsel %vm12244_vm4, %v3698_v37, 0.0  ;;  %v3653_v39 = vadd.f32 %v3652_v10, %v3651_v11  ;;  %vm3561_vm6 = vweird.f32 %v3554_v7 }
 0x58b   :  { %v3604_v49 = vsub.f32 %v3602_v48, %v3603_v26  ;;  %v3640_v44 = vrot.slane %v3639_v32, 1  ;;  %v3691_v51 = vadd.f32 %v3690_v33, %v3689_v8  ;;  %v3700_v4 = vrot.slane %v3699_v63, 4 }
 0x58c   :  { %v3654_v38 = vmul.f32 0.03125, %v3653_v39  ;;  %v3620_v48 = vstv %s10463_s26  ;;  %s10638_s26 = sld [smem:[#allocation8 + $0x80]] }
 0x58d   :  { %v3605_v13 = vmax.f32 %v3604_v49, 0.0  ;;  %v3641_v16 = vadd.f32 %v3640_v44, %v3639_v32  ;;  %v3701_v23 = vadd.f32 %v3700_v4, %v3699_v63  ;;  %v3692_v15 = vrot.slane %v3691_v51, 1 }
 0x58f   :  { %v3606_v41 = vadd.f32 1e-05, %v3605_v13  ;;  %v10451_v1 = vmul.f32 0.03125, %v3641_v16  ;;  %v3702_v17 = vrot.slane %v3701_v23, 2  ;;  %v3693_v62 = vadd.f32 %v3692_v15, %v3691_v51 }
 0x590   :  { %v7121_v61 = vpop.eup %7120  ;;  %v3669_v15 = vstv %s10469_s1  ;;  %s10646_s1 = sld [smem:[#allocation8 + $0x83]] }
 0x591   :  { %v3556_v56 = vmul.f32 %v7121_v61, %v3554_v7  ;;  %7122 = vrsqrt.f32 %v3606_v41  ;;  %v3655_v31 = vmul.f32 %v10451_v1, %v10451_v1  ;;  %v3703_v34 = vadd.f32 %v3702_v17, %v3701_v23 }
 0x592   :  { %vm3562_vm0 = vweird.f32 %v7121_v61  ;;  %v10457_v19 = vmul.f32 0.03125, %v3693_v62  ;;  %vm3613_vm3 = vweird.f32 %v3606_v41 }
 0x593   :  { %v3557_v22 = vmul.f32 %v7121_v61, %v3556_v56  ;;  %v3656_v27 = vsub.f32 %v3654_v38, %v3655_v31  ;;  %v3704_v40 = vrot.slane %v3703_v34, 1  ;;  %vm3563_vm2 = vmor %vm3561_vm6, %vm3562_vm0 }
 0x594   :  { %v3707_v18 = vmul.f32 %v10457_v19, %v10457_v19 }
 0x595   :  { %v3558_v60 = vmul.f32 0.5, %v3557_v22  ;;  %v3657_v0 = vmax.f32 %v3656_v27, 0.0  ;;  %v3705_v30 = vadd.f32 %v3704_v40, %v3703_v34 }
 0x597   :  { %v7123_v54 = vpop.eup %7122  ;;  %v3559_v35 = vsub.f32 1.5, %v3558_v60  ;;  %v10459_v52 = vadd.f32 1e-05, %v3657_v0  ;;  %v3706_v50 = vmul.f32 0.03125, %v3705_v30  ;;  %v3672_v60 = vstv %s10471_s2  ;;  %s10655_s2 = sld [smem:[#allocation8 + $0x73]] }
 0x598   :  { %v3608_v29 = vmul.f32 %v7123_v54, %v3606_v41  ;;  %vm3614_vm12 = vweird.f32 %v7123_v54 }
 0x599   :  { %v3560_v5 = vmul.f32 %v7121_v61, %v3559_v35  ;;  %7124 = vrsqrt.f32 %v10459_v52  ;;  %v3708_v28 = vsub.f32 %v3706_v50, %v3707_v18  ;;  %vm3615_vm11 = vmor %vm3613_vm3, %vm3614_vm12  ;;  %vm3665_vm5 = vweird.f32 %v10459_v52  ;;  %v12246_v35 = vld [vmem:[#allocation123_spill] sm:$0xff] }
 0x59a   :  { %v3609_v55 = vmul.f32 %v7123_v54, %v3608_v29  ;;  %vm12247_vm1 = vnez %v12246_v35  ;;  %vm3883_vm12 = vcmask 130048  }
 0x59b   :  { %v3564_v43 = vsel %vm3563_vm2, %v7121_v61, %v3560_v5  ;;  %v3709_v9 = vmax.f32 %v3708_v28, 0.0  ;;  %v3724_v28 = vstv %s10488_s30  ;;  %s10667_s30 = sld [smem:[#allocation8 + $0x77]] }
 0x59c   :  { %v3566_v2 = vmul.f32 %v3565_v6, %v3564_v43  ;;  %v3610_v42 = vmul.f32 0.5, %v3609_v55  ;;  %v3721_v55 = vstv %s10477_s27  ;;  %v3735_v43 = vstv %s10480_s28  ;;  %s10658_s27 = sld [smem:[#allocation8 + $0x84]] }
 0x59d   :  { %v10473_v8 = vadd.f32 1e-05, %v3709_v9  ;;  %v3807_v9 = vstv %s10493_s5  ;;  %s10677_s5 = sld [smem:[#allocation8 + $0x7f]] }
 0x59e   :  { %v3567_v59 = vmul.f32 %v3566_v2, %v10440_v14  ;;  %v3611_v25 = vsub.f32 1.5, %v3610_v42  ;;  %v3570_v11 = vmul.f32 %v3566_v2, %v10399_v53  ;;  %s10708_s28 = sld [smem:[#allocation8 + $0x67]] }
 0x59f   :  { %v7125_v26 = vpop.eup %7124  ;;  %7126 = vrsqrt.f32 %v10473_v8  ;;  %vm3717_vm8 = vweird.f32 %v10473_v8 }
 0x5a0   :  { %v3569_v3 = vsub.f32 %v3568_v21, %v3567_v59  ;;  %v3612_v20 = vmul.f32 %v7123_v54, %v3611_v25  ;;  %v3660_v32 = vmul.f32 %v7125_v26, %v10459_v52  ;;  %vm3666_vm9 = vweird.f32 %v7125_v26  ;;  %v12248_v52 = vld [vmem:[#allocation121_spill] sm:$0xff] }
 0x5a1   :  { %vm3667_vm7 = vmor %vm3665_vm5, %vm3666_vm9  ;;  %vm12249_vm15 = vnez %v12248_v52  ;;  %v3789_v25 = vstv %s10490_s4  ;;  %s10669_s4 = sld [smem:[#allocation8 + $0x7b]]  ;;  %vm4186_vm9 = vcmask 1041409  }
 0x5a2   :  { %v10475_v7 = vadd.f32 %v3570_v11, %v3569_v3  ;;  %v3616_v14 = vsel %vm3615_vm11, %v7123_v54, %v3612_v20  ;;  %v3661_v63 = vmul.f32 %v7125_v26, %v3660_v32  ;;  %vm4184_vm11 = vcmask 1040384  }
 0x5a3   :  { %v3618_v37 = vmul.f32 %v3617_v45, %v3616_v14  ;;  %v3792_v45 = vstv %s10527_s10  ;;  %s10733_s10 = sld [smem:[#allocation8 + $0x81]] }
 0x5a4   :  { %v3573_v53 = vmin.f32 %v10475_v7, 0.0  ;;  %v3662_v51 = vmul.f32 0.5, %v3661_v63  ;;  %vm3572_vm0 = vcmp.gt.f32.partialorder %v10475_v7, 0.0  ;;  %v3828_v63 = vstv %s10553_s14  ;;  %s7236_s14 = smov [#allocation9]  }
 0x5a5   :  { %v3619_v33 = vmul.f32 %v3618_v37, %v10446_v36  ;;  %v3622_v44 = vmul.f32 %v3618_v37, %v10412_v58  ;;  %v10497_v4 = vpop.eup %7126  ;;  %v12245_v36 = vmov 0.0   ;;  %v3825_v37 = vstv %s10539_s12  ;;  %s6933_s12 = sld [smem:[#allocation8 + $0x6b]] }
 0x5a6   :  { %v3574_v10 = vmul.f32 1.442695, %v3573_v53  ;;  %v251_v16 = vsel %vm10245_vm14, 1.0, %v12245_v36  ;;  %v3663_v58 = vsub.f32 1.5, %v3662_v51  ;;  %v3712_v39 = vmul.f32 %v10497_v4, %v10473_v8 }
 0x5a7   :  { %v3621_v49 = vsub.f32 %v3620_v48, %v3619_v33  ;;  %v10510_v23 = vsub.f32 %v251_v16, %v251_v16  ;;  %v249_v61 = vsel %vm10254_vm10, 1.0, %v12245_v36  ;;  %vm3718_vm13 = vweird.f32 %v10497_v4 }
 0x5a8   :  { %7128 = vpow2.f32 %v3574_v10  ;;  %v3664_v17 = vmul.f32 %v7125_v26, %v3663_v58  ;;  %v3713_v56 = vmul.f32 %v10497_v4, %v3712_v39  ;;  %v10525_v31 = vsub.f32 %v249_v61, %v249_v61  ;;  %vm3719_vm4 = vmor %vm3717_vm8, %vm3718_vm13 }
 0x5a9   :  { %v10499_v13 = vadd.f32 %v3622_v44, %v3621_v49  ;;  %v10522_v38 = vand.u32 4294901760, %v10510_v23  ;;  %3956 = vmatpush.msra.mxu2 %v10510_v23  ;;  %v252_v20 = vsel %vm12247_vm1, 1.0, %v12245_v36  ;;  %v3810_v8 = vstv %s10530_s11  ;;  %s6932_s11 = sld [smem:[#allocation8 + $0x6a]] }
 0x5aa   :  { %v3668_v22 = vsel %vm3667_vm7, %v7125_v26, %v3664_v17  ;;  %v3714_v62 = vmul.f32 0.5, %v3713_v56  ;;  %v10535_v40 = vand.u32 4294901760, %v10525_v31  ;;  %v10598_v26 = vsub.f32 %v252_v20, %v252_v20 }
 0x5ab   :  { %v3625_v41 = vmin.f32 %v10499_v13, 0.0  ;;  %v3928_v27 = vsub.f32 %v10510_v23, %v10522_v38  ;;  %3958 = vmatpush.msra.mxu2 %v10525_v31  ;;  %4004 = vmatpush.msrb.mxu0 %v10522_v38  ;;  %v3670_v54 = vmul.f32 %v3669_v15, %v3668_v22  ;;  %vm3624_vm6 = vcmp.gt.f32.partialorder %v10499_v13, 0.0 }
 0x5ac   :  { %v3715_v30 = vsub.f32 1.5, %v3714_v62  ;;  %v3933_v6 = vsub.f32 %v10525_v31, %v10535_v40  ;;  %v10616_v10 = vand.u32 4294901760, %v10598_v26  ;;  %v3843_v16 = vstv %s10561_s15  ;;  %s6416_s15 = sshll.u32 %s7236_s14, 4  ;;  %s6417_s15 = int_to_ptr.vmem [resolvable:$true] %s6416_s15 }
 0x5ad   :  { %v3626_v34 = vmul.f32 1.442695, %v3625_v41  ;;  %6966 = vmatpush.msk.msrb.mxu2 %vm12247_vm1, %v11741_v46  ;;  %v10548_v29 = vand.u32 4294901760, %v3928_v27  ;;  %4007 = vmatpush.msrb.mxu0 %v10535_v40  ;;  %v3671_v5 = vmul.f32 %v3670_v54, %v10451_v1  ;;  %v3753_v1 = vstv %s10485_s29  ;;  %s6931_s29 = sld [smem:[#allocation8 + $0x69]] }
 0x5ae   :  { %v7129_v0 = vpop.eup %7128  ;;  %v3716_v18 = vmul.f32 %v10497_v4, %v3715_v30  ;;  %v10566_v50 = vand.u32 4294901760, %v3933_v6  ;;  %v3674_v21 = vmul.f32 %v3670_v54, %v10418_v57  ;;  %v3846_v39 = vstv %s10569_s16 }
 0x5af   :  { %7130 = vpow2.f32 %v3626_v34  ;;  %6967 = vmatpush.msk.msrb.mxu2 %vm12249_vm15, %v11741_v46  ;;  %3930 = vmatpush.msra.mxu1 %v10548_v29  ;;  %v6910_v2 = vadd.f32 -1.0, %v7129_v0  ;;  %v3673_v42 = vsub.f32 %v3672_v60, %v3671_v5  ;;  %v3861_v61 = vstv %s10575_s17 }
 0x5b0   :  { %v3720_v59 = vsel %vm3719_vm4, %v10497_v4, %v3716_v18  ;;  %v4075_v4 = vsub.f32 %v10598_v26, %v10616_v10  ;;  %v3864_v17 = vstv %s10582_s18  ;;  %v3738_v6 = vstv %s10495_s6  ;;  %s10681_s6 = sld [smem:[#allocation8 + $0x85]]  ;;  %s6418_s18 = sshll.u32 %s11271_s3, 4  ;;  %s6419_s18 = int_to_ptr.hbm [resolvable:$true] %s6418_s18 }
 0x5b1   :  { %3935 = vmatpush.msra.mxu1 %v10566_v50  ;;  %v10586_v57 = vadd.f32 %v3674_v21, %v3673_v42  ;;  %v3722_v11 = vmul.f32 %v3721_v55, %v3720_v59  ;;  %v10602_v53 = vsel %vm3572_vm0, %v10475_v7, %v6910_v2  ;;  %v250_v7 = vsel %vm12249_vm15, 1.0, %v12245_v36 }
 0x5b2   :  { %v10627_v51 = vsub.f32 %v250_v7, %v250_v7  ;;  %v10644_v41 = vand.u32 4294901760, %v4075_v4  ;;  %v3808_v22 = vmul.f32 %v3807_v9, %v10602_v53  ;;  %v3826_v27 = vmul.f32 %v3825_v37, %v10602_v53 }
 0x5b3   :  { %6964 = vmatpush.msk.msrb.mxu1 %vm10245_vm14, %v11741_v46  ;;  %v3677_v48 = vmin.f32 %v10586_v57, 0.0  ;;  %v3723_v32 = vmul.f32 %v3722_v11, %v10457_v19  ;;  %v3726_v44 = vmul.f32 %v3722_v11, %v10428_v24  ;;  %v3844_v54 = vmul.f32 %v3843_v16, %v10602_v53 }
 0x5b4   :  { %v10641_v24 = vand.u32 4294901760, %v10627_v51  ;;  %4077 = vmatpush.msrb.mxu3 %v10644_v41  ;;  %v3862_v42 = vmul.f32 %v3861_v61, %v10602_v53  ;;  %v3742_v59 = vstv %s10501_s7  ;;  %v3814_v9 = vstv %s10542_s13  ;;  %s10693_s7 = sld [smem:[#allocation8 + $0x86]] }
 0x5b5   :  { %v7131_v3 = vpop.eup %7130  ;;  %6965 = vmatpush.msk.msrb.mxu1 %vm10254_vm10, %v11741_v46  ;;  %v3678_v19 = vmul.f32 1.442695, %v3677_v48  ;;  %v3725_v49 = vsub.f32 %v3724_v28, %v3723_v32  ;;  %vm3676_vm2 = vcmp.gt.f32.partialorder %v10586_v57, 0.0  ;;  %v3746_v32 = vstv %s10625_s24  ;;  %s6934_s13 = sld [smem:[#allocation8 + $0x82]] }
 0x5b6   :  { %v6913_v14 = vadd.f32 -1.0, %v7131_v3  ;;  %v4080_v34 = vsub.f32 %v10627_v51, %v10641_v24  ;;  %v3832_v3 = vstv %s10584_s19  ;;  %v3750_v7 = vstv %s10638_s26 }
 0x5b7   :  { %7132 = vpow2.f32 %v3678_v19  ;;  %v10636_v58 = vadd.f32 %v3726_v44, %v3725_v49  ;;  %v3736_v49 = vmul.f32 %v3735_v43, %v10602_v53  ;;  %v3800_v44 = vstv %s10633_s25 }
 0x5b8   :  { %v10613_v33 = vsel %vm3624_vm6, %v10499_v13, %v6913_v14  ;;  %v3790_v13 = vmul.f32 %v3789_v25, %v10602_v53  ;;  %v10665_v5 = vand.u32 4294901760, %v4080_v34  ;;  %v3760_v25 = vstv %s10506_s8  ;;  %s10772_s8 = sld [smem:[#allocation8 + $0x68]] }
 0x5b9   :  { %v3793_v36 = vmul.f32 %v3792_v45, %v10613_v33  ;;  %v3729_v56 = vmin.f32 %v10636_v58, 0.0  ;;  %v3811_v62 = vmul.f32 %v3810_v8, %v10613_v33  ;;  %v3829_v60 = vmul.f32 %v3828_v63, %v10613_v33 }
 0x5ba   :  { %v3847_v0 = vmul.f32 %v3846_v39, %v10613_v33  ;;  %v3865_v21 = vmul.f32 %v3864_v17, %v10613_v33  ;;  %v3796_v45 = vstv %s10514_s9  ;;  %4082 = vmatpush.msrb.mxu3 %v10665_v5  ;;  %v3850_v8 = vstv %s10596_s20  ;;  %s10701_s9 = sld [smem:[#allocation8 + $0x87]] }
 0x5bb   :  { %v3794_v15 = vadd.f32 %v3793_v36, %v3790_v13  ;;  %v3730_v30 = vmul.f32 1.442695, %v3729_v56  ;;  %v3812_v55 = vadd.f32 %v3811_v62, %v3808_v22  ;;  %v3830_v18 = vadd.f32 %v3829_v60, %v3826_v27 }
 0x5bc   :  { %v3848_v2 = vadd.f32 %v3847_v0, %v3844_v54  ;;  %v3866_v20 = vadd.f32 %v3865_v21, %v3862_v42  ;;  %v3868_v14 = vstv %s10605_s21  ;;  %v3739_v37 = vmul.f32 %v3738_v6, %v10613_v33 }
 0x5bd   :  { %v7133_v28 = vpop.eup %7132  ;;  %7134 = vpow2.f32 %v3730_v30  ;;  %v3756_v63 = vstv %s10621_s0  ;;  %v3818_v4 = vstv %s10655_s2  ;;  %v3836_v56 = vstv %s10667_s30 }
 0x5be   :  { %v6916_v11 = vadd.f32 -1.0, %v7133_v28  ;;  %v3740_v61 = vadd.f32 %v3739_v37, %v3736_v49  ;;  %vm3728_vm3 = vcmp.gt.f32.partialorder %v10636_v58, 0.0  ;;  %v3854_v60 = vstv %s10669_s4 }
 0x5bf   :  { %v3872_v0 = vstv %s10677_s5  ;;  %v3804_v6 = vstv %s10646_s1  ;;  %v3822_v42 = vstv %s10658_s27  ;;  %v3840_v21 = vstv %s10681_s6 }
 0x5c0   :  { %v10688_v48 = vsel %vm3676_vm2, %v10586_v57, %v6916_v11  ;;  %v3858_v11 = vstv %s10693_s7  ;;  %v3764_v49 = vstv %s10708_s28 }
 0x5c1   :  { %v3797_v19 = vmul.f32 %v3796_v45, %v10688_v48  ;;  %v3815_v13 = vmul.f32 %v3814_v9, %v10688_v48  ;;  %v3833_v57 = vmul.f32 %v3832_v3, %v10688_v48  ;;  %v3851_v36 = vmul.f32 %v3850_v8, %v10688_v48 }
 0x5c2   :  { %v3869_v16 = vmul.f32 %v3868_v14, %v10688_v48  ;;  %v3743_v43 = vmul.f32 %v3742_v59, %v10688_v48 }
 0x5c3   :  { %v7135_v39 = vpop.eup %7134  ;;  %v3798_v17 = vadd.f32 %v3797_v19, %v3794_v15  ;;  %v3816_v22 = vadd.f32 %v3815_v13, %v3812_v55  ;;  %v3834_v62 = vadd.f32 %v3833_v57, %v3830_v18  ;;  %v3852_v27 = vadd.f32 %v3851_v36, %v3848_v2 }
 0x5c4   :  { %v6919_v34 = vadd.f32 -1.0, %v7135_v39  ;;  %v3870_v54 = vadd.f32 %v3869_v16, %v3866_v20  ;;  %v3744_v28 = vadd.f32 %v3743_v43, %v3740_v61  ;;  %v3757_v55 = vmul.f32 %v3756_v63, %v10613_v33 }
 0x5c5   :  { %v3876_v20 = vstv %s10701_s9  ;;  %v3754_v19 = vmul.f32 %v3753_v1, %v10602_v53  ;;  %v3761_v16 = vmul.f32 %v3760_v25, %v10688_v48 }
 0x5c6   :  { %v10715_v30 = vsel %vm3728_vm3, %v10636_v58, %v6919_v34 }
 0x5c7   :  { %v3747_v15 = vmul.f32 %v3746_v32, %v10715_v30  ;;  %v3801_v18 = vmul.f32 %v3800_v44, %v10715_v30  ;;  %v3819_v2 = vmul.f32 %v3818_v4, %v10715_v30  ;;  %v3837_v59 = vmul.f32 %v3836_v56, %v10715_v30 }
 0x5c8   :  { %v3855_v45 = vmul.f32 %v3854_v60, %v10715_v30  ;;  %v3873_v58 = vmul.f32 %v3872_v0, %v10715_v30  ;;  %v3758_v61 = vadd.f32 %v3757_v55, %v3754_v19  ;;  %v3765_v1 = vmul.f32 %v3764_v49, %v10715_v30 }
 0x5c9   :  { %v3748_v9 = vadd.f32 %v3747_v15, %v3744_v28  ;;  %v3802_v3 = vadd.f32 %v3801_v18, %v3798_v17  ;;  %v3820_v8 = vadd.f32 %v3819_v2, %v3816_v22  ;;  %v3838_v14 = vadd.f32 %v3837_v59, %v3834_v62 }
 0x5ca   :  { %v3856_v37 = vadd.f32 %v3855_v45, %v3852_v27  ;;  %v3874_v32 = vadd.f32 %v3873_v58, %v3870_v54  ;;  %v3762_v62 = vadd.f32 %v3761_v16, %v3758_v61  ;;  %v3768_v0 = vstv %s10733_s10 }
 0x5cb   :  { %v3751_v63 = vadd.f32 %v3750_v7, %v3748_v9  ;;  %v3805_v44 = vadd.f32 %v3804_v6, %v3802_v3  ;;  %v3823_v4 = vadd.f32 %v3822_v42, %v3820_v8  ;;  %v3841_v13 = vadd.f32 %v3840_v21, %v3838_v14 }
 0x5cc   :  { %v3859_v57 = vadd.f32 %v3858_v11, %v3856_v37  ;;  %v3877_v36 = vadd.f32 %v3876_v20, %v3874_v32  ;;  %v3766_v60 = vadd.f32 %v3765_v1, %v3762_v62  ;;  %v3774_v15 = vstv %s6931_s29  ;;  %v10999_v62 = vld.sshfl [vmem:[#allocation1 + $0x8] sm:$0xff pattern:$0x73625140] }
 0x5cd   :  { %v3885_v39 = vsel %vm3883_vm12, %v3751_v63, 0  ;;  %v10740_v43 = vsel %vm3883_vm12, %v3805_v44, 0  ;;  %v10744_v17 = vsel %vm3883_vm12, %v3823_v4, 0  ;;  %v10747_v56 = vsel %vm3883_vm12, %v3841_v13, 0 }
 0x5ce   :  { %v3903_v7 = vand.u32 4294901760, %v3885_v39  ;;  %v10750_v34 = vsel %vm3883_vm12, %v3859_v57, 0  ;;  %v10753_v25 = vsel %vm3883_vm12, %v3877_v36, 0  ;;  %v3769_v42 = vadd.f32 %v3768_v0, %v3766_v60 }
 0x5cf   :  { %v3778_v55 = vstv %s6932_s11  ;;  %v3771_v2 = vstv %s10772_s8  ;;  %v3775_v59 = vmul.f32 %v3774_v15, %v10613_v33  ;;  %v3782_v45 = vstv %s6933_s12 }
 0x5d0   :  { %3937 = vmatmul.f32.vlgmr.msra.gmra.mxu1 %v3903_v7  ;;  %v3904_v22 = vsub.f32 %v3885_v39, %v3903_v7  ;;  %v4206_v21 = vsel %vm3883_vm12, %v3769_v42, 0  ;;  %v3779_v58 = vmul.f32 %v3778_v55, %v10688_v48  ;;  %v3772_v9 = vmul.f32 %v3771_v2, %v10602_v53 }
 0x5d1   :  { %6968 = vmatpush.msk.msra.mxu1 %vm12247_vm1, %v11741_v46  ;;  %v10782_v28 = vand.u32 4294901760, %v4206_v21  ;;  %v3783_v11 = vmul.f32 %v3782_v45, %v10715_v30  ;;  %v3786_v30 = vstv %s6934_s13  ;;  %v4856_v4 = vand.u32 4294901760, %v10740_v43 }
 0x5d2   :  { %3961 = vmatmul.f32.vlgmr.msra.gmra.mxu2 %v3904_v22  ;;  %v3905_v27 = vand.u32 4294901760, %v3904_v22  ;;  %v3776_v33 = vadd.f32 %v3775_v59, %v3772_v9  ;;  %v5172_v39 = vand.u32 4294901760, %v10744_v17  ;;  %v11060_v15 = vand.u32 4294901760, %v10750_v34  ;;  %v12251_v59 = vld [vmem:[#allocation16_spill] sm:$0xff] }
 0x5d3   :  { %4151 = vmatpush.msra.mxu2 %v10616_v10  ;;  %6969 = vmatpush.msk.msra.mxu1 %vm12249_vm15, %v11741_v46  ;;  %v4225_v18 = vsub.f32 %v4206_v21, %v10782_v28  ;;  %v4857_v13 = vsub.f32 %v10740_v43, %v4856_v4 }
 0x5d4   :  { %3984 = vmatmul.f32.vlgmr.msra.gmra.mxu3 %v3905_v27  ;;  %v3906_v54 = vsub.f32 %v3904_v22, %v3905_v27  ;;  %v3780_v48 = vadd.f32 %v3779_v58, %v3776_v33  ;;  %v5173_v43 = vsub.f32 %v10744_v17, %v5172_v39  ;;  %v10994_v17 = vand.u32 4294901760, %v10747_v56 }
 0x5d5   :  { %6970 = vmatpush.msk.msra.mxu3 %vm12247_vm1, %v11741_v46  ;;  %4154 = vmatpush.msra.mxu2 %v10641_v24  ;;  %v4226_v3 = vand.u32 4294901760, %v4225_v18  ;;  %v4858_v57 = vand.u32 4294901760, %v4857_v13  ;;  %v11080_v58 = vsub.f32 %v10750_v34, %v11060_v15 }
 0x5d6   :  { %v3907_v6 = vand.u32 4294901760, %v3906_v54  ;;  %v3784_v53 = vadd.f32 %v3783_v11, %v3780_v48  ;;  %v11010_v60 = vsub.f32 %v10747_v56, %v10994_v17 }
 0x5d7   :  { %6971 = vmatpush.msk.msra.mxu3 %vm12249_vm15, %v11741_v46  ;;  %v4227_v20 = vsub.f32 %v4225_v18, %v4226_v3  ;;  %v4859_v36 = vsub.f32 %v4857_v13, %v4858_v57  ;;  %v5806_v11 = vand.u32 4294901760, %v11080_v58 }
 0x5d8   :  { %3908 = vmatmul.f32.vlgmr.msra.gmra.mxu0 %v3907_v6  ;;  %4030 = vmatmul.f32.vlgmr.msrb.gmra.mxu1 %v3903_v7  ;;  %v3787_v14 = vadd.f32 %v3786_v30, %v3784_v53  ;;  %v5490_v56 = vand.u32 4294901760, %v11010_v60 }
 0x5d9   :  { %4103 = vmatpush.msra.mxu0 %v10598_v26  ;;  %4251 = vmatpush.msrb.mxu1 %v10548_v29  ;;  %v4228_v8 = vand.u32 4294901760, %v4227_v20  ;;  %v4860_v16 = vand.u32 4294901760, %v4859_v36  ;;  %v5807_v30 = vsub.f32 %v11080_v58, %v5806_v11 }
 0x5da   :  { %4055 = vmatmul.f32.vlgmr.msrb.gmra.mxu2 %v3907_v6  ;;  %v4522_v37 = vsel %vm3883_vm12, %v3787_v14, 0  ;;  %v5491_v54 = vsub.f32 %v11010_v60, %v5490_v56 }
 0x5db   :  { %4105 = vmatpush.msra.mxu0 %v10627_v51  ;;  %4277 = vmatpush.msrb.mxu2 %v10510_v23  ;;  %v4540_v32 = vand.u32 4294901760, %v4522_v37 }
 0x5dc   :  { %4084 = vmatmul.f32.vlgmr.msrb.gmra.mxu3 %v3903_v7  ;;  %4256 = vmatpush.msrb.mxu1 %v10566_v50  ;;  %v5492_v6 = vand.u32 4294901760, %v5491_v54  ;;  %v12255_v54 = vld [vmem:[#allocation17_spill] sm:$0xff] }
 0x5dd   :  { %6974 = vmatpush.msk.msrb.mxu3 %vm10245_vm14, %v11741_v46  ;;  %4279 = vmatpush.msrb.mxu2 %v10525_v31  ;;  %v4541_v63 = vsub.f32 %v4522_v37, %v4540_v32 }
 0x5df   :  { %6975 = vmatpush.msk.msrb.mxu3 %vm10254_vm10, %v11741_v46  ;;  %v4542_v19 = vand.u32 4294901760, %v4541_v63 }
 0x5e0   :  { %4009 = vmatmul.f32.vlgmr.msrb.gmra.mxu0 %v3903_v7  ;;  %4131 = vmatmul.f32.vlgmr.msra.gmra.mxu1 %v3905_v27  ;;  %v12250_v27 = vld [vmem:[#allocation15_spill] sm:$0xff] }
 0x5e1   :  { %6972 = vmatpush.msk.msrb.mxu0 %vm10245_vm14, %v11741_v46  ;;  %6976 = vmatpush.msk.msra.mxu1 %vm10245_vm14, %v11741_v46  ;;  %v4543_v49 = vsub.f32 %v4541_v63, %v4542_v19 }
 0x5e2   :  { %4156 = vmatmul.f32.vlgmr.msra.gmra.mxu2 %v3903_v7 }
 0x5e3   :  { %6973 = vmatpush.msk.msrb.mxu0 %vm10254_vm10, %v11741_v46  ;;  %6978 = vmatpush.msk.msra.mxu2 %vm12247_vm1, %v11741_v46  ;;  %v4544_v44 = vand.u32 4294901760, %v4543_v49  ;;  %v5808_v49 = vand.u32 4294901760, %v5807_v30 }
 0x5e4   :  { %4177 = vmatmul.f32.vlgmr.msra.gmra.mxu3 %v3903_v7  ;;  %6977 = vmatpush.msk.msra.mxu1 %vm10254_vm10, %v11741_v46  ;;  %v5174_v7 = vand.u32 4294901760, %v5173_v43 }
 0x5e5   :  { %4398 = vmatpush.msra.mxu3 %v10644_v41  ;;  %6979 = vmatpush.msk.msra.mxu2 %vm12249_vm15, %v11741_v46 }
 0x5e6   :  { %v5175_v61 = vsub.f32 %v5173_v43, %v5174_v7 }
 0x5e7   :  { %4403 = vmatpush.msra.mxu3 %v10665_v5 }
 0x5e8   :  { %4108 = vmatmul.f32.vlgmr.msra.gmra.mxu0 %v3904_v22  ;;  %4258 = vmatmul.f32.vlgmr.msrb.gmra.mxu1 %v10782_v28  ;;  %v5176_v1 = vand.u32 4294901760, %v5175_v61  ;;  %v3879_v22 = vld.sshfl [vmem:[#allocation1] sm:$0xff pattern:$0x73625140] }
 0x5e9   :  { %4325 = vmatpush.msra.mxu0 %v10522_v38  ;;  %6980 = vmatpush.msk.msrb.mxu1 %vm12247_vm1, %v11741_v46  ;;  %4200 = vst [vmem:[#allocation1] ss:$4 sm:$0xff] %v12250_v27 }
 0x5ea   :  { %4282 = vmatmul.f32.vlgmr.msrb.gmra.mxu2 %v4225_v18 }
 0x5eb   :  { %4328 = vmatpush.msra.mxu0 %v10535_v40  ;;  %4472 = vmatpush.msrb.mxu2 %v10616_v10 }
 0x5ec   :  { %4305 = vmatmul.f32.vlgmr.msrb.gmra.mxu3 %v4226_v3  ;;  %6981 = vmatpush.msk.msrb.mxu1 %vm12249_vm15, %v11741_v46 }
 0x5ed   :  { %6982 = vmatpush.msk.msrb.mxu3 %vm12247_vm1, %v11741_v46  ;;  %4475 = vmatpush.msrb.mxu2 %v10641_v24 }
 0x5ef   :  { %6983 = vmatpush.msk.msrb.mxu3 %vm12249_vm15, %v11741_v46 }
 0x5f0   :  { %4229 = vmatmul.f32.vlgmr.msrb.gmra.mxu0 %v4228_v8  ;;  %4351 = vmatmul.f32.vlgmr.msra.gmra.mxu1 %v10782_v28  ;;  %v11068_v2 = vld.sshfl [vmem:[#allocation1 + $0x8] sm:$0xff pattern:$0x73625140] }
 0x5f1   :  { %4424 = vmatpush.msrb.mxu0 %v10598_v26  ;;  %4567 = vmatpush.msra.mxu1 %v10548_v29 }
 0x5f2   :  { %4376 = vmatmul.f32.vlgmr.msra.gmra.mxu2 %v4228_v8 }
 0x5f3   :  { %4426 = vmatpush.msrb.mxu0 %v10627_v51  ;;  %4593 = vmatpush.msra.mxu2 %v10510_v23 }
 0x5f4   :  { %4405 = vmatmul.f32.vlgmr.msra.gmra.mxu3 %v10782_v28  ;;  %4572 = vmatpush.msra.mxu1 %v10566_v50 }
 0x5f5   :  { %6986 = vmatpush.msk.msra.mxu3 %vm10245_vm14, %v11741_v46  ;;  %4595 = vmatpush.msra.mxu2 %v10525_v31 }
 0x5f7   :  { %6987 = vmatpush.msk.msra.mxu3 %vm10254_vm10, %v11741_v46 }
 0x5f8   :  { %4330 = vmatmul.f32.vlgmr.msra.gmra.mxu0 %v10782_v28  ;;  %4452 = vmatmul.f32.vlgmr.msrb.gmra.mxu1 %v4226_v3 }
 0x5f9   :  { %6984 = vmatpush.msk.msra.mxu0 %vm10245_vm14, %v11741_v46  ;;  %6988 = vmatpush.msk.msrb.mxu1 %vm10245_vm14, %v11741_v46 }
 0x5fa   :  { %4477 = vmatmul.f32.vlgmr.msrb.gmra.mxu2 %v10782_v28 }
 0x5fb   :  { %6985 = vmatpush.msk.msra.mxu0 %vm10254_vm10, %v11741_v46  ;;  %6990 = vmatpush.msk.msrb.mxu2 %vm12247_vm1, %v11741_v46 }
 0x5fc   :  { %4498 = vmatmul.f32.vlgmr.msrb.gmra.mxu3 %v10782_v28  ;;  %6989 = vmatpush.msk.msrb.mxu1 %vm10254_vm10, %v11741_v46 }
 0x5fd   :  { %4714 = vmatpush.msrb.mxu3 %v10644_v41  ;;  %6991 = vmatpush.msk.msrb.mxu2 %vm12249_vm15, %v11741_v46 }
 0x5ff   :  { %4719 = vmatpush.msrb.mxu3 %v10665_v5 }
 0x600   :  { %4429 = vmatmul.f32.vlgmr.msrb.gmra.mxu0 %v4225_v18  ;;  %4574 = vmatmul.f32.vlgmr.msra.gmra.mxu1 %v4540_v32  ;;  %v11066_v18 = vld.sshfl [vmem:[#allocation1] sm:$0xff pattern:$0x73625140] }
 0x601   :  { %4641 = vmatpush.msrb.mxu0 %v10522_v38  ;;  %6992 = vmatpush.msk.msra.mxu1 %vm12247_vm1, %v11741_v46  ;;  %4516 = vst [vmem:[#allocation1] ss:$4 sm:$0xff] %v12251_v59 }
 0x602   :  { %4598 = vmatmul.f32.vlgmr.msra.gmra.mxu2 %v4541_v63 }
 0x603   :  { %4644 = vmatpush.msrb.mxu0 %v10535_v40  ;;  %4788 = vmatpush.msra.mxu2 %v10616_v10 }
 0x604   :  { %4621 = vmatmul.f32.vlgmr.msra.gmra.mxu3 %v4542_v19  ;;  %6993 = vmatpush.msk.msra.mxu1 %vm12249_vm15, %v11741_v46 }
 0x605   :  { %6994 = vmatpush.msk.msra.mxu3 %vm12247_vm1, %v11741_v46  ;;  %4791 = vmatpush.msra.mxu2 %v10641_v24 }
 0x607   :  { %6995 = vmatpush.msk.msra.mxu3 %vm12249_vm15, %v11741_v46 }
 0x608   :  { %4545 = vmatmul.f32.vlgmr.msra.gmra.mxu0 %v4544_v44  ;;  %4667 = vmatmul.f32.vlgmr.msrb.gmra.mxu1 %v4540_v32 }
 0x609   :  { %4740 = vmatpush.msra.mxu0 %v10598_v26  ;;  %4883 = vmatpush.msrb.mxu1 %v10548_v29 }
 0x60a   :  { %4692 = vmatmul.f32.vlgmr.msrb.gmra.mxu2 %v4544_v44 }
 0x60b   :  { %4742 = vmatpush.msra.mxu0 %v10627_v51  ;;  %4909 = vmatpush.msrb.mxu2 %v10510_v23 }
 0x60c   :  { %4721 = vmatmul.f32.vlgmr.msrb.gmra.mxu3 %v4540_v32  ;;  %4888 = vmatpush.msrb.mxu1 %v10566_v50 }
 0x60d   :  { %6998 = vmatpush.msk.msrb.mxu3 %vm10245_vm14, %v11741_v46  ;;  %4911 = vmatpush.msrb.mxu2 %v10525_v31 }
 0x60f   :  { %6999 = vmatpush.msk.msrb.mxu3 %vm10254_vm10, %v11741_v46 }
 0x610   :  { %4646 = vmatmul.f32.vlgmr.msrb.gmra.mxu0 %v4540_v32  ;;  %4768 = vmatmul.f32.vlgmr.msra.gmra.mxu1 %v4542_v19 }
 0x611   :  { %6996 = vmatpush.msk.msrb.mxu0 %vm10245_vm14, %v11741_v46  ;;  %7000 = vmatpush.msk.msra.mxu1 %vm10245_vm14, %v11741_v46 }
 0x612   :  { %4793 = vmatmul.f32.vlgmr.msra.gmra.mxu2 %v4540_v32 }
 0x613   :  { %6997 = vmatpush.msk.msrb.mxu0 %vm10254_vm10, %v11741_v46  ;;  %7002 = vmatpush.msk.msra.mxu2 %vm12247_vm1, %v11741_v46 }
 0x614   :  { %4814 = vmatmul.f32.vlgmr.msra.gmra.mxu3 %v4540_v32  ;;  %7001 = vmatpush.msk.msra.mxu1 %vm10254_vm10, %v11741_v46 }
 0x615   :  { %5030 = vmatpush.msra.mxu3 %v10644_v41  ;;  %7003 = vmatpush.msk.msra.mxu2 %vm12249_vm15, %v11741_v46 }
 0x617   :  { %5035 = vmatpush.msra.mxu3 %v10665_v5 }
 0x618   :  { %4745 = vmatmul.f32.vlgmr.msra.gmra.mxu0 %v4541_v63  ;;  %4890 = vmatmul.f32.vlgmr.msrb.gmra.mxu1 %v4856_v4 }
 0x619   :  { %4957 = vmatpush.msra.mxu0 %v10522_v38  ;;  %7004 = vmatpush.msk.msrb.mxu1 %vm12247_vm1, %v11741_v46 }
 0x61a   :  { %4914 = vmatmul.f32.vlgmr.msrb.gmra.mxu2 %v4857_v13 }
 0x61b   :  { %4960 = vmatpush.msra.mxu0 %v10535_v40  ;;  %5104 = vmatpush.msrb.mxu2 %v10616_v10 }
 0x61c   :  { %4937 = vmatmul.f32.vlgmr.msrb.gmra.mxu3 %v4858_v57  ;;  %7005 = vmatpush.msk.msrb.mxu1 %vm12249_vm15, %v11741_v46 }
 0x61d   :  { %7006 = vmatpush.msk.msrb.mxu3 %vm12247_vm1, %v11741_v46  ;;  %5107 = vmatpush.msrb.mxu2 %v10641_v24 }
 0x61f   :  { %7007 = vmatpush.msk.msrb.mxu3 %vm12249_vm15, %v11741_v46 }
 0x620   :  { %4861 = vmatmul.f32.vlgmr.msrb.gmra.mxu0 %v4860_v16  ;;  %4983 = vmatmul.f32.vlgmr.msra.gmra.mxu1 %v4856_v4 }
 0x621   :  { %5056 = vmatpush.msrb.mxu0 %v10598_v26  ;;  %5199 = vmatpush.msra.mxu1 %v10548_v29 }
 0x622   :  { %5008 = vmatmul.f32.vlgmr.msra.gmra.mxu2 %v4860_v16 }
 0x623   :  { %5058 = vmatpush.msrb.mxu0 %v10627_v51  ;;  %5225 = vmatpush.msra.mxu2 %v10510_v23 }
 0x624   :  { %5037 = vmatmul.f32.vlgmr.msra.gmra.mxu3 %v4856_v4  ;;  %5204 = vmatpush.msra.mxu1 %v10566_v50 }
 0x625   :  { %7010 = vmatpush.msk.msra.mxu3 %vm10245_vm14, %v11741_v46  ;;  %5227 = vmatpush.msra.mxu2 %v10525_v31 }
 0x627   :  { %7011 = vmatpush.msk.msra.mxu3 %vm10254_vm10, %v11741_v46 }
 0x628   :  { %4962 = vmatmul.f32.vlgmr.msra.gmra.mxu0 %v4856_v4  ;;  %5084 = vmatmul.f32.vlgmr.msrb.gmra.mxu1 %v4858_v57 }
 0x629   :  { %7008 = vmatpush.msk.msra.mxu0 %vm10245_vm14, %v11741_v46  ;;  %7012 = vmatpush.msk.msrb.mxu1 %vm10245_vm14, %v11741_v46 }
 0x62a   :  { %5109 = vmatmul.f32.vlgmr.msrb.gmra.mxu2 %v4856_v4 }
 0x62b   :  { %7009 = vmatpush.msk.msra.mxu0 %vm10254_vm10, %v11741_v46  ;;  %7014 = vmatpush.msk.msrb.mxu2 %vm12247_vm1, %v11741_v46 }
 0x62c   :  { %5130 = vmatmul.f32.vlgmr.msrb.gmra.mxu3 %v4856_v4  ;;  %7013 = vmatpush.msk.msrb.mxu1 %vm10254_vm10, %v11741_v46 }
 0x62d   :  { %5346 = vmatpush.msrb.mxu3 %v10644_v41  ;;  %7015 = vmatpush.msk.msrb.mxu2 %vm12249_vm15, %v11741_v46 }
 0x62f   :  { %5351 = vmatpush.msrb.mxu3 %v10665_v5 }
 0x630   :  { %5061 = vmatmul.f32.vlgmr.msrb.gmra.mxu0 %v4857_v13  ;;  %5206 = vmatmul.f32.vlgmr.msra.gmra.mxu1 %v5172_v39 }
 0x631   :  { %5273 = vmatpush.msrb.mxu0 %v10522_v38  ;;  %7016 = vmatpush.msk.msra.mxu1 %vm12247_vm1, %v11741_v46 }
 0x632   :  { %5230 = vmatmul.f32.vlgmr.msra.gmra.mxu2 %v5173_v43 }
 0x633   :  { %5276 = vmatpush.msrb.mxu0 %v10535_v40  ;;  %5420 = vmatpush.msra.mxu2 %v10616_v10 }
 0x634   :  { %5253 = vmatmul.f32.vlgmr.msra.gmra.mxu3 %v5174_v7  ;;  %7017 = vmatpush.msk.msra.mxu1 %vm12249_vm15, %v11741_v46 }
 0x635   :  { %7018 = vmatpush.msk.msra.mxu3 %vm12247_vm1, %v11741_v46  ;;  %5423 = vmatpush.msra.mxu2 %v10641_v24 }
 0x637   :  { %7019 = vmatpush.msk.msra.mxu3 %vm12249_vm15, %v11741_v46 }
 0x638   :  { %5177 = vmatmul.f32.vlgmr.msra.gmra.mxu0 %v5176_v1  ;;  %5299 = vmatmul.f32.vlgmr.msrb.gmra.mxu1 %v5172_v39 }
 0x639   :  { %5372 = vmatpush.msra.mxu0 %v10598_v26  ;;  %5515 = vmatpush.msrb.mxu1 %v10548_v29 }
 0x63a   :  { %5324 = vmatmul.f32.vlgmr.msrb.gmra.mxu2 %v5176_v1 }
 0x63b   :  { %5374 = vmatpush.msra.mxu0 %v10627_v51  ;;  %5541 = vmatpush.msrb.mxu2 %v10510_v23 }
 0x63c   :  { %5353 = vmatmul.f32.vlgmr.msrb.gmra.mxu3 %v5172_v39  ;;  %5520 = vmatpush.msrb.mxu1 %v10566_v50 }
 0x63d   :  { %7022 = vmatpush.msk.msrb.mxu3 %vm10245_vm14, %v11741_v46  ;;  %5543 = vmatpush.msrb.mxu2 %v10525_v31 }
 0x63f   :  { %7023 = vmatpush.msk.msrb.mxu3 %vm10254_vm10, %v11741_v46 }
 0x640   :  { %5278 = vmatmul.f32.vlgmr.msrb.gmra.mxu0 %v5172_v39  ;;  %5400 = vmatmul.f32.vlgmr.msra.gmra.mxu1 %v5174_v7  ;;  %v12252_v7 = vlaneseq }
 0x641   :  { %7020 = vmatpush.msk.msrb.mxu0 %vm10245_vm14, %v11741_v46  ;;  %7024 = vmatpush.msk.msra.mxu1 %vm10245_vm14, %v11741_v46 }
 0x642   :  { %5425 = vmatmul.f32.vlgmr.msra.gmra.mxu2 %v5172_v39  ;;  %vm11132_vm5 = vcmp.lt.s32.totalorder %v12252_v7, 256 }
 0x643   :  { %7021 = vmatpush.msk.msrb.mxu0 %vm10254_vm10, %v11741_v46  ;;  %7026 = vmatpush.msk.msra.mxu2 %vm12247_vm1, %v11741_v46 }
 0x644   :  { %5446 = vmatmul.f32.vlgmr.msra.gmra.mxu3 %v5172_v39  ;;  %7025 = vmatpush.msk.msra.mxu1 %vm10254_vm10, %v11741_v46 }
 0x645   :  { %5662 = vmatpush.msra.mxu3 %v10644_v41  ;;  %7027 = vmatpush.msk.msra.mxu2 %vm12249_vm15, %v11741_v46 }
 0x647   :  { %5667 = vmatpush.msra.mxu3 %v10665_v5 }
 0x648   :  { %5377 = vmatmul.f32.vlgmr.msra.gmra.mxu0 %v5173_v43  ;;  %5522 = vmatmul.f32.vlgmr.msrb.gmra.mxu1 %v10994_v17 }
 0x649   :  { %5589 = vmatpush.msra.mxu0 %v10522_v38  ;;  %7028 = vmatpush.msk.msrb.mxu1 %vm12247_vm1, %v11741_v46 }
 0x64a   :  { %5546 = vmatmul.f32.vlgmr.msrb.gmra.mxu2 %v11010_v60 }
 0x64b   :  { %5592 = vmatpush.msra.mxu0 %v10535_v40  ;;  %5736 = vmatpush.msrb.mxu2 %v10616_v10 }
 0x64c   :  { %5569 = vmatmul.f32.vlgmr.msrb.gmra.mxu3 %v5490_v56  ;;  %7029 = vmatpush.msk.msrb.mxu1 %vm12249_vm15, %v11741_v46 }
 0x64d   :  { %v3938_v0 = vpop.f32.mrf.mxu1  ;;  %7030 = vmatpush.msk.msrb.mxu3 %vm12247_vm1, %v11741_v46  ;;  %5739 = vmatpush.msrb.mxu2 %v10641_v24 }
 0x64f   :  { %7031 = vmatpush.msk.msrb.mxu3 %vm12249_vm15, %v11741_v46 }
 0x650   :  { %5493 = vmatmul.f32.vlgmr.msrb.gmra.mxu0 %v5492_v6  ;;  %5615 = vmatmul.f32.vlgmr.msra.gmra.mxu1 %v10994_v17 }
 0x651   :  { %5688 = vmatpush.msrb.mxu0 %v10598_v26  ;;  %5831 = vmatpush.msra.mxu1 %v10548_v29 }
 0x652   :  { %5640 = vmatmul.f32.vlgmr.msra.gmra.mxu2 %v5492_v6 }
 0x653   :  { %5690 = vmatpush.msrb.mxu0 %v10627_v51  ;;  %5857 = vmatpush.msra.mxu2 %v10510_v23 }
 0x654   :  { %5669 = vmatmul.f32.vlgmr.msra.gmra.mxu3 %v10994_v17  ;;  %5836 = vmatpush.msra.mxu1 %v10566_v50 }
 0x655   :  { %v3909_v42 = vpop.f32.mrf.mxu0  ;;  %v3962_v21 = vpop.f32.mrf.mxu2  ;;  %7034 = vmatpush.msk.msra.mxu3 %vm10245_vm14, %v11741_v46  ;;  %5859 = vmatpush.msra.mxu2 %v10525_v31 }
 0x656   :  { %v11057_v28 = vpop.f32.mrf.mxu1  ;;  %v3910_v45 = vadd.f32 %v3909_v42, %v3879_v22  ;;  %v11147_v22 = vld.sshfl [vmem:[#allocation1] sm:$0xff pattern:$0x73625140] }
 0x657   :  { %v3985_v55 = vpop.f32.mrf.mxu3  ;;  %7035 = vmatpush.msk.msra.mxu3 %vm10254_vm10, %v11741_v46 }
 0x658   :  { %5594 = vmatmul.f32.vlgmr.msra.gmra.mxu0 %v10994_v17  ;;  %5716 = vmatmul.f32.vlgmr.msrb.gmra.mxu1 %v5490_v56  ;;  %v3939_v34 = vadd.f32 %v3938_v0, %v3910_v45 }
 0x659   :  { %7032 = vmatpush.msk.msra.mxu0 %vm10245_vm14, %v11741_v46  ;;  %7036 = vmatpush.msk.msrb.mxu1 %vm10245_vm14, %v11741_v46 }
 0x65a   :  { %5741 = vmatmul.f32.vlgmr.msrb.gmra.mxu2 %v10994_v17  ;;  %v3963_v53 = vadd.f32 %v3962_v21, %v3939_v34 }
 0x65b   :  { %7033 = vmatpush.msk.msra.mxu0 %vm10254_vm10, %v11741_v46  ;;  %7038 = vmatpush.msk.msrb.mxu2 %vm12247_vm1, %v11741_v46 }
 0x65c   :  { %5762 = vmatmul.f32.vlgmr.msrb.gmra.mxu3 %v10994_v17  ;;  %7037 = vmatpush.msk.msrb.mxu1 %vm10254_vm10, %v11741_v46  ;;  %v3986_v32 = vadd.f32 %v3985_v55, %v3963_v53  ;;  %v12256_v53 = vld [vmem:[#allocation18_spill] sm:$0xff] }
 0x65d   :  { %v4010_v9 = vpop.f32.mrf.mxu0  ;;  %v4056_v3 = vpop.f32.mrf.mxu2  ;;  %5978 = vmatpush.msrb.mxu3 %v10644_v41  ;;  %7039 = vmatpush.msk.msrb.mxu2 %vm12249_vm15, %v11741_v46 }
 0x65e   :  { %v4132_v33 = vpop.f32.mrf.mxu1  ;;  %v4057_v20 = vadd.f32 %v4056_v3, %v10999_v62  ;;  %v4011_v13 = vadd.f32 %v4010_v9, %v3986_v32  ;;  %v11149_v62 = vld.sshfl [vmem:[#allocation1 + $0x8] sm:$0xff pattern:$0x73625140] }
 0x65f   :  { %v4085_v48 = vpop.f32.mrf.mxu3  ;;  %5983 = vmatpush.msrb.mxu3 %v10665_v5  ;;  %4832 = vst [vmem:[#allocation1] ss:$4 sm:$0xff] %v12255_v54 }
 0x660   :  { %5693 = vmatmul.f32.vlgmr.msrb.gmra.mxu0 %v11010_v60  ;;  %5838 = vmatmul.f32.vlgmr.msra.gmra.mxu1 %v11060_v15  ;;  %v4086_v8 = vadd.f32 %v4085_v48, %v4057_v20 }
 0x661   :  { %5905 = vmatpush.msrb.mxu0 %v10522_v38  ;;  %7040 = vmatpush.msk.msra.mxu1 %vm12247_vm1, %v11741_v46 }
 0x662   :  { %5862 = vmatmul.f32.vlgmr.msra.gmra.mxu2 %v11080_v58 }
 0x663   :  { %5908 = vmatpush.msrb.mxu0 %v10535_v40  ;;  %6052 = vmatpush.msra.mxu2 %v10616_v10 }
 0x664   :  { %5885 = vmatmul.f32.vlgmr.msra.gmra.mxu3 %v5806_v11  ;;  %7041 = vmatpush.msk.msra.mxu1 %vm12249_vm15, %v11741_v46 }
 0x665   :  { %v4109_v14 = vpop.f32.mrf.mxu0  ;;  %v4157_v37 = vpop.f32.mrf.mxu2  ;;  %7042 = vmatpush.msk.msra.mxu3 %vm12247_vm1, %v11741_v46  ;;  %6055 = vmatpush.msra.mxu2 %v10641_v24 }
 0x666   :  { %v4110_v63 = vadd.f32 %v4109_v14, %v4086_v8  ;;  %v4259_v19 = vpop.f32.mrf.mxu1  ;;  %v4834_v48 = vld.sshfl [vmem:[#allocation1 + $0x8] sm:$0xff pattern:$0x73625140] }
 0x667   :  { %v4178_v44 = vpop.f32.mrf.mxu3  ;;  %7043 = vmatpush.msk.msra.mxu3 %vm12249_vm15, %v11741_v46 }
 0x668   :  { %v4133_v4 = vadd.f32 %v4132_v33, %v4110_v63  ;;  %5809 = vmatmul.f32.vlgmr.msra.gmra.mxu0 %v5808_v49  ;;  %5931 = vmatmul.f32.vlgmr.msrb.gmra.mxu1 %v11060_v15 }
 0x669   :  { %6004 = vmatpush.msra.mxu0 %v10598_v26  ;;  %6147 = vmatpush.msrb.mxu1 %v10548_v29  ;;  %v4032_v29 = vadd.f32 %v11057_v28, %v4011_v13 }
 0x66a   :  { %v4158_v57 = vadd.f32 %v4157_v37, %v4133_v4  ;;  %5956 = vmatmul.f32.vlgmr.msrb.gmra.mxu2 %v5808_v49 }
 0x66b   :  { %6006 = vmatpush.msra.mxu0 %v10627_v51  ;;  %6173 = vmatpush.msrb.mxu2 %v10510_v23 }
 0x66c   :  { %v4179_v36 = vadd.f32 %v4178_v44, %v4158_v57  ;;  %5985 = vmatmul.f32.vlgmr.msrb.gmra.mxu3 %v11060_v15  ;;  %6152 = vmatpush.msrb.mxu1 %v10566_v50  ;;  %v11139_v50 = vand.u32 4294901760, %v10753_v25 }
 0x66d   :  { %v4230_v16 = vpop.f32.mrf.mxu0  ;;  %v4283_v39 = vpop.f32.mrf.mxu2  ;;  %7046 = vmatpush.msk.msrb.mxu3 %vm10245_vm14, %v11741_v46  ;;  %6175 = vmatpush.msrb.mxu2 %v10525_v31 }
 0x66e   :  { %v4183_v43 = vrot.slane %v4179_v36, 7  ;;  %v11136_v61 = vpop.f32.mrf.mxu1  ;;  %v4231_v60 = vadd.f32 %v4230_v16, %v11066_v18  ;;  %v11163_v56 = vsub.f32 %v10753_v25, %v11139_v50 }
 0x66f   :  { %v4306_v1 = vpop.f32.mrf.mxu3  ;;  %7047 = vmatpush.msk.msrb.mxu3 %vm10254_vm10, %v11741_v46 }
 0x670   :  { %v4185_v31 = vsel %vm4184_vm11, %v4032_v29, %v4183_v43  ;;  %v4187_v17 = vsel %vm4186_vm9, %v4032_v29, %v4183_v43  ;;  %5910 = vmatmul.f32.vlgmr.msrb.gmra.mxu0 %v11060_v15  ;;  %6032 = vmatmul.f32.vlgmr.msra.gmra.mxu1 %v5806_v11  ;;  %v4260_v0 = vadd.f32 %v4259_v19, %v4231_v60  ;;  %v6122_v42 = vand.u32 4294901760, %v11163_v56 }
 0x671   :  { %v4188_v27 = vrot.slane %v4187_v17, 1  ;;  %4195 = vst.msk [vmem:[#allocation9] ss:$8 sm:$0x3] %vm11132_vm5, %v4185_v31  ;;  %7044 = vmatpush.msk.msrb.mxu0 %vm10245_vm14, %v11741_v46  ;;  %7048 = vmatpush.msk.msra.mxu1 %vm10245_vm14, %v11741_v46 }
 0x672   :  { %6057 = vmatmul.f32.vlgmr.msra.gmra.mxu2 %v11060_v15  ;;  %v4284_v12 = vadd.f32 %v4283_v39, %v4260_v0 }
 0x673   :  { %4198 = vst.msk [vmem:[#allocation9 + $0x10] ss:$8 sm:$0x3] %vm11132_vm5, %v4188_v27  ;;  %7045 = vmatpush.msk.msrb.mxu0 %vm10254_vm10, %v11741_v46  ;;  %7050 = vmatpush.msk.msra.mxu2 %vm12247_vm1, %v11741_v46 }
 0x674   :  { %6078 = vmatmul.f32.vlgmr.msra.gmra.mxu3 %v11060_v15  ;;  %7049 = vmatpush.msk.msra.mxu1 %vm10254_vm10, %v11741_v46  ;;  %v4307_v55 = vadd.f32 %v4306_v1, %v4284_v12 }
 0x675   :  { %v4331_v47 = vpop.f32.mrf.mxu0  ;;  %v4377_v25 = vpop.f32.mrf.mxu2  ;;  %6294 = vmatpush.msra.mxu3 %v10644_v41  ;;  %7051 = vmatpush.msk.msra.mxu2 %vm12249_vm15, %v11741_v46  ;;  %v6123_v41 = vsub.f32 %v11163_v56, %v6122_v42 }
 0x676   :  { %v4453_v6 = vpop.f32.mrf.mxu1  ;;  %v4378_v28 = vadd.f32 %v4377_v25, %v11068_v2  ;;  %v4332_v45 = vadd.f32 %v4331_v47, %v4307_v55  ;;  %v12257_v25 = vld [vmem:[#allocation19_spill] sm:$0xff] }
 0x677   :  { %v4406_v21 = vpop.f32.mrf.mxu3  ;;  %6299 = vmatpush.msra.mxu3 %v10665_v5 }
 0x678   :  { %6009 = vmatmul.f32.vlgmr.msra.gmra.mxu0 %v11080_v58  ;;  %6154 = vmatmul.f32.vlgmr.msrb.gmra.mxu1 %v11139_v50  ;;  %v4407_v5 = vadd.f32 %v4406_v21, %v4378_v28  ;;  %v4353_v3 = vadd.f32 %v11136_v61, %v4332_v45 }
 0x679   :  { %6221 = vmatpush.msra.mxu0 %v10522_v38  ;;  %7052 = vmatpush.msk.msrb.mxu1 %vm12247_vm1, %v11741_v46 }
 0x67a   :  { %6178 = vmatmul.f32.vlgmr.msrb.gmra.mxu2 %v11163_v56 }
 0x67b   :  { %6224 = vmatpush.msra.mxu0 %v10535_v40  ;;  %6368 = vmatpush.msrb.mxu2 %v10616_v10  ;;  %v6124_v40 = vand.u32 4294901760, %v6123_v41 }
 0x67c   :  { %6201 = vmatmul.f32.vlgmr.msrb.gmra.mxu3 %v6122_v42  ;;  %7053 = vmatpush.msk.msrb.mxu1 %vm12249_vm15, %v11741_v46 }
 0x67d   :  { %v4430_v38 = vpop.f32.mrf.mxu0  ;;  %v4478_v15 = vpop.f32.mrf.mxu2  ;;  %7054 = vmatpush.msk.msrb.mxu3 %vm12247_vm1, %v11741_v46  ;;  %6371 = vmatpush.msrb.mxu2 %v10641_v24 }
 0x67e   :  { %v4431_v18 = vadd.f32 %v4430_v38, %v4407_v5  ;;  %v4575_v2 = vpop.f32.mrf.mxu1 }
 0x67f   :  { %v4499_v59 = vpop.f32.mrf.mxu3  ;;  %7055 = vmatpush.msk.msrb.mxu3 %vm12249_vm15, %v11741_v46 }
 0x680   :  { %v4454_v10 = vadd.f32 %v4453_v6, %v4431_v18  ;;  %6125 = vmatmul.f32.vlgmr.msrb.gmra.mxu0 %v6124_v40  ;;  %6247 = vmatmul.f32.vlgmr.msra.gmra.mxu1 %v11139_v50 }
 0x681   :  { %6320 = vmatpush.msrb.mxu0 %v10598_v26  ;;  %v4833_v26 = vld.sshfl [vmem:[#allocation1] sm:$0xff pattern:$0x73625140] }
 0x682   :  { %v4479_v35 = vadd.f32 %v4478_v15, %v4454_v10  ;;  %6272 = vmatmul.f32.vlgmr.msra.gmra.mxu2 %v6124_v40  ;;  %5148 = vst [vmem:[#allocation1] ss:$4 sm:$0xff] %v12256_v53 }
 0x683   :  { %6322 = vmatpush.msrb.mxu0 %v10627_v51 }
 0x684   :  { %v4500_v24 = vadd.f32 %v4499_v59, %v4479_v35  ;;  %6301 = vmatmul.f32.vlgmr.msra.gmra.mxu3 %v11139_v50 }
 0x685   :  { %v4546_v58 = vpop.f32.mrf.mxu0  ;;  %v4599_v9 = vpop.f32.mrf.mxu2 }
 0x686   :  { %v4504_v52 = vrot.slane %v4500_v24, 7  ;;  %v4668_v46 = vpop.f32.mrf.mxu1  ;;  %v4547_v20 = vadd.f32 %v4546_v58, %v11147_v22 }
 0x687   :  { %v4622_v34 = vpop.f32.mrf.mxu3 }
 0x688   :  { %v4505_v33 = vsel %vm4184_vm11, %v4353_v3, %v4504_v52  ;;  %v4506_v11 = vsel %vm4186_vm9, %v4353_v3, %v4504_v52  ;;  %6226 = vmatmul.f32.vlgmr.msra.gmra.mxu0 %v11139_v50  ;;  %6348 = vmatmul.f32.vlgmr.msrb.gmra.mxu1 %v6122_v42  ;;  %v4576_v14 = vadd.f32 %v4575_v2, %v4547_v20  ;;  %v12258_v20 = vld [vmem:[#allocation20_spill] sm:$0xff] }
 0x689   :  { %v4507_v51 = vrot.slane %v4506_v11, 1  ;;  %4511 = vst.msk [vmem:[#allocation9 + $0x1] ss:$8 sm:$0x3] %vm11132_vm5, %v4505_v33 }
 0x68a   :  { %6373 = vmatmul.f32.vlgmr.msrb.gmra.mxu2 %v11139_v50  ;;  %v4600_v19 = vadd.f32 %v4599_v9, %v4576_v14  ;;  %v5149_v60 = vld.sshfl [vmem:[#allocation1] sm:$0xff pattern:$0x73625140] }
 0x68b   :  { %4514 = vst.msk [vmem:[#allocation9 + $0x11] ss:$8 sm:$0x3] %vm11132_vm5, %v4507_v51 }
 0x68c   :  { %6394 = vmatmul.f32.vlgmr.msrb.gmra.mxu3 %v11139_v50  ;;  %v4623_v13 = vadd.f32 %v4622_v34, %v4600_v19 }
 0x68d   :  { %v4647_v30 = vpop.f32.mrf.mxu0  ;;  %v4693_v8 = vpop.f32.mrf.mxu2 }
 0x68e   :  { %v4769_v37 = vpop.f32.mrf.mxu1  ;;  %v4694_v63 = vadd.f32 %v4693_v8, %v11149_v62  ;;  %v4648_v29 = vadd.f32 %v4647_v30, %v4623_v13 }
 0x68f   :  { %v4722_v32 = vpop.f32.mrf.mxu3 }
 0x690   :  { %6325 = vmatmul.f32.vlgmr.msrb.gmra.mxu0 %v11163_v56  ;;  %v4723_v49 = vadd.f32 %v4722_v32, %v4694_v63  ;;  %v4669_v1 = vadd.f32 %v4668_v46, %v4648_v29  ;;  %v5150_v56 = vld.sshfl [vmem:[#allocation1 + $0x8] sm:$0xff pattern:$0x73625140] }
 0x691   :  { %5464 = vst [vmem:[#allocation1] ss:$4 sm:$0xff] %v12257_v25 }
 0x695   :  { %v4746_v44 = vpop.f32.mrf.mxu0  ;;  %v4794_v4 = vpop.f32.mrf.mxu2 }
 0x696   :  { %v4747_v57 = vadd.f32 %v4746_v44, %v4723_v49  ;;  %v4891_v36 = vpop.f32.mrf.mxu1 }
 0x697   :  { %v4815_v16 = vpop.f32.mrf.mxu3 }
 0x698   :  { %v4770_v39 = vadd.f32 %v4769_v37, %v4747_v57  ;;  %v5465_v11 = vld.sshfl [vmem:[#allocation1] sm:$0xff pattern:$0x73625140] }
 0x69a   :  { %v4795_v43 = vadd.f32 %v4794_v4, %v4770_v39 }
 0x69c   :  { %v4816_v7 = vadd.f32 %v4815_v16, %v4795_v43 }
 0x69d   :  { %v4862_v61 = vpop.f32.mrf.mxu0  ;;  %v4915_v50 = vpop.f32.mrf.mxu2 }
 0x69e   :  { %v4820_v31 = vrot.slane %v4816_v7, 7  ;;  %v4984_v17 = vpop.f32.mrf.mxu1  ;;  %v4863_v47 = vadd.f32 %v4862_v61, %v4833_v26  ;;  %v5466_v26 = vld.sshfl [vmem:[#allocation1 + $0x8] sm:$0xff pattern:$0x73625140] }
 0x69f   :  { %v4938_v22 = vpop.f32.mrf.mxu3  ;;  %5780 = vst [vmem:[#allocation1] ss:$4 sm:$0xff] %v12258_v20 }
 0x6a0   :  { %v4821_v62 = vsel %vm4184_vm11, %v4669_v1, %v4820_v31  ;;  %v4822_v27 = vsel %vm4186_vm9, %v4669_v1, %v4820_v31  ;;  %v4892_v42 = vadd.f32 %v4891_v36, %v4863_v47  ;;  %v12259_v47 = vld [vmem:[#allocation21_spill] sm:$0xff] }
 0x6a1   :  { %v4823_v54 = vrot.slane %v4822_v27, 1  ;;  %4827 = vst.msk [vmem:[#allocation9 + $0x2] ss:$8 sm:$0x3] %vm11132_vm5, %v4821_v62 }
 0x6a2   :  { %v4916_v41 = vadd.f32 %v4915_v50, %v4892_v42 }
 0x6a3   :  { %4830 = vst.msk [vmem:[#allocation9 + $0x12] ss:$8 sm:$0x3] %vm11132_vm5, %v4823_v54 }
 0x6a4   :  { %v4939_v55 = vadd.f32 %v4938_v22, %v4916_v41 }
 0x6a5   :  { %v4963_v0 = vpop.f32.mrf.mxu0  ;;  %v5009_v6 = vpop.f32.mrf.mxu2 }
 0x6a6   :  { %v5085_v21 = vpop.f32.mrf.mxu1  ;;  %v5010_v12 = vadd.f32 %v5009_v6, %v4834_v48  ;;  %v4964_v10 = vadd.f32 %v4963_v0, %v4939_v55  ;;  %v5781_v27 = vld.sshfl [vmem:[#allocation1] sm:$0xff pattern:$0x73625140] }
 0x6a7   :  { %v5038_v28 = vpop.f32.mrf.mxu3 }
 0x6a8   :  { %v5039_v5 = vadd.f32 %v5038_v28, %v5010_v12  ;;  %v4985_v9 = vadd.f32 %v4984_v17, %v4964_v10 }
 0x6ad   :  { %v5062_v38 = vpop.f32.mrf.mxu0  ;;  %v5110_v15 = vpop.f32.mrf.mxu2 }
 0x6ae   :  { %v5063_v18 = vadd.f32 %v5062_v38, %v5039_v5  ;;  %v5207_v2 = vpop.f32.mrf.mxu1 }
 0x6af   :  { %v5131_v40 = vpop.f32.mrf.mxu3 }
 0x6b0   :  { %v5086_v59 = vadd.f32 %v5085_v21, %v5063_v18 }
 0x6b2   :  { %v5111_v45 = vadd.f32 %v5110_v15, %v5086_v59 }
 0x6b4   :  { %v5132_v35 = vadd.f32 %v5131_v40, %v5111_v45 }
 0x6b5   :  { %v5178_v24 = vpop.f32.mrf.mxu0  ;;  %v5231_v58 = vpop.f32.mrf.mxu2 }
 0x6b6   :  { %v5136_v3 = vrot.slane %v5132_v35, 7  ;;  %v5300_v52 = vpop.f32.mrf.mxu1  ;;  %v5179_v51 = vadd.f32 %v5178_v24, %v5149_v60  ;;  %v5782_v60 = vld.sshfl [vmem:[#allocation1 + $0x8] sm:$0xff pattern:$0x73625140] }
 0x6b7   :  { %v5254_v46 = vpop.f32.mrf.mxu3  ;;  %6096 = vst [vmem:[#allocation1] ss:$4 sm:$0xff] %v12259_v47 }
 0x6b8   :  { %v5137_v34 = vsel %vm4184_vm11, %v4985_v9, %v5136_v3  ;;  %v5138_v33 = vsel %vm4186_vm9, %v4985_v9, %v5136_v3  ;;  %v5208_v8 = vadd.f32 %v5207_v2, %v5179_v51 }
 0x6b9   :  { %v5139_v48 = vrot.slane %v5138_v33, 1  ;;  %5143 = vst.msk [vmem:[#allocation9 + $0x3] ss:$8 sm:$0x3] %vm11132_vm5, %v5137_v34 }
 0x6ba   :  { %v5232_v63 = vadd.f32 %v5231_v58, %v5208_v8 }
 0x6bb   :  { %5146 = vst.msk [vmem:[#allocation9 + $0x13] ss:$8 sm:$0x3] %vm11132_vm5, %v5139_v48 }
 0x6bc   :  { %v5255_v4 = vadd.f32 %v5254_v46, %v5232_v63 }
 0x6bd   :  { %v5279_v53 = vpop.f32.mrf.mxu0  ;;  %v5325_v30 = vpop.f32.mrf.mxu2 }
 0x6be   :  { %v5401_v14 = vpop.f32.mrf.mxu1  ;;  %v5326_v32 = vadd.f32 %v5325_v30, %v5150_v56  ;;  %v5280_v39 = vadd.f32 %v5279_v53, %v5255_v4 }
 0x6bf   :  { %v5354_v37 = vpop.f32.mrf.mxu3 }
 0x6c0   :  { %v5355_v19 = vadd.f32 %v5354_v37, %v5326_v32  ;;  %v5301_v50 = vadd.f32 %v5300_v52, %v5280_v39 }
 0x6c5   :  { %v5378_v49 = vpop.f32.mrf.mxu0  ;;  %v5426_v44 = vpop.f32.mrf.mxu2 }
 0x6c6   :  { %v5379_v13 = vadd.f32 %v5378_v49, %v5355_v19  ;;  %v5523_v57 = vpop.f32.mrf.mxu1 }
 0x6c7   :  { %v5447_v36 = vpop.f32.mrf.mxu3 }
 0x6c8   :  { %v5402_v16 = vadd.f32 %v5401_v14, %v5379_v13 }
 0x6ca   :  { %v5427_v29 = vadd.f32 %v5426_v44, %v5402_v16 }
 0x6cc   :  { %v5448_v43 = vadd.f32 %v5447_v36, %v5427_v29 }
 0x6cd   :  { %v5494_v7 = vpop.f32.mrf.mxu0  ;;  %v5547_v61 = vpop.f32.mrf.mxu2 }
 0x6ce   :  { %v5452_v1 = vrot.slane %v5448_v43, 7  ;;  %v5616_v31 = vpop.f32.mrf.mxu1  ;;  %v5495_v54 = vadd.f32 %v5494_v7, %v5465_v11  ;;  %v6097_v7 = vld.sshfl [vmem:[#allocation1] sm:$0xff pattern:$0x73625140] }
 0x6cf   :  { %v5570_v17 = vpop.f32.mrf.mxu3 }
 0x6d0   :  { %v5453_v22 = vsel %vm4184_vm11, %v5301_v50, %v5452_v1  ;;  %v5454_v62 = vsel %vm4186_vm9, %v5301_v50, %v5452_v1  ;;  %v5524_v6 = vadd.f32 %v5523_v57, %v5495_v54 }
 0x6d1   :  { %v5455_v56 = vrot.slane %v5454_v62, 1  ;;  %5459 = vst.msk [vmem:[#allocation9 + $0x4] ss:$8 sm:$0x3] %vm11132_vm5, %v5453_v22 }
 0x6d2   :  { %v5548_v12 = vadd.f32 %v5547_v61, %v5524_v6 }
 0x6d3   :  { %5462 = vst.msk [vmem:[#allocation9 + $0x14] ss:$8 sm:$0x3] %vm11132_vm5, %v5455_v56 }
 0x6d4   :  { %v5571_v15 = vadd.f32 %v5570_v17, %v5548_v12 }
 0x6d5   :  { %v5595_v25 = vpop.f32.mrf.mxu0  ;;  %v5641_v0 = vpop.f32.mrf.mxu2 }
 0x6d6   :  { %v5717_v42 = vpop.f32.mrf.mxu1  ;;  %v5642_v28 = vadd.f32 %v5641_v0, %v5466_v26  ;;  %v5596_v59 = vadd.f32 %v5595_v25, %v5571_v15 }
 0x6d7   :  { %v5670_v21 = vpop.f32.mrf.mxu3 }
 0x6d8   :  { %v5671_v41 = vadd.f32 %v5670_v21, %v5642_v28  ;;  %v5617_v58 = vadd.f32 %v5616_v31, %v5596_v59 }
 0x6dd   :  { %v5694_v5 = vpop.f32.mrf.mxu0  ;;  %v5742_v38 = vpop.f32.mrf.mxu2 }
 0x6de   :  { %v5695_v55 = vadd.f32 %v5694_v5, %v5671_v41  ;;  %v5839_v18 = vpop.f32.mrf.mxu1 }
 0x6df   :  { %v5763_v2 = vpop.f32.mrf.mxu3 }
 0x6e0   :  { %v5718_v40 = vadd.f32 %v5717_v42, %v5695_v55 }
 0x6e2   :  { %v5743_v10 = vadd.f32 %v5742_v38, %v5718_v40 }
 0x6e4   :  { %v5764_v45 = vadd.f32 %v5763_v2, %v5743_v10 }
 0x6e5   :  { %v5810_v35 = vpop.f32.mrf.mxu0  ;;  %v5863_v24 = vpop.f32.mrf.mxu2 }
 0x6e6   :  { %v5768_v9 = vrot.slane %v5764_v45, 7  ;;  %v5932_v3 = vpop.f32.mrf.mxu1  ;;  %v5811_v11 = vadd.f32 %v5810_v35, %v5781_v27  ;;  %v6098_v27 = vld.sshfl [vmem:[#allocation1 + $0x8] sm:$0xff pattern:$0x73625140] }
 0x6e7   :  { %v5886_v52 = vpop.f32.mrf.mxu3 }
 0x6e8   :  { %v5769_v46 = vsel %vm4184_vm11, %v5617_v58, %v5768_v9  ;;  %v5770_v34 = vsel %vm4186_vm9, %v5617_v58, %v5768_v9  ;;  %v5840_v51 = vadd.f32 %v5839_v18, %v5811_v11 }
 0x6e9   :  { %v5771_v33 = vrot.slane %v5770_v34, 1  ;;  %5775 = vst.msk [vmem:[#allocation9 + $0x5] ss:$8 sm:$0x3] %vm11132_vm5, %v5769_v46 }
 0x6ea   :  { %v5864_v8 = vadd.f32 %v5863_v24, %v5840_v51 }
 0x6eb   :  { %5778 = vst.msk [vmem:[#allocation9 + $0x15] ss:$8 sm:$0x3] %vm11132_vm5, %v5771_v33 }
 0x6ec   :  { %v5887_v63 = vadd.f32 %v5886_v52, %v5864_v8 }
 0x6ed   :  { %v5911_v26 = vpop.f32.mrf.mxu0  ;;  %v5957_v48 = vpop.f32.mrf.mxu2 }
 0x6ee   :  { %v5958_v53 = vadd.f32 %v5957_v48, %v5782_v60  ;;  %v6033_v30 = vpop.f32.mrf.mxu1  ;;  %v5912_v4 = vadd.f32 %v5911_v26, %v5887_v63 }
 0x6ef   :  { %v5986_v20 = vpop.f32.mrf.mxu3 }
 0x6f0   :  { %v5987_v14 = vadd.f32 %v5986_v20, %v5958_v53  ;;  %v5933_v29 = vadd.f32 %v5932_v3, %v5912_v4 }
 0x6f5   :  { %v6010_v37 = vpop.f32.mrf.mxu0  ;;  %v6058_v32 = vpop.f32.mrf.mxu2 }
 0x6f6   :  { %v6011_v19 = vadd.f32 %v6010_v37, %v5987_v14  ;;  %v6155_v57 = vpop.f32.mrf.mxu1 }
 0x6f7   :  { %v6079_v49 = vpop.f32.mrf.mxu3 }
 0x6f8   :  { %v6034_v44 = vadd.f32 %v6033_v30, %v6011_v19 }
 0x6fa   :  { %v6059_v13 = vadd.f32 %v6058_v32, %v6034_v44 }
 0x6fc   :  { %v6080_v36 = vadd.f32 %v6079_v49, %v6059_v13 }
 0x6fd   :  { %v6126_v16 = vpop.f32.mrf.mxu0  ;;  %v6179_v39 = vpop.f32.mrf.mxu2 }
 0x6fe   :  { %v6084_v43 = vrot.slane %v6080_v36, 7  ;;  %v6127_v17 = vadd.f32 %v6126_v16, %v6097_v7  ;;  %v6248_v22 = vpop.f32.mrf.mxu1 }
 0x6ff   :  { %v6202_v61 = vpop.f32.mrf.mxu3 }
 0x700   :  { %v6085_v50 = vsel %vm4184_vm11, %v5933_v29, %v6084_v43  ;;  %v6086_v1 = vsel %vm4186_vm9, %v5933_v29, %v6084_v43  ;;  %v6156_v56 = vadd.f32 %v6155_v57, %v6127_v17 }
 0x701   :  { %v6087_v31 = vrot.slane %v6086_v1, 1  ;;  %6091 = vst.msk [vmem:[#allocation9 + $0x6] ss:$8 sm:$0x3] %vm11132_vm5, %v6085_v50 }
 0x702   :  { %v6180_v25 = vadd.f32 %v6179_v39, %v6156_v56 }
 0x703   :  { %6094 = vst.msk [vmem:[#allocation9 + $0x16] ss:$8 sm:$0x3] %vm11132_vm5, %v6087_v31 }
 0x704   :  { %v6203_v42 = vadd.f32 %v6202_v61, %v6180_v25 }
 0x705   :  { %v6227_v62 = vpop.f32.mrf.mxu0  ;;  %v6273_v60 = vpop.f32.mrf.mxu2 }
 0x706   :  { %v6274_v54 = vadd.f32 %v6273_v60, %v6098_v27  ;;  %v6349_v28 = vpop.f32.mrf.mxu1  ;;  %v6228_v5 = vadd.f32 %v6227_v62, %v6203_v42 }
 0x707   :  { %v6302_v47 = vpop.f32.mrf.mxu3 }
 0x708   :  { %v6303_v0 = vadd.f32 %v6302_v47, %v6274_v54  ;;  %v6249_v18 = vadd.f32 %v6248_v22, %v6228_v5 }
 0x70d   :  { %v6326_v6 = vpop.f32.mrf.mxu0  ;;  %v6374_v41 = vpop.f32.mrf.mxu2 }
 0x70e   :  { %v6327_v21 = vadd.f32 %v6326_v6, %v6303_v0 }
 0x70f   :  { %v6395_v15 = vpop.f32.mrf.mxu3 }
 0x710   :  { %v6350_v12 = vadd.f32 %v6349_v28, %v6327_v21 }
 0x712   :  { %v6375_v38 = vadd.f32 %v6374_v41, %v6350_v12 }
 0x714   :  { %v6396_v55 = vadd.f32 %v6395_v15, %v6375_v38 }
 0x716   :  { %v6400_v2 = vrot.slane %v6396_v55, 7 }
 0x718   :  { %v6401_v40 = vsel %vm4184_vm11, %v6249_v18, %v6400_v2  ;;  %v6402_v59 = vsel %vm4186_vm9, %v6249_v18, %v6400_v2 }
 0x719   :  { %v6403_v10 = vrot.slane %v6402_v59, 1  ;;  %6407 = vst.msk [vmem:[#allocation9 + $0x7] ss:$8 sm:$0x3] %vm11132_vm5, %v6401_v40 }
 0x71b   :  { %6410 = vst.msk [vmem:[#allocation9 + $0x17] ss:$8 sm:$0x3] %vm11132_vm5, %v6403_v10 }
 0x71c   :  { %6424 = dma.vmem_to_hbm [thread:$0]  %s6417_s15, 512, %s6419_s18, [#allocation4], %s7231_s22, %s7231_s22, %s7232_s23  }
 0x71d   :  { %7227 = dma.done.wait [#allocation4], 512  }
 0x71e   :  { %7228 = vsyncadd [#allocation4], 4294966784 }
 0x71f   :  { %6429 = vsyncpa [#allocation3], 1 }
 0x720   :  { %6430 = vsyncpa [#allocation7], 1 }
 0x721   :  { %6431 = vsyncpa [#allocation4], 1 }
 0x722   :  { %6432 = vsyncpa [#allocation5], 1 }

</bundles_post_ra>
